<compile_context>
chip_gen: v6e
topology: v6e:2x2x1
jax: 0.10.0
libtpu: 0.0.40
codegen_flags: <defaults>
</compile_context>

<pallas_src>
import math
from functools import partial

import jax
import jax.numpy as jnp
from jax.experimental import pallas as pl
from jax.experimental.pallas import tpu as pltpu

D_MODEL = 32
N_HEADS = 4
D_K = D_MODEL // N_HEADS
D_FF = 64
N_LAYERS = 2
VOCAB = 16
EPS = 1e-6

_VMEM = pl.BlockSpec(memory_space=pltpu.MemorySpace.VMEM)


# ------------------------------ fused kernel -------------------------------

def _encdec_kernel(src_x_ref, tgt_x_ref, smask_ref, tmask_ref,
                   # encoder (stacked over layers)
                   e_wqkv, e_bqkv, e_wo, e_bo, e_w1, e_b1, e_w2, e_b2,
                   e_n1, e_n2, e_fn,
                   # decoder (stacked over layers)
                   d_sa_wqkv, d_sa_bqkv, d_sa_wo, d_sa_bo,
                   d_ca_wq, d_ca_bq, d_ca_wkv, d_ca_bkv, d_ca_wo, d_ca_bo,
                   d_w1, d_b1, d_w2, d_b2,
                   d_n1, d_n2, d_n3, d_fn,
                   out_ref):
    B, Ss, D = src_x_ref.shape
    St = tgt_x_ref.shape[1]

    # Loaded once, reused across all layers (hoisted).
    smask = smask_ref[...]          # (B, 1, Ss)  -- broadcasts over the query axis
    tmask = tmask_ref[...]          # (B, St, St)

    def layernorm(x2d, gb):
        # gb: (2, D) -> row 0 = gamma, row 1 = beta.
        g = gb[0:1, :]
        b = gb[1:2, :]
        mean = jnp.mean(x2d, axis=-1, keepdims=True)
        # torch.std (unbiased, ddof=1) and division by (std + eps), per reference.
        var = jnp.sum((x2d - mean) ** 2, axis=-1, keepdims=True) / (D - 1)
        inv = pl.reciprocal(jnp.sqrt(var) + EPS, approx=True)
        return g * (x2d - mean) * inv + b

    def mha(q, k, v, mask):
        # q: (B, Sq, D), k/v: (B, Sk, D), mask: (B, 1|Sq, Sk) with 1 = keep.
        scale = 1.0 / math.sqrt(D_K)
        heads = []
        for h in range(N_HEADS):                      # static unroll, static slices
            sl = slice(h * D_K, (h + 1) * D_K)
            s = jnp.einsum('bqd,bkd->bqk', q[:, :, sl], k[:, :, sl],
                           preferred_element_type=jnp.float32) * scale
            s = jnp.where(mask > 0.0, s, jnp.float32(-1e9))
            s = s - jnp.max(s, axis=-1, keepdims=True)
            p = jnp.exp(s)
            p = p * pl.reciprocal(jnp.sum(p, axis=-1, keepdims=True), approx=True)
            heads.append(jnp.einsum('bqk,bkd->bqd', p, v[:, :, sl],
                                    preferred_element_type=jnp.float32))
        return jnp.concatenate(heads, axis=-1)        # (B, Sq, D)

    # -------------------------------- encoder --------------------------------
    x = src_x_ref[...].reshape(B * Ss, D)
    for l in range(N_LAYERS):
        # sublayer 1: pre-norm self-attention (fused QKV projection)
        nx = layernorm(x, e_n1[l])
        qkv = jnp.dot(nx, e_wqkv[l], preferred_element_type=jnp.float32) + e_bqkv[l]
        q = qkv[:, :D].reshape(B, Ss, D)
        k = qkv[:, D:2 * D].reshape(B, Ss, D)
        v = qkv[:, 2 * D:].reshape(B, Ss, D)
        a = mha(q, k, v, smask).reshape(B * Ss, D)
        x = x + jnp.dot(a, e_wo[l], preferred_element_type=jnp.float32) + e_bo[l]
        # sublayer 2: pre-norm FFN (hidden stays in vregs)
        nx = layernorm(x, e_n2[l])
        h1 = jnp.maximum(
            jnp.dot(nx, e_w1[l], preferred_element_type=jnp.float32) + e_b1[l], 0.0)
        x = x + jnp.dot(h1, e_w2[l], preferred_element_type=jnp.float32) + e_b2[l]
    mem = layernorm(x, e_fn[...])                     # (B*Ss, D)  encoder memory

    # -------------------------------- decoder --------------------------------
    y = tgt_x_ref[...].reshape(B * St, D)
    for l in range(N_LAYERS):
        # masked self-attention
        ny = layernorm(y, d_n1[l])
        qkv = jnp.dot(ny, d_sa_wqkv[l], preferred_element_type=jnp.float32) + d_sa_bqkv[l]
        q = qkv[:, :D].reshape(B, St, D)
        k = qkv[:, D:2 * D].reshape(B, St, D)
        v = qkv[:, 2 * D:].reshape(B, St, D)
        a = mha(q, k, v, tmask).reshape(B * St, D)
        y = y + jnp.dot(a, d_sa_wo[l], preferred_element_type=jnp.float32) + d_sa_bo[l]

        # cross-attention over encoder memory (fused K/V projection)
        ny = layernorm(y, d_n2[l])
        q = (jnp.dot(ny, d_ca_wq[l], preferred_element_type=jnp.float32)
             + d_ca_bq[l]).reshape(B, St, D)
        kv = jnp.dot(mem, d_ca_wkv[l], preferred_element_type=jnp.float32) + d_ca_bkv[l]
        k = kv[:, :D].reshape(B, Ss, D)
        v = kv[:, D:].reshape(B, Ss, D)
        a = mha(q, k, v, smask).reshape(B * St, D)
        y = y + jnp.dot(a, d_ca_wo[l], preferred_element_type=jnp.float32) + d_ca_bo[l]

        # FFN
        ny = layernorm(y, d_n3[l])
        h1 = jnp.maximum(
            jnp.dot(ny, d_w1[l], preferred_element_type=jnp.float32) + d_b1[l], 0.0)
        y = y + jnp.dot(h1, d_w2[l], preferred_element_type=jnp.float32) + d_b2[l]

    # single lane-masked store of the final activation only
    out_ref[...] = layernorm(y, d_fn[...]).reshape(B, St, D)


# ------------------------------ model glue ---------------------------------

def positional_encoding(max_len, d_model):
    pos = jnp.arange(max_len, dtype=jnp.float32)[:, None]
    div = jnp.exp(jnp.arange(0, d_model, 2, dtype=jnp.float32)
                  * -(math.log(10000.0) / d_model))
    pe = jnp.zeros((max_len, d_model), jnp.float32)
    pe = pe.at[:, 0::2].set(jnp.sin(pos * div))
    pe = pe.at[:, 1::2].set(jnp.cos(pos * div))
    return pe


def init_params(key):
    ks = iter(jax.random.split(key, 64))

    def dense(fan_in, fan_out):
        lim = 1.0 / math.sqrt(fan_in)
        w = jax.random.uniform(next(ks), (fan_in, fan_out), jnp.float32, -lim, lim)
        b = jax.random.uniform(next(ks), (fan_out,), jnp.float32, -lim, lim)
        return w, b

    def stacked_dense(fan_in, fan_out):
        ws, bs = zip(*[dense(fan_in, fan_out) for _ in range(N_LAYERS)])
        return jnp.stack(ws), jnp.stack(bs)[:, None, :]        # (L,fi,fo), (L,1,fo)

    def stacked_norm():
        g = jnp.ones((N_LAYERS, 1, D_MODEL), jnp.float32)
        b = jnp.zeros((N_LAYERS, 1, D_MODEL), jnp.float32)
        return jnp.concatenate([g, b], axis=1)                  # (L, 2, D)

    def final_norm():
        return jnp.stack([jnp.ones((D_MODEL,), jnp.float32),
                          jnp.zeros((D_MODEL,), jnp.float32)])  # (2, D)

    enc = {}
    enc["wqkv"], enc["bqkv"] = stacked_dense(D_MODEL, 3 * D_MODEL)
    enc["wo"], enc["bo"] = stacked_dense(D_MODEL, D_MODEL)
    enc["w1"], enc["b1"] = stacked_dense(D_MODEL, D_FF)
    enc["w2"], enc["b2"] = stacked_dense(D_FF, D_MODEL)
    enc["n1"], enc["n2"], enc["fn"] = stacked_norm(), stacked_norm(), final_norm()

    dec = {}
    dec["sa_wqkv"], dec["sa_bqkv"] = stacked_dense(D_MODEL, 3 * D_MODEL)
    dec["sa_wo"], dec["sa_bo"] = stacked_dense(D_MODEL, D_MODEL)
    dec["ca_wq"], dec["ca_bq"] = stacked_dense(D_MODEL, D_MODEL)
    dec["ca_wkv"], dec["ca_bkv"] = stacked_dense(D_MODEL, 2 * D_MODEL)
    dec["ca_wo"], dec["ca_bo"] = stacked_dense(D_MODEL, D_MODEL)
    dec["w1"], dec["b1"] = stacked_dense(D_MODEL, D_FF)
    dec["w2"], dec["b2"] = stacked_dense(D_FF, D_MODEL)
    dec["n1"], dec["n2"], dec["n3"] = stacked_norm(), stacked_norm(), stacked_norm()
    dec["fn"] = final_norm()

    return {"src_emb": jax.random.normal(next(ks), (VOCAB, D_MODEL), jnp.float32),
            "tgt_emb": jax.random.normal(next(ks), (VOCAB, D_MODEL), jnp.float32),
            "enc": enc, "dec": dec}


def encoder_decoder_forward(params, src, tgt, src_mask, tgt_mask, pe):
    B, Ss = src.shape
    St = tgt.shape[1]
    scale = math.sqrt(D_MODEL)
    # Embedding lookup + scaled + positional encoding (dropout = identity, eval mode).
    src_x = jnp.take(params["src_emb"], src, axis=0) * scale + pe[None, :Ss, :]
    tgt_x = jnp.take(params["tgt_emb"], tgt, axis=0) * scale + pe[None, :St, :]

    e, d = params["enc"], params["dec"]
    args = (src_x, tgt_x,
            src_mask.astype(jnp.float32), tgt_mask.astype(jnp.float32),
            e["wqkv"], e["bqkv"], e["wo"], e["bo"],
            e["w1"], e["b1"], e["w2"], e["b2"],
            e["n1"], e["n2"], e["fn"],
            d["sa_wqkv"], d["sa_bqkv"], d["sa_wo"], d["sa_bo"],
            d["ca_wq"], d["ca_bq"], d["ca_wkv"], d["ca_bkv"], d["ca_wo"], d["ca_bo"],
            d["w1"], d["b1"], d["w2"], d["b2"],
            d["n1"], d["n2"], d["n3"], d["fn"])

    # TODO(synk): on v7x, add a grid over batch rows with dimension_semantics=("parallel",)
    # to use the second TensorCore once batch/seq grow; at B*S=16 a single block is optimal.
    return pl.pallas_call(
        _encdec_kernel,
        out_shape=jax.ShapeDtypeStruct((B, St, D_MODEL), jnp.float32),
        in_specs=[_VMEM] * len(args),
        out_specs=_VMEM,
    )(*args)


if __name__ == "__main__":
    key = jax.random.PRNGKey(0)
    pkey, skey, tkey = jax.random.split(key, 3)
    params = init_params(pkey)

    B, S_SRC, S_TGT = 2, 8, 8
    pe = positional_encoding(64, D_MODEL)

    src = jax.random.randint(skey, (B, S_SRC), 0, VOCAB)
    tgt = jax.random.randint(tkey, (B, S_TGT), 0, VOCAB)
    src_mask = jnp.ones((B, 1, S_SRC), jnp.float32)
    tgt_mask = jnp.broadcast_to(
        jnp.tril(jnp.ones((S_TGT, S_TGT), jnp.float32))[None], (B, S_TGT, S_TGT))

    fwd = jax.jit(partial(encoder_decoder_forward, pe=pe))
    out = fwd(params, src, tgt, src_mask, tgt_mask)
    jax.block_until_ready(out)
    assert out.shape == (B, S_TGT, D_MODEL) and out.dtype == jnp.float32
    print("KERNEL_OK")
</pallas_src>

<mosaic_0001>
module attributes {stable_mosaic.version = 11 : i64} {
  func.func @_encdec_kernel(%arg0: memref<2x8x32xf32, #tpu.memory_space<vmem>>, %arg1: memref<2x8x32xf32, #tpu.memory_space<vmem>>, %arg2: memref<2x1x8xf32, #tpu.memory_space<vmem>>, %arg3: memref<2x8x8xf32, #tpu.memory_space<vmem>>, %arg4: memref<2x32x96xf32, #tpu.memory_space<vmem>>, %arg5: memref<2x1x96xf32, #tpu.memory_space<vmem>>, %arg6: memref<2x32x32xf32, #tpu.memory_space<vmem>>, %arg7: memref<2x1x32xf32, #tpu.memory_space<vmem>>, %arg8: memref<2x32x64xf32, #tpu.memory_space<vmem>>, %arg9: memref<2x1x64xf32, #tpu.memory_space<vmem>>, %arg10: memref<2x64x32xf32, #tpu.memory_space<vmem>>, %arg11: memref<2x1x32xf32, #tpu.memory_space<vmem>>, %arg12: memref<2x2x32xf32, #tpu.memory_space<vmem>>, %arg13: memref<2x2x32xf32, #tpu.memory_space<vmem>>, %arg14: memref<2x32xf32, #tpu.memory_space<vmem>>, %arg15: memref<2x32x96xf32, #tpu.memory_space<vmem>>, %arg16: memref<2x1x96xf32, #tpu.memory_space<vmem>>, %arg17: memref<2x32x32xf32, #tpu.memory_space<vmem>>, %arg18: memref<2x1x32xf32, #tpu.memory_space<vmem>>, %arg19: memref<2x32x32xf32, #tpu.memory_space<vmem>>, %arg20: memref<2x1x32xf32, #tpu.memory_space<vmem>>, %arg21: memref<2x32x64xf32, #tpu.memory_space<vmem>>, %arg22: memref<2x1x64xf32, #tpu.memory_space<vmem>>, %arg23: memref<2x32x32xf32, #tpu.memory_space<vmem>>, %arg24: memref<2x1x32xf32, #tpu.memory_space<vmem>>, %arg25: memref<2x32x64xf32, #tpu.memory_space<vmem>>, %arg26: memref<2x1x64xf32, #tpu.memory_space<vmem>>, %arg27: memref<2x64x32xf32, #tpu.memory_space<vmem>>, %arg28: memref<2x1x32xf32, #tpu.memory_space<vmem>>, %arg29: memref<2x2x32xf32, #tpu.memory_space<vmem>>, %arg30: memref<2x2x32xf32, #tpu.memory_space<vmem>>, %arg31: memref<2x2x32xf32, #tpu.memory_space<vmem>>, %arg32: memref<2x32xf32, #tpu.memory_space<vmem>>, %arg33: memref<2x8x32xf32, #tpu.memory_space<vmem>>) attributes {dimension_semantics = [], scalar_prefetch = 0 : i64, scratch_operands = 0 : i64, tpu.core_type = #tpu.core_type<tc>} {
    %c0 = arith.constant 0 : index
    %c0_0 = arith.constant 0 : index
    %c0_1 = arith.constant 0 : index
    %0 = vector.load %arg2[%c0, %c0_0, %c0_1] : memref<2x1x8xf32, #tpu.memory_space<vmem>>, vector<2x1x8xf32>
    %c0_2 = arith.constant 0 : index
    %c0_3 = arith.constant 0 : index
    %c0_4 = arith.constant 0 : index
    %1 = vector.load %arg3[%c0_2, %c0_3, %c0_4] : memref<2x8x8xf32, #tpu.memory_space<vmem>>, vector<2x8x8xf32>
    %c0_5 = arith.constant 0 : index
    %c0_6 = arith.constant 0 : index
    %c0_7 = arith.constant 0 : index
    %2 = vector.load %arg0[%c0_5, %c0_6, %c0_7] : memref<2x8x32xf32, #tpu.memory_space<vmem>>, vector<2x8x32xf32>
    %3 = vector.shape_cast %2 : vector<2x8x32xf32> to vector<16x32xf32>
    %c0_8 = arith.constant 0 : index
    %c0_9 = arith.constant 0 : index
    %c0_10 = arith.constant 0 : index
    %4 = vector.load %arg12[%c0_8, %c0_9, %c0_10] : memref<2x2x32xf32, #tpu.memory_space<vmem>>, vector<1x2x32xf32>
    %5 = vector.shape_cast %4 : vector<1x2x32xf32> to vector<2x32xf32>
    %6 = vector.extract_strided_slice %5 {offsets = [0, 0], sizes = [1, 32], strides = [1, 1]} : vector<2x32xf32> to vector<1x32xf32>
    %7 = vector.extract_strided_slice %5 {offsets = [1, 0], sizes = [1, 32], strides = [1, 1]} : vector<2x32xf32> to vector<1x32xf32>
    %cst = arith.constant dense<0.000000e+00> : vector<16xf32>
    %8 = vector.multi_reduction <add>, %3, %cst [1] : vector<16x32xf32> to vector<16xf32>
    %9 = vector.shape_cast %8 : vector<16xf32> to vector<16x1xf32>
    %cst_11 = arith.constant 3.200000e+01 : f32
    %10 = vector.broadcast %cst_11 : f32 to vector<16x1xf32>
    %11 = arith.divf %9, %10 : vector<16x1xf32>
    %12 = vector.broadcast %11 : vector<16x1xf32> to vector<16x32xf32>
    %13 = arith.subf %3, %12 : vector<16x32xf32>
    %14 = arith.mulf %13, %13 : vector<16x32xf32>
    %cst_12 = arith.constant dense<0.000000e+00> : vector<16xf32>
    %15 = vector.multi_reduction <add>, %14, %cst_12 [1] : vector<16x32xf32> to vector<16xf32>
    %16 = vector.shape_cast %15 : vector<16xf32> to vector<16x1xf32>
    %cst_13 = arith.constant 3.100000e+01 : f32
    %17 = vector.broadcast %cst_13 : f32 to vector<16x1xf32>
    %18 = arith.divf %16, %17 : vector<16x1xf32>
    %19 = math.sqrt %18 : vector<16x1xf32>
    %cst_14 = arith.constant 9.99999997E-7 : f32
    %20 = vector.broadcast %cst_14 : f32 to vector<16x1xf32>
    %21 = arith.addf %19, %20 : vector<16x1xf32>
    %22 = tpu.reciprocal %21 {approx = true} : vector<16x1xf32> -> vector<16x1xf32>
    %23 = vector.broadcast %11 : vector<16x1xf32> to vector<16x32xf32>
    %24 = arith.subf %3, %23 : vector<16x32xf32>
    %25 = vector.broadcast %6 : vector<1x32xf32> to vector<16x32xf32>
    %26 = arith.mulf %25, %24 : vector<16x32xf32>
    %27 = vector.broadcast %22 : vector<16x1xf32> to vector<16x32xf32>
    %28 = arith.mulf %26, %27 : vector<16x32xf32>
    %29 = vector.broadcast %7 : vector<1x32xf32> to vector<16x32xf32>
    %30 = arith.addf %28, %29 : vector<16x32xf32>
    %c0_15 = arith.constant 0 : index
    %c0_16 = arith.constant 0 : index
    %c0_17 = arith.constant 0 : index
    %31 = vector.load %arg4[%c0_15, %c0_16, %c0_17] : memref<2x32x96xf32, #tpu.memory_space<vmem>>, vector<1x32x96xf32>
    %32 = vector.shape_cast %31 : vector<1x32x96xf32> to vector<32x96xf32>
    %cst_18 = arith.constant dense<0.000000e+00> : vector<16x96xf32>
    %33 = tpu.matmul %30, %32, %cst_18 {dimension_numbers = #tpu.dot_dimension_numbers<[1], [0], [0], [1], [0, 0, 1, 1], [], []>} : vector<16x32xf32>, vector<32x96xf32>, vector<16x96xf32> -> vector<16x96xf32>
    %c0_19 = arith.constant 0 : index
    %c0_20 = arith.constant 0 : index
    %c0_21 = arith.constant 0 : index
    %34 = vector.load %arg5[%c0_19, %c0_20, %c0_21] : memref<2x1x96xf32, #tpu.memory_space<vmem>>, vector<1x1x96xf32>
    %35 = vector.shape_cast %34 : vector<1x1x96xf32> to vector<1x96xf32>
    %36 = vector.broadcast %35 : vector<1x96xf32> to vector<16x96xf32>
    %37 = arith.addf %33, %36 : vector<16x96xf32>
    %38 = vector.extract_strided_slice %37 {offsets = [0, 0], sizes = [16, 32], strides = [1, 1]} : vector<16x96xf32> to vector<16x32xf32>
    %39 = vector.shape_cast %38 : vector<16x32xf32> to vector<2x8x32xf32>
    %40 = vector.extract_strided_slice %37 {offsets = [0, 32], sizes = [16, 32], strides = [1, 1]} : vector<16x96xf32> to vector<16x32xf32>
    %41 = vector.shape_cast %40 : vector<16x32xf32> to vector<2x8x32xf32>
    %42 = vector.extract_strided_slice %37 {offsets = [0, 64], sizes = [16, 32], strides = [1, 1]} : vector<16x96xf32> to vector<16x32xf32>
    %43 = vector.shape_cast %42 : vector<16x32xf32> to vector<2x8x32xf32>
    %44 = vector.extract_strided_slice %39 {offsets = [0, 0, 0], sizes = [2, 8, 8], strides = [1, 1, 1]} : vector<2x8x32xf32> to vector<2x8x8xf32>
    %45 = vector.extract_strided_slice %41 {offsets = [0, 0, 0], sizes = [2, 8, 8], strides = [1, 1, 1]} : vector<2x8x32xf32> to vector<2x8x8xf32>
    "tpu.trace_start"() <{level = 10 : i32, message = "bqd,bkd->bqk"}> : () -> ()
    %cst_22 = arith.constant dense<0.000000e+00> : vector<2x8x8xf32>
    %46 = tpu.matmul %44, %45, %cst_22 {dimension_numbers = #tpu.dot_dimension_numbers<[2], [2], [1], [1], [0, 0, 0, 1, 1, 1], [0], [0]>} : vector<2x8x8xf32>, vector<2x8x8xf32>, vector<2x8x8xf32> -> vector<2x8x8xf32>
    "tpu.trace_stop"() : () -> ()
    %cst_23 = arith.constant 0.353553385 : f32
    %47 = vector.broadcast %cst_23 : f32 to vector<2x8x8xf32>
    %48 = arith.mulf %46, %47 : vector<2x8x8xf32>
    %cst_24 = arith.constant 0.000000e+00 : f32
    %49 = vector.broadcast %cst_24 : f32 to vector<2x1x8xf32>
    %50 = arith.cmpf ogt, %0, %49 : vector<2x1x8xf32>
    %cst_25 = arith.constant -1.000000e+09 : f32
    %51 = vector.shape_cast %50 : vector<2x1x8xi1> to vector<2x1x8xi1>
    %52 = vector.broadcast %51 : vector<2x1x8xi1> to vector<2x8x8xi1>
    %53 = vector.broadcast %cst_25 : f32 to vector<2x8x8xf32>
    %54 = arith.select %52, %48, %53 : vector<2x8x8xi1>, vector<2x8x8xf32>
    %cst_26 = arith.constant dense<0xFF800000> : vector<2x8xf32>
    %55 = vector.multi_reduction <maximumf>, %54, %cst_26 [2] : vector<2x8x8xf32> to vector<2x8xf32>
    %56 = vector.shape_cast %55 : vector<2x8xf32> to vector<2x8x1xf32>
    %57 = vector.broadcast %56 : vector<2x8x1xf32> to vector<2x8x8xf32>
    %58 = arith.subf %54, %57 : vector<2x8x8xf32>
    %59 = math.exp %58 : vector<2x8x8xf32>
    %cst_27 = arith.constant dense<0.000000e+00> : vector<2x8xf32>
    %60 = vector.multi_reduction <add>, %59, %cst_27 [2] : vector<2x8x8xf32> to vector<2x8xf32>
    %61 = vector.shape_cast %60 : vector<2x8xf32> to vector<2x8x1xf32>
    %62 = tpu.reciprocal %61 {approx = true} : vector<2x8x1xf32> -> vector<2x8x1xf32>
    %63 = vector.broadcast %62 : vector<2x8x1xf32> to vector<2x8x8xf32>
    %64 = arith.mulf %59, %63 : vector<2x8x8xf32>
    %65 = vector.extract_strided_slice %43 {offsets = [0, 0, 0], sizes = [2, 8, 8], strides = [1, 1, 1]} : vector<2x8x32xf32> to vector<2x8x8xf32>
    "tpu.trace_start"() <{level = 10 : i32, message = "bqk,bkd->bqd"}> : () -> ()
    %cst_28 = arith.constant dense<0.000000e+00> : vector<2x8x8xf32>
    %66 = tpu.matmul %64, %65, %cst_28 {dimension_numbers = #tpu.dot_dimension_numbers<[2], [1], [1], [2], [0, 0, 0, 1, 1, 2], [0], [0]>} : vector<2x8x8xf32>, vector<2x8x8xf32>, vector<2x8x8xf32> -> vector<2x8x8xf32>
    "tpu.trace_stop"() : () -> ()
    %67 = vector.extract_strided_slice %39 {offsets = [0, 0, 8], sizes = [2, 8, 8], strides = [1, 1, 1]} : vector<2x8x32xf32> to vector<2x8x8xf32>
    %68 = vector.extract_strided_slice %41 {offsets = [0, 0, 8], sizes = [2, 8, 8], strides = [1, 1, 1]} : vector<2x8x32xf32> to vector<2x8x8xf32>
    "tpu.trace_start"() <{level = 10 : i32, message = "bqd,bkd->bqk"}> : () -> ()
    %cst_29 = arith.constant dense<0.000000e+00> : vector<2x8x8xf32>
    %69 = tpu.matmul %67, %68, %cst_29 {dimension_numbers = #tpu.dot_dimension_numbers<[2], [2], [1], [1], [0, 0, 0, 1, 1, 1], [0], [0]>} : vector<2x8x8xf32>, vector<2x8x8xf32>, vector<2x8x8xf32> -> vector<2x8x8xf32>
    "tpu.trace_stop"() : () -> ()
    %cst_30 = arith.constant 0.353553385 : f32
    %70 = vector.broadcast %cst_30 : f32 to vector<2x8x8xf32>
    %71 = arith.mulf %69, %70 : vector<2x8x8xf32>
    %cst_31 = arith.constant 0.000000e+00 : f32
    %72 = vector.broadcast %cst_31 : f32 to vector<2x1x8xf32>
    %73 = arith.cmpf ogt, %0, %72 : vector<2x1x8xf32>
    %cst_32 = arith.constant -1.000000e+09 : f32
    %74 = vector.shape_cast %73 : vector<2x1x8xi1> to vector<2x1x8xi1>
    %75 = vector.broadcast %74 : vector<2x1x8xi1> to vector<2x8x8xi1>
    %76 = vector.broadcast %cst_32 : f32 to vector<2x8x8xf32>
    %77 = arith.select %75, %71, %76 : vector<2x8x8xi1>, vector<2x8x8xf32>
    %cst_33 = arith.constant dense<0xFF800000> : vector<2x8xf32>
    %78 = vector.multi_reduction <maximumf>, %77, %cst_33 [2] : vector<2x8x8xf32> to vector<2x8xf32>
    %79 = vector.shape_cast %78 : vector<2x8xf32> to vector<2x8x1xf32>
    %80 = vector.broadcast %79 : vector<2x8x1xf32> to vector<2x8x8xf32>
    %81 = arith.subf %77, %80 : vector<2x8x8xf32>
    %82 = math.exp %81 : vector<2x8x8xf32>
    %cst_34 = arith.constant dense<0.000000e+00> : vector<2x8xf32>
    %83 = vector.multi_reduction <add>, %82, %cst_34 [2] : vector<2x8x8xf32> to vector<2x8xf32>
    %84 = vector.shape_cast %83 : vector<2x8xf32> to vector<2x8x1xf32>
    %85 = tpu.reciprocal %84 {approx = true} : vector<2x8x1xf32> -> vector<2x8x1xf32>
    %86 = vector.broadcast %85 : vector<2x8x1xf32> to vector<2x8x8xf32>
    %87 = arith.mulf %82, %86 : vector<2x8x8xf32>
    %88 = vector.extract_strided_slice %43 {offsets = [0, 0, 8], sizes = [2, 8, 8], strides = [1, 1, 1]} : vector<2x8x32xf32> to vector<2x8x8xf32>
    "tpu.trace_start"() <{level = 10 : i32, message = "bqk,bkd->bqd"}> : () -> ()
    %cst_35 = arith.constant dense<0.000000e+00> : vector<2x8x8xf32>
    %89 = tpu.matmul %87, %88, %cst_35 {dimension_numbers = #tpu.dot_dimension_numbers<[2], [1], [1], [2], [0, 0, 0, 1, 1, 2], [0], [0]>} : vector<2x8x8xf32>, vector<2x8x8xf32>, vector<2x8x8xf32> -> vector<2x8x8xf32>
    "tpu.trace_stop"() : () -> ()
    %90 = vector.extract_strided_slice %39 {offsets = [0, 0, 16], sizes = [2, 8, 8], strides = [1, 1, 1]} : vector<2x8x32xf32> to vector<2x8x8xf32>
    %91 = vector.extract_strided_slice %41 {offsets = [0, 0, 16], sizes = [2, 8, 8], strides = [1, 1, 1]} : vector<2x8x32xf32> to vector<2x8x8xf32>
    "tpu.trace_start"() <{level = 10 : i32, message = "bqd,bkd->bqk"}> : () -> ()
    %cst_36 = arith.constant dense<0.000000e+00> : vector<2x8x8xf32>
    %92 = tpu.matmul %90, %91, %cst_36 {dimension_numbers = #tpu.dot_dimension_numbers<[2], [2], [1], [1], [0, 0, 0, 1, 1, 1], [0], [0]>} : vector<2x8x8xf32>, vector<2x8x8xf32>, vector<2x8x8xf32> -> vector<2x8x8xf32>
    "tpu.trace_stop"() : () -> ()
    %cst_37 = arith.constant 0.353553385 : f32
    %93 = vector.broadcast %cst_37 : f32 to vector<2x8x8xf32>
    %94 = arith.mulf %92, %93 : vector<2x8x8xf32>
    %cst_38 = arith.constant 0.000000e+00 : f32
    %95 = vector.broadcast %cst_38 : f32 to vector<2x1x8xf32>
    %96 = arith.cmpf ogt, %0, %95 : vector<2x1x8xf32>
    %cst_39 = arith.constant -1.000000e+09 : f32
    %97 = vector.shape_cast %96 : vector<2x1x8xi1> to vector<2x1x8xi1>
    %98 = vector.broadcast %97 : vector<2x1x8xi1> to vector<2x8x8xi1>
    %99 = vector.broadcast %cst_39 : f32 to vector<2x8x8xf32>
    %100 = arith.select %98, %94, %99 : vector<2x8x8xi1>, vector<2x8x8xf32>
    %cst_40 = arith.constant dense<0xFF800000> : vector<2x8xf32>
    %101 = vector.multi_reduction <maximumf>, %100, %cst_40 [2] : vector<2x8x8xf32> to vector<2x8xf32>
    %102 = vector.shape_cast %101 : vector<2x8xf32> to vector<2x8x1xf32>
    %103 = vector.broadcast %102 : vector<2x8x1xf32> to vector<2x8x8xf32>
    %104 = arith.subf %100, %103 : vector<2x8x8xf32>
    %105 = math.exp %104 : vector<2x8x8xf32>
    %cst_41 = arith.constant dense<0.000000e+00> : vector<2x8xf32>
    %106 = vector.multi_reduction <add>, %105, %cst_41 [2] : vector<2x8x8xf32> to vector<2x8xf32>
    %107 = vector.shape_cast %106 : vector<2x8xf32> to vector<2x8x1xf32>
    %108 = tpu.reciprocal %107 {approx = true} : vector<2x8x1xf32> -> vector<2x8x1xf32>
    %109 = vector.broadcast %108 : vector<2x8x1xf32> to vector<2x8x8xf32>
    %110 = arith.mulf %105, %109 : vector<2x8x8xf32>
    %111 = vector.extract_strided_slice %43 {offsets = [0, 0, 16], sizes = [2, 8, 8], strides = [1, 1, 1]} : vector<2x8x32xf32> to vector<2x8x8xf32>
    "tpu.trace_start"() <{level = 10 : i32, message = "bqk,bkd->bqd"}> : () -> ()
    %cst_42 = arith.constant dense<0.000000e+00> : vector<2x8x8xf32>
    %112 = tpu.matmul %110, %111, %cst_42 {dimension_numbers = #tpu.dot_dimension_numbers<[2], [1], [1], [2], [0, 0, 0, 1, 1, 2], [0], [0]>} : vector<2x8x8xf32>, vector<2x8x8xf32>, vector<2x8x8xf32> -> vector<2x8x8xf32>
    "tpu.trace_stop"() : () -> ()
    %113 = vector.extract_strided_slice %39 {offsets = [0, 0, 24], sizes = [2, 8, 8], strides = [1, 1, 1]} : vector<2x8x32xf32> to vector<2x8x8xf32>
    %114 = vector.extract_strided_slice %41 {offsets = [0, 0, 24], sizes = [2, 8, 8], strides = [1, 1, 1]} : vector<2x8x32xf32> to vector<2x8x8xf32>
    "tpu.trace_start"() <{level = 10 : i32, message = "bqd,bkd->bqk"}> : () -> ()
    %cst_43 = arith.constant dense<0.000000e+00> : vector<2x8x8xf32>
    %115 = tpu.matmul %113, %114, %cst_43 {dimension_numbers = #tpu.dot_dimension_numbers<[2], [2], [1], [1], [0, 0, 0, 1, 1, 1], [0], [0]>} : vector<2x8x8xf32>, vector<2x8x8xf32>, vector<2x8x8xf32> -> vector<2x8x8xf32>
    "tpu.trace_stop"() : () -> ()
    %cst_44 = arith.constant 0.353553385 : f32
    %116 = vector.broadcast %cst_44 : f32 to vector<2x8x8xf32>
    %117 = arith.mulf %115, %116 : vector<2x8x8xf32>
    %cst_45 = arith.constant 0.000000e+00 : f32
    %118 = vector.broadcast %cst_45 : f32 to vector<2x1x8xf32>
    %119 = arith.cmpf ogt, %0, %118 : vector<2x1x8xf32>
    %cst_46 = arith.constant -1.000000e+09 : f32
    %120 = vector.shape_cast %119 : vector<2x1x8xi1> to vector<2x1x8xi1>
    %121 = vector.broadcast %120 : vector<2x1x8xi1> to vector<2x8x8xi1>
    %122 = vector.broadcast %cst_46 : f32 to vector<2x8x8xf32>
    %123 = arith.select %121, %117, %122 : vector<2x8x8xi1>, vector<2x8x8xf32>
    %cst_47 = arith.constant dense<0xFF800000> : vector<2x8xf32>
    %124 = vector.multi_reduction <maximumf>, %123, %cst_47 [2] : vector<2x8x8xf32> to vector<2x8xf32>
    %125 = vector.shape_cast %124 : vector<2x8xf32> to vector<2x8x1xf32>
    %126 = vector.broadcast %125 : vector<2x8x1xf32> to vector<2x8x8xf32>
    %127 = arith.subf %123, %126 : vector<2x8x8xf32>
    %128 = math.exp %127 : vector<2x8x8xf32>
    %cst_48 = arith.constant dense<0.000000e+00> : vector<2x8xf32>
    %129 = vector.multi_reduction <add>, %128, %cst_48 [2] : vector<2x8x8xf32> to vector<2x8xf32>
    %130 = vector.shape_cast %129 : vector<2x8xf32> to vector<2x8x1xf32>
    %131 = tpu.reciprocal %130 {approx = true} : vector<2x8x1xf32> -> vector<2x8x1xf32>
    %132 = vector.broadcast %131 : vector<2x8x1xf32> to vector<2x8x8xf32>
    %133 = arith.mulf %128, %132 : vector<2x8x8xf32>
    %134 = vector.extract_strided_slice %43 {offsets = [0, 0, 24], sizes = [2, 8, 8], strides = [1, 1, 1]} : vector<2x8x32xf32> to vector<2x8x8xf32>
    "tpu.trace_start"() <{level = 10 : i32, message = "bqk,bkd->bqd"}> : () -> ()
    %cst_49 = arith.constant dense<0.000000e+00> : vector<2x8x8xf32>
    %135 = tpu.matmul %133, %134, %cst_49 {dimension_numbers = #tpu.dot_dimension_numbers<[2], [1], [1], [2], [0, 0, 0, 1, 1, 2], [0], [0]>} : vector<2x8x8xf32>, vector<2x8x8xf32>, vector<2x8x8xf32> -> vector<2x8x8xf32>
    "tpu.trace_stop"() : () -> ()
    %136 = tpu.concatenate %66, %89, %112, %135 in 2 : vector<2x8x8xf32>, vector<2x8x8xf32>, vector<2x8x8xf32>, vector<2x8x8xf32> -> vector<2x8x32xf32>
    %137 = vector.shape_cast %136 : vector<2x8x32xf32> to vector<16x32xf32>
    %c0_50 = arith.constant 0 : index
    %c0_51 = arith.constant 0 : index
    %c0_52 = arith.constant 0 : index
    %138 = vector.load %arg6[%c0_50, %c0_51, %c0_52] : memref<2x32x32xf32, #tpu.memory_space<vmem>>, vector<1x32x32xf32>
    %139 = vector.shape_cast %138 : vector<1x32x32xf32> to vector<32x32xf32>
    %cst_53 = arith.constant dense<0.000000e+00> : vector<16x32xf32>
    %140 = tpu.matmul %137, %139, %cst_53 {dimension_numbers = #tpu.dot_dimension_numbers<[1], [0], [0], [1], [0, 0, 1, 1], [], []>} : vector<16x32xf32>, vector<32x32xf32>, vector<16x32xf32> -> vector<16x32xf32>
    %141 = arith.addf %3, %140 : vector<16x32xf32>
    %c0_54 = arith.constant 0 : index
    %c0_55 = arith.constant 0 : index
    %c0_56 = arith.constant 0 : index
    %142 = vector.load %arg7[%c0_54, %c0_55, %c0_56] : memref<2x1x32xf32, #tpu.memory_space<vmem>>, vector<1x1x32xf32>
    %143 = vector.shape_cast %142 : vector<1x1x32xf32> to vector<1x32xf32>
    %144 = vector.broadcast %143 : vector<1x32xf32> to vector<16x32xf32>
    %145 = arith.addf %141, %144 : vector<16x32xf32>
    %c0_57 = arith.constant 0 : index
    %c0_58 = arith.constant 0 : index
    %c0_59 = arith.constant 0 : index
    %146 = vector.load %arg13[%c0_57, %c0_58, %c0_59] : memref<2x2x32xf32, #tpu.memory_space<vmem>>, vector<1x2x32xf32>
    %147 = vector.shape_cast %146 : vector<1x2x32xf32> to vector<2x32xf32>
    %148 = vector.extract_strided_slice %147 {offsets = [0, 0], sizes = [1, 32], strides = [1, 1]} : vector<2x32xf32> to vector<1x32xf32>
    %149 = vector.extract_strided_slice %147 {offsets = [1, 0], sizes = [1, 32], strides = [1, 1]} : vector<2x32xf32> to vector<1x32xf32>
    %cst_60 = arith.constant dense<0.000000e+00> : vector<16xf32>
    %150 = vector.multi_reduction <add>, %145, %cst_60 [1] : vector<16x32xf32> to vector<16xf32>
    %151 = vector.shape_cast %150 : vector<16xf32> to vector<16x1xf32>
    %cst_61 = arith.constant 3.200000e+01 : f32
    %152 = vector.broadcast %cst_61 : f32 to vector<16x1xf32>
    %153 = arith.divf %151, %152 : vector<16x1xf32>
    %154 = vector.broadcast %153 : vector<16x1xf32> to vector<16x32xf32>
    %155 = arith.subf %145, %154 : vector<16x32xf32>
    %156 = arith.mulf %155, %155 : vector<16x32xf32>
    %cst_62 = arith.constant dense<0.000000e+00> : vector<16xf32>
    %157 = vector.multi_reduction <add>, %156, %cst_62 [1] : vector<16x32xf32> to vector<16xf32>
    %158 = vector.shape_cast %157 : vector<16xf32> to vector<16x1xf32>
    %cst_63 = arith.constant 3.100000e+01 : f32
    %159 = vector.broadcast %cst_63 : f32 to vector<16x1xf32>
    %160 = arith.divf %158, %159 : vector<16x1xf32>
    %161 = math.sqrt %160 : vector<16x1xf32>
    %cst_64 = arith.constant 9.99999997E-7 : f32
    %162 = vector.broadcast %cst_64 : f32 to vector<16x1xf32>
    %163 = arith.addf %161, %162 : vector<16x1xf32>
    %164 = tpu.reciprocal %163 {approx = true} : vector<16x1xf32> -> vector<16x1xf32>
    %165 = vector.broadcast %153 : vector<16x1xf32> to vector<16x32xf32>
    %166 = arith.subf %145, %165 : vector<16x32xf32>
    %167 = vector.broadcast %148 : vector<1x32xf32> to vector<16x32xf32>
    %168 = arith.mulf %167, %166 : vector<16x32xf32>
    %169 = vector.broadcast %164 : vector<16x1xf32> to vector<16x32xf32>
    %170 = arith.mulf %168, %169 : vector<16x32xf32>
    %171 = vector.broadcast %149 : vector<1x32xf32> to vector<16x32xf32>
    %172 = arith.addf %170, %171 : vector<16x32xf32>
    %c0_65 = arith.constant 0 : index
    %c0_66 = arith.constant 0 : index
    %c0_67 = arith.constant 0 : index
    %173 = vector.load %arg8[%c0_65, %c0_66, %c0_67] : memref<2x32x64xf32, #tpu.memory_space<vmem>>, vector<1x32x64xf32>
    %174 = vector.shape_cast %173 : vector<1x32x64xf32> to vector<32x64xf32>
    %cst_68 = arith.constant dense<0.000000e+00> : vector<16x64xf32>
    %175 = tpu.matmul %172, %174, %cst_68 {dimension_numbers = #tpu.dot_dimension_numbers<[1], [0], [0], [1], [0, 0, 1, 1], [], []>} : vector<16x32xf32>, vector<32x64xf32>, vector<16x64xf32> -> vector<16x64xf32>
    %c0_69 = arith.constant 0 : index
    %c0_70 = arith.constant 0 : index
    %c0_71 = arith.constant 0 : index
    %176 = vector.load %arg9[%c0_69, %c0_70, %c0_71] : memref<2x1x64xf32, #tpu.memory_space<vmem>>, vector<1x1x64xf32>
    %177 = vector.shape_cast %176 : vector<1x1x64xf32> to vector<1x64xf32>
    %178 = vector.broadcast %177 : vector<1x64xf32> to vector<16x64xf32>
    %179 = arith.addf %175, %178 : vector<16x64xf32>
    %cst_72 = arith.constant 0.000000e+00 : f32
    %180 = vector.broadcast %cst_72 : f32 to vector<16x64xf32>
    %181 = arith.maximumf %179, %180 : vector<16x64xf32>
    %c0_73 = arith.constant 0 : index
    %c0_74 = arith.constant 0 : index
    %c0_75 = arith.constant 0 : index
    %182 = vector.load %arg10[%c0_73, %c0_74, %c0_75] : memref<2x64x32xf32, #tpu.memory_space<vmem>>, vector<1x64x32xf32>
    %183 = vector.shape_cast %182 : vector<1x64x32xf32> to vector<64x32xf32>
    %cst_76 = arith.constant dense<0.000000e+00> : vector<16x32xf32>
    %184 = tpu.matmul %181, %183, %cst_76 {dimension_numbers = #tpu.dot_dimension_numbers<[1], [0], [0], [1], [0, 0, 1, 1], [], []>} : vector<16x64xf32>, vector<64x32xf32>, vector<16x32xf32> -> vector<16x32xf32>
    %185 = arith.addf %145, %184 : vector<16x32xf32>
    %c0_77 = arith.constant 0 : index
    %c0_78 = arith.constant 0 : index
    %c0_79 = arith.constant 0 : index
    %186 = vector.load %arg11[%c0_77, %c0_78, %c0_79] : memref<2x1x32xf32, #tpu.memory_space<vmem>>, vector<1x1x32xf32>
    %187 = vector.shape_cast %186 : vector<1x1x32xf32> to vector<1x32xf32>
    %188 = vector.broadcast %187 : vector<1x32xf32> to vector<16x32xf32>
    %189 = arith.addf %185, %188 : vector<16x32xf32>
    %c1 = arith.constant 1 : index
    %c0_80 = arith.constant 0 : index
    %c0_81 = arith.constant 0 : index
    %190 = vector.load %arg12[%c1, %c0_80, %c0_81] : memref<2x2x32xf32, #tpu.memory_space<vmem>>, vector<1x2x32xf32>
    %191 = vector.shape_cast %190 : vector<1x2x32xf32> to vector<2x32xf32>
    %192 = vector.extract_strided_slice %191 {offsets = [0, 0], sizes = [1, 32], strides = [1, 1]} : vector<2x32xf32> to vector<1x32xf32>
    %193 = vector.extract_strided_slice %191 {offsets = [1, 0], sizes = [1, 32], strides = [1, 1]} : vector<2x32xf32> to vector<1x32xf32>
    %cst_82 = arith.constant dense<0.000000e+00> : vector<16xf32>
    %194 = vector.multi_reduction <add>, %189, %cst_82 [1] : vector<16x32xf32> to vector<16xf32>
    %195 = vector.shape_cast %194 : vector<16xf32> to vector<16x1xf32>
    %cst_83 = arith.constant 3.200000e+01 : f32
    %196 = vector.broadcast %cst_83 : f32 to vector<16x1xf32>
    %197 = arith.divf %195, %196 : vector<16x1xf32>
    %198 = vector.broadcast %197 : vector<16x1xf32> to vector<16x32xf32>
    %199 = arith.subf %189, %198 : vector<16x32xf32>
    %200 = arith.mulf %199, %199 : vector<16x32xf32>
    %cst_84 = arith.constant dense<0.000000e+00> : vector<16xf32>
    %201 = vector.multi_reduction <add>, %200, %cst_84 [1] : vector<16x32xf32> to vector<16xf32>
    %202 = vector.shape_cast %201 : vector<16xf32> to vector<16x1xf32>
    %cst_85 = arith.constant 3.100000e+01 : f32
    %203 = vector.broadcast %cst_85 : f32 to vector<16x1xf32>
    %204 = arith.divf %202, %203 : vector<16x1xf32>
    %205 = math.sqrt %204 : vector<16x1xf32>
    %cst_86 = arith.constant 9.99999997E-7 : f32
    %206 = vector.broadcast %cst_86 : f32 to vector<16x1xf32>
    %207 = arith.addf %205, %206 : vector<16x1xf32>
    %208 = tpu.reciprocal %207 {approx = true} : vector<16x1xf32> -> vector<16x1xf32>
    %209 = vector.broadcast %197 : vector<16x1xf32> to vector<16x32xf32>
    %210 = arith.subf %189, %209 : vector<16x32xf32>
    %211 = vector.broadcast %192 : vector<1x32xf32> to vector<16x32xf32>
    %212 = arith.mulf %211, %210 : vector<16x32xf32>
    %213 = vector.broadcast %208 : vector<16x1xf32> to vector<16x32xf32>
    %214 = arith.mulf %212, %213 : vector<16x32xf32>
    %215 = vector.broadcast %193 : vector<1x32xf32> to vector<16x32xf32>
    %216 = arith.addf %214, %215 : vector<16x32xf32>
    %c1_87 = arith.constant 1 : index
    %c0_88 = arith.constant 0 : index
    %c0_89 = arith.constant 0 : index
    %217 = vector.load %arg4[%c1_87, %c0_88, %c0_89] : memref<2x32x96xf32, #tpu.memory_space<vmem>>, vector<1x32x96xf32>
    %218 = vector.shape_cast %217 : vector<1x32x96xf32> to vector<32x96xf32>
    %cst_90 = arith.constant dense<0.000000e+00> : vector<16x96xf32>
    %219 = tpu.matmul %216, %218, %cst_90 {dimension_numbers = #tpu.dot_dimension_numbers<[1], [0], [0], [1], [0, 0, 1, 1], [], []>} : vector<16x32xf32>, vector<32x96xf32>, vector<16x96xf32> -> vector<16x96xf32>
    %c1_91 = arith.constant 1 : index
    %c0_92 = arith.constant 0 : index
    %c0_93 = arith.constant 0 : index
    %220 = vector.load %arg5[%c1_91, %c0_92, %c0_93] : memref<2x1x96xf32, #tpu.memory_space<vmem>>, vector<1x1x96xf32>
    %221 = vector.shape_cast %220 : vector<1x1x96xf32> to vector<1x96xf32>
    %222 = vector.broadcast %221 : vector<1x96xf32> to vector<16x96xf32>
    %223 = arith.addf %219, %222 : vector<16x96xf32>
    %224 = vector.extract_strided_slice %223 {offsets = [0, 0], sizes = [16, 32], strides = [1, 1]} : vector<16x96xf32> to vector<16x32xf32>
    %225 = vector.shape_cast %224 : vector<16x32xf32> to vector<2x8x32xf32>
    %226 = vector.extract_strided_slice %223 {offsets = [0, 32], sizes = [16, 32], strides = [1, 1]} : vector<16x96xf32> to vector<16x32xf32>
    %227 = vector.shape_cast %226 : vector<16x32xf32> to vector<2x8x32xf32>
    %228 = vector.extract_strided_slice %223 {offsets = [0, 64], sizes = [16, 32], strides = [1, 1]} : vector<16x96xf32> to vector<16x32xf32>
    %229 = vector.shape_cast %228 : vector<16x32xf32> to vector<2x8x32xf32>
    %230 = vector.extract_strided_slice %225 {offsets = [0, 0, 0], sizes = [2, 8, 8], strides = [1, 1, 1]} : vector<2x8x32xf32> to vector<2x8x8xf32>
    %231 = vector.extract_strided_slice %227 {offsets = [0, 0, 0], sizes = [2, 8, 8], strides = [1, 1, 1]} : vector<2x8x32xf32> to vector<2x8x8xf32>
    "tpu.trace_start"() <{level = 10 : i32, message = "bqd,bkd->bqk"}> : () -> ()
    %cst_94 = arith.constant dense<0.000000e+00> : vector<2x8x8xf32>
    %232 = tpu.matmul %230, %231, %cst_94 {dimension_numbers = #tpu.dot_dimension_numbers<[2], [2], [1], [1], [0, 0, 0, 1, 1, 1], [0], [0]>} : vector<2x8x8xf32>, vector<2x8x8xf32>, vector<2x8x8xf32> -> vector<2x8x8xf32>
    "tpu.trace_stop"() : () -> ()
    %cst_95 = arith.constant 0.353553385 : f32
    %233 = vector.broadcast %cst_95 : f32 to vector<2x8x8xf32>
    %234 = arith.mulf %232, %233 : vector<2x8x8xf32>
    %cst_96 = arith.constant 0.000000e+00 : f32
    %235 = vector.broadcast %cst_96 : f32 to vector<2x1x8xf32>
    %236 = arith.cmpf ogt, %0, %235 : vector<2x1x8xf32>
    %cst_97 = arith.constant -1.000000e+09 : f32
    %237 = vector.shape_cast %236 : vector<2x1x8xi1> to vector<2x1x8xi1>
    %238 = vector.broadcast %237 : vector<2x1x8xi1> to vector<2x8x8xi1>
    %239 = vector.broadcast %cst_97 : f32 to vector<2x8x8xf32>
    %240 = arith.select %238, %234, %239 : vector<2x8x8xi1>, vector<2x8x8xf32>
    %cst_98 = arith.constant dense<0xFF800000> : vector<2x8xf32>
    %241 = vector.multi_reduction <maximumf>, %240, %cst_98 [2] : vector<2x8x8xf32> to vector<2x8xf32>
    %242 = vector.shape_cast %241 : vector<2x8xf32> to vector<2x8x1xf32>
    %243 = vector.broadcast %242 : vector<2x8x1xf32> to vector<2x8x8xf32>
    %244 = arith.subf %240, %243 : vector<2x8x8xf32>
    %245 = math.exp %244 : vector<2x8x8xf32>
    %cst_99 = arith.constant dense<0.000000e+00> : vector<2x8xf32>
    %246 = vector.multi_reduction <add>, %245, %cst_99 [2] : vector<2x8x8xf32> to vector<2x8xf32>
    %247 = vector.shape_cast %246 : vector<2x8xf32> to vector<2x8x1xf32>
    %248 = tpu.reciprocal %247 {approx = true} : vector<2x8x1xf32> -> vector<2x8x1xf32>
    %249 = vector.broadcast %248 : vector<2x8x1xf32> to vector<2x8x8xf32>
    %250 = arith.mulf %245, %249 : vector<2x8x8xf32>
    %251 = vector.extract_strided_slice %229 {offsets = [0, 0, 0], sizes = [2, 8, 8], strides = [1, 1, 1]} : vector<2x8x32xf32> to vector<2x8x8xf32>
    "tpu.trace_start"() <{level = 10 : i32, message = "bqk,bkd->bqd"}> : () -> ()
    %cst_100 = arith.constant dense<0.000000e+00> : vector<2x8x8xf32>
    %252 = tpu.matmul %250, %251, %cst_100 {dimension_numbers = #tpu.dot_dimension_numbers<[2], [1], [1], [2], [0, 0, 0, 1, 1, 2], [0], [0]>} : vector<2x8x8xf32>, vector<2x8x8xf32>, vector<2x8x8xf32> -> vector<2x8x8xf32>
    "tpu.trace_stop"() : () -> ()
    %253 = vector.extract_strided_slice %225 {offsets = [0, 0, 8], sizes = [2, 8, 8], strides = [1, 1, 1]} : vector<2x8x32xf32> to vector<2x8x8xf32>
    %254 = vector.extract_strided_slice %227 {offsets = [0, 0, 8], sizes = [2, 8, 8], strides = [1, 1, 1]} : vector<2x8x32xf32> to vector<2x8x8xf32>
    "tpu.trace_start"() <{level = 10 : i32, message = "bqd,bkd->bqk"}> : () -> ()
    %cst_101 = arith.constant dense<0.000000e+00> : vector<2x8x8xf32>
    %255 = tpu.matmul %253, %254, %cst_101 {dimension_numbers = #tpu.dot_dimension_numbers<[2], [2], [1], [1], [0, 0, 0, 1, 1, 1], [0], [0]>} : vector<2x8x8xf32>, vector<2x8x8xf32>, vector<2x8x8xf32> -> vector<2x8x8xf32>
    "tpu.trace_stop"() : () -> ()
    %cst_102 = arith.constant 0.353553385 : f32
    %256 = vector.broadcast %cst_102 : f32 to vector<2x8x8xf32>
    %257 = arith.mulf %255, %256 : vector<2x8x8xf32>
    %cst_103 = arith.constant 0.000000e+00 : f32
    %258 = vector.broadcast %cst_103 : f32 to vector<2x1x8xf32>
    %259 = arith.cmpf ogt, %0, %258 : vector<2x1x8xf32>
    %cst_104 = arith.constant -1.000000e+09 : f32
    %260 = vector.shape_cast %259 : vector<2x1x8xi1> to vector<2x1x8xi1>
    %261 = vector.broadcast %260 : vector<2x1x8xi1> to vector<2x8x8xi1>
    %262 = vector.broadcast %cst_104 : f32 to vector<2x8x8xf32>
    %263 = arith.select %261, %257, %262 : vector<2x8x8xi1>, vector<2x8x8xf32>
    %cst_105 = arith.constant dense<0xFF800000> : vector<2x8xf32>
    %264 = vector.multi_reduction <maximumf>, %263, %cst_105 [2] : vector<2x8x8xf32> to vector<2x8xf32>
    %265 = vector.shape_cast %264 : vector<2x8xf32> to vector<2x8x1xf32>
    %266 = vector.broadcast %265 : vector<2x8x1xf32> to vector<2x8x8xf32>
    %267 = arith.subf %263, %266 : vector<2x8x8xf32>
    %268 = math.exp %267 : vector<2x8x8xf32>
    %cst_106 = arith.constant dense<0.000000e+00> : vector<2x8xf32>
    %269 = vector.multi_reduction <add>, %268, %cst_106 [2] : vector<2x8x8xf32> to vector<2x8xf32>
    %270 = vector.shape_cast %269 : vector<2x8xf32> to vector<2x8x1xf32>
    %271 = tpu.reciprocal %270 {approx = true} : vector<2x8x1xf32> -> vector<2x8x1xf32>
    %272 = vector.broadcast %271 : vector<2x8x1xf32> to vector<2x8x8xf32>
    %273 = arith.mulf %268, %272 : vector<2x8x8xf32>
    %274 = vector.extract_strided_slice %229 {offsets = [0, 0, 8], sizes = [2, 8, 8], strides = [1, 1, 1]} : vector<2x8x32xf32> to vector<2x8x8xf32>
    "tpu.trace_start"() <{level = 10 : i32, message = "bqk,bkd->bqd"}> : () -> ()
    %cst_107 = arith.constant dense<0.000000e+00> : vector<2x8x8xf32>
    %275 = tpu.matmul %273, %274, %cst_107 {dimension_numbers = #tpu.dot_dimension_numbers<[2], [1], [1], [2], [0, 0, 0, 1, 1, 2], [0], [0]>} : vector<2x8x8xf32>, vector<2x8x8xf32>, vector<2x8x8xf32> -> vector<2x8x8xf32>
    "tpu.trace_stop"() : () -> ()
    %276 = vector.extract_strided_slice %225 {offsets = [0, 0, 16], sizes = [2, 8, 8], strides = [1, 1, 1]} : vector<2x8x32xf32> to vector<2x8x8xf32>
    %277 = vector.extract_strided_slice %227 {offsets = [0, 0, 16], sizes = [2, 8, 8], strides = [1, 1, 1]} : vector<2x8x32xf32> to vector<2x8x8xf32>
    "tpu.trace_start"() <{level = 10 : i32, message = "bqd,bkd->bqk"}> : () -> ()
    %cst_108 = arith.constant dense<0.000000e+00> : vector<2x8x8xf32>
    %278 = tpu.matmul %276, %277, %cst_108 {dimension_numbers = #tpu.dot_dimension_numbers<[2], [2], [1], [1], [0, 0, 0, 1, 1, 1], [0], [0]>} : vector<2x8x8xf32>, vector<2x8x8xf32>, vector<2x8x8xf32> -> vector<2x8x8xf32>
    "tpu.trace_stop"() : () -> ()
    %cst_109 = arith.constant 0.353553385 : f32
    %279 = vector.broadcast %cst_109 : f32 to vector<2x8x8xf32>
    %280 = arith.mulf %278, %279 : vector<2x8x8xf32>
    %cst_110 = arith.constant 0.000000e+00 : f32
    %281 = vector.broadcast %cst_110 : f32 to vector<2x1x8xf32>
    %282 = arith.cmpf ogt, %0, %281 : vector<2x1x8xf32>
    %cst_111 = arith.constant -1.000000e+09 : f32
    %283 = vector.shape_cast %282 : vector<2x1x8xi1> to vector<2x1x8xi1>
    %284 = vector.broadcast %283 : vector<2x1x8xi1> to vector<2x8x8xi1>
    %285 = vector.broadcast %cst_111 : f32 to vector<2x8x8xf32>
    %286 = arith.select %284, %280, %285 : vector<2x8x8xi1>, vector<2x8x8xf32>
    %cst_112 = arith.constant dense<0xFF800000> : vector<2x8xf32>
    %287 = vector.multi_reduction <maximumf>, %286, %cst_112 [2] : vector<2x8x8xf32> to vector<2x8xf32>
    %288 = vector.shape_cast %287 : vector<2x8xf32> to vector<2x8x1xf32>
    %289 = vector.broadcast %288 : vector<2x8x1xf32> to vector<2x8x8xf32>
    %290 = arith.subf %286, %289 : vector<2x8x8xf32>
    %291 = math.exp %290 : vector<2x8x8xf32>
    %cst_113 = arith.constant dense<0.000000e+00> : vector<2x8xf32>
    %292 = vector.multi_reduction <add>, %291, %cst_113 [2] : vector<2x8x8xf32> to vector<2x8xf32>
    %293 = vector.shape_cast %292 : vector<2x8xf32> to vector<2x8x1xf32>
    %294 = tpu.reciprocal %293 {approx = true} : vector<2x8x1xf32> -> vector<2x8x1xf32>
    %295 = vector.broadcast %294 : vector<2x8x1xf32> to vector<2x8x8xf32>
    %296 = arith.mulf %291, %295 : vector<2x8x8xf32>
    %297 = vector.extract_strided_slice %229 {offsets = [0, 0, 16], sizes = [2, 8, 8], strides = [1, 1, 1]} : vector<2x8x32xf32> to vector<2x8x8xf32>
    "tpu.trace_start"() <{level = 10 : i32, message = "bqk,bkd->bqd"}> : () -> ()
    %cst_114 = arith.constant dense<0.000000e+00> : vector<2x8x8xf32>
    %298 = tpu.matmul %296, %297, %cst_114 {dimension_numbers = #tpu.dot_dimension_numbers<[2], [1], [1], [2], [0, 0, 0, 1, 1, 2], [0], [0]>} : vector<2x8x8xf32>, vector<2x8x8xf32>, vector<2x8x8xf32> -> vector<2x8x8xf32>
    "tpu.trace_stop"() : () -> ()
    %299 = vector.extract_strided_slice %225 {offsets = [0, 0, 24], sizes = [2, 8, 8], strides = [1, 1, 1]} : vector<2x8x32xf32> to vector<2x8x8xf32>
    %300 = vector.extract_strided_slice %227 {offsets = [0, 0, 24], sizes = [2, 8, 8], strides = [1, 1, 1]} : vector<2x8x32xf32> to vector<2x8x8xf32>
    "tpu.trace_start"() <{level = 10 : i32, message = "bqd,bkd->bqk"}> : () -> ()
    %cst_115 = arith.constant dense<0.000000e+00> : vector<2x8x8xf32>
    %301 = tpu.matmul %299, %300, %cst_115 {dimension_numbers = #tpu.dot_dimension_numbers<[2], [2], [1], [1], [0, 0, 0, 1, 1, 1], [0], [0]>} : vector<2x8x8xf32>, vector<2x8x8xf32>, vector<2x8x8xf32> -> vector<2x8x8xf32>
    "tpu.trace_stop"() : () -> ()
    %cst_116 = arith.constant 0.353553385 : f32
    %302 = vector.broadcast %cst_116 : f32 to vector<2x8x8xf32>
    %303 = arith.mulf %301, %302 : vector<2x8x8xf32>
    %cst_117 = arith.constant 0.000000e+00 : f32
    %304 = vector.broadcast %cst_117 : f32 to vector<2x1x8xf32>
    %305 = arith.cmpf ogt, %0, %304 : vector<2x1x8xf32>
    %cst_118 = arith.constant -1.000000e+09 : f32
    %306 = vector.shape_cast %305 : vector<2x1x8xi1> to vector<2x1x8xi1>
    %307 = vector.broadcast %306 : vector<2x1x8xi1> to vector<2x8x8xi1>
    %308 = vector.broadcast %cst_118 : f32 to vector<2x8x8xf32>
    %309 = arith.select %307, %303, %308 : vector<2x8x8xi1>, vector<2x8x8xf32>
    %cst_119 = arith.constant dense<0xFF800000> : vector<2x8xf32>
    %310 = vector.multi_reduction <maximumf>, %309, %cst_119 [2] : vector<2x8x8xf32> to vector<2x8xf32>
    %311 = vector.shape_cast %310 : vector<2x8xf32> to vector<2x8x1xf32>
    %312 = vector.broadcast %311 : vector<2x8x1xf32> to vector<2x8x8xf32>
    %313 = arith.subf %309, %312 : vector<2x8x8xf32>
    %314 = math.exp %313 : vector<2x8x8xf32>
    %cst_120 = arith.constant dense<0.000000e+00> : vector<2x8xf32>
    %315 = vector.multi_reduction <add>, %314, %cst_120 [2] : vector<2x8x8xf32> to vector<2x8xf32>
    %316 = vector.shape_cast %315 : vector<2x8xf32> to vector<2x8x1xf32>
    %317 = tpu.reciprocal %316 {approx = true} : vector<2x8x1xf32> -> vector<2x8x1xf32>
    %318 = vector.broadcast %317 : vector<2x8x1xf32> to vector<2x8x8xf32>
    %319 = arith.mulf %314, %318 : vector<2x8x8xf32>
    %320 = vector.extract_strided_slice %229 {offsets = [0, 0, 24], sizes = [2, 8, 8], strides = [1, 1, 1]} : vector<2x8x32xf32> to vector<2x8x8xf32>
    "tpu.trace_start"() <{level = 10 : i32, message = "bqk,bkd->bqd"}> : () -> ()
    %cst_121 = arith.constant dense<0.000000e+00> : vector<2x8x8xf32>
    %321 = tpu.matmul %319, %320, %cst_121 {dimension_numbers = #tpu.dot_dimension_numbers<[2], [1], [1], [2], [0, 0, 0, 1, 1, 2], [0], [0]>} : vector<2x8x8xf32>, vector<2x8x8xf32>, vector<2x8x8xf32> -> vector<2x8x8xf32>
    "tpu.trace_stop"() : () -> ()
    %322 = tpu.concatenate %252, %275, %298, %321 in 2 : vector<2x8x8xf32>, vector<2x8x8xf32>, vector<2x8x8xf32>, vector<2x8x8xf32> -> vector<2x8x32xf32>
    %323 = vector.shape_cast %322 : vector<2x8x32xf32> to vector<16x32xf32>
    %c1_122 = arith.constant 1 : index
    %c0_123 = arith.constant 0 : index
    %c0_124 = arith.constant 0 : index
    %324 = vector.load %arg6[%c1_122, %c0_123, %c0_124] : memref<2x32x32xf32, #tpu.memory_space<vmem>>, vector<1x32x32xf32>
    %325 = vector.shape_cast %324 : vector<1x32x32xf32> to vector<32x32xf32>
    %cst_125 = arith.constant dense<0.000000e+00> : vector<16x32xf32>
    %326 = tpu.matmul %323, %325, %cst_125 {dimension_numbers = #tpu.dot_dimension_numbers<[1], [0], [0], [1], [0, 0, 1, 1], [], []>} : vector<16x32xf32>, vector<32x32xf32>, vector<16x32xf32> -> vector<16x32xf32>
    %327 = arith.addf %189, %326 : vector<16x32xf32>
    %c1_126 = arith.constant 1 : index
    %c0_127 = arith.constant 0 : index
    %c0_128 = arith.constant 0 : index
    %328 = vector.load %arg7[%c1_126, %c0_127, %c0_128] : memref<2x1x32xf32, #tpu.memory_space<vmem>>, vector<1x1x32xf32>
    %329 = vector.shape_cast %328 : vector<1x1x32xf32> to vector<1x32xf32>
    %330 = vector.broadcast %329 : vector<1x32xf32> to vector<16x32xf32>
    %331 = arith.addf %327, %330 : vector<16x32xf32>
    %c1_129 = arith.constant 1 : index
    %c0_130 = arith.constant 0 : index
    %c0_131 = arith.constant 0 : index
    %332 = vector.load %arg13[%c1_129, %c0_130, %c0_131] : memref<2x2x32xf32, #tpu.memory_space<vmem>>, vector<1x2x32xf32>
    %333 = vector.shape_cast %332 : vector<1x2x32xf32> to vector<2x32xf32>
    %334 = vector.extract_strided_slice %333 {offsets = [0, 0], sizes = [1, 32], strides = [1, 1]} : vector<2x32xf32> to vector<1x32xf32>
    %335 = vector.extract_strided_slice %333 {offsets = [1, 0], sizes = [1, 32], strides = [1, 1]} : vector<2x32xf32> to vector<1x32xf32>
    %cst_132 = arith.constant dense<0.000000e+00> : vector<16xf32>
    %336 = vector.multi_reduction <add>, %331, %cst_132 [1] : vector<16x32xf32> to vector<16xf32>
    %337 = vector.shape_cast %336 : vector<16xf32> to vector<16x1xf32>
    %cst_133 = arith.constant 3.200000e+01 : f32
    %338 = vector.broadcast %cst_133 : f32 to vector<16x1xf32>
    %339 = arith.divf %337, %338 : vector<16x1xf32>
    %340 = vector.broadcast %339 : vector<16x1xf32> to vector<16x32xf32>
    %341 = arith.subf %331, %340 : vector<16x32xf32>
    %342 = arith.mulf %341, %341 : vector<16x32xf32>
    %cst_134 = arith.constant dense<0.000000e+00> : vector<16xf32>
    %343 = vector.multi_reduction <add>, %342, %cst_134 [1] : vector<16x32xf32> to vector<16xf32>
    %344 = vector.shape_cast %343 : vector<16xf32> to vector<16x1xf32>
    %cst_135 = arith.constant 3.100000e+01 : f32
    %345 = vector.broadcast %cst_135 : f32 to vector<16x1xf32>
    %346 = arith.divf %344, %345 : vector<16x1xf32>
    %347 = math.sqrt %346 : vector<16x1xf32>
    %cst_136 = arith.constant 9.99999997E-7 : f32
    %348 = vector.broadcast %cst_136 : f32 to vector<16x1xf32>
    %349 = arith.addf %347, %348 : vector<16x1xf32>
    %350 = tpu.reciprocal %349 {approx = true} : vector<16x1xf32> -> vector<16x1xf32>
    %351 = vector.broadcast %339 : vector<16x1xf32> to vector<16x32xf32>
    %352 = arith.subf %331, %351 : vector<16x32xf32>
    %353 = vector.broadcast %334 : vector<1x32xf32> to vector<16x32xf32>
    %354 = arith.mulf %353, %352 : vector<16x32xf32>
    %355 = vector.broadcast %350 : vector<16x1xf32> to vector<16x32xf32>
    %356 = arith.mulf %354, %355 : vector<16x32xf32>
    %357 = vector.broadcast %335 : vector<1x32xf32> to vector<16x32xf32>
    %358 = arith.addf %356, %357 : vector<16x32xf32>
    %c1_137 = arith.constant 1 : index
    %c0_138 = arith.constant 0 : index
    %c0_139 = arith.constant 0 : index
    %359 = vector.load %arg8[%c1_137, %c0_138, %c0_139] : memref<2x32x64xf32, #tpu.memory_space<vmem>>, vector<1x32x64xf32>
    %360 = vector.shape_cast %359 : vector<1x32x64xf32> to vector<32x64xf32>
    %cst_140 = arith.constant dense<0.000000e+00> : vector<16x64xf32>
    %361 = tpu.matmul %358, %360, %cst_140 {dimension_numbers = #tpu.dot_dimension_numbers<[1], [0], [0], [1], [0, 0, 1, 1], [], []>} : vector<16x32xf32>, vector<32x64xf32>, vector<16x64xf32> -> vector<16x64xf32>
    %c1_141 = arith.constant 1 : index
    %c0_142 = arith.constant 0 : index
    %c0_143 = arith.constant 0 : index
    %362 = vector.load %arg9[%c1_141, %c0_142, %c0_143] : memref<2x1x64xf32, #tpu.memory_space<vmem>>, vector<1x1x64xf32>
    %363 = vector.shape_cast %362 : vector<1x1x64xf32> to vector<1x64xf32>
    %364 = vector.broadcast %363 : vector<1x64xf32> to vector<16x64xf32>
    %365 = arith.addf %361, %364 : vector<16x64xf32>
    %cst_144 = arith.constant 0.000000e+00 : f32
    %366 = vector.broadcast %cst_144 : f32 to vector<16x64xf32>
    %367 = arith.maximumf %365, %366 : vector<16x64xf32>
    %c1_145 = arith.constant 1 : index
    %c0_146 = arith.constant 0 : index
    %c0_147 = arith.constant 0 : index
    %368 = vector.load %arg10[%c1_145, %c0_146, %c0_147] : memref<2x64x32xf32, #tpu.memory_space<vmem>>, vector<1x64x32xf32>
    %369 = vector.shape_cast %368 : vector<1x64x32xf32> to vector<64x32xf32>
    %cst_148 = arith.constant dense<0.000000e+00> : vector<16x32xf32>
    %370 = tpu.matmul %367, %369, %cst_148 {dimension_numbers = #tpu.dot_dimension_numbers<[1], [0], [0], [1], [0, 0, 1, 1], [], []>} : vector<16x64xf32>, vector<64x32xf32>, vector<16x32xf32> -> vector<16x32xf32>
    %371 = arith.addf %331, %370 : vector<16x32xf32>
    %c1_149 = arith.constant 1 : index
    %c0_150 = arith.constant 0 : index
    %c0_151 = arith.constant 0 : index
    %372 = vector.load %arg11[%c1_149, %c0_150, %c0_151] : memref<2x1x32xf32, #tpu.memory_space<vmem>>, vector<1x1x32xf32>
    %373 = vector.shape_cast %372 : vector<1x1x32xf32> to vector<1x32xf32>
    %374 = vector.broadcast %373 : vector<1x32xf32> to vector<16x32xf32>
    %375 = arith.addf %371, %374 : vector<16x32xf32>
    %c0_152 = arith.constant 0 : index
    %c0_153 = arith.constant 0 : index
    %376 = vector.load %arg14[%c0_152, %c0_153] : memref<2x32xf32, #tpu.memory_space<vmem>>, vector<2x32xf32>
    %377 = vector.extract_strided_slice %376 {offsets = [0, 0], sizes = [1, 32], strides = [1, 1]} : vector<2x32xf32> to vector<1x32xf32>
    %378 = vector.extract_strided_slice %376 {offsets = [1, 0], sizes = [1, 32], strides = [1, 1]} : vector<2x32xf32> to vector<1x32xf32>
    %cst_154 = arith.constant dense<0.000000e+00> : vector<16xf32>
    %379 = vector.multi_reduction <add>, %375, %cst_154 [1] : vector<16x32xf32> to vector<16xf32>
    %380 = vector.shape_cast %379 : vector<16xf32> to vector<16x1xf32>
    %cst_155 = arith.constant 3.200000e+01 : f32
    %381 = vector.broadcast %cst_155 : f32 to vector<16x1xf32>
    %382 = arith.divf %380, %381 : vector<16x1xf32>
    %383 = vector.broadcast %382 : vector<16x1xf32> to vector<16x32xf32>
    %384 = arith.subf %375, %383 : vector<16x32xf32>
    %385 = arith.mulf %384, %384 : vector<16x32xf32>
    %cst_156 = arith.constant dense<0.000000e+00> : vector<16xf32>
    %386 = vector.multi_reduction <add>, %385, %cst_156 [1] : vector<16x32xf32> to vector<16xf32>
    %387 = vector.shape_cast %386 : vector<16xf32> to vector<16x1xf32>
    %cst_157 = arith.constant 3.100000e+01 : f32
    %388 = vector.broadcast %cst_157 : f32 to vector<16x1xf32>
    %389 = arith.divf %387, %388 : vector<16x1xf32>
    %390 = math.sqrt %389 : vector<16x1xf32>
    %cst_158 = arith.constant 9.99999997E-7 : f32
    %391 = vector.broadcast %cst_158 : f32 to vector<16x1xf32>
    %392 = arith.addf %390, %391 : vector<16x1xf32>
    %393 = tpu.reciprocal %392 {approx = true} : vector<16x1xf32> -> vector<16x1xf32>
    %394 = vector.broadcast %382 : vector<16x1xf32> to vector<16x32xf32>
    %395 = arith.subf %375, %394 : vector<16x32xf32>
    %396 = vector.broadcast %377 : vector<1x32xf32> to vector<16x32xf32>
    %397 = arith.mulf %396, %395 : vector<16x32xf32>
    %398 = vector.broadcast %393 : vector<16x1xf32> to vector<16x32xf32>
    %399 = arith.mulf %397, %398 : vector<16x32xf32>
    %400 = vector.broadcast %378 : vector<1x32xf32> to vector<16x32xf32>
    %401 = arith.addf %399, %400 : vector<16x32xf32>
    %c0_159 = arith.constant 0 : index
    %c0_160 = arith.constant 0 : index
    %c0_161 = arith.constant 0 : index
    %402 = vector.load %arg1[%c0_159, %c0_160, %c0_161] : memref<2x8x32xf32, #tpu.memory_space<vmem>>, vector<2x8x32xf32>
    %403 = vector.shape_cast %402 : vector<2x8x32xf32> to vector<16x32xf32>
    %c0_162 = arith.constant 0 : index
    %c0_163 = arith.constant 0 : index
    %c0_164 = arith.constant 0 : index
    %404 = vector.load %arg29[%c0_162, %c0_163, %c0_164] : memref<2x2x32xf32, #tpu.memory_space<vmem>>, vector<1x2x32xf32>
    %405 = vector.shape_cast %404 : vector<1x2x32xf32> to vector<2x32xf32>
    %406 = vector.extract_strided_slice %405 {offsets = [0, 0], sizes = [1, 32], strides = [1, 1]} : vector<2x32xf32> to vector<1x32xf32>
    %407 = vector.extract_strided_slice %405 {offsets = [1, 0], sizes = [1, 32], strides = [1, 1]} : vector<2x32xf32> to vector<1x32xf32>
    %cst_165 = arith.constant dense<0.000000e+00> : vector<16xf32>
    %408 = vector.multi_reduction <add>, %403, %cst_165 [1] : vector<16x32xf32> to vector<16xf32>
    %409 = vector.shape_cast %408 : vector<16xf32> to vector<16x1xf32>
    %cst_166 = arith.constant 3.200000e+01 : f32
    %410 = vector.broadcast %cst_166 : f32 to vector<16x1xf32>
    %411 = arith.divf %409, %410 : vector<16x1xf32>
    %412 = vector.broadcast %411 : vector<16x1xf32> to vector<16x32xf32>
    %413 = arith.subf %403, %412 : vector<16x32xf32>
    %414 = arith.mulf %413, %413 : vector<16x32xf32>
    %cst_167 = arith.constant dense<0.000000e+00> : vector<16xf32>
    %415 = vector.multi_reduction <add>, %414, %cst_167 [1] : vector<16x32xf32> to vector<16xf32>
    %416 = vector.shape_cast %415 : vector<16xf32> to vector<16x1xf32>
    %cst_168 = arith.constant 3.100000e+01 : f32
    %417 = vector.broadcast %cst_168 : f32 to vector<16x1xf32>
    %418 = arith.divf %416, %417 : vector<16x1xf32>
    %419 = math.sqrt %418 : vector<16x1xf32>
    %cst_169 = arith.constant 9.99999997E-7 : f32
    %420 = vector.broadcast %cst_169 : f32 to vector<16x1xf32>
    %421 = arith.addf %419, %420 : vector<16x1xf32>
    %422 = tpu.reciprocal %421 {approx = true} : vector<16x1xf32> -> vector<16x1xf32>
    %423 = vector.broadcast %411 : vector<16x1xf32> to vector<16x32xf32>
    %424 = arith.subf %403, %423 : vector<16x32xf32>
    %425 = vector.broadcast %406 : vector<1x32xf32> to vector<16x32xf32>
    %426 = arith.mulf %425, %424 : vector<16x32xf32>
    %427 = vector.broadcast %422 : vector<16x1xf32> to vector<16x32xf32>
    %428 = arith.mulf %426, %427 : vector<16x32xf32>
    %429 = vector.broadcast %407 : vector<1x32xf32> to vector<16x32xf32>
    %430 = arith.addf %428, %429 : vector<16x32xf32>
    %c0_170 = arith.constant 0 : index
    %c0_171 = arith.constant 0 : index
    %c0_172 = arith.constant 0 : index
    %431 = vector.load %arg15[%c0_170, %c0_171, %c0_172] : memref<2x32x96xf32, #tpu.memory_space<vmem>>, vector<1x32x96xf32>
    %432 = vector.shape_cast %431 : vector<1x32x96xf32> to vector<32x96xf32>
    %cst_173 = arith.constant dense<0.000000e+00> : vector<16x96xf32>
    %433 = tpu.matmul %430, %432, %cst_173 {dimension_numbers = #tpu.dot_dimension_numbers<[1], [0], [0], [1], [0, 0, 1, 1], [], []>} : vector<16x32xf32>, vector<32x96xf32>, vector<16x96xf32> -> vector<16x96xf32>
    %c0_174 = arith.constant 0 : index
    %c0_175 = arith.constant 0 : index
    %c0_176 = arith.constant 0 : index
    %434 = vector.load %arg16[%c0_174, %c0_175, %c0_176] : memref<2x1x96xf32, #tpu.memory_space<vmem>>, vector<1x1x96xf32>
    %435 = vector.shape_cast %434 : vector<1x1x96xf32> to vector<1x96xf32>
    %436 = vector.broadcast %435 : vector<1x96xf32> to vector<16x96xf32>
    %437 = arith.addf %433, %436 : vector<16x96xf32>
    %438 = vector.extract_strided_slice %437 {offsets = [0, 0], sizes = [16, 32], strides = [1, 1]} : vector<16x96xf32> to vector<16x32xf32>
    %439 = vector.shape_cast %438 : vector<16x32xf32> to vector<2x8x32xf32>
    %440 = vector.extract_strided_slice %437 {offsets = [0, 32], sizes = [16, 32], strides = [1, 1]} : vector<16x96xf32> to vector<16x32xf32>
    %441 = vector.shape_cast %440 : vector<16x32xf32> to vector<2x8x32xf32>
    %442 = vector.extract_strided_slice %437 {offsets = [0, 64], sizes = [16, 32], strides = [1, 1]} : vector<16x96xf32> to vector<16x32xf32>
    %443 = vector.shape_cast %442 : vector<16x32xf32> to vector<2x8x32xf32>
    %444 = vector.extract_strided_slice %439 {offsets = [0, 0, 0], sizes = [2, 8, 8], strides = [1, 1, 1]} : vector<2x8x32xf32> to vector<2x8x8xf32>
    %445 = vector.extract_strided_slice %441 {offsets = [0, 0, 0], sizes = [2, 8, 8], strides = [1, 1, 1]} : vector<2x8x32xf32> to vector<2x8x8xf32>
    "tpu.trace_start"() <{level = 10 : i32, message = "bqd,bkd->bqk"}> : () -> ()
    %cst_177 = arith.constant dense<0.000000e+00> : vector<2x8x8xf32>
    %446 = tpu.matmul %444, %445, %cst_177 {dimension_numbers = #tpu.dot_dimension_numbers<[2], [2], [1], [1], [0, 0, 0, 1, 1, 1], [0], [0]>} : vector<2x8x8xf32>, vector<2x8x8xf32>, vector<2x8x8xf32> -> vector<2x8x8xf32>
    "tpu.trace_stop"() : () -> ()
    %cst_178 = arith.constant 0.353553385 : f32
    %447 = vector.broadcast %cst_178 : f32 to vector<2x8x8xf32>
    %448 = arith.mulf %446, %447 : vector<2x8x8xf32>
    %cst_179 = arith.constant 0.000000e+00 : f32
    %449 = vector.broadcast %cst_179 : f32 to vector<2x8x8xf32>
    %450 = arith.cmpf ogt, %1, %449 : vector<2x8x8xf32>
    %cst_180 = arith.constant -1.000000e+09 : f32
    %451 = vector.broadcast %cst_180 : f32 to vector<2x8x8xf32>
    %452 = arith.select %450, %448, %451 : vector<2x8x8xi1>, vector<2x8x8xf32>
    %cst_181 = arith.constant dense<0xFF800000> : vector<2x8xf32>
    %453 = vector.multi_reduction <maximumf>, %452, %cst_181 [2] : vector<2x8x8xf32> to vector<2x8xf32>
    %454 = vector.shape_cast %453 : vector<2x8xf32> to vector<2x8x1xf32>
    %455 = vector.broadcast %454 : vector<2x8x1xf32> to vector<2x8x8xf32>
    %456 = arith.subf %452, %455 : vector<2x8x8xf32>
    %457 = math.exp %456 : vector<2x8x8xf32>
    %cst_182 = arith.constant dense<0.000000e+00> : vector<2x8xf32>
    %458 = vector.multi_reduction <add>, %457, %cst_182 [2] : vector<2x8x8xf32> to vector<2x8xf32>
    %459 = vector.shape_cast %458 : vector<2x8xf32> to vector<2x8x1xf32>
    %460 = tpu.reciprocal %459 {approx = true} : vector<2x8x1xf32> -> vector<2x8x1xf32>
    %461 = vector.broadcast %460 : vector<2x8x1xf32> to vector<2x8x8xf32>
    %462 = arith.mulf %457, %461 : vector<2x8x8xf32>
    %463 = vector.extract_strided_slice %443 {offsets = [0, 0, 0], sizes = [2, 8, 8], strides = [1, 1, 1]} : vector<2x8x32xf32> to vector<2x8x8xf32>
    "tpu.trace_start"() <{level = 10 : i32, message = "bqk,bkd->bqd"}> : () -> ()
    %cst_183 = arith.constant dense<0.000000e+00> : vector<2x8x8xf32>
    %464 = tpu.matmul %462, %463, %cst_183 {dimension_numbers = #tpu.dot_dimension_numbers<[2], [1], [1], [2], [0, 0, 0, 1, 1, 2], [0], [0]>} : vector<2x8x8xf32>, vector<2x8x8xf32>, vector<2x8x8xf32> -> vector<2x8x8xf32>
    "tpu.trace_stop"() : () -> ()
    %465 = vector.extract_strided_slice %439 {offsets = [0, 0, 8], sizes = [2, 8, 8], strides = [1, 1, 1]} : vector<2x8x32xf32> to vector<2x8x8xf32>
    %466 = vector.extract_strided_slice %441 {offsets = [0, 0, 8], sizes = [2, 8, 8], strides = [1, 1, 1]} : vector<2x8x32xf32> to vector<2x8x8xf32>
    "tpu.trace_start"() <{level = 10 : i32, message = "bqd,bkd->bqk"}> : () -> ()
    %cst_184 = arith.constant dense<0.000000e+00> : vector<2x8x8xf32>
    %467 = tpu.matmul %465, %466, %cst_184 {dimension_numbers = #tpu.dot_dimension_numbers<[2], [2], [1], [1], [0, 0, 0, 1, 1, 1], [0], [0]>} : vector<2x8x8xf32>, vector<2x8x8xf32>, vector<2x8x8xf32> -> vector<2x8x8xf32>
    "tpu.trace_stop"() : () -> ()
    %cst_185 = arith.constant 0.353553385 : f32
    %468 = vector.broadcast %cst_185 : f32 to vector<2x8x8xf32>
    %469 = arith.mulf %467, %468 : vector<2x8x8xf32>
    %cst_186 = arith.constant 0.000000e+00 : f32
    %470 = vector.broadcast %cst_186 : f32 to vector<2x8x8xf32>
    %471 = arith.cmpf ogt, %1, %470 : vector<2x8x8xf32>
    %cst_187 = arith.constant -1.000000e+09 : f32
    %472 = vector.broadcast %cst_187 : f32 to vector<2x8x8xf32>
    %473 = arith.select %471, %469, %472 : vector<2x8x8xi1>, vector<2x8x8xf32>
    %cst_188 = arith.constant dense<0xFF800000> : vector<2x8xf32>
    %474 = vector.multi_reduction <maximumf>, %473, %cst_188 [2] : vector<2x8x8xf32> to vector<2x8xf32>
    %475 = vector.shape_cast %474 : vector<2x8xf32> to vector<2x8x1xf32>
    %476 = vector.broadcast %475 : vector<2x8x1xf32> to vector<2x8x8xf32>
    %477 = arith.subf %473, %476 : vector<2x8x8xf32>
    %478 = math.exp %477 : vector<2x8x8xf32>
    %cst_189 = arith.constant dense<0.000000e+00> : vector<2x8xf32>
    %479 = vector.multi_reduction <add>, %478, %cst_189 [2] : vector<2x8x8xf32> to vector<2x8xf32>
    %480 = vector.shape_cast %479 : vector<2x8xf32> to vector<2x8x1xf32>
    %481 = tpu.reciprocal %480 {approx = true} : vector<2x8x1xf32> -> vector<2x8x1xf32>
    %482 = vector.broadcast %481 : vector<2x8x1xf32> to vector<2x8x8xf32>
    %483 = arith.mulf %478, %482 : vector<2x8x8xf32>
    %484 = vector.extract_strided_slice %443 {offsets = [0, 0, 8], sizes = [2, 8, 8], strides = [1, 1, 1]} : vector<2x8x32xf32> to vector<2x8x8xf32>
    "tpu.trace_start"() <{level = 10 : i32, message = "bqk,bkd->bqd"}> : () -> ()
    %cst_190 = arith.constant dense<0.000000e+00> : vector<2x8x8xf32>
    %485 = tpu.matmul %483, %484, %cst_190 {dimension_numbers = #tpu.dot_dimension_numbers<[2], [1], [1], [2], [0, 0, 0, 1, 1, 2], [0], [0]>} : vector<2x8x8xf32>, vector<2x8x8xf32>, vector<2x8x8xf32> -> vector<2x8x8xf32>
    "tpu.trace_stop"() : () -> ()
    %486 = vector.extract_strided_slice %439 {offsets = [0, 0, 16], sizes = [2, 8, 8], strides = [1, 1, 1]} : vector<2x8x32xf32> to vector<2x8x8xf32>
    %487 = vector.extract_strided_slice %441 {offsets = [0, 0, 16], sizes = [2, 8, 8], strides = [1, 1, 1]} : vector<2x8x32xf32> to vector<2x8x8xf32>
    "tpu.trace_start"() <{level = 10 : i32, message = "bqd,bkd->bqk"}> : () -> ()
    %cst_191 = arith.constant dense<0.000000e+00> : vector<2x8x8xf32>
    %488 = tpu.matmul %486, %487, %cst_191 {dimension_numbers = #tpu.dot_dimension_numbers<[2], [2], [1], [1], [0, 0, 0, 1, 1, 1], [0], [0]>} : vector<2x8x8xf32>, vector<2x8x8xf32>, vector<2x8x8xf32> -> vector<2x8x8xf32>
    "tpu.trace_stop"() : () -> ()
    %cst_192 = arith.constant 0.353553385 : f32
    %489 = vector.broadcast %cst_192 : f32 to vector<2x8x8xf32>
    %490 = arith.mulf %488, %489 : vector<2x8x8xf32>
    %cst_193 = arith.constant 0.000000e+00 : f32
    %491 = vector.broadcast %cst_193 : f32 to vector<2x8x8xf32>
    %492 = arith.cmpf ogt, %1, %491 : vector<2x8x8xf32>
    %cst_194 = arith.constant -1.000000e+09 : f32
    %493 = vector.broadcast %cst_194 : f32 to vector<2x8x8xf32>
    %494 = arith.select %492, %490, %493 : vector<2x8x8xi1>, vector<2x8x8xf32>
    %cst_195 = arith.constant dense<0xFF800000> : vector<2x8xf32>
    %495 = vector.multi_reduction <maximumf>, %494, %cst_195 [2] : vector<2x8x8xf32> to vector<2x8xf32>
    %496 = vector.shape_cast %495 : vector<2x8xf32> to vector<2x8x1xf32>
    %497 = vector.broadcast %496 : vector<2x8x1xf32> to vector<2x8x8xf32>
    %498 = arith.subf %494, %497 : vector<2x8x8xf32>
    %499 = math.exp %498 : vector<2x8x8xf32>
    %cst_196 = arith.constant dense<0.000000e+00> : vector<2x8xf32>
    %500 = vector.multi_reduction <add>, %499, %cst_196 [2] : vector<2x8x8xf32> to vector<2x8xf32>
    %501 = vector.shape_cast %500 : vector<2x8xf32> to vector<2x8x1xf32>
    %502 = tpu.reciprocal %501 {approx = true} : vector<2x8x1xf32> -> vector<2x8x1xf32>
    %503 = vector.broadcast %502 : vector<2x8x1xf32> to vector<2x8x8xf32>
    %504 = arith.mulf %499, %503 : vector<2x8x8xf32>
    %505 = vector.extract_strided_slice %443 {offsets = [0, 0, 16], sizes = [2, 8, 8], strides = [1, 1, 1]} : vector<2x8x32xf32> to vector<2x8x8xf32>
    "tpu.trace_start"() <{level = 10 : i32, message = "bqk,bkd->bqd"}> : () -> ()
    %cst_197 = arith.constant dense<0.000000e+00> : vector<2x8x8xf32>
    %506 = tpu.matmul %504, %505, %cst_197 {dimension_numbers = #tpu.dot_dimension_numbers<[2], [1], [1], [2], [0, 0, 0, 1, 1, 2], [0], [0]>} : vector<2x8x8xf32>, vector<2x8x8xf32>, vector<2x8x8xf32> -> vector<2x8x8xf32>
    "tpu.trace_stop"() : () -> ()
    %507 = vector.extract_strided_slice %439 {offsets = [0, 0, 24], sizes = [2, 8, 8], strides = [1, 1, 1]} : vector<2x8x32xf32> to vector<2x8x8xf32>
    %508 = vector.extract_strided_slice %441 {offsets = [0, 0, 24], sizes = [2, 8, 8], strides = [1, 1, 1]} : vector<2x8x32xf32> to vector<2x8x8xf32>
    "tpu.trace_start"() <{level = 10 : i32, message = "bqd,bkd->bqk"}> : () -> ()
    %cst_198 = arith.constant dense<0.000000e+00> : vector<2x8x8xf32>
    %509 = tpu.matmul %507, %508, %cst_198 {dimension_numbers = #tpu.dot_dimension_numbers<[2], [2], [1], [1], [0, 0, 0, 1, 1, 1], [0], [0]>} : vector<2x8x8xf32>, vector<2x8x8xf32>, vector<2x8x8xf32> -> vector<2x8x8xf32>
    "tpu.trace_stop"() : () -> ()
    %cst_199 = arith.constant 0.353553385 : f32
    %510 = vector.broadcast %cst_199 : f32 to vector<2x8x8xf32>
    %511 = arith.mulf %509, %510 : vector<2x8x8xf32>
    %cst_200 = arith.constant 0.000000e+00 : f32
    %512 = vector.broadcast %cst_200 : f32 to vector<2x8x8xf32>
    %513 = arith.cmpf ogt, %1, %512 : vector<2x8x8xf32>
    %cst_201 = arith.constant -1.000000e+09 : f32
    %514 = vector.broadcast %cst_201 : f32 to vector<2x8x8xf32>
    %515 = arith.select %513, %511, %514 : vector<2x8x8xi1>, vector<2x8x8xf32>
    %cst_202 = arith.constant dense<0xFF800000> : vector<2x8xf32>
    %516 = vector.multi_reduction <maximumf>, %515, %cst_202 [2] : vector<2x8x8xf32> to vector<2x8xf32>
    %517 = vector.shape_cast %516 : vector<2x8xf32> to vector<2x8x1xf32>
    %518 = vector.broadcast %517 : vector<2x8x1xf32> to vector<2x8x8xf32>
    %519 = arith.subf %515, %518 : vector<2x8x8xf32>
    %520 = math.exp %519 : vector<2x8x8xf32>
    %cst_203 = arith.constant dense<0.000000e+00> : vector<2x8xf32>
    %521 = vector.multi_reduction <add>, %520, %cst_203 [2] : vector<2x8x8xf32> to vector<2x8xf32>
    %522 = vector.shape_cast %521 : vector<2x8xf32> to vector<2x8x1xf32>
    %523 = tpu.reciprocal %522 {approx = true} : vector<2x8x1xf32> -> vector<2x8x1xf32>
    %524 = vector.broadcast %523 : vector<2x8x1xf32> to vector<2x8x8xf32>
    %525 = arith.mulf %520, %524 : vector<2x8x8xf32>
    %526 = vector.extract_strided_slice %443 {offsets = [0, 0, 24], sizes = [2, 8, 8], strides = [1, 1, 1]} : vector<2x8x32xf32> to vector<2x8x8xf32>
    "tpu.trace_start"() <{level = 10 : i32, message = "bqk,bkd->bqd"}> : () -> ()
    %cst_204 = arith.constant dense<0.000000e+00> : vector<2x8x8xf32>
    %527 = tpu.matmul %525, %526, %cst_204 {dimension_numbers = #tpu.dot_dimension_numbers<[2], [1], [1], [2], [0, 0, 0, 1, 1, 2], [0], [0]>} : vector<2x8x8xf32>, vector<2x8x8xf32>, vector<2x8x8xf32> -> vector<2x8x8xf32>
    "tpu.trace_stop"() : () -> ()
    %528 = tpu.concatenate %464, %485, %506, %527 in 2 : vector<2x8x8xf32>, vector<2x8x8xf32>, vector<2x8x8xf32>, vector<2x8x8xf32> -> vector<2x8x32xf32>
    %529 = vector.shape_cast %528 : vector<2x8x32xf32> to vector<16x32xf32>
    %c0_205 = arith.constant 0 : index
    %c0_206 = arith.constant 0 : index
    %c0_207 = arith.constant 0 : index
    %530 = vector.load %arg17[%c0_205, %c0_206, %c0_207] : memref<2x32x32xf32, #tpu.memory_space<vmem>>, vector<1x32x32xf32>
    %531 = vector.shape_cast %530 : vector<1x32x32xf32> to vector<32x32xf32>
    %cst_208 = arith.constant dense<0.000000e+00> : vector<16x32xf32>
    %532 = tpu.matmul %529, %531, %cst_208 {dimension_numbers = #tpu.dot_dimension_numbers<[1], [0], [0], [1], [0, 0, 1, 1], [], []>} : vector<16x32xf32>, vector<32x32xf32>, vector<16x32xf32> -> vector<16x32xf32>
    %533 = arith.addf %403, %532 : vector<16x32xf32>
    %c0_209 = arith.constant 0 : index
    %c0_210 = arith.constant 0 : index
    %c0_211 = arith.constant 0 : index
    %534 = vector.load %arg18[%c0_209, %c0_210, %c0_211] : memref<2x1x32xf32, #tpu.memory_space<vmem>>, vector<1x1x32xf32>
    %535 = vector.shape_cast %534 : vector<1x1x32xf32> to vector<1x32xf32>
    %536 = vector.broadcast %535 : vector<1x32xf32> to vector<16x32xf32>
    %537 = arith.addf %533, %536 : vector<16x32xf32>
    %c0_212 = arith.constant 0 : index
    %c0_213 = arith.constant 0 : index
    %c0_214 = arith.constant 0 : index
    %538 = vector.load %arg30[%c0_212, %c0_213, %c0_214] : memref<2x2x32xf32, #tpu.memory_space<vmem>>, vector<1x2x32xf32>
    %539 = vector.shape_cast %538 : vector<1x2x32xf32> to vector<2x32xf32>
    %540 = vector.extract_strided_slice %539 {offsets = [0, 0], sizes = [1, 32], strides = [1, 1]} : vector<2x32xf32> to vector<1x32xf32>
    %541 = vector.extract_strided_slice %539 {offsets = [1, 0], sizes = [1, 32], strides = [1, 1]} : vector<2x32xf32> to vector<1x32xf32>
    %cst_215 = arith.constant dense<0.000000e+00> : vector<16xf32>
    %542 = vector.multi_reduction <add>, %537, %cst_215 [1] : vector<16x32xf32> to vector<16xf32>
    %543 = vector.shape_cast %542 : vector<16xf32> to vector<16x1xf32>
    %cst_216 = arith.constant 3.200000e+01 : f32
    %544 = vector.broadcast %cst_216 : f32 to vector<16x1xf32>
    %545 = arith.divf %543, %544 : vector<16x1xf32>
    %546 = vector.broadcast %545 : vector<16x1xf32> to vector<16x32xf32>
    %547 = arith.subf %537, %546 : vector<16x32xf32>
    %548 = arith.mulf %547, %547 : vector<16x32xf32>
    %cst_217 = arith.constant dense<0.000000e+00> : vector<16xf32>
    %549 = vector.multi_reduction <add>, %548, %cst_217 [1] : vector<16x32xf32> to vector<16xf32>
    %550 = vector.shape_cast %549 : vector<16xf32> to vector<16x1xf32>
    %cst_218 = arith.constant 3.100000e+01 : f32
    %551 = vector.broadcast %cst_218 : f32 to vector<16x1xf32>
    %552 = arith.divf %550, %551 : vector<16x1xf32>
    %553 = math.sqrt %552 : vector<16x1xf32>
    %cst_219 = arith.constant 9.99999997E-7 : f32
    %554 = vector.broadcast %cst_219 : f32 to vector<16x1xf32>
    %555 = arith.addf %553, %554 : vector<16x1xf32>
    %556 = tpu.reciprocal %555 {approx = true} : vector<16x1xf32> -> vector<16x1xf32>
    %557 = vector.broadcast %545 : vector<16x1xf32> to vector<16x32xf32>
    %558 = arith.subf %537, %557 : vector<16x32xf32>
    %559 = vector.broadcast %540 : vector<1x32xf32> to vector<16x32xf32>
    %560 = arith.mulf %559, %558 : vector<16x32xf32>
    %561 = vector.broadcast %556 : vector<16x1xf32> to vector<16x32xf32>
    %562 = arith.mulf %560, %561 : vector<16x32xf32>
    %563 = vector.broadcast %541 : vector<1x32xf32> to vector<16x32xf32>
    %564 = arith.addf %562, %563 : vector<16x32xf32>
    %c0_220 = arith.constant 0 : index
    %c0_221 = arith.constant 0 : index
    %c0_222 = arith.constant 0 : index
    %565 = vector.load %arg19[%c0_220, %c0_221, %c0_222] : memref<2x32x32xf32, #tpu.memory_space<vmem>>, vector<1x32x32xf32>
    %566 = vector.shape_cast %565 : vector<1x32x32xf32> to vector<32x32xf32>
    %cst_223 = arith.constant dense<0.000000e+00> : vector<16x32xf32>
    %567 = tpu.matmul %564, %566, %cst_223 {dimension_numbers = #tpu.dot_dimension_numbers<[1], [0], [0], [1], [0, 0, 1, 1], [], []>} : vector<16x32xf32>, vector<32x32xf32>, vector<16x32xf32> -> vector<16x32xf32>
    %c0_224 = arith.constant 0 : index
    %c0_225 = arith.constant 0 : index
    %c0_226 = arith.constant 0 : index
    %568 = vector.load %arg20[%c0_224, %c0_225, %c0_226] : memref<2x1x32xf32, #tpu.memory_space<vmem>>, vector<1x1x32xf32>
    %569 = vector.shape_cast %568 : vector<1x1x32xf32> to vector<1x32xf32>
    %570 = vector.broadcast %569 : vector<1x32xf32> to vector<16x32xf32>
    %571 = arith.addf %567, %570 : vector<16x32xf32>
    %572 = vector.shape_cast %571 : vector<16x32xf32> to vector<2x8x32xf32>
    %c0_227 = arith.constant 0 : index
    %c0_228 = arith.constant 0 : index
    %c0_229 = arith.constant 0 : index
    %573 = vector.load %arg21[%c0_227, %c0_228, %c0_229] : memref<2x32x64xf32, #tpu.memory_space<vmem>>, vector<1x32x64xf32>
    %574 = vector.shape_cast %573 : vector<1x32x64xf32> to vector<32x64xf32>
    %cst_230 = arith.constant dense<0.000000e+00> : vector<16x64xf32>
    %575 = tpu.matmul %401, %574, %cst_230 {dimension_numbers = #tpu.dot_dimension_numbers<[1], [0], [0], [1], [0, 0, 1, 1], [], []>} : vector<16x32xf32>, vector<32x64xf32>, vector<16x64xf32> -> vector<16x64xf32>
    %c0_231 = arith.constant 0 : index
    %c0_232 = arith.constant 0 : index
    %c0_233 = arith.constant 0 : index
    %576 = vector.load %arg22[%c0_231, %c0_232, %c0_233] : memref<2x1x64xf32, #tpu.memory_space<vmem>>, vector<1x1x64xf32>
    %577 = vector.shape_cast %576 : vector<1x1x64xf32> to vector<1x64xf32>
    %578 = vector.broadcast %577 : vector<1x64xf32> to vector<16x64xf32>
    %579 = arith.addf %575, %578 : vector<16x64xf32>
    %580 = vector.extract_strided_slice %579 {offsets = [0, 0], sizes = [16, 32], strides = [1, 1]} : vector<16x64xf32> to vector<16x32xf32>
    %581 = vector.shape_cast %580 : vector<16x32xf32> to vector<2x8x32xf32>
    %582 = vector.extract_strided_slice %579 {offsets = [0, 32], sizes = [16, 32], strides = [1, 1]} : vector<16x64xf32> to vector<16x32xf32>
    %583 = vector.shape_cast %582 : vector<16x32xf32> to vector<2x8x32xf32>
    %584 = vector.extract_strided_slice %572 {offsets = [0, 0, 0], sizes = [2, 8, 8], strides = [1, 1, 1]} : vector<2x8x32xf32> to vector<2x8x8xf32>
    %585 = vector.extract_strided_slice %581 {offsets = [0, 0, 0], sizes = [2, 8, 8], strides = [1, 1, 1]} : vector<2x8x32xf32> to vector<2x8x8xf32>
    "tpu.trace_start"() <{level = 10 : i32, message = "bqd,bkd->bqk"}> : () -> ()
    %cst_234 = arith.constant dense<0.000000e+00> : vector<2x8x8xf32>
    %586 = tpu.matmul %584, %585, %cst_234 {dimension_numbers = #tpu.dot_dimension_numbers<[2], [2], [1], [1], [0, 0, 0, 1, 1, 1], [0], [0]>} : vector<2x8x8xf32>, vector<2x8x8xf32>, vector<2x8x8xf32> -> vector<2x8x8xf32>
    "tpu.trace_stop"() : () -> ()
    %cst_235 = arith.constant 0.353553385 : f32
    %587 = vector.broadcast %cst_235 : f32 to vector<2x8x8xf32>
    %588 = arith.mulf %586, %587 : vector<2x8x8xf32>
    %cst_236 = arith.constant 0.000000e+00 : f32
    %589 = vector.broadcast %cst_236 : f32 to vector<2x1x8xf32>
    %590 = arith.cmpf ogt, %0, %589 : vector<2x1x8xf32>
    %cst_237 = arith.constant -1.000000e+09 : f32
    %591 = vector.shape_cast %590 : vector<2x1x8xi1> to vector<2x1x8xi1>
    %592 = vector.broadcast %591 : vector<2x1x8xi1> to vector<2x8x8xi1>
    %593 = vector.broadcast %cst_237 : f32 to vector<2x8x8xf32>
    %594 = arith.select %592, %588, %593 : vector<2x8x8xi1>, vector<2x8x8xf32>
    %cst_238 = arith.constant dense<0xFF800000> : vector<2x8xf32>
    %595 = vector.multi_reduction <maximumf>, %594, %cst_238 [2] : vector<2x8x8xf32> to vector<2x8xf32>
    %596 = vector.shape_cast %595 : vector<2x8xf32> to vector<2x8x1xf32>
    %597 = vector.broadcast %596 : vector<2x8x1xf32> to vector<2x8x8xf32>
    %598 = arith.subf %594, %597 : vector<2x8x8xf32>
    %599 = math.exp %598 : vector<2x8x8xf32>
    %cst_239 = arith.constant dense<0.000000e+00> : vector<2x8xf32>
    %600 = vector.multi_reduction <add>, %599, %cst_239 [2] : vector<2x8x8xf32> to vector<2x8xf32>
    %601 = vector.shape_cast %600 : vector<2x8xf32> to vector<2x8x1xf32>
    %602 = tpu.reciprocal %601 {approx = true} : vector<2x8x1xf32> -> vector<2x8x1xf32>
    %603 = vector.broadcast %602 : vector<2x8x1xf32> to vector<2x8x8xf32>
    %604 = arith.mulf %599, %603 : vector<2x8x8xf32>
    %605 = vector.extract_strided_slice %583 {offsets = [0, 0, 0], sizes = [2, 8, 8], strides = [1, 1, 1]} : vector<2x8x32xf32> to vector<2x8x8xf32>
    "tpu.trace_start"() <{level = 10 : i32, message = "bqk,bkd->bqd"}> : () -> ()
    %cst_240 = arith.constant dense<0.000000e+00> : vector<2x8x8xf32>
    %606 = tpu.matmul %604, %605, %cst_240 {dimension_numbers = #tpu.dot_dimension_numbers<[2], [1], [1], [2], [0, 0, 0, 1, 1, 2], [0], [0]>} : vector<2x8x8xf32>, vector<2x8x8xf32>, vector<2x8x8xf32> -> vector<2x8x8xf32>
    "tpu.trace_stop"() : () -> ()
    %607 = vector.extract_strided_slice %572 {offsets = [0, 0, 8], sizes = [2, 8, 8], strides = [1, 1, 1]} : vector<2x8x32xf32> to vector<2x8x8xf32>
    %608 = vector.extract_strided_slice %581 {offsets = [0, 0, 8], sizes = [2, 8, 8], strides = [1, 1, 1]} : vector<2x8x32xf32> to vector<2x8x8xf32>
    "tpu.trace_start"() <{level = 10 : i32, message = "bqd,bkd->bqk"}> : () -> ()
    %cst_241 = arith.constant dense<0.000000e+00> : vector<2x8x8xf32>
    %609 = tpu.matmul %607, %608, %cst_241 {dimension_numbers = #tpu.dot_dimension_numbers<[2], [2], [1], [1], [0, 0, 0, 1, 1, 1], [0], [0]>} : vector<2x8x8xf32>, vector<2x8x8xf32>, vector<2x8x8xf32> -> vector<2x8x8xf32>
    "tpu.trace_stop"() : () -> ()
    %cst_242 = arith.constant 0.353553385 : f32
    %610 = vector.broadcast %cst_242 : f32 to vector<2x8x8xf32>
    %611 = arith.mulf %609, %610 : vector<2x8x8xf32>
    %cst_243 = arith.constant 0.000000e+00 : f32
    %612 = vector.broadcast %cst_243 : f32 to vector<2x1x8xf32>
    %613 = arith.cmpf ogt, %0, %612 : vector<2x1x8xf32>
    %cst_244 = arith.constant -1.000000e+09 : f32
    %614 = vector.shape_cast %613 : vector<2x1x8xi1> to vector<2x1x8xi1>
    %615 = vector.broadcast %614 : vector<2x1x8xi1> to vector<2x8x8xi1>
    %616 = vector.broadcast %cst_244 : f32 to vector<2x8x8xf32>
    %617 = arith.select %615, %611, %616 : vector<2x8x8xi1>, vector<2x8x8xf32>
    %cst_245 = arith.constant dense<0xFF800000> : vector<2x8xf32>
    %618 = vector.multi_reduction <maximumf>, %617, %cst_245 [2] : vector<2x8x8xf32> to vector<2x8xf32>
    %619 = vector.shape_cast %618 : vector<2x8xf32> to vector<2x8x1xf32>
    %620 = vector.broadcast %619 : vector<2x8x1xf32> to vector<2x8x8xf32>
    %621 = arith.subf %617, %620 : vector<2x8x8xf32>
    %622 = math.exp %621 : vector<2x8x8xf32>
    %cst_246 = arith.constant dense<0.000000e+00> : vector<2x8xf32>
    %623 = vector.multi_reduction <add>, %622, %cst_246 [2] : vector<2x8x8xf32> to vector<2x8xf32>
    %624 = vector.shape_cast %623 : vector<2x8xf32> to vector<2x8x1xf32>
    %625 = tpu.reciprocal %624 {approx = true} : vector<2x8x1xf32> -> vector<2x8x1xf32>
    %626 = vector.broadcast %625 : vector<2x8x1xf32> to vector<2x8x8xf32>
    %627 = arith.mulf %622, %626 : vector<2x8x8xf32>
    %628 = vector.extract_strided_slice %583 {offsets = [0, 0, 8], sizes = [2, 8, 8], strides = [1, 1, 1]} : vector<2x8x32xf32> to vector<2x8x8xf32>
    "tpu.trace_start"() <{level = 10 : i32, message = "bqk,bkd->bqd"}> : () -> ()
    %cst_247 = arith.constant dense<0.000000e+00> : vector<2x8x8xf32>
    %629 = tpu.matmul %627, %628, %cst_247 {dimension_numbers = #tpu.dot_dimension_numbers<[2], [1], [1], [2], [0, 0, 0, 1, 1, 2], [0], [0]>} : vector<2x8x8xf32>, vector<2x8x8xf32>, vector<2x8x8xf32> -> vector<2x8x8xf32>
    "tpu.trace_stop"() : () -> ()
    %630 = vector.extract_strided_slice %572 {offsets = [0, 0, 16], sizes = [2, 8, 8], strides = [1, 1, 1]} : vector<2x8x32xf32> to vector<2x8x8xf32>
    %631 = vector.extract_strided_slice %581 {offsets = [0, 0, 16], sizes = [2, 8, 8], strides = [1, 1, 1]} : vector<2x8x32xf32> to vector<2x8x8xf32>
    "tpu.trace_start"() <{level = 10 : i32, message = "bqd,bkd->bqk"}> : () -> ()
    %cst_248 = arith.constant dense<0.000000e+00> : vector<2x8x8xf32>
    %632 = tpu.matmul %630, %631, %cst_248 {dimension_numbers = #tpu.dot_dimension_numbers<[2], [2], [1], [1], [0, 0, 0, 1, 1, 1], [0], [0]>} : vector<2x8x8xf32>, vector<2x8x8xf32>, vector<2x8x8xf32> -> vector<2x8x8xf32>
    "tpu.trace_stop"() : () -> ()
    %cst_249 = arith.constant 0.353553385 : f32
    %633 = vector.broadcast %cst_249 : f32 to vector<2x8x8xf32>
    %634 = arith.mulf %632, %633 : vector<2x8x8xf32>
    %cst_250 = arith.constant 0.000000e+00 : f32
    %635 = vector.broadcast %cst_250 : f32 to vector<2x1x8xf32>
    %636 = arith.cmpf ogt, %0, %635 : vector<2x1x8xf32>
    %cst_251 = arith.constant -1.000000e+09 : f32
    %637 = vector.shape_cast %636 : vector<2x1x8xi1> to vector<2x1x8xi1>
    %638 = vector.broadcast %637 : vector<2x1x8xi1> to vector<2x8x8xi1>
    %639 = vector.broadcast %cst_251 : f32 to vector<2x8x8xf32>
    %640 = arith.select %638, %634, %639 : vector<2x8x8xi1>, vector<2x8x8xf32>
    %cst_252 = arith.constant dense<0xFF800000> : vector<2x8xf32>
    %641 = vector.multi_reduction <maximumf>, %640, %cst_252 [2] : vector<2x8x8xf32> to vector<2x8xf32>
    %642 = vector.shape_cast %641 : vector<2x8xf32> to vector<2x8x1xf32>
    %643 = vector.broadcast %642 : vector<2x8x1xf32> to vector<2x8x8xf32>
    %644 = arith.subf %640, %643 : vector<2x8x8xf32>
    %645 = math.exp %644 : vector<2x8x8xf32>
    %cst_253 = arith.constant dense<0.000000e+00> : vector<2x8xf32>
    %646 = vector.multi_reduction <add>, %645, %cst_253 [2] : vector<2x8x8xf32> to vector<2x8xf32>
    %647 = vector.shape_cast %646 : vector<2x8xf32> to vector<2x8x1xf32>
    %648 = tpu.reciprocal %647 {approx = true} : vector<2x8x1xf32> -> vector<2x8x1xf32>
    %649 = vector.broadcast %648 : vector<2x8x1xf32> to vector<2x8x8xf32>
    %650 = arith.mulf %645, %649 : vector<2x8x8xf32>
    %651 = vector.extract_strided_slice %583 {offsets = [0, 0, 16], sizes = [2, 8, 8], strides = [1, 1, 1]} : vector<2x8x32xf32> to vector<2x8x8xf32>
    "tpu.trace_start"() <{level = 10 : i32, message = "bqk,bkd->bqd"}> : () -> ()
    %cst_254 = arith.constant dense<0.000000e+00> : vector<2x8x8xf32>
    %652 = tpu.matmul %650, %651, %cst_254 {dimension_numbers = #tpu.dot_dimension_numbers<[2], [1], [1], [2], [0, 0, 0, 1, 1, 2], [0], [0]>} : vector<2x8x8xf32>, vector<2x8x8xf32>, vector<2x8x8xf32> -> vector<2x8x8xf32>
    "tpu.trace_stop"() : () -> ()
    %653 = vector.extract_strided_slice %572 {offsets = [0, 0, 24], sizes = [2, 8, 8], strides = [1, 1, 1]} : vector<2x8x32xf32> to vector<2x8x8xf32>
    %654 = vector.extract_strided_slice %581 {offsets = [0, 0, 24], sizes = [2, 8, 8], strides = [1, 1, 1]} : vector<2x8x32xf32> to vector<2x8x8xf32>
    "tpu.trace_start"() <{level = 10 : i32, message = "bqd,bkd->bqk"}> : () -> ()
    %cst_255 = arith.constant dense<0.000000e+00> : vector<2x8x8xf32>
    %655 = tpu.matmul %653, %654, %cst_255 {dimension_numbers = #tpu.dot_dimension_numbers<[2], [2], [1], [1], [0, 0, 0, 1, 1, 1], [0], [0]>} : vector<2x8x8xf32>, vector<2x8x8xf32>, vector<2x8x8xf32> -> vector<2x8x8xf32>
    "tpu.trace_stop"() : () -> ()
    %cst_256 = arith.constant 0.353553385 : f32
    %656 = vector.broadcast %cst_256 : f32 to vector<2x8x8xf32>
    %657 = arith.mulf %655, %656 : vector<2x8x8xf32>
    %cst_257 = arith.constant 0.000000e+00 : f32
    %658 = vector.broadcast %cst_257 : f32 to vector<2x1x8xf32>
    %659 = arith.cmpf ogt, %0, %658 : vector<2x1x8xf32>
    %cst_258 = arith.constant -1.000000e+09 : f32
    %660 = vector.shape_cast %659 : vector<2x1x8xi1> to vector<2x1x8xi1>
    %661 = vector.broadcast %660 : vector<2x1x8xi1> to vector<2x8x8xi1>
    %662 = vector.broadcast %cst_258 : f32 to vector<2x8x8xf32>
    %663 = arith.select %661, %657, %662 : vector<2x8x8xi1>, vector<2x8x8xf32>
    %cst_259 = arith.constant dense<0xFF800000> : vector<2x8xf32>
    %664 = vector.multi_reduction <maximumf>, %663, %cst_259 [2] : vector<2x8x8xf32> to vector<2x8xf32>
    %665 = vector.shape_cast %664 : vector<2x8xf32> to vector<2x8x1xf32>
    %666 = vector.broadcast %665 : vector<2x8x1xf32> to vector<2x8x8xf32>
    %667 = arith.subf %663, %666 : vector<2x8x8xf32>
    %668 = math.exp %667 : vector<2x8x8xf32>
    %cst_260 = arith.constant dense<0.000000e+00> : vector<2x8xf32>
    %669 = vector.multi_reduction <add>, %668, %cst_260 [2] : vector<2x8x8xf32> to vector<2x8xf32>
    %670 = vector.shape_cast %669 : vector<2x8xf32> to vector<2x8x1xf32>
    %671 = tpu.reciprocal %670 {approx = true} : vector<2x8x1xf32> -> vector<2x8x1xf32>
    %672 = vector.broadcast %671 : vector<2x8x1xf32> to vector<2x8x8xf32>
    %673 = arith.mulf %668, %672 : vector<2x8x8xf32>
    %674 = vector.extract_strided_slice %583 {offsets = [0, 0, 24], sizes = [2, 8, 8], strides = [1, 1, 1]} : vector<2x8x32xf32> to vector<2x8x8xf32>
    "tpu.trace_start"() <{level = 10 : i32, message = "bqk,bkd->bqd"}> : () -> ()
    %cst_261 = arith.constant dense<0.000000e+00> : vector<2x8x8xf32>
    %675 = tpu.matmul %673, %674, %cst_261 {dimension_numbers = #tpu.dot_dimension_numbers<[2], [1], [1], [2], [0, 0, 0, 1, 1, 2], [0], [0]>} : vector<2x8x8xf32>, vector<2x8x8xf32>, vector<2x8x8xf32> -> vector<2x8x8xf32>
    "tpu.trace_stop"() : () -> ()
    %676 = tpu.concatenate %606, %629, %652, %675 in 2 : vector<2x8x8xf32>, vector<2x8x8xf32>, vector<2x8x8xf32>, vector<2x8x8xf32> -> vector<2x8x32xf32>
    %677 = vector.shape_cast %676 : vector<2x8x32xf32> to vector<16x32xf32>
    %c0_262 = arith.constant 0 : index
    %c0_263 = arith.constant 0 : index
    %c0_264 = arith.constant 0 : index
    %678 = vector.load %arg23[%c0_262, %c0_263, %c0_264] : memref<2x32x32xf32, #tpu.memory_space<vmem>>, vector<1x32x32xf32>
    %679 = vector.shape_cast %678 : vector<1x32x32xf32> to vector<32x32xf32>
    %cst_265 = arith.constant dense<0.000000e+00> : vector<16x32xf32>
    %680 = tpu.matmul %677, %679, %cst_265 {dimension_numbers = #tpu.dot_dimension_numbers<[1], [0], [0], [1], [0, 0, 1, 1], [], []>} : vector<16x32xf32>, vector<32x32xf32>, vector<16x32xf32> -> vector<16x32xf32>
    %681 = arith.addf %537, %680 : vector<16x32xf32>
    %c0_266 = arith.constant 0 : index
    %c0_267 = arith.constant 0 : index
    %c0_268 = arith.constant 0 : index
    %682 = vector.load %arg24[%c0_266, %c0_267, %c0_268] : memref<2x1x32xf32, #tpu.memory_space<vmem>>, vector<1x1x32xf32>
    %683 = vector.shape_cast %682 : vector<1x1x32xf32> to vector<1x32xf32>
    %684 = vector.broadcast %683 : vector<1x32xf32> to vector<16x32xf32>
    %685 = arith.addf %681, %684 : vector<16x32xf32>
    %c0_269 = arith.constant 0 : index
    %c0_270 = arith.constant 0 : index
    %c0_271 = arith.constant 0 : index
    %686 = vector.load %arg31[%c0_269, %c0_270, %c0_271] : memref<2x2x32xf32, #tpu.memory_space<vmem>>, vector<1x2x32xf32>
    %687 = vector.shape_cast %686 : vector<1x2x32xf32> to vector<2x32xf32>
    %688 = vector.extract_strided_slice %687 {offsets = [0, 0], sizes = [1, 32], strides = [1, 1]} : vector<2x32xf32> to vector<1x32xf32>
    %689 = vector.extract_strided_slice %687 {offsets = [1, 0], sizes = [1, 32], strides = [1, 1]} : vector<2x32xf32> to vector<1x32xf32>
    %cst_272 = arith.constant dense<0.000000e+00> : vector<16xf32>
    %690 = vector.multi_reduction <add>, %685, %cst_272 [1] : vector<16x32xf32> to vector<16xf32>
    %691 = vector.shape_cast %690 : vector<16xf32> to vector<16x1xf32>
    %cst_273 = arith.constant 3.200000e+01 : f32
    %692 = vector.broadcast %cst_273 : f32 to vector<16x1xf32>
    %693 = arith.divf %691, %692 : vector<16x1xf32>
    %694 = vector.broadcast %693 : vector<16x1xf32> to vector<16x32xf32>
    %695 = arith.subf %685, %694 : vector<16x32xf32>
    %696 = arith.mulf %695, %695 : vector<16x32xf32>
    %cst_274 = arith.constant dense<0.000000e+00> : vector<16xf32>
    %697 = vector.multi_reduction <add>, %696, %cst_274 [1] : vector<16x32xf32> to vector<16xf32>
    %698 = vector.shape_cast %697 : vector<16xf32> to vector<16x1xf32>
    %cst_275 = arith.constant 3.100000e+01 : f32
    %699 = vector.broadcast %cst_275 : f32 to vector<16x1xf32>
    %700 = arith.divf %698, %699 : vector<16x1xf32>
    %701 = math.sqrt %700 : vector<16x1xf32>
    %cst_276 = arith.constant 9.99999997E-7 : f32
    %702 = vector.broadcast %cst_276 : f32 to vector<16x1xf32>
    %703 = arith.addf %701, %702 : vector<16x1xf32>
    %704 = tpu.reciprocal %703 {approx = true} : vector<16x1xf32> -> vector<16x1xf32>
    %705 = vector.broadcast %693 : vector<16x1xf32> to vector<16x32xf32>
    %706 = arith.subf %685, %705 : vector<16x32xf32>
    %707 = vector.broadcast %688 : vector<1x32xf32> to vector<16x32xf32>
    %708 = arith.mulf %707, %706 : vector<16x32xf32>
    %709 = vector.broadcast %704 : vector<16x1xf32> to vector<16x32xf32>
    %710 = arith.mulf %708, %709 : vector<16x32xf32>
    %711 = vector.broadcast %689 : vector<1x32xf32> to vector<16x32xf32>
    %712 = arith.addf %710, %711 : vector<16x32xf32>
    %c0_277 = arith.constant 0 : index
    %c0_278 = arith.constant 0 : index
    %c0_279 = arith.constant 0 : index
    %713 = vector.load %arg25[%c0_277, %c0_278, %c0_279] : memref<2x32x64xf32, #tpu.memory_space<vmem>>, vector<1x32x64xf32>
    %714 = vector.shape_cast %713 : vector<1x32x64xf32> to vector<32x64xf32>
    %cst_280 = arith.constant dense<0.000000e+00> : vector<16x64xf32>
    %715 = tpu.matmul %712, %714, %cst_280 {dimension_numbers = #tpu.dot_dimension_numbers<[1], [0], [0], [1], [0, 0, 1, 1], [], []>} : vector<16x32xf32>, vector<32x64xf32>, vector<16x64xf32> -> vector<16x64xf32>
    %c0_281 = arith.constant 0 : index
    %c0_282 = arith.constant 0 : index
    %c0_283 = arith.constant 0 : index
    %716 = vector.load %arg26[%c0_281, %c0_282, %c0_283] : memref<2x1x64xf32, #tpu.memory_space<vmem>>, vector<1x1x64xf32>
    %717 = vector.shape_cast %716 : vector<1x1x64xf32> to vector<1x64xf32>
    %718 = vector.broadcast %717 : vector<1x64xf32> to vector<16x64xf32>
    %719 = arith.addf %715, %718 : vector<16x64xf32>
    %cst_284 = arith.constant 0.000000e+00 : f32
    %720 = vector.broadcast %cst_284 : f32 to vector<16x64xf32>
    %721 = arith.maximumf %719, %720 : vector<16x64xf32>
    %c0_285 = arith.constant 0 : index
    %c0_286 = arith.constant 0 : index
    %c0_287 = arith.constant 0 : index
    %722 = vector.load %arg27[%c0_285, %c0_286, %c0_287] : memref<2x64x32xf32, #tpu.memory_space<vmem>>, vector<1x64x32xf32>
    %723 = vector.shape_cast %722 : vector<1x64x32xf32> to vector<64x32xf32>
    %cst_288 = arith.constant dense<0.000000e+00> : vector<16x32xf32>
    %724 = tpu.matmul %721, %723, %cst_288 {dimension_numbers = #tpu.dot_dimension_numbers<[1], [0], [0], [1], [0, 0, 1, 1], [], []>} : vector<16x64xf32>, vector<64x32xf32>, vector<16x32xf32> -> vector<16x32xf32>
    %725 = arith.addf %685, %724 : vector<16x32xf32>
    %c0_289 = arith.constant 0 : index
    %c0_290 = arith.constant 0 : index
    %c0_291 = arith.constant 0 : index
    %726 = vector.load %arg28[%c0_289, %c0_290, %c0_291] : memref<2x1x32xf32, #tpu.memory_space<vmem>>, vector<1x1x32xf32>
    %727 = vector.shape_cast %726 : vector<1x1x32xf32> to vector<1x32xf32>
    %728 = vector.broadcast %727 : vector<1x32xf32> to vector<16x32xf32>
    %729 = arith.addf %725, %728 : vector<16x32xf32>
    %c1_292 = arith.constant 1 : index
    %c0_293 = arith.constant 0 : index
    %c0_294 = arith.constant 0 : index
    %730 = vector.load %arg29[%c1_292, %c0_293, %c0_294] : memref<2x2x32xf32, #tpu.memory_space<vmem>>, vector<1x2x32xf32>
    %731 = vector.shape_cast %730 : vector<1x2x32xf32> to vector<2x32xf32>
    %732 = vector.extract_strided_slice %731 {offsets = [0, 0], sizes = [1, 32], strides = [1, 1]} : vector<2x32xf32> to vector<1x32xf32>
    %733 = vector.extract_strided_slice %731 {offsets = [1, 0], sizes = [1, 32], strides = [1, 1]} : vector<2x32xf32> to vector<1x32xf32>
    %cst_295 = arith.constant dense<0.000000e+00> : vector<16xf32>
    %734 = vector.multi_reduction <add>, %729, %cst_295 [1] : vector<16x32xf32> to vector<16xf32>
    %735 = vector.shape_cast %734 : vector<16xf32> to vector<16x1xf32>
    %cst_296 = arith.constant 3.200000e+01 : f32
    %736 = vector.broadcast %cst_296 : f32 to vector<16x1xf32>
    %737 = arith.divf %735, %736 : vector<16x1xf32>
    %738 = vector.broadcast %737 : vector<16x1xf32> to vector<16x32xf32>
    %739 = arith.subf %729, %738 : vector<16x32xf32>
    %740 = arith.mulf %739, %739 : vector<16x32xf32>
    %cst_297 = arith.constant dense<0.000000e+00> : vector<16xf32>
    %741 = vector.multi_reduction <add>, %740, %cst_297 [1] : vector<16x32xf32> to vector<16xf32>
    %742 = vector.shape_cast %741 : vector<16xf32> to vector<16x1xf32>
    %cst_298 = arith.constant 3.100000e+01 : f32
    %743 = vector.broadcast %cst_298 : f32 to vector<16x1xf32>
    %744 = arith.divf %742, %743 : vector<16x1xf32>
    %745 = math.sqrt %744 : vector<16x1xf32>
    %cst_299 = arith.constant 9.99999997E-7 : f32
    %746 = vector.broadcast %cst_299 : f32 to vector<16x1xf32>
    %747 = arith.addf %745, %746 : vector<16x1xf32>
    %748 = tpu.reciprocal %747 {approx = true} : vector<16x1xf32> -> vector<16x1xf32>
    %749 = vector.broadcast %737 : vector<16x1xf32> to vector<16x32xf32>
    %750 = arith.subf %729, %749 : vector<16x32xf32>
    %751 = vector.broadcast %732 : vector<1x32xf32> to vector<16x32xf32>
    %752 = arith.mulf %751, %750 : vector<16x32xf32>
    %753 = vector.broadcast %748 : vector<16x1xf32> to vector<16x32xf32>
    %754 = arith.mulf %752, %753 : vector<16x32xf32>
    %755 = vector.broadcast %733 : vector<1x32xf32> to vector<16x32xf32>
    %756 = arith.addf %754, %755 : vector<16x32xf32>
    %c1_300 = arith.constant 1 : index
    %c0_301 = arith.constant 0 : index
    %c0_302 = arith.constant 0 : index
    %757 = vector.load %arg15[%c1_300, %c0_301, %c0_302] : memref<2x32x96xf32, #tpu.memory_space<vmem>>, vector<1x32x96xf32>
    %758 = vector.shape_cast %757 : vector<1x32x96xf32> to vector<32x96xf32>
    %cst_303 = arith.constant dense<0.000000e+00> : vector<16x96xf32>
    %759 = tpu.matmul %756, %758, %cst_303 {dimension_numbers = #tpu.dot_dimension_numbers<[1], [0], [0], [1], [0, 0, 1, 1], [], []>} : vector<16x32xf32>, vector<32x96xf32>, vector<16x96xf32> -> vector<16x96xf32>
    %c1_304 = arith.constant 1 : index
    %c0_305 = arith.constant 0 : index
    %c0_306 = arith.constant 0 : index
    %760 = vector.load %arg16[%c1_304, %c0_305, %c0_306] : memref<2x1x96xf32, #tpu.memory_space<vmem>>, vector<1x1x96xf32>
    %761 = vector.shape_cast %760 : vector<1x1x96xf32> to vector<1x96xf32>
    %762 = vector.broadcast %761 : vector<1x96xf32> to vector<16x96xf32>
    %763 = arith.addf %759, %762 : vector<16x96xf32>
    %764 = vector.extract_strided_slice %763 {offsets = [0, 0], sizes = [16, 32], strides = [1, 1]} : vector<16x96xf32> to vector<16x32xf32>
    %765 = vector.shape_cast %764 : vector<16x32xf32> to vector<2x8x32xf32>
    %766 = vector.extract_strided_slice %763 {offsets = [0, 32], sizes = [16, 32], strides = [1, 1]} : vector<16x96xf32> to vector<16x32xf32>
    %767 = vector.shape_cast %766 : vector<16x32xf32> to vector<2x8x32xf32>
    %768 = vector.extract_strided_slice %763 {offsets = [0, 64], sizes = [16, 32], strides = [1, 1]} : vector<16x96xf32> to vector<16x32xf32>
    %769 = vector.shape_cast %768 : vector<16x32xf32> to vector<2x8x32xf32>
    %770 = vector.extract_strided_slice %765 {offsets = [0, 0, 0], sizes = [2, 8, 8], strides = [1, 1, 1]} : vector<2x8x32xf32> to vector<2x8x8xf32>
    %771 = vector.extract_strided_slice %767 {offsets = [0, 0, 0], sizes = [2, 8, 8], strides = [1, 1, 1]} : vector<2x8x32xf32> to vector<2x8x8xf32>
    "tpu.trace_start"() <{level = 10 : i32, message = "bqd,bkd->bqk"}> : () -> ()
    %cst_307 = arith.constant dense<0.000000e+00> : vector<2x8x8xf32>
    %772 = tpu.matmul %770, %771, %cst_307 {dimension_numbers = #tpu.dot_dimension_numbers<[2], [2], [1], [1], [0, 0, 0, 1, 1, 1], [0], [0]>} : vector<2x8x8xf32>, vector<2x8x8xf32>, vector<2x8x8xf32> -> vector<2x8x8xf32>
    "tpu.trace_stop"() : () -> ()
    %cst_308 = arith.constant 0.353553385 : f32
    %773 = vector.broadcast %cst_308 : f32 to vector<2x8x8xf32>
    %774 = arith.mulf %772, %773 : vector<2x8x8xf32>
    %cst_309 = arith.constant 0.000000e+00 : f32
    %775 = vector.broadcast %cst_309 : f32 to vector<2x8x8xf32>
    %776 = arith.cmpf ogt, %1, %775 : vector<2x8x8xf32>
    %cst_310 = arith.constant -1.000000e+09 : f32
    %777 = vector.broadcast %cst_310 : f32 to vector<2x8x8xf32>
    %778 = arith.select %776, %774, %777 : vector<2x8x8xi1>, vector<2x8x8xf32>
    %cst_311 = arith.constant dense<0xFF800000> : vector<2x8xf32>
    %779 = vector.multi_reduction <maximumf>, %778, %cst_311 [2] : vector<2x8x8xf32> to vector<2x8xf32>
    %780 = vector.shape_cast %779 : vector<2x8xf32> to vector<2x8x1xf32>
    %781 = vector.broadcast %780 : vector<2x8x1xf32> to vector<2x8x8xf32>
    %782 = arith.subf %778, %781 : vector<2x8x8xf32>
    %783 = math.exp %782 : vector<2x8x8xf32>
    %cst_312 = arith.constant dense<0.000000e+00> : vector<2x8xf32>
    %784 = vector.multi_reduction <add>, %783, %cst_312 [2] : vector<2x8x8xf32> to vector<2x8xf32>
    %785 = vector.shape_cast %784 : vector<2x8xf32> to vector<2x8x1xf32>
    %786 = tpu.reciprocal %785 {approx = true} : vector<2x8x1xf32> -> vector<2x8x1xf32>
    %787 = vector.broadcast %786 : vector<2x8x1xf32> to vector<2x8x8xf32>
    %788 = arith.mulf %783, %787 : vector<2x8x8xf32>
    %789 = vector.extract_strided_slice %769 {offsets = [0, 0, 0], sizes = [2, 8, 8], strides = [1, 1, 1]} : vector<2x8x32xf32> to vector<2x8x8xf32>
    "tpu.trace_start"() <{level = 10 : i32, message = "bqk,bkd->bqd"}> : () -> ()
    %cst_313 = arith.constant dense<0.000000e+00> : vector<2x8x8xf32>
    %790 = tpu.matmul %788, %789, %cst_313 {dimension_numbers = #tpu.dot_dimension_numbers<[2], [1], [1], [2], [0, 0, 0, 1, 1, 2], [0], [0]>} : vector<2x8x8xf32>, vector<2x8x8xf32>, vector<2x8x8xf32> -> vector<2x8x8xf32>
    "tpu.trace_stop"() : () -> ()
    %791 = vector.extract_strided_slice %765 {offsets = [0, 0, 8], sizes = [2, 8, 8], strides = [1, 1, 1]} : vector<2x8x32xf32> to vector<2x8x8xf32>
    %792 = vector.extract_strided_slice %767 {offsets = [0, 0, 8], sizes = [2, 8, 8], strides = [1, 1, 1]} : vector<2x8x32xf32> to vector<2x8x8xf32>
    "tpu.trace_start"() <{level = 10 : i32, message = "bqd,bkd->bqk"}> : () -> ()
    %cst_314 = arith.constant dense<0.000000e+00> : vector<2x8x8xf32>
    %793 = tpu.matmul %791, %792, %cst_314 {dimension_numbers = #tpu.dot_dimension_numbers<[2], [2], [1], [1], [0, 0, 0, 1, 1, 1], [0], [0]>} : vector<2x8x8xf32>, vector<2x8x8xf32>, vector<2x8x8xf32> -> vector<2x8x8xf32>
    "tpu.trace_stop"() : () -> ()
    %cst_315 = arith.constant 0.353553385 : f32
    %794 = vector.broadcast %cst_315 : f32 to vector<2x8x8xf32>
    %795 = arith.mulf %793, %794 : vector<2x8x8xf32>
    %cst_316 = arith.constant 0.000000e+00 : f32
    %796 = vector.broadcast %cst_316 : f32 to vector<2x8x8xf32>
    %797 = arith.cmpf ogt, %1, %796 : vector<2x8x8xf32>
    %cst_317 = arith.constant -1.000000e+09 : f32
    %798 = vector.broadcast %cst_317 : f32 to vector<2x8x8xf32>
    %799 = arith.select %797, %795, %798 : vector<2x8x8xi1>, vector<2x8x8xf32>
    %cst_318 = arith.constant dense<0xFF800000> : vector<2x8xf32>
    %800 = vector.multi_reduction <maximumf>, %799, %cst_318 [2] : vector<2x8x8xf32> to vector<2x8xf32>
    %801 = vector.shape_cast %800 : vector<2x8xf32> to vector<2x8x1xf32>
    %802 = vector.broadcast %801 : vector<2x8x1xf32> to vector<2x8x8xf32>
    %803 = arith.subf %799, %802 : vector<2x8x8xf32>
    %804 = math.exp %803 : vector<2x8x8xf32>
    %cst_319 = arith.constant dense<0.000000e+00> : vector<2x8xf32>
    %805 = vector.multi_reduction <add>, %804, %cst_319 [2] : vector<2x8x8xf32> to vector<2x8xf32>
    %806 = vector.shape_cast %805 : vector<2x8xf32> to vector<2x8x1xf32>
    %807 = tpu.reciprocal %806 {approx = true} : vector<2x8x1xf32> -> vector<2x8x1xf32>
    %808 = vector.broadcast %807 : vector<2x8x1xf32> to vector<2x8x8xf32>
    %809 = arith.mulf %804, %808 : vector<2x8x8xf32>
    %810 = vector.extract_strided_slice %769 {offsets = [0, 0, 8], sizes = [2, 8, 8], strides = [1, 1, 1]} : vector<2x8x32xf32> to vector<2x8x8xf32>
    "tpu.trace_start"() <{level = 10 : i32, message = "bqk,bkd->bqd"}> : () -> ()
    %cst_320 = arith.constant dense<0.000000e+00> : vector<2x8x8xf32>
    %811 = tpu.matmul %809, %810, %cst_320 {dimension_numbers = #tpu.dot_dimension_numbers<[2], [1], [1], [2], [0, 0, 0, 1, 1, 2], [0], [0]>} : vector<2x8x8xf32>, vector<2x8x8xf32>, vector<2x8x8xf32> -> vector<2x8x8xf32>
    "tpu.trace_stop"() : () -> ()
    %812 = vector.extract_strided_slice %765 {offsets = [0, 0, 16], sizes = [2, 8, 8], strides = [1, 1, 1]} : vector<2x8x32xf32> to vector<2x8x8xf32>
    %813 = vector.extract_strided_slice %767 {offsets = [0, 0, 16], sizes = [2, 8, 8], strides = [1, 1, 1]} : vector<2x8x32xf32> to vector<2x8x8xf32>
    "tpu.trace_start"() <{level = 10 : i32, message = "bqd,bkd->bqk"}> : () -> ()
    %cst_321 = arith.constant dense<0.000000e+00> : vector<2x8x8xf32>
    %814 = tpu.matmul %812, %813, %cst_321 {dimension_numbers = #tpu.dot_dimension_numbers<[2], [2], [1], [1], [0, 0, 0, 1, 1, 1], [0], [0]>} : vector<2x8x8xf32>, vector<2x8x8xf32>, vector<2x8x8xf32> -> vector<2x8x8xf32>
    "tpu.trace_stop"() : () -> ()
    %cst_322 = arith.constant 0.353553385 : f32
    %815 = vector.broadcast %cst_322 : f32 to vector<2x8x8xf32>
    %816 = arith.mulf %814, %815 : vector<2x8x8xf32>
    %cst_323 = arith.constant 0.000000e+00 : f32
    %817 = vector.broadcast %cst_323 : f32 to vector<2x8x8xf32>
    %818 = arith.cmpf ogt, %1, %817 : vector<2x8x8xf32>
    %cst_324 = arith.constant -1.000000e+09 : f32
    %819 = vector.broadcast %cst_324 : f32 to vector<2x8x8xf32>
    %820 = arith.select %818, %816, %819 : vector<2x8x8xi1>, vector<2x8x8xf32>
    %cst_325 = arith.constant dense<0xFF800000> : vector<2x8xf32>
    %821 = vector.multi_reduction <maximumf>, %820, %cst_325 [2] : vector<2x8x8xf32> to vector<2x8xf32>
    %822 = vector.shape_cast %821 : vector<2x8xf32> to vector<2x8x1xf32>
    %823 = vector.broadcast %822 : vector<2x8x1xf32> to vector<2x8x8xf32>
    %824 = arith.subf %820, %823 : vector<2x8x8xf32>
    %825 = math.exp %824 : vector<2x8x8xf32>
    %cst_326 = arith.constant dense<0.000000e+00> : vector<2x8xf32>
    %826 = vector.multi_reduction <add>, %825, %cst_326 [2] : vector<2x8x8xf32> to vector<2x8xf32>
    %827 = vector.shape_cast %826 : vector<2x8xf32> to vector<2x8x1xf32>
    %828 = tpu.reciprocal %827 {approx = true} : vector<2x8x1xf32> -> vector<2x8x1xf32>
    %829 = vector.broadcast %828 : vector<2x8x1xf32> to vector<2x8x8xf32>
    %830 = arith.mulf %825, %829 : vector<2x8x8xf32>
    %831 = vector.extract_strided_slice %769 {offsets = [0, 0, 16], sizes = [2, 8, 8], strides = [1, 1, 1]} : vector<2x8x32xf32> to vector<2x8x8xf32>
    "tpu.trace_start"() <{level = 10 : i32, message = "bqk,bkd->bqd"}> : () -> ()
    %cst_327 = arith.constant dense<0.000000e+00> : vector<2x8x8xf32>
    %832 = tpu.matmul %830, %831, %cst_327 {dimension_numbers = #tpu.dot_dimension_numbers<[2], [1], [1], [2], [0, 0, 0, 1, 1, 2], [0], [0]>} : vector<2x8x8xf32>, vector<2x8x8xf32>, vector<2x8x8xf32> -> vector<2x8x8xf32>
    "tpu.trace_stop"() : () -> ()
    %833 = vector.extract_strided_slice %765 {offsets = [0, 0, 24], sizes = [2, 8, 8], strides = [1, 1, 1]} : vector<2x8x32xf32> to vector<2x8x8xf32>
    %834 = vector.extract_strided_slice %767 {offsets = [0, 0, 24], sizes = [2, 8, 8], strides = [1, 1, 1]} : vector<2x8x32xf32> to vector<2x8x8xf32>
    "tpu.trace_start"() <{level = 10 : i32, message = "bqd,bkd->bqk"}> : () -> ()
    %cst_328 = arith.constant dense<0.000000e+00> : vector<2x8x8xf32>
    %835 = tpu.matmul %833, %834, %cst_328 {dimension_numbers = #tpu.dot_dimension_numbers<[2], [2], [1], [1], [0, 0, 0, 1, 1, 1], [0], [0]>} : vector<2x8x8xf32>, vector<2x8x8xf32>, vector<2x8x8xf32> -> vector<2x8x8xf32>
    "tpu.trace_stop"() : () -> ()
    %cst_329 = arith.constant 0.353553385 : f32
    %836 = vector.broadcast %cst_329 : f32 to vector<2x8x8xf32>
    %837 = arith.mulf %835, %836 : vector<2x8x8xf32>
    %cst_330 = arith.constant 0.000000e+00 : f32
    %838 = vector.broadcast %cst_330 : f32 to vector<2x8x8xf32>
    %839 = arith.cmpf ogt, %1, %838 : vector<2x8x8xf32>
    %cst_331 = arith.constant -1.000000e+09 : f32
    %840 = vector.broadcast %cst_331 : f32 to vector<2x8x8xf32>
    %841 = arith.select %839, %837, %840 : vector<2x8x8xi1>, vector<2x8x8xf32>
    %cst_332 = arith.constant dense<0xFF800000> : vector<2x8xf32>
    %842 = vector.multi_reduction <maximumf>, %841, %cst_332 [2] : vector<2x8x8xf32> to vector<2x8xf32>
    %843 = vector.shape_cast %842 : vector<2x8xf32> to vector<2x8x1xf32>
    %844 = vector.broadcast %843 : vector<2x8x1xf32> to vector<2x8x8xf32>
    %845 = arith.subf %841, %844 : vector<2x8x8xf32>
    %846 = math.exp %845 : vector<2x8x8xf32>
    %cst_333 = arith.constant dense<0.000000e+00> : vector<2x8xf32>
    %847 = vector.multi_reduction <add>, %846, %cst_333 [2] : vector<2x8x8xf32> to vector<2x8xf32>
    %848 = vector.shape_cast %847 : vector<2x8xf32> to vector<2x8x1xf32>
    %849 = tpu.reciprocal %848 {approx = true} : vector<2x8x1xf32> -> vector<2x8x1xf32>
    %850 = vector.broadcast %849 : vector<2x8x1xf32> to vector<2x8x8xf32>
    %851 = arith.mulf %846, %850 : vector<2x8x8xf32>
    %852 = vector.extract_strided_slice %769 {offsets = [0, 0, 24], sizes = [2, 8, 8], strides = [1, 1, 1]} : vector<2x8x32xf32> to vector<2x8x8xf32>
    "tpu.trace_start"() <{level = 10 : i32, message = "bqk,bkd->bqd"}> : () -> ()
    %cst_334 = arith.constant dense<0.000000e+00> : vector<2x8x8xf32>
    %853 = tpu.matmul %851, %852, %cst_334 {dimension_numbers = #tpu.dot_dimension_numbers<[2], [1], [1], [2], [0, 0, 0, 1, 1, 2], [0], [0]>} : vector<2x8x8xf32>, vector<2x8x8xf32>, vector<2x8x8xf32> -> vector<2x8x8xf32>
    "tpu.trace_stop"() : () -> ()
    %854 = tpu.concatenate %790, %811, %832, %853 in 2 : vector<2x8x8xf32>, vector<2x8x8xf32>, vector<2x8x8xf32>, vector<2x8x8xf32> -> vector<2x8x32xf32>
    %855 = vector.shape_cast %854 : vector<2x8x32xf32> to vector<16x32xf32>
    %c1_335 = arith.constant 1 : index
    %c0_336 = arith.constant 0 : index
    %c0_337 = arith.constant 0 : index
    %856 = vector.load %arg17[%c1_335, %c0_336, %c0_337] : memref<2x32x32xf32, #tpu.memory_space<vmem>>, vector<1x32x32xf32>
    %857 = vector.shape_cast %856 : vector<1x32x32xf32> to vector<32x32xf32>
    %cst_338 = arith.constant dense<0.000000e+00> : vector<16x32xf32>
    %858 = tpu.matmul %855, %857, %cst_338 {dimension_numbers = #tpu.dot_dimension_numbers<[1], [0], [0], [1], [0, 0, 1, 1], [], []>} : vector<16x32xf32>, vector<32x32xf32>, vector<16x32xf32> -> vector<16x32xf32>
    %859 = arith.addf %729, %858 : vector<16x32xf32>
    %c1_339 = arith.constant 1 : index
    %c0_340 = arith.constant 0 : index
    %c0_341 = arith.constant 0 : index
    %860 = vector.load %arg18[%c1_339, %c0_340, %c0_341] : memref<2x1x32xf32, #tpu.memory_space<vmem>>, vector<1x1x32xf32>
    %861 = vector.shape_cast %860 : vector<1x1x32xf32> to vector<1x32xf32>
    %862 = vector.broadcast %861 : vector<1x32xf32> to vector<16x32xf32>
    %863 = arith.addf %859, %862 : vector<16x32xf32>
    %c1_342 = arith.constant 1 : index
    %c0_343 = arith.constant 0 : index
    %c0_344 = arith.constant 0 : index
    %864 = vector.load %arg30[%c1_342, %c0_343, %c0_344] : memref<2x2x32xf32, #tpu.memory_space<vmem>>, vector<1x2x32xf32>
    %865 = vector.shape_cast %864 : vector<1x2x32xf32> to vector<2x32xf32>
    %866 = vector.extract_strided_slice %865 {offsets = [0, 0], sizes = [1, 32], strides = [1, 1]} : vector<2x32xf32> to vector<1x32xf32>
    %867 = vector.extract_strided_slice %865 {offsets = [1, 0], sizes = [1, 32], strides = [1, 1]} : vector<2x32xf32> to vector<1x32xf32>
    %cst_345 = arith.constant dense<0.000000e+00> : vector<16xf32>
    %868 = vector.multi_reduction <add>, %863, %cst_345 [1] : vector<16x32xf32> to vector<16xf32>
    %869 = vector.shape_cast %868 : vector<16xf32> to vector<16x1xf32>
    %cst_346 = arith.constant 3.200000e+01 : f32
    %870 = vector.broadcast %cst_346 : f32 to vector<16x1xf32>
    %871 = arith.divf %869, %870 : vector<16x1xf32>
    %872 = vector.broadcast %871 : vector<16x1xf32> to vector<16x32xf32>
    %873 = arith.subf %863, %872 : vector<16x32xf32>
    %874 = arith.mulf %873, %873 : vector<16x32xf32>
    %cst_347 = arith.constant dense<0.000000e+00> : vector<16xf32>
    %875 = vector.multi_reduction <add>, %874, %cst_347 [1] : vector<16x32xf32> to vector<16xf32>
    %876 = vector.shape_cast %875 : vector<16xf32> to vector<16x1xf32>
    %cst_348 = arith.constant 3.100000e+01 : f32
    %877 = vector.broadcast %cst_348 : f32 to vector<16x1xf32>
    %878 = arith.divf %876, %877 : vector<16x1xf32>
    %879 = math.sqrt %878 : vector<16x1xf32>
    %cst_349 = arith.constant 9.99999997E-7 : f32
    %880 = vector.broadcast %cst_349 : f32 to vector<16x1xf32>
    %881 = arith.addf %879, %880 : vector<16x1xf32>
    %882 = tpu.reciprocal %881 {approx = true} : vector<16x1xf32> -> vector<16x1xf32>
    %883 = vector.broadcast %871 : vector<16x1xf32> to vector<16x32xf32>
    %884 = arith.subf %863, %883 : vector<16x32xf32>
    %885 = vector.broadcast %866 : vector<1x32xf32> to vector<16x32xf32>
    %886 = arith.mulf %885, %884 : vector<16x32xf32>
    %887 = vector.broadcast %882 : vector<16x1xf32> to vector<16x32xf32>
    %888 = arith.mulf %886, %887 : vector<16x32xf32>
    %889 = vector.broadcast %867 : vector<1x32xf32> to vector<16x32xf32>
    %890 = arith.addf %888, %889 : vector<16x32xf32>
    %c1_350 = arith.constant 1 : index
    %c0_351 = arith.constant 0 : index
    %c0_352 = arith.constant 0 : index
    %891 = vector.load %arg19[%c1_350, %c0_351, %c0_352] : memref<2x32x32xf32, #tpu.memory_space<vmem>>, vector<1x32x32xf32>
    %892 = vector.shape_cast %891 : vector<1x32x32xf32> to vector<32x32xf32>
    %cst_353 = arith.constant dense<0.000000e+00> : vector<16x32xf32>
    %893 = tpu.matmul %890, %892, %cst_353 {dimension_numbers = #tpu.dot_dimension_numbers<[1], [0], [0], [1], [0, 0, 1, 1], [], []>} : vector<16x32xf32>, vector<32x32xf32>, vector<16x32xf32> -> vector<16x32xf32>
    %c1_354 = arith.constant 1 : index
    %c0_355 = arith.constant 0 : index
    %c0_356 = arith.constant 0 : index
    %894 = vector.load %arg20[%c1_354, %c0_355, %c0_356] : memref<2x1x32xf32, #tpu.memory_space<vmem>>, vector<1x1x32xf32>
    %895 = vector.shape_cast %894 : vector<1x1x32xf32> to vector<1x32xf32>
    %896 = vector.broadcast %895 : vector<1x32xf32> to vector<16x32xf32>
    %897 = arith.addf %893, %896 : vector<16x32xf32>
    %898 = vector.shape_cast %897 : vector<16x32xf32> to vector<2x8x32xf32>
    %c1_357 = arith.constant 1 : index
    %c0_358 = arith.constant 0 : index
    %c0_359 = arith.constant 0 : index
    %899 = vector.load %arg21[%c1_357, %c0_358, %c0_359] : memref<2x32x64xf32, #tpu.memory_space<vmem>>, vector<1x32x64xf32>
    %900 = vector.shape_cast %899 : vector<1x32x64xf32> to vector<32x64xf32>
    %cst_360 = arith.constant dense<0.000000e+00> : vector<16x64xf32>
    %901 = tpu.matmul %401, %900, %cst_360 {dimension_numbers = #tpu.dot_dimension_numbers<[1], [0], [0], [1], [0, 0, 1, 1], [], []>} : vector<16x32xf32>, vector<32x64xf32>, vector<16x64xf32> -> vector<16x64xf32>
    %c1_361 = arith.constant 1 : index
    %c0_362 = arith.constant 0 : index
    %c0_363 = arith.constant 0 : index
    %902 = vector.load %arg22[%c1_361, %c0_362, %c0_363] : memref<2x1x64xf32, #tpu.memory_space<vmem>>, vector<1x1x64xf32>
    %903 = vector.shape_cast %902 : vector<1x1x64xf32> to vector<1x64xf32>
    %904 = vector.broadcast %903 : vector<1x64xf32> to vector<16x64xf32>
    %905 = arith.addf %901, %904 : vector<16x64xf32>
    %906 = vector.extract_strided_slice %905 {offsets = [0, 0], sizes = [16, 32], strides = [1, 1]} : vector<16x64xf32> to vector<16x32xf32>
    %907 = vector.shape_cast %906 : vector<16x32xf32> to vector<2x8x32xf32>
    %908 = vector.extract_strided_slice %905 {offsets = [0, 32], sizes = [16, 32], strides = [1, 1]} : vector<16x64xf32> to vector<16x32xf32>
    %909 = vector.shape_cast %908 : vector<16x32xf32> to vector<2x8x32xf32>
    %910 = vector.extract_strided_slice %898 {offsets = [0, 0, 0], sizes = [2, 8, 8], strides = [1, 1, 1]} : vector<2x8x32xf32> to vector<2x8x8xf32>
    %911 = vector.extract_strided_slice %907 {offsets = [0, 0, 0], sizes = [2, 8, 8], strides = [1, 1, 1]} : vector<2x8x32xf32> to vector<2x8x8xf32>
    "tpu.trace_start"() <{level = 10 : i32, message = "bqd,bkd->bqk"}> : () -> ()
    %cst_364 = arith.constant dense<0.000000e+00> : vector<2x8x8xf32>
    %912 = tpu.matmul %910, %911, %cst_364 {dimension_numbers = #tpu.dot_dimension_numbers<[2], [2], [1], [1], [0, 0, 0, 1, 1, 1], [0], [0]>} : vector<2x8x8xf32>, vector<2x8x8xf32>, vector<2x8x8xf32> -> vector<2x8x8xf32>
    "tpu.trace_stop"() : () -> ()
    %cst_365 = arith.constant 0.353553385 : f32
    %913 = vector.broadcast %cst_365 : f32 to vector<2x8x8xf32>
    %914 = arith.mulf %912, %913 : vector<2x8x8xf32>
    %cst_366 = arith.constant 0.000000e+00 : f32
    %915 = vector.broadcast %cst_366 : f32 to vector<2x1x8xf32>
    %916 = arith.cmpf ogt, %0, %915 : vector<2x1x8xf32>
    %cst_367 = arith.constant -1.000000e+09 : f32
    %917 = vector.shape_cast %916 : vector<2x1x8xi1> to vector<2x1x8xi1>
    %918 = vector.broadcast %917 : vector<2x1x8xi1> to vector<2x8x8xi1>
    %919 = vector.broadcast %cst_367 : f32 to vector<2x8x8xf32>
    %920 = arith.select %918, %914, %919 : vector<2x8x8xi1>, vector<2x8x8xf32>
    %cst_368 = arith.constant dense<0xFF800000> : vector<2x8xf32>
    %921 = vector.multi_reduction <maximumf>, %920, %cst_368 [2] : vector<2x8x8xf32> to vector<2x8xf32>
    %922 = vector.shape_cast %921 : vector<2x8xf32> to vector<2x8x1xf32>
    %923 = vector.broadcast %922 : vector<2x8x1xf32> to vector<2x8x8xf32>
    %924 = arith.subf %920, %923 : vector<2x8x8xf32>
    %925 = math.exp %924 : vector<2x8x8xf32>
    %cst_369 = arith.constant dense<0.000000e+00> : vector<2x8xf32>
    %926 = vector.multi_reduction <add>, %925, %cst_369 [2] : vector<2x8x8xf32> to vector<2x8xf32>
    %927 = vector.shape_cast %926 : vector<2x8xf32> to vector<2x8x1xf32>
    %928 = tpu.reciprocal %927 {approx = true} : vector<2x8x1xf32> -> vector<2x8x1xf32>
    %929 = vector.broadcast %928 : vector<2x8x1xf32> to vector<2x8x8xf32>
    %930 = arith.mulf %925, %929 : vector<2x8x8xf32>
    %931 = vector.extract_strided_slice %909 {offsets = [0, 0, 0], sizes = [2, 8, 8], strides = [1, 1, 1]} : vector<2x8x32xf32> to vector<2x8x8xf32>
    "tpu.trace_start"() <{level = 10 : i32, message = "bqk,bkd->bqd"}> : () -> ()
    %cst_370 = arith.constant dense<0.000000e+00> : vector<2x8x8xf32>
    %932 = tpu.matmul %930, %931, %cst_370 {dimension_numbers = #tpu.dot_dimension_numbers<[2], [1], [1], [2], [0, 0, 0, 1, 1, 2], [0], [0]>} : vector<2x8x8xf32>, vector<2x8x8xf32>, vector<2x8x8xf32> -> vector<2x8x8xf32>
    "tpu.trace_stop"() : () -> ()
    %933 = vector.extract_strided_slice %898 {offsets = [0, 0, 8], sizes = [2, 8, 8], strides = [1, 1, 1]} : vector<2x8x32xf32> to vector<2x8x8xf32>
    %934 = vector.extract_strided_slice %907 {offsets = [0, 0, 8], sizes = [2, 8, 8], strides = [1, 1, 1]} : vector<2x8x32xf32> to vector<2x8x8xf32>
    "tpu.trace_start"() <{level = 10 : i32, message = "bqd,bkd->bqk"}> : () -> ()
    %cst_371 = arith.constant dense<0.000000e+00> : vector<2x8x8xf32>
    %935 = tpu.matmul %933, %934, %cst_371 {dimension_numbers = #tpu.dot_dimension_numbers<[2], [2], [1], [1], [0, 0, 0, 1, 1, 1], [0], [0]>} : vector<2x8x8xf32>, vector<2x8x8xf32>, vector<2x8x8xf32> -> vector<2x8x8xf32>
    "tpu.trace_stop"() : () -> ()
    %cst_372 = arith.constant 0.353553385 : f32
    %936 = vector.broadcast %cst_372 : f32 to vector<2x8x8xf32>
    %937 = arith.mulf %935, %936 : vector<2x8x8xf32>
    %cst_373 = arith.constant 0.000000e+00 : f32
    %938 = vector.broadcast %cst_373 : f32 to vector<2x1x8xf32>
    %939 = arith.cmpf ogt, %0, %938 : vector<2x1x8xf32>
    %cst_374 = arith.constant -1.000000e+09 : f32
    %940 = vector.shape_cast %939 : vector<2x1x8xi1> to vector<2x1x8xi1>
    %941 = vector.broadcast %940 : vector<2x1x8xi1> to vector<2x8x8xi1>
    %942 = vector.broadcast %cst_374 : f32 to vector<2x8x8xf32>
    %943 = arith.select %941, %937, %942 : vector<2x8x8xi1>, vector<2x8x8xf32>
    %cst_375 = arith.constant dense<0xFF800000> : vector<2x8xf32>
    %944 = vector.multi_reduction <maximumf>, %943, %cst_375 [2] : vector<2x8x8xf32> to vector<2x8xf32>
    %945 = vector.shape_cast %944 : vector<2x8xf32> to vector<2x8x1xf32>
    %946 = vector.broadcast %945 : vector<2x8x1xf32> to vector<2x8x8xf32>
    %947 = arith.subf %943, %946 : vector<2x8x8xf32>
    %948 = math.exp %947 : vector<2x8x8xf32>
    %cst_376 = arith.constant dense<0.000000e+00> : vector<2x8xf32>
    %949 = vector.multi_reduction <add>, %948, %cst_376 [2] : vector<2x8x8xf32> to vector<2x8xf32>
    %950 = vector.shape_cast %949 : vector<2x8xf32> to vector<2x8x1xf32>
    %951 = tpu.reciprocal %950 {approx = true} : vector<2x8x1xf32> -> vector<2x8x1xf32>
    %952 = vector.broadcast %951 : vector<2x8x1xf32> to vector<2x8x8xf32>
    %953 = arith.mulf %948, %952 : vector<2x8x8xf32>
    %954 = vector.extract_strided_slice %909 {offsets = [0, 0, 8], sizes = [2, 8, 8], strides = [1, 1, 1]} : vector<2x8x32xf32> to vector<2x8x8xf32>
    "tpu.trace_start"() <{level = 10 : i32, message = "bqk,bkd->bqd"}> : () -> ()
    %cst_377 = arith.constant dense<0.000000e+00> : vector<2x8x8xf32>
    %955 = tpu.matmul %953, %954, %cst_377 {dimension_numbers = #tpu.dot_dimension_numbers<[2], [1], [1], [2], [0, 0, 0, 1, 1, 2], [0], [0]>} : vector<2x8x8xf32>, vector<2x8x8xf32>, vector<2x8x8xf32> -> vector<2x8x8xf32>
    "tpu.trace_stop"() : () -> ()
    %956 = vector.extract_strided_slice %898 {offsets = [0, 0, 16], sizes = [2, 8, 8], strides = [1, 1, 1]} : vector<2x8x32xf32> to vector<2x8x8xf32>
    %957 = vector.extract_strided_slice %907 {offsets = [0, 0, 16], sizes = [2, 8, 8], strides = [1, 1, 1]} : vector<2x8x32xf32> to vector<2x8x8xf32>
    "tpu.trace_start"() <{level = 10 : i32, message = "bqd,bkd->bqk"}> : () -> ()
    %cst_378 = arith.constant dense<0.000000e+00> : vector<2x8x8xf32>
    %958 = tpu.matmul %956, %957, %cst_378 {dimension_numbers = #tpu.dot_dimension_numbers<[2], [2], [1], [1], [0, 0, 0, 1, 1, 1], [0], [0]>} : vector<2x8x8xf32>, vector<2x8x8xf32>, vector<2x8x8xf32> -> vector<2x8x8xf32>
    "tpu.trace_stop"() : () -> ()
    %cst_379 = arith.constant 0.353553385 : f32
    %959 = vector.broadcast %cst_379 : f32 to vector<2x8x8xf32>
    %960 = arith.mulf %958, %959 : vector<2x8x8xf32>
    %cst_380 = arith.constant 0.000000e+00 : f32
    %961 = vector.broadcast %cst_380 : f32 to vector<2x1x8xf32>
    %962 = arith.cmpf ogt, %0, %961 : vector<2x1x8xf32>
    %cst_381 = arith.constant -1.000000e+09 : f32
    %963 = vector.shape_cast %962 : vector<2x1x8xi1> to vector<2x1x8xi1>
    %964 = vector.broadcast %963 : vector<2x1x8xi1> to vector<2x8x8xi1>
    %965 = vector.broadcast %cst_381 : f32 to vector<2x8x8xf32>
    %966 = arith.select %964, %960, %965 : vector<2x8x8xi1>, vector<2x8x8xf32>
    %cst_382 = arith.constant dense<0xFF800000> : vector<2x8xf32>
    %967 = vector.multi_reduction <maximumf>, %966, %cst_382 [2] : vector<2x8x8xf32> to vector<2x8xf32>
    %968 = vector.shape_cast %967 : vector<2x8xf32> to vector<2x8x1xf32>
    %969 = vector.broadcast %968 : vector<2x8x1xf32> to vector<2x8x8xf32>
    %970 = arith.subf %966, %969 : vector<2x8x8xf32>
    %971 = math.exp %970 : vector<2x8x8xf32>
    %cst_383 = arith.constant dense<0.000000e+00> : vector<2x8xf32>
    %972 = vector.multi_reduction <add>, %971, %cst_383 [2] : vector<2x8x8xf32> to vector<2x8xf32>
    %973 = vector.shape_cast %972 : vector<2x8xf32> to vector<2x8x1xf32>
    %974 = tpu.reciprocal %973 {approx = true} : vector<2x8x1xf32> -> vector<2x8x1xf32>
    %975 = vector.broadcast %974 : vector<2x8x1xf32> to vector<2x8x8xf32>
    %976 = arith.mulf %971, %975 : vector<2x8x8xf32>
    %977 = vector.extract_strided_slice %909 {offsets = [0, 0, 16], sizes = [2, 8, 8], strides = [1, 1, 1]} : vector<2x8x32xf32> to vector<2x8x8xf32>
    "tpu.trace_start"() <{level = 10 : i32, message = "bqk,bkd->bqd"}> : () -> ()
    %cst_384 = arith.constant dense<0.000000e+00> : vector<2x8x8xf32>
    %978 = tpu.matmul %976, %977, %cst_384 {dimension_numbers = #tpu.dot_dimension_numbers<[2], [1], [1], [2], [0, 0, 0, 1, 1, 2], [0], [0]>} : vector<2x8x8xf32>, vector<2x8x8xf32>, vector<2x8x8xf32> -> vector<2x8x8xf32>
    "tpu.trace_stop"() : () -> ()
    %979 = vector.extract_strided_slice %898 {offsets = [0, 0, 24], sizes = [2, 8, 8], strides = [1, 1, 1]} : vector<2x8x32xf32> to vector<2x8x8xf32>
    %980 = vector.extract_strided_slice %907 {offsets = [0, 0, 24], sizes = [2, 8, 8], strides = [1, 1, 1]} : vector<2x8x32xf32> to vector<2x8x8xf32>
    "tpu.trace_start"() <{level = 10 : i32, message = "bqd,bkd->bqk"}> : () -> ()
    %cst_385 = arith.constant dense<0.000000e+00> : vector<2x8x8xf32>
    %981 = tpu.matmul %979, %980, %cst_385 {dimension_numbers = #tpu.dot_dimension_numbers<[2], [2], [1], [1], [0, 0, 0, 1, 1, 1], [0], [0]>} : vector<2x8x8xf32>, vector<2x8x8xf32>, vector<2x8x8xf32> -> vector<2x8x8xf32>
    "tpu.trace_stop"() : () -> ()
    %cst_386 = arith.constant 0.353553385 : f32
    %982 = vector.broadcast %cst_386 : f32 to vector<2x8x8xf32>
    %983 = arith.mulf %981, %982 : vector<2x8x8xf32>
    %cst_387 = arith.constant 0.000000e+00 : f32
    %984 = vector.broadcast %cst_387 : f32 to vector<2x1x8xf32>
    %985 = arith.cmpf ogt, %0, %984 : vector<2x1x8xf32>
    %cst_388 = arith.constant -1.000000e+09 : f32
    %986 = vector.shape_cast %985 : vector<2x1x8xi1> to vector<2x1x8xi1>
    %987 = vector.broadcast %986 : vector<2x1x8xi1> to vector<2x8x8xi1>
    %988 = vector.broadcast %cst_388 : f32 to vector<2x8x8xf32>
    %989 = arith.select %987, %983, %988 : vector<2x8x8xi1>, vector<2x8x8xf32>
    %cst_389 = arith.constant dense<0xFF800000> : vector<2x8xf32>
    %990 = vector.multi_reduction <maximumf>, %989, %cst_389 [2] : vector<2x8x8xf32> to vector<2x8xf32>
    %991 = vector.shape_cast %990 : vector<2x8xf32> to vector<2x8x1xf32>
    %992 = vector.broadcast %991 : vector<2x8x1xf32> to vector<2x8x8xf32>
    %993 = arith.subf %989, %992 : vector<2x8x8xf32>
    %994 = math.exp %993 : vector<2x8x8xf32>
    %cst_390 = arith.constant dense<0.000000e+00> : vector<2x8xf32>
    %995 = vector.multi_reduction <add>, %994, %cst_390 [2] : vector<2x8x8xf32> to vector<2x8xf32>
    %996 = vector.shape_cast %995 : vector<2x8xf32> to vector<2x8x1xf32>
    %997 = tpu.reciprocal %996 {approx = true} : vector<2x8x1xf32> -> vector<2x8x1xf32>
    %998 = vector.broadcast %997 : vector<2x8x1xf32> to vector<2x8x8xf32>
    %999 = arith.mulf %994, %998 : vector<2x8x8xf32>
    %1000 = vector.extract_strided_slice %909 {offsets = [0, 0, 24], sizes = [2, 8, 8], strides = [1, 1, 1]} : vector<2x8x32xf32> to vector<2x8x8xf32>
    "tpu.trace_start"() <{level = 10 : i32, message = "bqk,bkd->bqd"}> : () -> ()
    %cst_391 = arith.constant dense<0.000000e+00> : vector<2x8x8xf32>
    %1001 = tpu.matmul %999, %1000, %cst_391 {dimension_numbers = #tpu.dot_dimension_numbers<[2], [1], [1], [2], [0, 0, 0, 1, 1, 2], [0], [0]>} : vector<2x8x8xf32>, vector<2x8x8xf32>, vector<2x8x8xf32> -> vector<2x8x8xf32>
    "tpu.trace_stop"() : () -> ()
    %1002 = tpu.concatenate %932, %955, %978, %1001 in 2 : vector<2x8x8xf32>, vector<2x8x8xf32>, vector<2x8x8xf32>, vector<2x8x8xf32> -> vector<2x8x32xf32>
    %1003 = vector.shape_cast %1002 : vector<2x8x32xf32> to vector<16x32xf32>
    %c1_392 = arith.constant 1 : index
    %c0_393 = arith.constant 0 : index
    %c0_394 = arith.constant 0 : index
    %1004 = vector.load %arg23[%c1_392, %c0_393, %c0_394] : memref<2x32x32xf32, #tpu.memory_space<vmem>>, vector<1x32x32xf32>
    %1005 = vector.shape_cast %1004 : vector<1x32x32xf32> to vector<32x32xf32>
    %cst_395 = arith.constant dense<0.000000e+00> : vector<16x32xf32>
    %1006 = tpu.matmul %1003, %1005, %cst_395 {dimension_numbers = #tpu.dot_dimension_numbers<[1], [0], [0], [1], [0, 0, 1, 1], [], []>} : vector<16x32xf32>, vector<32x32xf32>, vector<16x32xf32> -> vector<16x32xf32>
    %1007 = arith.addf %863, %1006 : vector<16x32xf32>
    %c1_396 = arith.constant 1 : index
    %c0_397 = arith.constant 0 : index
    %c0_398 = arith.constant 0 : index
    %1008 = vector.load %arg24[%c1_396, %c0_397, %c0_398] : memref<2x1x32xf32, #tpu.memory_space<vmem>>, vector<1x1x32xf32>
    %1009 = vector.shape_cast %1008 : vector<1x1x32xf32> to vector<1x32xf32>
    %1010 = vector.broadcast %1009 : vector<1x32xf32> to vector<16x32xf32>
    %1011 = arith.addf %1007, %1010 : vector<16x32xf32>
    %c1_399 = arith.constant 1 : index
    %c0_400 = arith.constant 0 : index
    %c0_401 = arith.constant 0 : index
    %1012 = vector.load %arg31[%c1_399, %c0_400, %c0_401] : memref<2x2x32xf32, #tpu.memory_space<vmem>>, vector<1x2x32xf32>
    %1013 = vector.shape_cast %1012 : vector<1x2x32xf32> to vector<2x32xf32>
    %1014 = vector.extract_strided_slice %1013 {offsets = [0, 0], sizes = [1, 32], strides = [1, 1]} : vector<2x32xf32> to vector<1x32xf32>
    %1015 = vector.extract_strided_slice %1013 {offsets = [1, 0], sizes = [1, 32], strides = [1, 1]} : vector<2x32xf32> to vector<1x32xf32>
    %cst_402 = arith.constant dense<0.000000e+00> : vector<16xf32>
    %1016 = vector.multi_reduction <add>, %1011, %cst_402 [1] : vector<16x32xf32> to vector<16xf32>
    %1017 = vector.shape_cast %1016 : vector<16xf32> to vector<16x1xf32>
    %cst_403 = arith.constant 3.200000e+01 : f32
    %1018 = vector.broadcast %cst_403 : f32 to vector<16x1xf32>
    %1019 = arith.divf %1017, %1018 : vector<16x1xf32>
    %1020 = vector.broadcast %1019 : vector<16x1xf32> to vector<16x32xf32>
    %1021 = arith.subf %1011, %1020 : vector<16x32xf32>
    %1022 = arith.mulf %1021, %1021 : vector<16x32xf32>
    %cst_404 = arith.constant dense<0.000000e+00> : vector<16xf32>
    %1023 = vector.multi_reduction <add>, %1022, %cst_404 [1] : vector<16x32xf32> to vector<16xf32>
    %1024 = vector.shape_cast %1023 : vector<16xf32> to vector<16x1xf32>
    %cst_405 = arith.constant 3.100000e+01 : f32
    %1025 = vector.broadcast %cst_405 : f32 to vector<16x1xf32>
    %1026 = arith.divf %1024, %1025 : vector<16x1xf32>
    %1027 = math.sqrt %1026 : vector<16x1xf32>
    %cst_406 = arith.constant 9.99999997E-7 : f32
    %1028 = vector.broadcast %cst_406 : f32 to vector<16x1xf32>
    %1029 = arith.addf %1027, %1028 : vector<16x1xf32>
    %1030 = tpu.reciprocal %1029 {approx = true} : vector<16x1xf32> -> vector<16x1xf32>
    %1031 = vector.broadcast %1019 : vector<16x1xf32> to vector<16x32xf32>
    %1032 = arith.subf %1011, %1031 : vector<16x32xf32>
    %1033 = vector.broadcast %1014 : vector<1x32xf32> to vector<16x32xf32>
    %1034 = arith.mulf %1033, %1032 : vector<16x32xf32>
    %1035 = vector.broadcast %1030 : vector<16x1xf32> to vector<16x32xf32>
    %1036 = arith.mulf %1034, %1035 : vector<16x32xf32>
    %1037 = vector.broadcast %1015 : vector<1x32xf32> to vector<16x32xf32>
    %1038 = arith.addf %1036, %1037 : vector<16x32xf32>
    %c1_407 = arith.constant 1 : index
    %c0_408 = arith.constant 0 : index
    %c0_409 = arith.constant 0 : index
    %1039 = vector.load %arg25[%c1_407, %c0_408, %c0_409] : memref<2x32x64xf32, #tpu.memory_space<vmem>>, vector<1x32x64xf32>
    %1040 = vector.shape_cast %1039 : vector<1x32x64xf32> to vector<32x64xf32>
    %cst_410 = arith.constant dense<0.000000e+00> : vector<16x64xf32>
    %1041 = tpu.matmul %1038, %1040, %cst_410 {dimension_numbers = #tpu.dot_dimension_numbers<[1], [0], [0], [1], [0, 0, 1, 1], [], []>} : vector<16x32xf32>, vector<32x64xf32>, vector<16x64xf32> -> vector<16x64xf32>
    %c1_411 = arith.constant 1 : index
    %c0_412 = arith.constant 0 : index
    %c0_413 = arith.constant 0 : index
    %1042 = vector.load %arg26[%c1_411, %c0_412, %c0_413] : memref<2x1x64xf32, #tpu.memory_space<vmem>>, vector<1x1x64xf32>
    %1043 = vector.shape_cast %1042 : vector<1x1x64xf32> to vector<1x64xf32>
    %1044 = vector.broadcast %1043 : vector<1x64xf32> to vector<16x64xf32>
    %1045 = arith.addf %1041, %1044 : vector<16x64xf32>
    %cst_414 = arith.constant 0.000000e+00 : f32
    %1046 = vector.broadcast %cst_414 : f32 to vector<16x64xf32>
    %1047 = arith.maximumf %1045, %1046 : vector<16x64xf32>
    %c1_415 = arith.constant 1 : index
    %c0_416 = arith.constant 0 : index
    %c0_417 = arith.constant 0 : index
    %1048 = vector.load %arg27[%c1_415, %c0_416, %c0_417] : memref<2x64x32xf32, #tpu.memory_space<vmem>>, vector<1x64x32xf32>
    %1049 = vector.shape_cast %1048 : vector<1x64x32xf32> to vector<64x32xf32>
    %cst_418 = arith.constant dense<0.000000e+00> : vector<16x32xf32>
    %1050 = tpu.matmul %1047, %1049, %cst_418 {dimension_numbers = #tpu.dot_dimension_numbers<[1], [0], [0], [1], [0, 0, 1, 1], [], []>} : vector<16x64xf32>, vector<64x32xf32>, vector<16x32xf32> -> vector<16x32xf32>
    %1051 = arith.addf %1011, %1050 : vector<16x32xf32>
    %c1_419 = arith.constant 1 : index
    %c0_420 = arith.constant 0 : index
    %c0_421 = arith.constant 0 : index
    %1052 = vector.load %arg28[%c1_419, %c0_420, %c0_421] : memref<2x1x32xf32, #tpu.memory_space<vmem>>, vector<1x1x32xf32>
    %1053 = vector.shape_cast %1052 : vector<1x1x32xf32> to vector<1x32xf32>
    %1054 = vector.broadcast %1053 : vector<1x32xf32> to vector<16x32xf32>
    %1055 = arith.addf %1051, %1054 : vector<16x32xf32>
    %c0_422 = arith.constant 0 : index
    %c0_423 = arith.constant 0 : index
    %1056 = vector.load %arg32[%c0_422, %c0_423] : memref<2x32xf32, #tpu.memory_space<vmem>>, vector<2x32xf32>
    %1057 = vector.extract_strided_slice %1056 {offsets = [0, 0], sizes = [1, 32], strides = [1, 1]} : vector<2x32xf32> to vector<1x32xf32>
    %1058 = vector.extract_strided_slice %1056 {offsets = [1, 0], sizes = [1, 32], strides = [1, 1]} : vector<2x32xf32> to vector<1x32xf32>
    %cst_424 = arith.constant dense<0.000000e+00> : vector<16xf32>
    %1059 = vector.multi_reduction <add>, %1055, %cst_424 [1] : vector<16x32xf32> to vector<16xf32>
    %1060 = vector.shape_cast %1059 : vector<16xf32> to vector<16x1xf32>
    %cst_425 = arith.constant 3.200000e+01 : f32
    %1061 = vector.broadcast %cst_425 : f32 to vector<16x1xf32>
    %1062 = arith.divf %1060, %1061 : vector<16x1xf32>
    %1063 = vector.broadcast %1062 : vector<16x1xf32> to vector<16x32xf32>
    %1064 = arith.subf %1055, %1063 : vector<16x32xf32>
    %1065 = arith.mulf %1064, %1064 : vector<16x32xf32>
    %cst_426 = arith.constant dense<0.000000e+00> : vector<16xf32>
    %1066 = vector.multi_reduction <add>, %1065, %cst_426 [1] : vector<16x32xf32> to vector<16xf32>
    %1067 = vector.shape_cast %1066 : vector<16xf32> to vector<16x1xf32>
    %cst_427 = arith.constant 3.100000e+01 : f32
    %1068 = vector.broadcast %cst_427 : f32 to vector<16x1xf32>
    %1069 = arith.divf %1067, %1068 : vector<16x1xf32>
    %1070 = math.sqrt %1069 : vector<16x1xf32>
    %cst_428 = arith.constant 9.99999997E-7 : f32
    %1071 = vector.broadcast %cst_428 : f32 to vector<16x1xf32>
    %1072 = arith.addf %1070, %1071 : vector<16x1xf32>
    %1073 = tpu.reciprocal %1072 {approx = true} : vector<16x1xf32> -> vector<16x1xf32>
    %1074 = vector.broadcast %1062 : vector<16x1xf32> to vector<16x32xf32>
    %1075 = arith.subf %1055, %1074 : vector<16x32xf32>
    %1076 = vector.broadcast %1057 : vector<1x32xf32> to vector<16x32xf32>
    %1077 = arith.mulf %1076, %1075 : vector<16x32xf32>
    %1078 = vector.broadcast %1073 : vector<16x1xf32> to vector<16x32xf32>
    %1079 = arith.mulf %1077, %1078 : vector<16x32xf32>
    %1080 = vector.broadcast %1058 : vector<1x32xf32> to vector<16x32xf32>
    %1081 = arith.addf %1079, %1080 : vector<16x32xf32>
    %1082 = vector.shape_cast %1081 : vector<16x32xf32> to vector<2x8x32xf32>
    %c0_429 = arith.constant 0 : index
    %c0_430 = arith.constant 0 : index
    %c0_431 = arith.constant 0 : index
    %1083 = vector.load %arg33[%c0_429, %c0_430, %c0_431] : memref<2x8x32xf32, #tpu.memory_space<vmem>>, vector<2x8x32xf32>
    tpu.vector_store %arg33[%c0_429, %c0_430, %c0_431], %1082 {strides = array<i32>} : memref<2x8x32xf32, #tpu.memory_space<vmem>>, vector<2x8x32xf32>,
    return
  }
}

</mosaic_0001>

<bundles_post_ra>
// kernel: encoder_decoder_forward.1
= control target key start
LH: loop header
LB: loop body
LE: loop exit
PB: predicated region body
PF: predicated region fallthrough
CT: control target
= control target key end

     0   :  { %s12918_s6 = smov 1   ;;  %s12919_s10 = smov 2   ;;  %s14660_s0 = inlined_call_operand.smem [shape: u32[34], index: -1, kind: input, shape index: {}] }
   0x1   :  { %s12980_s5 = sld [smem:[%s14660_s0]]   ;;  %s12920_s14 = smov 3  }
   0x2   :  { %s12985_s9 = sld [smem:[%s14660_s0 + %s12918_s6]]   ;;  %s12921_s18 = smov 4  }
   0x3   :  { %s12990_s13 = sld [smem:[%s14660_s0 + %s12919_s10]]   ;;  %s12922_s22 = smov 5  }
   0x4   :  { %s12995_s17 = sld [smem:[%s14660_s0 + %s12920_s14]]   ;;  %s12923_s26 = smov 6  }
   0x5   :  { %s13000_s21 = sld [smem:[%s14660_s0 + %s12921_s18]]   ;;  %s12924_s30 = smov 7  }
   0x6   :  { %s13005_s25 = sld [smem:[%s14660_s0 + %s12922_s22]]   ;;  %s12925_s4 = smov 8  }
   0x7   :  { %s13010_s29 = sld [smem:[%s14660_s0 + %s12923_s26]]   ;;  %s12926_s10 = smov 9  }
   0x8   :  { %s13015_s3 = sld [smem:[%s14660_s0 + %s12924_s30]]   ;;  %s12927_s15 = smov 10  }
   0x9   :  { %s13020_s8 = sld [smem:[%s14660_s0 + %s12925_s4]]   ;;  %s12928_s20 = smov 11  }
   0xa   :  { %14678 = sst [smem:[#allocation8_spill]] %s12995_s17  ;;  %s12929_s26 = smov 12  }
   0xb   :  { %s13025_s14 = sld [smem:[%s14660_s0 + %s12926_s10]]   ;;  %s12930_s1 = smov 13  }
   0xc   :  { %s13030_s19 = sld [smem:[%s14660_s0 + %s12927_s15]]   ;;  %s12931_s7 = smov 14  }
   0xd   :  { %s13035_s24 = sld [smem:[%s14660_s0 + %s12928_s20]]   ;;  %s12932_s15 = smov 15  }
   0xe   :  { %s13040_s30 = sld [smem:[%s14660_s0 + %s12929_s26]]   ;;  %s12933_s22 = smov 16  }
   0xf   :  { %s13045_s6 = sld [smem:[%s14660_s0 + %s12930_s1]]   ;;  %s12934_s28 = smov 17  }
  0x10   :  { %s13050_s12 = sld [smem:[%s14660_s0 + %s12931_s7]]   ;;  %s12935_s7 = smov 18  }
  0x11   :  { %s13055_s20 = sld [smem:[%s14660_s0 + %s12932_s15]]   ;;  %s12936_s15 = smov 19  }
  0x12   :  { %s13060_s27 = sld [smem:[%s14660_s0 + %s12933_s22]]   ;;  %s12937_s22 = smov 20  }
  0x13   :  { %s13065_s4 = sld [smem:[%s14660_s0 + %s12934_s28]]   ;;  %s12938_s28 = smov 21  }
  0x14   :  { %s13075_s17 = sld [smem:[%s14660_s0 + %s12936_s15]]   ;;  %s12940_s15 = smov 23  }
  0x15   :  { %s12946_s1 = smov 29   ;;  %s12947_s10 = smov 30  }
  0x16   :  { %14679 = sst [smem:[#allocation9_spill]] %s13050_s12  ;;  %s12948_s16 = smov 31  }
  0x17   :  { %14680 = sst [smem:[#allocation10_spill]] %s13055_s20  ;;  %s12949_s23 = smov 32  }
  0x18   :  { %14681 = sst [smem:[#allocation11_spill]] %s13060_s27 }
  0x19   :  { %14682 = sst [smem:[#allocation12_spill]] %s13065_s4 }
  0x1a   :  { %s13070_s12 = sld [smem:[%s14660_s0 + %s12935_s7]]   ;;  %s12939_s7 = smov 22  }
  0x1b   :  { %14684 = sst [smem:[#allocation14_spill]] %s13075_s17 }
  0x1c   :  { %s13080_s27 = sld [smem:[%s14660_s0 + %s12937_s22]]   ;;  %s12941_s22 = smov 24  }
  0x1d   :  { %s13085_s4 = sld [smem:[%s14660_s0 + %s12938_s28]]   ;;  %s12942_s28 = smov 25  }
  0x1e   :  { %s13095_s17 = sld [smem:[%s14660_s0 + %s12940_s15]]   ;;  %s12944_s15 = smov 27  }
  0x1f   :  { %s13138_s20 = sld [smem:[%s14660_s0 + %s12949_s23]]  }
  0x20   :  { %14683 = sst [smem:[#allocation13_spill]] %s13070_s12 }
  0x21   :  { %s13090_s12 = sld [smem:[%s14660_s0 + %s12939_s7]]   ;;  %s12943_s7 = smov 26  }
  0x22   :  { %14685 = sst [smem:[#allocation15_spill]] %s13080_s27 }
  0x23   :  { %14686 = sst [smem:[#allocation16_spill]] %s13085_s4 }
  0x24   :  { %14688 = sst [smem:[#allocation18_spill]] %s13095_s17 }
  0x25   :  { %s13100_s27 = sld [smem:[%s14660_s0 + %s12941_s22]]   ;;  %s12945_s22 = smov 28  }
  0x26   :  { %s13105_s4 = sld [smem:[%s14660_s0 + %s12942_s28]]  }
  0x27   :  { %14687 = sst [smem:[#allocation17_spill]] %s13090_s12 }
  0x28   :  { %s13110_s12 = sld [smem:[%s14660_s0 + %s12943_s7]]  }
  0x29   :  { %s13115_s17 = sld [smem:[%s14660_s0 + %s12944_s15]]  }
  0x2b   :  { %14689 = sst [smem:[#allocation19_spill]] %s13100_s27 }
  0x2c   :  { %14690 = sst [smem:[#allocation20_spill]] %s13105_s4 }
  0x2d   :  { %s11155_s27 = sld [smem:[%s14660_s0 + %s12945_s22]]  }
  0x2e   :  { %14691 = sst [smem:[#allocation21_spill]] %s13110_s12 }
  0x2f   :  { %14692 = sst [smem:[#allocation22_spill]] %s13115_s17 }
  0x30   :  { %s13123_s4 = sld [smem:[%s14660_s0 + %s12946_s1]]   ;;  %s12950_s1 = smov 33  }
  0x31   :  { %s13128_s12 = sld [smem:[%s14660_s0 + %s12947_s10]]  }
  0x32   :  { %s13133_s17 = sld [smem:[%s14660_s0 + %s12948_s16]]  }
  0x36   :  { %14693 = sst [smem:[#allocation23_spill]] %s13123_s4 }
  0x37   :  { %s13143_s4 = sld [smem:[%s14660_s0 + %s12950_s1]]  }
  0x38   :  { %72 = vsyncpa [#allocation3], 0 }
  0x39   :  { %73 = vsyncpa [#allocation4], 0  ;;  %s12951_s10 = smov [#allocation2]  }
  0x3a   :  { %s135_s7 = sshll.u32 %s12951_s10, 4  ;;  %s136_s7 = int_to_ptr.vmem [resolvable:$true] %s135_s7 }
  0x3b   :  { %s12882_s11 = scalar_lea.vmem %s136_s7, 32  ;;  %p12887_p1 = scmp.lt.s32.totalorder %s136_s7, %s136_s7 }
  0x3c   :  { %p12883_p0 = scmp.ne.s32.totalorder %s136_s7, %s12882_s11  ;;  %p12888_p2 = scmp.lt.s32.totalorder %s12882_s11, %s12882_s11 }
  0x3e   :  { %p12889_p3 = por %p12888_p2, %p12887_p1 }
  0x40   :  { %p12890_p4 = pnand %p12889_p3, %p12883_p0 }
  0x42   :  { %12893 = shalt.err (!%p12890_p4)
}
  0x43   :  { %s12952_s16 = smov 16   ;;  %s12953_s15 = smov 1  }
  0x44   :  { %141 = dma.hbm_to_vmem [thread:$0]  %s11155_s27, 32, %s136_s7, [#allocation3], %s12952_s16, %s12952_s16, %s12953_s15  }
  0x45   :  { %12914 = dma.done.wait [#allocation3], 32  }
  0x46   :  { %12915 = vsyncadd [#allocation3], 4294967264  ;;  %vm160_vm0 = vcmask 261120   ;;  %v13148_v0 = vld [vmem:[%s12980_s5] sm:$0xff]  ;;  %v13151_v1 = vld [vmem:[%s12980_s5 + $0x8] sm:$0xff]  ;;  %v201_v26 = vlaneseq  ;;  %v12954_v49 = vmov 0.0  }
  0x47   :  { %v161_v2 = vsel %vm160_vm0, %v13148_v0, 0.0  ;;  %v164_v3 = vsel %vm160_vm0, %v13151_v1, 0.0  ;;  %v218_v14 = vld [vmem:[%s13000_s21 + $0x18] sm:$0xff]  ;;  %v217_v15 = vld [vmem:[%s13000_s21 + $0x10] sm:$0xff]  ;;  %v216_v16 = vld [vmem:[%s13000_s21 + $0x8] sm:$0xff]  ;;  %11799 = vmatprep.subr.mxu0 %v12954_v49  ;;  %vm12955_vm5 = vmmov 0  }
  0x48   :  { %162 = vadd.xlane.f32.xlu0 %v161_v2  ;;  %11778 = vmatprep.subr.mxu1 %v218_v14  ;;  %v215_v17 = vld [vmem:[%s13000_s21] sm:$0xff]  ;;  %v202_v33 = vshrl.u32 %v201_v26, 7  ;;  %s12956_s0 = smov 96   ;;  %vm310_vm6 = vcmask 64512   ;;  %v12957_v59 = vmov 0   ;;  %s12958_s5 = smov 64  }
  0x49   :  { %11779 = vmatpush3.msra.mxu1 %v218_v14  ;;  %v159_v37 = vld [vmem:[%s13040_s30] sm:$0x3]  ;;  %11801 = vmatprep.mubr.msk.f32.mxu0 %vm12955_vm5, %v12954_v49  ;;  %s12960_s27 = smov 120   ;;  %s12961_s18 = smov 56   ;;  %vm1685_vm11 = vcmask 195584   ;;  %vm1682_vm12 = vcmask 130048  }
  0x4a   :  { %11780 = vmatprep.subr.mxu1 %v217_v15  ;;  %v13165_v36 = vsub.s32 0, %v202_v33  ;;  %v13169_v39 = vsub.s32 1, %v202_v33  ;;  %v11161_v50 = vld [vmem:[%s13005_s25] ss:$0 sm:$0xff]  ;;  %v154_v58 = vld [vmem:[%s12990_s13 + $0x1] sm:$0x1] }
  0x4b   :  { %11781 = vmatpush3.msra.mxu1 %v217_v15  ;;  %v153_v57 = vld [vmem:[%s12990_s13] sm:$0x1]  ;;  %vm465_vm8 = vcmp.gt.f32.partialorder %v154_v58, 0.0  ;;  %s12959_s13 = smov 88   ;;  %s12962_s23 = smov 80  }
  0x4c   :  { %165 = vadd.xlane.f32.xlu0 %v164_v3  ;;  %11782 = vmatprep.subr.mxu1 %v216_v16  ;;  %v204_v38 = vrot.slane %v159_v37, %v13165_v36  ;;  %v212_v41 = vrot.slane %v159_v37, %v13169_v39  ;;  %vm464_vm7 = vcmp.gt.f32.partialorder %v153_v57, 0.0  ;;  %v467_v62 = vsel %vm465_vm8, 1, %v12957_v59  ;;  %s12963_s22 = smov 112   ;;  %s12964_s26 = smov 48  }
  0x4d   :  { %11783 = vmatpush3.msra.mxu1 %v216_v16  ;;  %v466_v60 = vsel %vm464_vm7, 1, %v12957_v59  ;;  %v475_v3 = vrot.slane %v467_v62, %v13165_v36  ;;  %s12965_s1 = smov 72   ;;  %s12966_s28 = smov 104  }
  0x4e   :  { %11784 = vmatprep.subr.mxu1 %v215_v17  ;;  %v471_v61 = vrot.slane %v466_v60, %v13165_v36  ;;  %s12967_s2 = smov 40   ;;  %s12968_s10 = smov 8  }
  0x4f   :  { %11785 = vmatpush3.msra.mxu1 %v215_v17  ;;  %vm13212_vm10 = vcmp.eq.s32.totalorder %v475_v3, 1  ;;  %s14676_s7 = smov 24   ;;  %s14709_s11 = sld [smem:[#allocation18_spill]] }
  0x50   :  { %11789 = vmatprep.subr.mxu1 %v12954_v49  ;;  %vm13204_vm9 = vcmp.eq.s32.totalorder %v471_v61, 1  ;;  %s14710_s15 = sld [smem:[#allocation19_spill]] }
  0xd1   :  { %v163_v4 = vpop.xlane.xlu0 %162 }
  0xd2   :  { %v168_v5 = vmul.f32 0.03125, %v163_v4 }
  0xd4   :  { %v170_v6 = vsub.f32 %v13148_v0, %v168_v5 }
  0xd5   :  { %v166_v7 = vpop.xlane.xlu0 %165 }
  0xd6   :  { %v169_v8 = vmul.f32 0.03125, %v166_v7  ;;  %v172_v9 = vmul.f32 %v170_v6, %v170_v6  ;;  %v205_v40 = vmul.f32 %v204_v38, %v170_v6 }
  0xd8   :  { %v171_v10 = vsub.f32 %v13151_v1, %v169_v8  ;;  %v174_v11 = vsel %vm160_vm0, %v172_v9, 0.0 }
  0xd9   :  { %175 = vadd.xlane.f32.xlu1 %v174_v11 }
  0xda   :  { %v173_v12 = vmul.f32 %v171_v10, %v171_v10  ;;  %v206_v44 = vmul.f32 %v204_v38, %v171_v10 }
  0xdc   :  { %v177_v13 = vsel %vm160_vm0, %v173_v12, 0.0 }
  0xdd   :  { %178 = vadd.xlane.f32.xlu1 %v177_v13 }
 0x162   :  { %v176_v18 = vpop.xlane.xlu1 %175 }
 0x163   :  { %v181_v19 = vmul.f32 0.032258064, %v176_v18 }
 0x165   :  { %12586 = vrsqrt.f32 %v181_v19  ;;  %vm185_vm1 = vcmp.eq.f32.partialorder %v181_v19, inf  ;;  %v188_v24 = vand.u32 2147483648, %v181_v19  ;;  %vm187_vm2 = vcmp.eq.f32.partialorder %v181_v19, 0.0 }
 0x166   :  { %v179_v20 = vpop.xlane.xlu1 %178 }
 0x167   :  { %v182_v21 = vmul.f32 0.032258064, %v179_v20 }
 0x169   :  { %12588 = vrsqrt.f32 %v182_v21  ;;  %vm192_vm3 = vcmp.eq.f32.partialorder %v182_v21, inf  ;;  %v195_v31 = vand.u32 2147483648, %v182_v21  ;;  %vm194_vm4 = vcmp.eq.f32.partialorder %v182_v21, 0.0 }
 0x172   :  { %v12587_v22 = vpop.eup %12586 }
 0x173   :  { %v184_v23 = vmul.f32 %v12587_v22, %v181_v19 }
 0x175   :  { %v186_v25 = vsel %vm185_vm1, %v181_v19, %v184_v23 }
 0x176   :  { %v12589_v27 = vpop.eup %12588  ;;  %v189_v28 = vsel %vm187_vm2, %v188_v24, %v186_v25  ;;  %vm1939_vm2 = vcmask 523264  }
 0x177   :  { %v191_v29 = vmul.f32 %v12589_v27, %v182_v21  ;;  %v197_v30 = vadd.f32 1e-06, %v189_v28 }
 0x179   :  { %v193_v32 = vsel %vm192_vm3, %v182_v21, %v191_v29  ;;  %12590 = vrcp.f32 %v197_v30 }
 0x17a   :  { %v196_v34 = vsel %vm194_vm4, %v195_v31, %v193_v32 }
 0x17b   :  { %v198_v35 = vadd.f32 1e-06, %v196_v34 }
 0x17d   :  { %12592 = vrcp.f32 %v198_v35 }
 0x186   :  { %v12591_v42 = vpop.eup %12590 }
 0x187   :  { %v207_v43 = vmul.f32 %v12591_v42, %v205_v40 }
 0x189   :  { %v213_v45 = vadd.f32 %v212_v41, %v207_v43 }
 0x18a   :  { %v12593_v46 = vpop.eup %12592 }
 0x18b   :  { %v208_v47 = vmul.f32 %v12593_v46, %v206_v44  ;;  %11786 = vmatprep.mubr.msk.f32.mxu1 %vm160_vm0, %v213_v45 }
 0x18d   :  { %v214_v48 = vadd.f32 %v212_v41, %v208_v47 }
 0x18f   :  { %11787 = vmatmul.mubr.msk.f32.vlgmr.msra.gmra.mxu1 %vm160_vm0, %v214_v48 }
 0x190   :  { %11791 = vmatprep.mubr.msk.f32.mxu1 %vm12955_vm5, %v12954_v49 }
 0x24f   :  { %v11788_v51 = vpop.f32.mrf.mxu1 }
 0x250   :  { %v13181_v52 = vadd.f32 %v11788_v51, %v11161_v50 }
 0x251   :  { %v298_v53 = vpop.f32.mrf.mxu1 }
 0x252   :  { %v13183_v54 = vadd.f32 %v11161_v50, %v298_v53  ;;  %386 = vrot.lane.b32.xlu1 %v13181_v52, %s12956_s0 }
 0x254   :  { %308 = vrot.lane.b32.xlu0 %v13183_v54, %s12956_s0 }
 0x2c4   :  { %v387_v56 = vpop.permute.xlu1 %386 }
 0x2c6   :  { %v309_v55 = vpop.permute.xlu0 %308 }
 0x2c7   :  { %11790 = vmatpush3.xpose.msk.msra.mxu1 %vm310_vm6, %v309_v55 }
 0x2c8   :  { %11794 = vmatprep.subr.mxu1 %v12954_v49 }
 0x2ca   :  { %11792 = vmatmul.mubr.msk.f32.vlgmr.msra.gmra.mxu1 %vm310_vm6, %v13183_v54 }
 0x2cb   :  { %11795 = vmatpush3.xpose.msk.msra.mxu1 %vm310_vm6, %v387_v56  ;;  %11796 = vmatprep.mubr.msk.f32.mxu1 %vm12955_vm5, %v12954_v49 }
 0x2cc   :  { %11804 = vmatprep.subr.mxu1 %v12954_v49 }
 0x2ce   :  { %11797 = vmatmul.mubr.msk.f32.vlgmr.msra.gmra.mxu1 %vm310_vm6, %v13181_v52 }
 0x2cf   :  { %11806 = vmatprep.mubr.msk.f32.mxu1 %vm12955_vm5, %v12954_v49 }
 0x38a   :  { %v381_v63 = vpop.f32.mrf.mxu1 }
 0x38b   :  { %v462_v4 = vmul.f32 0.35355338, %v381_v63 }
 0x38c   :  { %v11793_v5 = vpop.f32.mrf.mxu1 }
 0x38d   :  { %v478_v6 = vsel %vm13204_vm9, %v462_v4, -1e+09 }
 0x38e   :  { %v458_v7 = vpop.f32.mrf.mxu1  ;;  %v480_v8 = vsel %vm310_vm6, %v478_v6, -inf }
 0x38f   :  { %v463_v10 = vmul.f32 0.35355338, %v458_v7  ;;  %481 = vmax.xlane.f32.xlu1 %v480_v8 }
 0x390   :  { %v11798_v11 = vpop.f32.mrf.mxu1 }
 0x391   :  { %v479_v12 = vsel %vm13212_vm10, %v463_v10, -1e+09 }
 0x392   :  { %v483_v13 = vsel %vm310_vm6, %v479_v12, -inf }
 0x393   :  { %484 = vmax.xlane.f32.xlu0 %v483_v13 }
 0x3a0   :  { %578 = vrot.lane.b32.xlu1 %v13181_v52, %s12958_s5 }
 0x3a4   :  { %656 = vrot.lane.b32.xlu1 %v13183_v54, %s12959_s13 }
 0x3a8   :  { %734 = vrot.lane.b32.xlu1 %v13181_v52, %s12959_s13 }
 0x418   :  { %v482_v14 = vpop.xlane.xlu1 %481 }
 0x419   :  { %v486_v15 = vsub.f32 %v478_v6, %v482_v14 }
 0x41b   :  { %v488_v16 = vmul.f32 1.442695, %v486_v15 }
 0x41c   :  { %v485_v17 = vpop.xlane.xlu0 %484  ;;  %v579_v18 = vpop.permute.xlu1 %578 }
 0x41d   :  { %12594 = vpow2.f32 %v488_v16  ;;  %v487_v19 = vsub.f32 %v479_v12, %v485_v17  ;;  %11805 = vmatpush3.msra.mxu1 %v579_v18 }
 0x41e   :  { %11814 = vmatprep.subr.mxu1 %v12954_v49 }
 0x41f   :  { %v490_v20 = vmul.f32 1.442695, %v487_v19 }
 0x420   :  { %v657_v25 = vpop.permute.xlu1 %656 }
 0x421   :  { %12596 = vpow2.f32 %v490_v20 }
 0x424   :  { %v735_v26 = vpop.permute.xlu1 %734 }
 0x42a   :  { %v12595_v21 = vpop.eup %12594 }
 0x42b   :  { %v492_v22 = vsel %vm310_vm6, %v12595_v21, 0.0 }
 0x42c   :  { %493 = vadd.xlane.f32.xlu0 %v492_v22 }
 0x42e   :  { %v12597_v23 = vpop.eup %12596 }
 0x42f   :  { %v495_v24 = vsel %vm310_vm6, %v12597_v23, 0.0 }
 0x430   :  { %496 = vadd.xlane.f32.xlu1 %v495_v24 }
 0x441   :  { %732 = vrot.lane.b32.xlu1 %v13181_v52, %s12960_s27 }
 0x442   :  { %502 = vrot.lane.b32.xlu0 %v13183_v54, %s12958_s5 }
 0x446   :  { %654 = vrot.lane.b32.xlu0 %v13183_v54, %s12960_s27 }
 0x4b5   :  { %v494_v27 = vpop.xlane.xlu0 %493 }
 0x4b6   :  { %12598 = vrcp.f32 %v494_v27 }
 0x4b9   :  { %v503_v28 = vpop.permute.xlu0 %502  ;;  %v497_v29 = vpop.xlane.xlu1 %496 }
 0x4ba   :  { %12600 = vrcp.f32 %v497_v29  ;;  %11800 = vmatpush3.msra.mxu0 %v503_v28 }
 0x4bb   :  { %11809 = vmatprep.subr.mxu0 %v12954_v49 }
 0x4bd   :  { %v655_v34 = vpop.permute.xlu0 %654  ;;  %v733_v35 = vpop.permute.xlu1 %732 }
 0x4c3   :  { %v12599_v30 = vpop.eup %12598 }
 0x4c4   :  { %v500_v31 = vmul.f32 %v12599_v30, %v12595_v21 }
 0x4c6   :  { %11802 = vmatmul.mubr.msk.f32.vlgmr.msra.gmra.mxu0 %vm310_vm6, %v500_v31 }
 0x4c7   :  { %v12601_v32 = vpop.eup %12600  ;;  %11810 = vmatpush3.xpose.msk.msra.mxu0 %vm310_vm6, %v657_v25  ;;  %11811 = vmatprep.mubr.msk.f32.mxu0 %vm12955_vm5, %v12954_v49 }
 0x4c8   :  { %v501_v33 = vmul.f32 %v12601_v32, %v12597_v23  ;;  %11819 = vmatprep.subr.mxu0 %v12954_v49 }
 0x4ca   :  { %11807 = vmatmul.mubr.msk.f32.vlgmr.msra.gmra.mxu1 %vm310_vm6, %v501_v33  ;;  %11812 = vmatmul.mubr.msk.f32.vlgmr.msra.gmra.mxu0 %vm310_vm6, %v655_v34 }
 0x4cb   :  { %11815 = vmatpush3.xpose.msk.msra.mxu1 %vm310_vm6, %v735_v26  ;;  %11816 = vmatprep.mubr.msk.f32.mxu1 %vm12955_vm5, %v12954_v49 }
 0x4cc   :  { %11824 = vmatprep.subr.mxu1 %v12954_v49  ;;  %11821 = vmatprep.mubr.msk.f32.mxu0 %vm12955_vm5, %v12954_v49 }
 0x4ce   :  { %11817 = vmatmul.mubr.msk.f32.vlgmr.msra.gmra.mxu1 %vm310_vm6, %v733_v35 }
 0x4cf   :  { %11826 = vmatprep.mubr.msk.f32.mxu1 %vm12955_vm5, %v12954_v49 }
 0x586   :  { %v13251_v37 = vpop.f32.mrf.mxu0 }
 0x588   :  { %v11803_v38 = vpop.f32.mrf.mxu0 }
 0x58a   :  { %v13253_v40 = vpop.f32.mrf.mxu1  ;;  %v728_v41 = vpop.f32.mrf.mxu0 }
 0x58b   :  { %v810_v42 = vmul.f32 0.35355338, %v728_v41 }
 0x58c   :  { %v11808_v43 = vpop.f32.mrf.mxu1  ;;  %v11813_v44 = vpop.f32.mrf.mxu0 }
 0x58d   :  { %v812_v45 = vsel %vm13204_vm9, %v810_v42, -1e+09 }
 0x58e   :  { %v806_v46 = vpop.f32.mrf.mxu1  ;;  %v814_v47 = vsel %vm310_vm6, %v812_v45, -inf }
 0x58f   :  { %v811_v48 = vmul.f32 0.35355338, %v806_v46  ;;  %815 = vmax.xlane.f32.xlu0 %v814_v47 }
 0x590   :  { %v11818_v50 = vpop.f32.mrf.mxu1 }
 0x591   :  { %v813_v51 = vsel %vm13212_vm10, %v811_v48, -1e+09 }
 0x592   :  { %v817_v53 = vsel %vm310_vm6, %v813_v51, -inf }
 0x593   :  { %818 = vmax.xlane.f32.xlu1 %v817_v53 }
 0x5a4   :  { %912 = vrot.lane.b32.xlu1 %v13181_v52, %s12961_s18 }
 0x5a5   :  { %836 = vrot.lane.b32.xlu0 %v13183_v54, %s12961_s18 }
 0x5a8   :  { %990 = vrot.lane.b32.xlu1 %v13183_v54, %s12962_s23 }
 0x5ac   :  { %1068 = vrot.lane.b32.xlu1 %v13181_v52, %s12962_s23 }
 0x5b0   :  { %1066 = vrot.lane.b32.xlu1 %v13181_v52, %s12963_s22 }
 0x618   :  { %v816_v55 = vpop.xlane.xlu0 %815 }
 0x619   :  { %v820_v56 = vsub.f32 %v812_v45, %v816_v55 }
 0x61b   :  { %v822_v57 = vmul.f32 1.442695, %v820_v56 }
 0x61c   :  { %v837_v58 = vpop.permute.xlu0 %836  ;;  %v819_v59 = vpop.xlane.xlu1 %818 }
 0x61d   :  { %12602 = vpow2.f32 %v822_v57  ;;  %v821_v60 = vsub.f32 %v813_v51, %v819_v59  ;;  %11820 = vmatpush3.msra.mxu0 %v837_v58 }
 0x61e   :  { %11829 = vmatprep.subr.mxu0 %v12954_v49 }
 0x61f   :  { %v824_v61 = vmul.f32 1.442695, %v821_v60 }
 0x620   :  { %v913_v62 = vpop.permute.xlu1 %912 }
 0x621   :  { %12604 = vpow2.f32 %v824_v61  ;;  %11825 = vmatpush3.msra.mxu1 %v913_v62 }
 0x622   :  { %11834 = vmatprep.subr.mxu1 %v12954_v49 }
 0x624   :  { %v991_v8 = vpop.permute.xlu1 %990 }
 0x628   :  { %v1069_v13 = vpop.permute.xlu1 %1068 }
 0x62a   :  { %v12603_v63 = vpop.eup %12602 }
 0x62b   :  { %v826_v3 = vsel %vm310_vm6, %v12603_v63, 0.0 }
 0x62c   :  { %827 = vadd.xlane.f32.xlu0 %v826_v3  ;;  %v1067_v16 = vpop.permute.xlu1 %1066 }
 0x62e   :  { %v12605_v4 = vpop.eup %12604 }
 0x62f   :  { %v829_v5 = vsel %vm310_vm6, %v12605_v4, 0.0 }
 0x630   :  { %830 = vadd.xlane.f32.xlu0 %v829_v5 }
 0x646   :  { %988 = vrot.lane.b32.xlu0 %v13183_v54, %s12963_s22 }
 0x6b5   :  { %v828_v6 = vpop.xlane.xlu0 %827 }
 0x6b6   :  { %12606 = vrcp.f32 %v828_v6 }
 0x6b9   :  { %v831_v7 = vpop.xlane.xlu0 %830 }
 0x6ba   :  { %12608 = vrcp.f32 %v831_v7 }
 0x6bd   :  { %v989_v15 = vpop.permute.xlu0 %988 }
 0x6c3   :  { %v12607_v10 = vpop.eup %12606 }
 0x6c4   :  { %v834_v11 = vmul.f32 %v12607_v10, %v12603_v63 }
 0x6c6   :  { %11822 = vmatmul.mubr.msk.f32.vlgmr.msra.gmra.mxu0 %vm310_vm6, %v834_v11 }
 0x6c7   :  { %v12609_v12 = vpop.eup %12608  ;;  %11830 = vmatpush3.xpose.msk.msra.mxu0 %vm310_vm6, %v991_v8  ;;  %11831 = vmatprep.mubr.msk.f32.mxu0 %vm12955_vm5, %v12954_v49 }
 0x6c8   :  { %v835_v14 = vmul.f32 %v12609_v12, %v12605_v4  ;;  %11839 = vmatprep.subr.mxu0 %v12954_v49 }
 0x6ca   :  { %11827 = vmatmul.mubr.msk.f32.vlgmr.msra.gmra.mxu1 %vm310_vm6, %v835_v14  ;;  %11832 = vmatmul.mubr.msk.f32.vlgmr.msra.gmra.mxu0 %vm310_vm6, %v989_v15 }
 0x6cb   :  { %11835 = vmatpush3.xpose.msk.msra.mxu1 %vm310_vm6, %v1069_v13  ;;  %11836 = vmatprep.mubr.msk.f32.mxu1 %vm12955_vm5, %v12954_v49 }
 0x6cc   :  { %11844 = vmatprep.subr.mxu1 %v12954_v49  ;;  %11841 = vmatprep.mubr.msk.f32.mxu0 %vm12955_vm5, %v12954_v49 }
 0x6ce   :  { %11837 = vmatmul.mubr.msk.f32.vlgmr.msra.gmra.mxu1 %vm310_vm6, %v1067_v16 }
 0x6cf   :  { %11846 = vmatprep.mubr.msk.f32.mxu1 %vm12955_vm5, %v12954_v49 }
 0x786   :  { %v13293_v17 = vpop.f32.mrf.mxu0 }
 0x788   :  { %v11823_v18 = vpop.f32.mrf.mxu0 }
 0x78a   :  { %v13295_v19 = vpop.f32.mrf.mxu1  ;;  %v1062_v20 = vpop.f32.mrf.mxu0 }
 0x78b   :  { %v1144_v21 = vmul.f32 0.35355338, %v1062_v20 }
 0x78c   :  { %v11828_v22 = vpop.f32.mrf.mxu1  ;;  %v11833_v23 = vpop.f32.mrf.mxu0 }
 0x78d   :  { %v1146_v24 = vsel %vm13204_vm9, %v1144_v21, -1e+09 }
 0x78e   :  { %v1140_v25 = vpop.f32.mrf.mxu1  ;;  %v1148_v26 = vsel %vm310_vm6, %v1146_v24, -inf }
 0x78f   :  { %v1145_v27 = vmul.f32 0.35355338, %v1140_v25  ;;  %1149 = vmax.xlane.f32.xlu0 %v1148_v26 }
 0x790   :  { %v11838_v28 = vpop.f32.mrf.mxu1 }
 0x791   :  { %v1147_v29 = vsel %vm13212_vm10, %v1145_v27, -1e+09 }
 0x792   :  { %v1151_v30 = vsel %vm310_vm6, %v1147_v29, -inf }
 0x793   :  { %1152 = vmax.xlane.f32.xlu1 %v1151_v30 }
 0x7a4   :  { %1246 = vrot.lane.b32.xlu1 %v13181_v52, %s12964_s26 }
 0x7a5   :  { %1170 = vrot.lane.b32.xlu0 %v13183_v54, %s12964_s26 }
 0x7a8   :  { %1324 = vrot.lane.b32.xlu1 %v13183_v54, %s12965_s1 }
 0x7ac   :  { %1402 = vrot.lane.b32.xlu1 %v13181_v52, %s12965_s1 }
 0x7b0   :  { %1400 = vrot.lane.b32.xlu1 %v13181_v52, %s12966_s28 }
 0x818   :  { %v1150_v31 = vpop.xlane.xlu0 %1149 }
 0x819   :  { %v1154_v32 = vsub.f32 %v1146_v24, %v1150_v31  ;;  %v1691_v31 = vld [vmem:[%s13010_s29 + $0x18] sm:$0xff] }
 0x81b   :  { %v1156_v33 = vmul.f32 1.442695, %v1154_v32  ;;  %v1689_v32 = vld [vmem:[%s13010_s29 + $0x8] sm:$0xff] }
 0x81c   :  { %v1171_v34 = vpop.permute.xlu0 %1170  ;;  %v1153_v35 = vpop.xlane.xlu1 %1152 }
 0x81d   :  { %12610 = vpow2.f32 %v1156_v33  ;;  %v1155_v38 = vsub.f32 %v1147_v29, %v1153_v35  ;;  %11840 = vmatpush3.msra.mxu0 %v1171_v34  ;;  %v1688_v33 = vld [vmem:[%s13010_s29] sm:$0xff] }
 0x81e   :  { %11849 = vmatprep.subr.mxu0 %v12954_v49 }
 0x81f   :  { %v1158_v41 = vmul.f32 1.442695, %v1155_v38 }
 0x820   :  { %v1247_v42 = vpop.permute.xlu1 %1246 }
 0x821   :  { %12612 = vpow2.f32 %v1158_v41  ;;  %11845 = vmatpush3.msra.mxu1 %v1247_v42 }
 0x822   :  { %11854 = vmatprep.subr.mxu1 %v12954_v49 }
 0x824   :  { %v1325_v50 = vpop.permute.xlu1 %1324 }
 0x828   :  { %v1403_v56 = vpop.permute.xlu1 %1402 }
 0x82a   :  { %v12611_v43 = vpop.eup %12610 }
 0x82b   :  { %v1160_v44 = vsel %vm310_vm6, %v12611_v43, 0.0 }
 0x82c   :  { %1161 = vadd.xlane.f32.xlu0 %v1160_v44  ;;  %v1401_v59 = vpop.permute.xlu1 %1400 }
 0x82e   :  { %v12613_v45 = vpop.eup %12612 }
 0x82f   :  { %v1163_v46 = vsel %vm310_vm6, %v12613_v45, 0.0 }
 0x830   :  { %1164 = vadd.xlane.f32.xlu0 %v1163_v46 }
 0x846   :  { %1322 = vrot.lane.b32.xlu0 %v13183_v54, %s12966_s28 }
 0x8b5   :  { %v1162_v47 = vpop.xlane.xlu0 %1161 }
 0x8b6   :  { %12614 = vrcp.f32 %v1162_v47 }
 0x8b9   :  { %v1165_v48 = vpop.xlane.xlu0 %1164 }
 0x8ba   :  { %12616 = vrcp.f32 %v1165_v48 }
 0x8bd   :  { %v1323_v58 = vpop.permute.xlu0 %1322 }
 0x8c3   :  { %v12615_v51 = vpop.eup %12614 }
 0x8c4   :  { %v1168_v53 = vmul.f32 %v12615_v51, %v12611_v43 }
 0x8c6   :  { %11842 = vmatmul.mubr.msk.f32.vlgmr.msra.gmra.mxu0 %vm310_vm6, %v1168_v53 }
 0x8c7   :  { %v12617_v55 = vpop.eup %12616  ;;  %11850 = vmatpush3.xpose.msk.msra.mxu0 %vm310_vm6, %v1325_v50  ;;  %11851 = vmatprep.mubr.msk.f32.mxu0 %vm12955_vm5, %v12954_v49 }
 0x8c8   :  { %v1169_v57 = vmul.f32 %v12617_v55, %v12613_v45  ;;  %11859 = vmatprep.subr.mxu0 %v12954_v49 }
 0x8ca   :  { %11847 = vmatmul.mubr.msk.f32.vlgmr.msra.gmra.mxu1 %vm310_vm6, %v1169_v57  ;;  %11852 = vmatmul.mubr.msk.f32.vlgmr.msra.gmra.mxu0 %vm310_vm6, %v1323_v58  ;;  %v11190_v57 = vld [vmem:[%s13015_s3] ss:$0 sm:$0xff] }
 0x8cb   :  { %11855 = vmatpush3.xpose.msk.msra.mxu1 %vm310_vm6, %v1403_v56  ;;  %11856 = vmatprep.mubr.msk.f32.mxu1 %vm12955_vm5, %v12954_v49 }
 0x8cc   :  { %11864 = vmatprep.subr.mxu1 %v12954_v49  ;;  %11861 = vmatprep.mubr.msk.f32.mxu0 %vm12955_vm5, %v12954_v49 }
 0x8ce   :  { %11857 = vmatmul.mubr.msk.f32.vlgmr.msra.gmra.mxu1 %vm310_vm6, %v1401_v59 }
 0x8cf   :  { %11866 = vmatprep.mubr.msk.f32.mxu1 %vm12955_vm5, %v12954_v49 }
 0x986   :  { %v1242_v60 = vpop.f32.mrf.mxu0 }
 0x988   :  { %v11843_v61 = vpop.f32.mrf.mxu0 }
 0x98a   :  { %v1318_v62 = vpop.f32.mrf.mxu1  ;;  %v1396_v63 = vpop.f32.mrf.mxu0 }
 0x98b   :  { %v1478_v3 = vmul.f32 0.35355338, %v1396_v63 }
 0x98c   :  { %v11848_v4 = vpop.f32.mrf.mxu1  ;;  %v11853_v5 = vpop.f32.mrf.mxu0 }
 0x98d   :  { %v1480_v6 = vsel %vm13204_vm9, %v1478_v3, -1e+09 }
 0x98e   :  { %v1474_v7 = vpop.f32.mrf.mxu1  ;;  %v1482_v8 = vsel %vm310_vm6, %v1480_v6, -inf }
 0x98f   :  { %v1479_v10 = vmul.f32 0.35355338, %v1474_v7  ;;  %1483 = vmax.xlane.f32.xlu0 %v1482_v8 }
 0x990   :  { %v11858_v11 = vpop.f32.mrf.mxu1 }
 0x991   :  { %v1481_v12 = vsel %vm13212_vm10, %v1479_v10, -1e+09 }
 0x992   :  { %v1485_v13 = vsel %vm310_vm6, %v1481_v12, -inf }
 0x993   :  { %1486 = vmax.xlane.f32.xlu1 %v1485_v13  ;;  %v1839_v13 = vld [vmem:[%s13020_s8 + $0x10] sm:$0xff] }
 0x9a4   :  { %1580 = vrot.lane.b32.xlu1 %v13181_v52, %s12967_s2 }
 0x9a8   :  { %1658 = vrot.lane.b32.xlu1 %v13293_v17, %s12968_s10 }
 0x9ac   :  { %1660 = vrot.lane.b32.xlu1 %v13295_v19, %s12968_s10 }
 0x9b0   :  { %1668 = vrot.lane.b32.xlu1 %v1318_v62, %s12952_s16 }
 0xa18   :  { %v1484_v14 = vpop.xlane.xlu0 %1483 }
 0xa19   :  { %v1488_v15 = vsub.f32 %v1480_v6, %v1484_v14  ;;  %v1838_v14 = vld [vmem:[%s13020_s8 + $0x8] sm:$0xff] }
 0xa1b   :  { %v1490_v16 = vmul.f32 1.442695, %v1488_v15  ;;  %v1837_v15 = vld [vmem:[%s13020_s8] sm:$0xff] }
 0xa1c   :  { %v1487_v18 = vpop.xlane.xlu1 %1486 }
 0xa1d   :  { %12618 = vpow2.f32 %v1490_v16  ;;  %v1489_v20 = vsub.f32 %v1481_v12, %v1487_v18  ;;  %v1840_v12 = vld [vmem:[%s13020_s8 + $0x18] sm:$0xff]  ;;  %v1937_v18 = vld [vmem:[%s13030_s19 + $0x30] sm:$0xff] }
 0xa1e   :  { %v1938_v16 = vld [vmem:[%s13030_s19 + $0x38] sm:$0xff] }
 0xa1f   :  { %v1492_v21 = vmul.f32 1.442695, %v1489_v20  ;;  %v1936_v20 = vld [vmem:[%s13030_s19 + $0x28] sm:$0xff] }
 0xa20   :  { %v1581_v22 = vpop.permute.xlu1 %1580 }
 0xa21   :  { %12620 = vpow2.f32 %v1492_v21  ;;  %11865 = vmatpush3.msra.mxu1 %v1581_v22  ;;  %v1935_v21 = vld [vmem:[%s13030_s19 + $0x20] sm:$0xff] }
 0xa22   :  { %11880 = vmatprep.subr.mxu1 %v1840_v12 }
 0xa24   :  { %v1659_v42 = vpop.permute.xlu1 %1658 }
 0xa25   :  { %v1680_v45 = vsel %vm310_vm6, %v13251_v37, %v1659_v42 }
 0xa28   :  { %v1661_v43 = vpop.permute.xlu1 %1660 }
 0xa29   :  { %v1681_v51 = vsel %vm310_vm6, %v13253_v40, %v1661_v43 }
 0xa2a   :  { %v12619_v52 = vpop.eup %12618 }
 0xa2b   :  { %v1494_v23 = vsel %vm310_vm6, %v12619_v52, 0.0 }
 0xa2c   :  { %1495 = vadd.xlane.f32.xlu0 %v1494_v23  ;;  %v1669_v46 = vpop.permute.xlu1 %1668 }
 0xa2d   :  { %v1684_v53 = vsel %vm1682_vm12, %v1681_v51, %v1669_v46  ;;  %v1933_v51 = vld [vmem:[%s13030_s19 + $0x10] sm:$0xff] }
 0xa2e   :  { %v12621_v17 = vpop.eup %12620 }
 0xa2f   :  { %v1497_v24 = vsel %vm310_vm6, %v12621_v17, 0.0 }
 0xa30   :  { %1498 = vadd.xlane.f32.xlu0 %v1497_v24 }
 0xa46   :  { %1504 = vrot.lane.b32.xlu0 %v13183_v54, %s12967_s2  ;;  %v1690_v54 = vld [vmem:[%s13010_s29 + $0x10] sm:$0xff] }
 0xa4a   :  { %1666 = vrot.lane.b32.xlu0 %v1242_v60, %s12952_s16 }
 0xab5   :  { %v1496_v19 = vpop.xlane.xlu0 %1495 }
 0xab6   :  { %12622 = vrcp.f32 %v1496_v19 }
 0xab9   :  { %v1499_v25 = vpop.xlane.xlu0 %1498 }
 0xaba   :  { %12624 = vrcp.f32 %v1499_v25 }
 0xabd   :  { %v1505_v26 = vpop.permute.xlu0 %1504 }
 0xabe   :  { %11860 = vmatpush3.msra.mxu0 %v1505_v26 }
 0xabf   :  { %11869 = vmatprep.subr.mxu0 %v1691_v31 }
 0xac1   :  { %v1667_v44 = vpop.permute.xlu0 %1666 }
 0xac2   :  { %v1683_v47 = vsel %vm1682_vm12, %v1680_v45, %v1667_v44 }
 0xac3   :  { %v12623_v27 = vpop.eup %12622 }
 0xac4   :  { %v1502_v28 = vmul.f32 %v12623_v27, %v12619_v52 }
 0xac6   :  { %11862 = vmatmul.mubr.msk.f32.vlgmr.msra.gmra.mxu0 %vm310_vm6, %v1502_v28 }
 0xac7   :  { %v12625_v29 = vpop.eup %12624  ;;  %11870 = vmatpush3.msra.mxu0 %v1691_v31 }
 0xac8   :  { %v1503_v30 = vmul.f32 %v12625_v29, %v12621_v17  ;;  %11871 = vmatprep.subr.mxu0 %v1690_v54 }
 0xac9   :  { %11872 = vmatpush3.msra.mxu0 %v1690_v54 }
 0xaca   :  { %11867 = vmatmul.mubr.msk.f32.vlgmr.msra.gmra.mxu1 %vm310_vm6, %v1503_v30  ;;  %11873 = vmatprep.subr.mxu0 %v1689_v32 }
 0xacb   :  { %11874 = vmatpush3.msra.mxu0 %v1689_v32  ;;  %11881 = vmatpush3.msra.mxu1 %v1840_v12 }
 0xacc   :  { %11875 = vmatprep.subr.mxu0 %v1688_v33  ;;  %11882 = vmatprep.subr.mxu1 %v1839_v13 }
 0xacd   :  { %11876 = vmatpush3.msra.mxu0 %v1688_v33  ;;  %11883 = vmatpush3.msra.mxu1 %v1839_v13 }
 0xace   :  { %11884 = vmatprep.subr.mxu1 %v1838_v14  ;;  %11891 = vmatprep.subr.mxu0 %v1938_v16 }
 0xacf   :  { %11885 = vmatpush3.msra.mxu1 %v1838_v14 }
 0xad0   :  { %11886 = vmatprep.subr.mxu1 %v1837_v15 }
 0xad1   :  { %11887 = vmatpush3.msra.mxu1 %v1837_v15 }
 0xb86   :  { %v1576_v34 = vpop.f32.mrf.mxu0 }
 0xb87   :  { %1674 = vrot.lane.b32.xlu0 %v1576_v34, %s14676_s7  ;;  %v1784_v34 = vld [vmem:[%s13045_s6] sm:$0x3] }
 0xb88   :  { %v11863_v35 = vpop.f32.mrf.mxu0 }
 0xb89   :  { %v1826_v35 = vrot.slane %v1784_v34, %v13165_v36 }
 0xb8a   :  { %v1652_v38 = vpop.f32.mrf.mxu1 }
 0xb8b   :  { %1676 = vrot.lane.b32.xlu1 %v1652_v38, %s14676_s7 }
 0xb8c   :  { %v11868_v41 = vpop.f32.mrf.mxu1 }
 0xb8d   :  { %v1834_v41 = vrot.slane %v1784_v34, %v13169_v39 }
 0xbf9   :  { %v1675_v48 = vpop.permute.xlu0 %1674 }
 0xbfa   :  { %v1686_v50 = vsel %vm1685_vm11, %v1683_v47, %v1675_v48 }
 0xbfb   :  { %11877 = vmatprep.mubr.msk.f32.mxu0 %vm160_vm0, %v1686_v50  ;;  %v1934_v50 = vld [vmem:[%s13030_s19 + $0x18] sm:$0xff] }
 0xbfd   :  { %v1677_v55 = vpop.permute.xlu1 %1676 }
 0xbfe   :  { %v1687_v56 = vsel %vm1685_vm11, %v1684_v53, %v1677_v55  ;;  %v1932_v53 = vld [vmem:[%s13030_s19 + $0x8] sm:$0xff]  ;;  %v1931_v55 = vld [vmem:[%s13030_s19] sm:$0xff] }
 0xbff   :  { %11878 = vmatmul.mubr.msk.f32.vlgmr.msra.gmra.mxu0 %vm160_vm0, %v1687_v56  ;;  %v11191_v56 = vld [vmem:[%s13025_s14] ss:$0 sm:$0xff] }
 0xc00   :  { %11892 = vmatpush3.msra.mxu0 %v1938_v16 }
 0xc01   :  { %11893 = vmatprep.subr.mxu0 %v1937_v18 }
 0xc02   :  { %11894 = vmatpush3.msra.mxu0 %v1937_v18 }
 0xc03   :  { %11895 = vmatprep.subr.mxu0 %v1936_v20 }
 0xc04   :  { %11896 = vmatpush3.msra.mxu0 %v1936_v20  ;;  %v11201_v20 = vld [vmem:[%s13000_s21 + $0x38] sm:$0xff] }
 0xc05   :  { %11897 = vmatprep.subr.mxu0 %v1935_v21  ;;  %11910 = vmatprep.subr.mxu1 %v11201_v20 }
 0xc06   :  { %11898 = vmatpush3.msra.mxu0 %v1935_v21  ;;  %v11200_v21 = vld [vmem:[%s13000_s21 + $0x30] sm:$0xff] }
 0xc07   :  { %11899 = vmatprep.subr.mxu0 %v1934_v50 }
 0xc08   :  { %11900 = vmatpush3.msra.mxu0 %v1934_v50 }
 0xc09   :  { %11901 = vmatprep.subr.mxu0 %v1933_v51 }
 0xc0a   :  { %11902 = vmatpush3.msra.mxu0 %v1933_v51 }
 0xc0b   :  { %11903 = vmatprep.subr.mxu0 %v1932_v53 }
 0xc0c   :  { %11904 = vmatpush3.msra.mxu0 %v1932_v53  ;;  %v11203_v53 = vld [vmem:[%s13005_s25 + $0x1] ss:$0 sm:$0xff]  ;;  %s14700_s25 = sld [smem:[#allocation11_spill]] }
 0xc0d   :  { %11905 = vmatprep.subr.mxu0 %v1931_v55 }
 0xc0e   :  { %11906 = vmatpush3.msra.mxu0 %v1931_v55 }
 0xc0f   :  { %11931 = vmatprep.subr.mxu0 %v12954_v49 }
 0xcbf   :  { %v11879_v37 = vpop.f32.mrf.mxu0 }
 0xcc0   :  { %v1774_v58 = vadd.f32 %v11879_v37, %v13151_v1 }
 0xcc1   :  { %v1764_v59 = vpop.f32.mrf.mxu0 }
 0xcc2   :  { %v13373_v60 = vadd.f32 %v11190_v57, %v1774_v58  ;;  %v1773_v61 = vadd.f32 %v1764_v59, %v13148_v0 }
 0xcc4   :  { %v13376_v62 = vadd.f32 %v11190_v57, %v1773_v61  ;;  %v1788_v40 = vsel %vm160_vm0, %v13373_v60, 0.0 }
 0xcc5   :  { %1789 = vadd.xlane.f32.xlu1 %v1788_v40 }
 0xcc6   :  { %v1785_v63 = vsel %vm160_vm0, %v13376_v62, 0.0 }
 0xcc7   :  { %1786 = vadd.xlane.f32.xlu0 %v1785_v63 }
 0xd4e   :  { %v1790_v3 = vpop.xlane.xlu1 %1789 }
 0xd4f   :  { %v1792_v1 = vmul.f32 0.03125, %v1790_v3  ;;  %v11196_v3 = vld [vmem:[%s13035_s24] ss:$0 sm:$0xff] }
 0xd50   :  { %v1787_v4 = vpop.xlane.xlu0 %1786 }
 0xd51   :  { %v1791_v5 = vmul.f32 0.03125, %v1787_v4  ;;  %v1794_v6 = vsub.f32 %v13373_v60, %v1792_v1 }
 0xd53   :  { %v1793_v0 = vsub.f32 %v13376_v62, %v1791_v5  ;;  %v1796_v10 = vmul.f32 %v1794_v6, %v1794_v6  ;;  %v1828_v44 = vmul.f32 %v1826_v35, %v1794_v6 }
 0xd55   :  { %v1795_v7 = vmul.f32 %v1793_v0, %v1793_v0  ;;  %v1800_v11 = vsel %vm160_vm0, %v1796_v10, 0.0  ;;  %v1827_v38 = vmul.f32 %v1826_v35, %v1793_v0 }
 0xd57   :  { %v1797_v8 = vsel %vm160_vm0, %v1795_v7, 0.0 }
 0xd58   :  { %1798 = vadd.xlane.f32.xlu0 %v1797_v8 }
 0xd5c   :  { %1801 = vadd.xlane.f32.xlu0 %v1800_v11 }
 0xde1   :  { %v1799_v22 = vpop.xlane.xlu0 %1798 }
 0xde2   :  { %v1803_v52 = vmul.f32 0.032258064, %v1799_v22  ;;  %v11199_v22 = vld [vmem:[%s13000_s21 + $0x28] sm:$0xff] }
 0xde4   :  { %12626 = vrsqrt.f32 %v1803_v52  ;;  %vm1807_vm13 = vcmp.eq.f32.partialorder %v1803_v52, inf  ;;  %v1810_v25 = vand.u32 2147483648, %v1803_v52  ;;  %vm1809_vm14 = vcmp.eq.f32.partialorder %v1803_v52, 0.0 }
 0xde5   :  { %v1802_v23 = vpop.xlane.xlu0 %1801 }
 0xde6   :  { %v1804_v17 = vmul.f32 0.032258064, %v1802_v23 }
 0xde8   :  { %12628 = vrsqrt.f32 %v1804_v17  ;;  %vm1814_vm15 = vcmp.eq.f32.partialorder %v1804_v17, inf  ;;  %v1817_v31 = vand.u32 2147483648, %v1804_v17  ;;  %vm1816_vm1 = vcmp.eq.f32.partialorder %v1804_v17, 0.0 }
 0xdf1   :  { %v12627_v24 = vpop.eup %12626 }
 0xdf2   :  { %v1806_v19 = vmul.f32 %v12627_v24, %v1803_v52 }
 0xdf4   :  { %v1808_v26 = vsel %vm1807_vm13, %v1803_v52, %v1806_v19  ;;  %v11198_v52 = vld [vmem:[%s13000_s21 + $0x20] sm:$0xff]  ;;  %s14699_s21 = sld [smem:[#allocation23_spill]] }
 0xdf5   :  { %v12629_v27 = vpop.eup %12628  ;;  %v1811_v28 = vsel %vm1809_vm14, %v1810_v25, %v1808_v26 }
 0xdf6   :  { %v1819_v29 = vadd.f32 1e-06, %v1811_v28  ;;  %v1813_v30 = vmul.f32 %v12629_v27, %v1804_v17 }
 0xdf8   :  { %12630 = vrcp.f32 %v1819_v29  ;;  %v1815_v54 = vsel %vm1814_vm15, %v1804_v17, %v1813_v30 }
 0xdf9   :  { %v1818_v32 = vsel %vm1816_vm1, %v1817_v31, %v1815_v54 }
 0xdfa   :  { %v1820_v33 = vadd.f32 1e-06, %v1818_v32 }
 0xdfc   :  { %12632 = vrcp.f32 %v1820_v33 }
 0xe05   :  { %v12631_v42 = vpop.eup %12630 }
 0xe06   :  { %v1829_v43 = vmul.f32 %v12631_v42, %v1827_v38  ;;  %v11197_v38 = vld [vmem:[%s13040_s30 + $0x2] sm:$0x3]  ;;  %s14707_s30 = sld [smem:[#allocation17_spill]] }
 0xe08   :  { %v1835_v45 = vadd.f32 %v1834_v41, %v1829_v43 }
 0xe09   :  { %v12633_v46 = vpop.eup %12632 }
 0xe0a   :  { %v1830_v47 = vmul.f32 %v12633_v46, %v1828_v44  ;;  %11888 = vmatprep.mubr.msk.f32.mxu1 %vm160_vm0, %v1835_v45 }
 0xe0c   :  { %v1836_v48 = vadd.f32 %v1834_v41, %v1830_v47  ;;  %v2075_v41 = vrot.slane %v11197_v38, %v13165_v36  ;;  %v2083_v47 = vrot.slane %v11197_v38, %v13169_v39 }
 0xe0e   :  { %11889 = vmatmul.mubr.msk.f32.vlgmr.msra.gmra.mxu1 %vm160_vm0, %v1836_v48 }
 0xe0f   :  { %11911 = vmatpush3.msra.mxu1 %v11201_v20 }
 0xe10   :  { %11912 = vmatprep.subr.mxu1 %v11200_v21 }
 0xe11   :  { %11913 = vmatpush3.msra.mxu1 %v11200_v21 }
 0xe12   :  { %11914 = vmatprep.subr.mxu1 %v11199_v22 }
 0xe13   :  { %11915 = vmatpush3.msra.mxu1 %v11199_v22 }
 0xe14   :  { %11916 = vmatprep.subr.mxu1 %v11198_v52 }
 0xe15   :  { %11917 = vmatpush3.msra.mxu1 %v11198_v52 }
 0xe16   :  { %11921 = vmatprep.subr.mxu1 %v12954_v49 }
 0xece   :  { %v11890_v37 = vpop.f32.mrf.mxu1 }
 0xecf   :  { %v1926_v57 = vadd.f32 %v11890_v37, %v11191_v56 }
 0xed0   :  { %v1920_v58 = vpop.f32.mrf.mxu1 }
 0xed1   :  { %v1921_v59 = vadd.f32 %v11191_v56, %v1920_v58  ;;  %v1930_v40 = vmax.f32 %v1926_v57, 0.0 }
 0xed3   :  { %v1929_v61 = vmax.f32 %v1921_v59, 0.0 }
 0xed5   :  { %11907 = vmatprep.mubr.msk.f32.mxu0 %vm1939_vm2, %v1929_v61 }
 0xed6   :  { %11908 = vmatmul.mubr.msk.f32.vlgmr.msra.gmra.mxu0 %vm1939_vm2, %v1930_v40 }
 0xed7   :  { %11933 = vmatprep.mubr.msk.f32.mxu0 %vm12955_vm5, %v12954_v49 }
 0xf96   :  { %v11909_v63 = vpop.f32.mrf.mxu0 }
 0xf97   :  { %v2022_v1 = vadd.f32 %v11909_v63, %v13373_v60 }
 0xf98   :  { %v2012_v4 = vpop.f32.mrf.mxu0 }
 0xf99   :  { %v13411_v5 = vadd.f32 %v11196_v3, %v2022_v1  ;;  %v2021_v6 = vadd.f32 %v2012_v4, %v13376_v62 }
 0xf9b   :  { %v13414_v0 = vadd.f32 %v11196_v3, %v2021_v6  ;;  %v2037_v7 = vsel %vm160_vm0, %v13411_v5, 0.0 }
 0xf9c   :  { %2038 = vadd.xlane.f32.xlu1 %v2037_v7 }
 0xf9d   :  { %v2034_v8 = vsel %vm160_vm0, %v13414_v0, 0.0 }
 0xf9e   :  { %2035 = vadd.xlane.f32.xlu0 %v2034_v8 }
0x1025   :  { %v2039_v10 = vpop.xlane.xlu1 %2038 }
0x1026   :  { %v2041_v60 = vmul.f32 0.03125, %v2039_v10 }
0x1027   :  { %v2036_v11 = vpop.xlane.xlu0 %2035 }
0x1028   :  { %v2043_v12 = vsub.f32 %v13411_v5, %v2041_v60  ;;  %v2040_v62 = vmul.f32 0.03125, %v2036_v11 }
0x102a   :  { %v2042_v13 = vsub.f32 %v13414_v0, %v2040_v62  ;;  %v2045_v14 = vmul.f32 %v2043_v12, %v2043_v12  ;;  %v2077_v43 = vmul.f32 %v2075_v41, %v2043_v12 }
0x102c   :  { %v2049_v15 = vsel %vm160_vm0, %v2045_v14, 0.0  ;;  %v2044_v16 = vmul.f32 %v2042_v13, %v2042_v13  ;;  %v2076_v44 = vmul.f32 %v2075_v41, %v2042_v13 }
0x102d   :  { %2050 = vadd.xlane.f32.xlu1 %v2049_v15 }
0x102e   :  { %v2046_v18 = vsel %vm160_vm0, %v2044_v16, 0.0 }
0x102f   :  { %2047 = vadd.xlane.f32.xlu0 %v2046_v18 }
0x10b6   :  { %v2051_v23 = vpop.xlane.xlu1 %2050 }
0x10b7   :  { %v2053_v17 = vmul.f32 0.032258064, %v2051_v23 }
0x10b8   :  { %v2048_v24 = vpop.xlane.xlu0 %2047 }
0x10b9   :  { %12634 = vrsqrt.f32 %v2053_v17  ;;  %v2052_v19 = vmul.f32 0.032258064, %v2048_v24  ;;  %vm2063_vm3 = vcmp.eq.f32.partialorder %v2053_v17, inf  ;;  %v2066_v27 = vand.u32 2147483648, %v2053_v17 }
0x10ba   :  { %vm2065_vm4 = vcmp.eq.f32.partialorder %v2053_v17, 0.0 }
0x10bb   :  { %12636 = vrsqrt.f32 %v2052_v19  ;;  %vm2056_vm7 = vcmp.eq.f32.partialorder %v2052_v19, inf  ;;  %v2059_v32 = vand.u32 2147483648, %v2052_v19  ;;  %vm2058_vm8 = vcmp.eq.f32.partialorder %v2052_v19, 0.0 }
0x10c6   :  { %v12635_v25 = vpop.eup %12634 }
0x10c7   :  { %v2062_v26 = vmul.f32 %v12635_v25, %v2053_v17 }
0x10c8   :  { %v12637_v28 = vpop.eup %12636 }
0x10c9   :  { %v2064_v29 = vsel %vm2063_vm3, %v2053_v17, %v2062_v26  ;;  %v2055_v31 = vmul.f32 %v12637_v28, %v2052_v19 }
0x10ca   :  { %v2067_v30 = vsel %vm2065_vm4, %v2066_v27, %v2064_v29 }
0x10cb   :  { %v2069_v54 = vadd.f32 1e-06, %v2067_v30  ;;  %v2057_v33 = vsel %vm2056_vm7, %v2052_v19, %v2055_v31 }
0x10cc   :  { %v2060_v34 = vsel %vm2058_vm8, %v2059_v32, %v2057_v33 }
0x10cd   :  { %12638 = vrcp.f32 %v2069_v54  ;;  %v2068_v35 = vadd.f32 1e-06, %v2060_v34 }
0x10cf   :  { %12640 = vrcp.f32 %v2068_v35 }
0x10da   :  { %v12639_v42 = vpop.eup %12638 }
0x10db   :  { %v2079_v46 = vmul.f32 %v12639_v42, %v2077_v43 }
0x10dc   :  { %v12641_v45 = vpop.eup %12640 }
0x10dd   :  { %v2078_v48 = vmul.f32 %v12641_v45, %v2076_v44  ;;  %v2085_v51 = vadd.f32 %v2083_v47, %v2079_v46 }
0x10df   :  { %v2084_v50 = vadd.f32 %v2083_v47, %v2078_v48 }
0x10e1   :  { %11918 = vmatprep.mubr.msk.f32.mxu1 %vm160_vm0, %v2084_v50 }
0x10e2   :  { %11919 = vmatmul.mubr.msk.f32.vlgmr.msra.gmra.mxu1 %vm160_vm0, %v2085_v51 }
0x10e3   :  { %11923 = vmatprep.mubr.msk.f32.mxu1 %vm12955_vm5, %v12954_v49 }
0x11a2   :  { %v11920_v55 = vpop.f32.mrf.mxu1 }
0x11a3   :  { %v13437_v56 = vadd.f32 %v11920_v55, %v11203_v53 }
0x11a4   :  { %v2171_v37 = vpop.f32.mrf.mxu1 }
0x11a5   :  { %v13439_v57 = vadd.f32 %v11203_v53, %v2171_v37  ;;  %2258 = vrot.lane.b32.xlu1 %v13437_v56, %s12956_s0 }
0x11a7   :  { %2181 = vrot.lane.b32.xlu0 %v13439_v57, %s12956_s0 }
0x1217   :  { %v2259_v59 = vpop.permute.xlu1 %2258 }
0x1219   :  { %v2182_v58 = vpop.permute.xlu0 %2181 }
0x121a   :  { %11922 = vmatpush3.xpose.msk.msra.mxu1 %vm310_vm6, %v2182_v58 }
0x121b   :  { %11926 = vmatprep.subr.mxu1 %v12954_v49 }
0x121d   :  { %11924 = vmatmul.mubr.msk.f32.vlgmr.msra.gmra.mxu1 %vm310_vm6, %v13439_v57 }
0x121e   :  { %11927 = vmatpush3.xpose.msk.msra.mxu1 %vm310_vm6, %v2259_v59  ;;  %11928 = vmatprep.mubr.msk.f32.mxu1 %vm12955_vm5, %v12954_v49 }
0x121f   :  { %11936 = vmatprep.subr.mxu1 %v12954_v49 }
0x1221   :  { %11929 = vmatmul.mubr.msk.f32.vlgmr.msra.gmra.mxu1 %vm310_vm6, %v13437_v56 }
0x1222   :  { %11938 = vmatprep.mubr.msk.f32.mxu1 %vm12955_vm5, %v12954_v49 }
0x12dd   :  { %v2253_v61 = vpop.f32.mrf.mxu1 }
0x12de   :  { %v2334_v40 = vmul.f32 0.35355338, %v2253_v61 }
0x12df   :  { %v11925_v63 = vpop.f32.mrf.mxu1 }
0x12e0   :  { %v2336_v3 = vsel %vm13204_vm9, %v2334_v40, -1e+09 }
0x12e1   :  { %v2330_v1 = vpop.f32.mrf.mxu1  ;;  %v2338_v4 = vsel %vm310_vm6, %v2336_v3, -inf }
0x12e2   :  { %v2335_v6 = vmul.f32 0.35355338, %v2330_v1  ;;  %2339 = vmax.xlane.f32.xlu1 %v2338_v4 }
0x12e3   :  { %v11930_v7 = vpop.f32.mrf.mxu1 }
0x12e4   :  { %v2337_v8 = vsel %vm13212_vm10, %v2335_v6, -1e+09 }
0x12e5   :  { %v2341_v10 = vsel %vm310_vm6, %v2337_v8, -inf }
0x12e6   :  { %2342 = vmax.xlane.f32.xlu0 %v2341_v10 }
0x12f3   :  { %2436 = vrot.lane.b32.xlu1 %v13437_v56, %s12958_s5 }
0x12f7   :  { %2514 = vrot.lane.b32.xlu1 %v13439_v57, %s12959_s13 }
0x12fb   :  { %2592 = vrot.lane.b32.xlu1 %v13437_v56, %s12959_s13 }
0x136b   :  { %v2340_v60 = vpop.xlane.xlu1 %2339 }
0x136c   :  { %v2344_v11 = vsub.f32 %v2336_v3, %v2340_v60 }
0x136e   :  { %v2346_v12 = vmul.f32 1.442695, %v2344_v11 }
0x136f   :  { %v2437_v62 = vpop.permute.xlu1 %2436  ;;  %v2343_v13 = vpop.xlane.xlu0 %2342 }
0x1370   :  { %12642 = vpow2.f32 %v2346_v12  ;;  %v2345_v14 = vsub.f32 %v2337_v8, %v2343_v13  ;;  %11937 = vmatpush3.msra.mxu1 %v2437_v62 }
0x1371   :  { %11946 = vmatprep.subr.mxu1 %v12954_v49 }
0x1372   :  { %v2348_v15 = vmul.f32 1.442695, %v2345_v14 }
0x1373   :  { %v2515_v22 = vpop.permute.xlu1 %2514 }
0x1374   :  { %12644 = vpow2.f32 %v2348_v15 }
0x1377   :  { %v2593_v52 = vpop.permute.xlu1 %2592 }
0x137d   :  { %v12643_v16 = vpop.eup %12642 }
0x137e   :  { %v2350_v18 = vsel %vm310_vm6, %v12643_v16, 0.0 }
0x137f   :  { %2351 = vadd.xlane.f32.xlu0 %v2350_v18 }
0x1381   :  { %v12645_v20 = vpop.eup %12644 }
0x1382   :  { %v2353_v21 = vsel %vm310_vm6, %v12645_v20, 0.0 }
0x1383   :  { %2354 = vadd.xlane.f32.xlu1 %v2353_v21 }
0x1394   :  { %2590 = vrot.lane.b32.xlu1 %v13437_v56, %s12960_s27 }
0x1395   :  { %2360 = vrot.lane.b32.xlu0 %v13439_v57, %s12958_s5 }
0x1399   :  { %2512 = vrot.lane.b32.xlu0 %v13439_v57, %s12960_s27 }
0x1408   :  { %v2352_v23 = vpop.xlane.xlu0 %2351 }
0x1409   :  { %12646 = vrcp.f32 %v2352_v23 }
0x140c   :  { %v2355_v17 = vpop.xlane.xlu1 %2354  ;;  %v2361_v24 = vpop.permute.xlu0 %2360 }
0x140d   :  { %12648 = vrcp.f32 %v2355_v17  ;;  %11932 = vmatpush3.msra.mxu0 %v2361_v24 }
0x140e   :  { %11941 = vmatprep.subr.mxu0 %v12954_v49 }
0x1410   :  { %v2513_v28 = vpop.permute.xlu0 %2512  ;;  %v2591_v29 = vpop.permute.xlu1 %2590 }
0x1416   :  { %v12647_v19 = vpop.eup %12646 }
0x1417   :  { %v2358_v25 = vmul.f32 %v12647_v19, %v12643_v16 }
0x1419   :  { %11934 = vmatmul.mubr.msk.f32.vlgmr.msra.gmra.mxu0 %vm310_vm6, %v2358_v25 }
0x141a   :  { %v12649_v26 = vpop.eup %12648  ;;  %11942 = vmatpush3.xpose.msk.msra.mxu0 %vm310_vm6, %v2515_v22  ;;  %11943 = vmatprep.mubr.msk.f32.mxu0 %vm12955_vm5, %v12954_v49 }
0x141b   :  { %v2359_v27 = vmul.f32 %v12649_v26, %v12645_v20  ;;  %11951 = vmatprep.subr.mxu0 %v12954_v49 }
0x141d   :  { %11939 = vmatmul.mubr.msk.f32.vlgmr.msra.gmra.mxu1 %vm310_vm6, %v2359_v27  ;;  %11944 = vmatmul.mubr.msk.f32.vlgmr.msra.gmra.mxu0 %vm310_vm6, %v2513_v28 }
0x141e   :  { %11947 = vmatpush3.xpose.msk.msra.mxu1 %vm310_vm6, %v2593_v52  ;;  %11948 = vmatprep.mubr.msk.f32.mxu1 %vm12955_vm5, %v12954_v49 }
0x141f   :  { %11956 = vmatprep.subr.mxu1 %v12954_v49  ;;  %11953 = vmatprep.mubr.msk.f32.mxu0 %vm12955_vm5, %v12954_v49 }
0x1421   :  { %11949 = vmatmul.mubr.msk.f32.vlgmr.msra.gmra.mxu1 %vm310_vm6, %v2591_v29 }
0x1422   :  { %11958 = vmatprep.mubr.msk.f32.mxu1 %vm12955_vm5, %v12954_v49 }
0x14d9   :  { %v13495_v30 = vpop.f32.mrf.mxu0 }
0x14db   :  { %v11935_v31 = vpop.f32.mrf.mxu0 }
0x14dd   :  { %v13497_v54 = vpop.f32.mrf.mxu1  ;;  %v2586_v32 = vpop.f32.mrf.mxu0 }
0x14de   :  { %v2668_v33 = vmul.f32 0.35355338, %v2586_v32 }
0x14df   :  { %v11940_v34 = vpop.f32.mrf.mxu1  ;;  %v11945_v35 = vpop.f32.mrf.mxu0 }
0x14e0   :  { %v2670_v38 = vsel %vm13204_vm9, %v2668_v33, -1e+09 }
0x14e1   :  { %v2664_v41 = vpop.f32.mrf.mxu1  ;;  %v2672_v42 = vsel %vm310_vm6, %v2670_v38, -inf }
0x14e2   :  { %v2669_v43 = vmul.f32 0.35355338, %v2664_v41  ;;  %2673 = vmax.xlane.f32.xlu0 %v2672_v42 }
0x14e3   :  { %v11950_v44 = vpop.f32.mrf.mxu1 }
0x14e4   :  { %v2671_v45 = vsel %vm13212_vm10, %v2669_v43, -1e+09 }
0x14e5   :  { %v2675_v46 = vsel %vm310_vm6, %v2671_v45, -inf }
0x14e6   :  { %2676 = vmax.xlane.f32.xlu1 %v2675_v46 }
0x14f7   :  { %2770 = vrot.lane.b32.xlu1 %v13437_v56, %s12961_s18 }
0x14f8   :  { %2694 = vrot.lane.b32.xlu0 %v13439_v57, %s12961_s18 }
0x14fb   :  { %2848 = vrot.lane.b32.xlu1 %v13439_v57, %s12962_s23 }
0x14ff   :  { %2926 = vrot.lane.b32.xlu1 %v13437_v56, %s12962_s23 }
0x1503   :  { %2924 = vrot.lane.b32.xlu1 %v13437_v56, %s12963_s22 }
0x156b   :  { %v2674_v47 = vpop.xlane.xlu0 %2673 }
0x156c   :  { %v2678_v48 = vsub.f32 %v2670_v38, %v2674_v47 }
0x156e   :  { %v2680_v50 = vmul.f32 1.442695, %v2678_v48 }
0x156f   :  { %v2695_v51 = vpop.permute.xlu0 %2694  ;;  %v2677_v53 = vpop.xlane.xlu1 %2676 }
0x1570   :  { %12650 = vpow2.f32 %v2680_v50  ;;  %v2679_v55 = vsub.f32 %v2671_v45, %v2677_v53  ;;  %11952 = vmatpush3.msra.mxu0 %v2695_v51 }
0x1571   :  { %11961 = vmatprep.subr.mxu0 %v12954_v49 }
0x1572   :  { %v2682_v37 = vmul.f32 1.442695, %v2679_v55 }
0x1573   :  { %v2771_v58 = vpop.permute.xlu1 %2770 }
0x1574   :  { %12652 = vpow2.f32 %v2682_v37  ;;  %11957 = vmatpush3.msra.mxu1 %v2771_v58 }
0x1575   :  { %11966 = vmatprep.subr.mxu1 %v12954_v49 }
0x1577   :  { %v2849_v4 = vpop.permute.xlu1 %2848 }
0x157b   :  { %v2927_v10 = vpop.permute.xlu1 %2926 }
0x157d   :  { %v12651_v59 = vpop.eup %12650 }
0x157e   :  { %v2684_v61 = vsel %vm310_vm6, %v12651_v59, 0.0 }
0x157f   :  { %2685 = vadd.xlane.f32.xlu0 %v2684_v61  ;;  %v2925_v12 = vpop.permute.xlu1 %2924 }
0x1581   :  { %v12653_v40 = vpop.eup %12652 }
0x1582   :  { %v2687_v63 = vsel %vm310_vm6, %v12653_v40, 0.0 }
0x1583   :  { %2688 = vadd.xlane.f32.xlu0 %v2687_v63 }
0x1599   :  { %2846 = vrot.lane.b32.xlu0 %v13439_v57, %s12963_s22 }
0x1608   :  { %v2686_v3 = vpop.xlane.xlu0 %2685 }
0x1609   :  { %12654 = vrcp.f32 %v2686_v3 }
0x160c   :  { %v2689_v1 = vpop.xlane.xlu0 %2688 }
0x160d   :  { %12656 = vrcp.f32 %v2689_v1 }
0x1610   :  { %v2847_v11 = vpop.permute.xlu0 %2846 }
0x1616   :  { %v12655_v6 = vpop.eup %12654 }
0x1617   :  { %v2692_v7 = vmul.f32 %v12655_v6, %v12651_v59 }
0x1619   :  { %11954 = vmatmul.mubr.msk.f32.vlgmr.msra.gmra.mxu0 %vm310_vm6, %v2692_v7 }
0x161a   :  { %v12657_v8 = vpop.eup %12656  ;;  %11962 = vmatpush3.xpose.msk.msra.mxu0 %vm310_vm6, %v2849_v4  ;;  %11963 = vmatprep.mubr.msk.f32.mxu0 %vm12955_vm5, %v12954_v49 }
0x161b   :  { %v2693_v60 = vmul.f32 %v12657_v8, %v12653_v40  ;;  %11971 = vmatprep.subr.mxu0 %v12954_v49 }
0x161d   :  { %11959 = vmatmul.mubr.msk.f32.vlgmr.msra.gmra.mxu1 %vm310_vm6, %v2693_v60  ;;  %11964 = vmatmul.mubr.msk.f32.vlgmr.msra.gmra.mxu0 %vm310_vm6, %v2847_v11 }
0x161e   :  { %11967 = vmatpush3.xpose.msk.msra.mxu1 %vm310_vm6, %v2927_v10  ;;  %11968 = vmatprep.mubr.msk.f32.mxu1 %vm12955_vm5, %v12954_v49 }
0x161f   :  { %11976 = vmatprep.subr.mxu1 %v12954_v49  ;;  %11973 = vmatprep.mubr.msk.f32.mxu0 %vm12955_vm5, %v12954_v49 }
0x1621   :  { %11969 = vmatmul.mubr.msk.f32.vlgmr.msra.gmra.mxu1 %vm310_vm6, %v2925_v12 }
0x1622   :  { %11978 = vmatprep.mubr.msk.f32.mxu1 %vm12955_vm5, %v12954_v49 }
0x16d9   :  { %v13537_v62 = vpop.f32.mrf.mxu0 }
0x16db   :  { %v11955_v13 = vpop.f32.mrf.mxu0 }
0x16dd   :  { %v13539_v14 = vpop.f32.mrf.mxu1  ;;  %v2920_v15 = vpop.f32.mrf.mxu0 }
0x16de   :  { %v3002_v16 = vmul.f32 0.35355338, %v2920_v15 }
0x16df   :  { %v11960_v18 = vpop.f32.mrf.mxu1  ;;  %v11965_v20 = vpop.f32.mrf.mxu0 }
0x16e0   :  { %v3004_v21 = vsel %vm13204_vm9, %v3002_v16, -1e+09 }
0x16e1   :  { %v2998_v22 = vpop.f32.mrf.mxu1  ;;  %v3006_v52 = vsel %vm310_vm6, %v3004_v21, -inf }
0x16e2   :  { %v3003_v23 = vmul.f32 0.35355338, %v2998_v22  ;;  %3007 = vmax.xlane.f32.xlu0 %v3006_v52 }
0x16e3   :  { %v11970_v17 = vpop.f32.mrf.mxu1 }
0x16e4   :  { %v3005_v24 = vsel %vm13212_vm10, %v3003_v23, -1e+09 }
0x16e5   :  { %v3009_v19 = vsel %vm310_vm6, %v3005_v24, -inf }
0x16e6   :  { %3010 = vmax.xlane.f32.xlu1 %v3009_v19 }
0x16f7   :  { %3104 = vrot.lane.b32.xlu1 %v13437_v56, %s12964_s26 }
0x16f8   :  { %3028 = vrot.lane.b32.xlu0 %v13439_v57, %s12964_s26 }
0x16fb   :  { %3182 = vrot.lane.b32.xlu1 %v13439_v57, %s12965_s1 }
0x16ff   :  { %3260 = vrot.lane.b32.xlu1 %v13437_v56, %s12965_s1 }
0x1703   :  { %3258 = vrot.lane.b32.xlu1 %v13437_v56, %s12966_s28 }
0x176b   :  { %v3008_v25 = vpop.xlane.xlu0 %3007 }
0x176c   :  { %v3012_v26 = vsub.f32 %v3004_v21, %v3008_v25  ;;  %v11233_v25 = vld [vmem:[%s13010_s29 + $0x38] sm:$0xff] }
0x176e   :  { %v3014_v27 = vmul.f32 1.442695, %v3012_v26  ;;  %v11231_v26 = vld [vmem:[%s13010_s29 + $0x28] sm:$0xff] }
0x176f   :  { %v3029_v28 = vpop.permute.xlu0 %3028  ;;  %v3011_v29 = vpop.xlane.xlu1 %3010 }
0x1770   :  { %12658 = vpow2.f32 %v3014_v27  ;;  %v3013_v31 = vsub.f32 %v3005_v24, %v3011_v29  ;;  %11972 = vmatpush3.msra.mxu0 %v3029_v28  ;;  %v11230_v27 = vld [vmem:[%s13010_s29 + $0x20] sm:$0xff] }
0x1771   :  { %11981 = vmatprep.subr.mxu0 %v12954_v49 }
0x1772   :  { %v3016_v32 = vmul.f32 1.442695, %v3013_v31 }
0x1773   :  { %v3105_v33 = vpop.permute.xlu1 %3104 }
0x1774   :  { %12660 = vpow2.f32 %v3016_v32  ;;  %11977 = vmatpush3.msra.mxu1 %v3105_v33 }
0x1775   :  { %11986 = vmatprep.subr.mxu1 %v12954_v49 }
0x1777   :  { %v3183_v44 = vpop.permute.xlu1 %3182 }
0x177b   :  { %v3261_v48 = vpop.permute.xlu1 %3260 }
0x177d   :  { %v12659_v34 = vpop.eup %12658 }
0x177e   :  { %v3018_v35 = vsel %vm310_vm6, %v12659_v34, 0.0 }
0x177f   :  { %3019 = vadd.xlane.f32.xlu0 %v3018_v35  ;;  %v3259_v53 = vpop.permute.xlu1 %3258 }
0x1781   :  { %v12661_v38 = vpop.eup %12660 }
0x1782   :  { %v3021_v41 = vsel %vm310_vm6, %v12661_v38, 0.0 }
0x1783   :  { %3022 = vadd.xlane.f32.xlu0 %v3021_v41 }
0x1799   :  { %3180 = vrot.lane.b32.xlu0 %v13439_v57, %s12966_s28 }
0x1808   :  { %v3020_v42 = vpop.xlane.xlu0 %3019 }
0x1809   :  { %12662 = vrcp.f32 %v3020_v42 }
0x180c   :  { %v3023_v43 = vpop.xlane.xlu0 %3022 }
0x180d   :  { %12664 = vrcp.f32 %v3023_v43 }
0x1810   :  { %v3181_v51 = vpop.permute.xlu0 %3180 }
0x1816   :  { %v12663_v45 = vpop.eup %12662 }
0x1817   :  { %v3026_v46 = vmul.f32 %v12663_v45, %v12659_v34 }
0x1819   :  { %11974 = vmatmul.mubr.msk.f32.vlgmr.msra.gmra.mxu0 %vm310_vm6, %v3026_v46 }
0x181a   :  { %v12665_v47 = vpop.eup %12664  ;;  %11982 = vmatpush3.xpose.msk.msra.mxu0 %vm310_vm6, %v3183_v44  ;;  %11983 = vmatprep.mubr.msk.f32.mxu0 %vm12955_vm5, %v12954_v49 }
0x181b   :  { %v3027_v50 = vmul.f32 %v12665_v47, %v12661_v38  ;;  %11991 = vmatprep.subr.mxu0 %v12954_v49 }
0x181d   :  { %11979 = vmatmul.mubr.msk.f32.vlgmr.msra.gmra.mxu1 %vm310_vm6, %v3027_v50  ;;  %11984 = vmatmul.mubr.msk.f32.vlgmr.msra.gmra.mxu0 %vm310_vm6, %v3181_v51  ;;  %v11237_v50 = vld [vmem:[%s13015_s3 + $0x1] ss:$0 sm:$0xff]  ;;  %s14702_s3 = sld [smem:[#allocation12_spill]] }
0x181e   :  { %11987 = vmatpush3.xpose.msk.msra.mxu1 %vm310_vm6, %v3261_v48  ;;  %11988 = vmatprep.mubr.msk.f32.mxu1 %vm12955_vm5, %v12954_v49 }
0x181f   :  { %11996 = vmatprep.subr.mxu1 %v12954_v49  ;;  %11993 = vmatprep.mubr.msk.f32.mxu0 %vm12955_vm5, %v12954_v49 }
0x1821   :  { %11989 = vmatmul.mubr.msk.f32.vlgmr.msra.gmra.mxu1 %vm310_vm6, %v3259_v53 }
0x1822   :  { %11998 = vmatprep.mubr.msk.f32.mxu1 %vm12955_vm5, %v12954_v49 }
0x18d9   :  { %v3100_v55 = vpop.f32.mrf.mxu0 }
0x18db   :  { %v11975_v37 = vpop.f32.mrf.mxu0 }
0x18dd   :  { %v3176_v58 = vpop.f32.mrf.mxu1  ;;  %v3254_v59 = vpop.f32.mrf.mxu0 }
0x18de   :  { %v3336_v61 = vmul.f32 0.35355338, %v3254_v59  ;;  %v13625_v59 = vld [vmem:[%s12985_s9] sm:$0xff] }
0x18df   :  { %v11980_v40 = vpop.f32.mrf.mxu1  ;;  %v11985_v63 = vpop.f32.mrf.mxu0 }
0x18e0   :  { %v3338_v3 = vsel %vm13204_vm9, %v3336_v61, -1e+09  ;;  %v13632_v40 = vld [vmem:[%s12985_s9 + $0x8] sm:$0xff]  ;;  %s14698_s9 = sld [smem:[#allocation10_spill]] }
0x18e1   :  { %v3332_v1 = vpop.f32.mrf.mxu1  ;;  %v3340_v4 = vsel %vm310_vm6, %v3338_v3, -inf }
0x18e2   :  { %v3337_v6 = vmul.f32 0.35355338, %v3332_v1  ;;  %3341 = vmax.xlane.f32.xlu0 %v3340_v4 }
0x18e3   :  { %v11990_v7 = vpop.f32.mrf.mxu1 }
0x18e4   :  { %v3339_v8 = vsel %vm13212_vm10, %v3337_v6, -1e+09 }
0x18e5   :  { %v3343_v10 = vsel %vm310_vm6, %v3339_v8, -inf }
0x18e6   :  { %3344 = vmax.xlane.f32.xlu1 %v3343_v10 }
0x18f7   :  { %3438 = vrot.lane.b32.xlu1 %v13437_v56, %s12967_s2 }
0x18fb   :  { %3516 = vrot.lane.b32.xlu1 %v13537_v62, %s12968_s10 }
0x18ff   :  { %3518 = vrot.lane.b32.xlu1 %v13539_v14, %s12968_s10 }
0x1903   :  { %3526 = vrot.lane.b32.xlu1 %v3176_v58, %s12952_s16 }
0x196b   :  { %v3342_v60 = vpop.xlane.xlu0 %3341 }
0x196c   :  { %v3346_v11 = vsub.f32 %v3338_v3, %v3342_v60 }
0x196e   :  { %v3348_v12 = vmul.f32 1.442695, %v3346_v11 }
0x196f   :  { %v3345_v13 = vpop.xlane.xlu1 %3344 }
0x1970   :  { %12666 = vpow2.f32 %v3348_v12  ;;  %v3347_v15 = vsub.f32 %v3339_v8, %v3345_v13 }
0x1972   :  { %v3350_v16 = vmul.f32 1.442695, %v3347_v15 }
0x1973   :  { %v3439_v18 = vpop.permute.xlu1 %3438 }
0x1974   :  { %12668 = vpow2.f32 %v3350_v16  ;;  %11997 = vmatpush3.msra.mxu1 %v3439_v18 }
0x1977   :  { %v3517_v33 = vpop.permute.xlu1 %3516 }
0x1978   :  { %v3538_v38 = vsel %vm310_vm6, %v13495_v30, %v3517_v33 }
0x197b   :  { %v3519_v34 = vpop.permute.xlu1 %3518 }
0x197c   :  { %v3539_v45 = vsel %vm310_vm6, %v13497_v54, %v3519_v34 }
0x197d   :  { %v12667_v20 = vpop.eup %12666 }
0x197e   :  { %v3352_v56 = vsel %vm310_vm6, %v12667_v20, 0.0 }
0x197f   :  { %3353 = vadd.xlane.f32.xlu0 %v3352_v56  ;;  %v3527_v41 = vpop.permute.xlu1 %3526 }
0x1980   :  { %v3541_v46 = vsel %vm1682_vm12, %v3539_v45, %v3527_v41 }
0x1981   :  { %v12669_v62 = vpop.eup %12668 }
0x1982   :  { %v3355_v21 = vsel %vm310_vm6, %v12669_v62, 0.0 }
0x1983   :  { %3356 = vadd.xlane.f32.xlu0 %v3355_v21 }
0x1999   :  { %3362 = vrot.lane.b32.xlu0 %v13439_v57, %s12967_s2  ;;  %v11232_v57 = vld [vmem:[%s13010_s29 + $0x30] sm:$0xff]  ;;  %s14701_s29 = sld [smem:[#allocation8_spill]] }
0x199d   :  { %3524 = vrot.lane.b32.xlu0 %v3100_v55, %s12952_s16 }
0x1a08   :  { %v3354_v14 = vpop.xlane.xlu0 %3353 }
0x1a09   :  { %12670 = vrcp.f32 %v3354_v14 }
0x1a0c   :  { %v3357_v22 = vpop.xlane.xlu0 %3356 }
0x1a0d   :  { %12672 = vrcp.f32 %v3357_v22  ;;  %v11242_v22 = vld [vmem:[%s13020_s8 + $0x38] sm:$0xff] }
0x1a0e   :  { %12012 = vmatprep.subr.mxu1 %v11242_v22 }
0x1a10   :  { %v3363_v52 = vpop.permute.xlu0 %3362 }
0x1a11   :  { %11992 = vmatpush3.msra.mxu0 %v3363_v52  ;;  %v11241_v52 = vld [vmem:[%s13020_s8 + $0x30] sm:$0xff] }
0x1a12   :  { %12001 = vmatprep.subr.mxu0 %v11233_v25 }
0x1a14   :  { %v3525_v35 = vpop.permute.xlu0 %3524 }
0x1a15   :  { %v3540_v42 = vsel %vm1682_vm12, %v3538_v38, %v3525_v35 }
0x1a16   :  { %v12671_v23 = vpop.eup %12670 }
0x1a17   :  { %v3360_v17 = vmul.f32 %v12671_v23, %v12667_v20  ;;  %v11240_v23 = vld [vmem:[%s13020_s8 + $0x28] sm:$0xff] }
0x1a19   :  { %11994 = vmatmul.mubr.msk.f32.vlgmr.msra.gmra.mxu0 %vm310_vm6, %v3360_v17  ;;  %v11239_v17 = vld [vmem:[%s13020_s8 + $0x20] sm:$0xff]  ;;  %s14703_s8 = sld [smem:[#allocation13_spill]] }
0x1a1a   :  { %v12673_v24 = vpop.eup %12672  ;;  %12002 = vmatpush3.msra.mxu0 %v11233_v25  ;;  %v11253_v25 = vld [vmem:[%s13030_s19 + $0x70] sm:$0xff] }
0x1a1b   :  { %v3361_v19 = vmul.f32 %v12673_v24, %v12669_v62  ;;  %12003 = vmatprep.subr.mxu0 %v11232_v57  ;;  %v13665_v24 = vld [vmem:[%s14698_s9 + $0x18] sm:$0xff] }
0x1a1c   :  { %12004 = vmatpush3.msra.mxu0 %v11232_v57  ;;  %v11252_v57 = vld [vmem:[%s13030_s19 + $0x68] sm:$0xff] }
0x1a1d   :  { %11999 = vmatmul.mubr.msk.f32.vlgmr.msra.gmra.mxu1 %vm310_vm6, %v3361_v19  ;;  %12005 = vmatprep.subr.mxu0 %v11231_v26  ;;  %v11254_v19 = vld [vmem:[%s13030_s19 + $0x78] sm:$0xff] }
0x1a1e   :  { %12006 = vmatpush3.msra.mxu0 %v11231_v26  ;;  %12013 = vmatpush3.msra.mxu1 %v11242_v22  ;;  %v11251_v26 = vld [vmem:[%s13030_s19 + $0x60] sm:$0xff] }
0x1a1f   :  { %12007 = vmatprep.subr.mxu0 %v11230_v27  ;;  %12014 = vmatprep.subr.mxu1 %v11241_v52 }
0x1a20   :  { %12008 = vmatpush3.msra.mxu0 %v11230_v27  ;;  %12015 = vmatpush3.msra.mxu1 %v11241_v52 }
0x1a21   :  { %12016 = vmatprep.subr.mxu1 %v11240_v23  ;;  %12023 = vmatprep.subr.mxu0 %v11254_v19 }
0x1a22   :  { %12017 = vmatpush3.msra.mxu1 %v11240_v23 }
0x1a23   :  { %12018 = vmatprep.subr.mxu1 %v11239_v17 }
0x1a24   :  { %12019 = vmatpush3.msra.mxu1 %v11239_v17 }
0x1a25   :  { %12042 = vmatprep.subr.mxu1 %v13665_v24 }
0x1ad9   :  { %v3434_v28 = vpop.f32.mrf.mxu0 }
0x1ada   :  { %3532 = vrot.lane.b32.xlu0 %v3434_v28, %s14676_s7 }
0x1adb   :  { %v11995_v29 = vpop.f32.mrf.mxu0 }
0x1add   :  { %v3510_v31 = vpop.f32.mrf.mxu1 }
0x1ade   :  { %3534 = vrot.lane.b32.xlu1 %v3510_v31, %s14676_s7 }
0x1adf   :  { %v12000_v32 = vpop.f32.mrf.mxu1 }
0x1b4c   :  { %v3533_v43 = vpop.permute.xlu0 %3532 }
0x1b4d   :  { %v3542_v44 = vsel %vm1685_vm11, %v3540_v42, %v3533_v43 }
0x1b4e   :  { %12009 = vmatprep.mubr.msk.f32.mxu0 %vm160_vm0, %v3542_v44 }
0x1b50   :  { %v3535_v47 = vpop.permute.xlu1 %3534 }
0x1b51   :  { %v3543_v48 = vsel %vm1685_vm11, %v3541_v46, %v3535_v47 }
0x1b52   :  { %12010 = vmatmul.mubr.msk.f32.vlgmr.msra.gmra.mxu0 %vm160_vm0, %v3543_v48 }
0x1b53   :  { %12024 = vmatpush3.msra.mxu0 %v11254_v19 }
0x1b54   :  { %12025 = vmatprep.subr.mxu0 %v11253_v25 }
0x1b55   :  { %12026 = vmatpush3.msra.mxu0 %v11253_v25 }
0x1b56   :  { %12027 = vmatprep.subr.mxu0 %v11252_v57 }
0x1b57   :  { %12028 = vmatpush3.msra.mxu0 %v11252_v57 }
0x1b58   :  { %12029 = vmatprep.subr.mxu0 %v11251_v26 }
0x1b59   :  { %12030 = vmatpush3.msra.mxu0 %v11251_v26 }
0x1c12   :  { %v12011_v30 = vpop.f32.mrf.mxu0 }
0x1c13   :  { %v3631_v51 = vadd.f32 %v12011_v30, %v13411_v5  ;;  %v3950_v5 = vsel %vm160_vm0, %v13625_v59, 0.0 }
0x1c14   :  { %v3621_v53 = vpop.f32.mrf.mxu0 }
0x1c15   :  { %v13617_v55 = vadd.f32 %v11237_v50, %v3631_v51  ;;  %v3630_v37 = vadd.f32 %v3621_v53, %v13414_v0  ;;  %v3953_v0 = vsel %vm160_vm0, %v13632_v40, 0.0 }
0x1c17   :  { %v13620_v58 = vadd.f32 %v11237_v50, %v3630_v37  ;;  %v3647_v54 = vsel %vm160_vm0, %v13617_v55, 0.0 }
0x1c18   :  { %3648 = vadd.xlane.f32.xlu1 %v3647_v54 }
0x1c19   :  { %v3644_v61 = vsel %vm160_vm0, %v13620_v58, 0.0 }
0x1c1a   :  { %3645 = vadd.xlane.f32.xlu0 %v3644_v61 }
0x1c1e   :  { %3951 = vadd.xlane.f32.xlu0 %v3950_v5 }
0x1c22   :  { %3954 = vadd.xlane.f32.xlu0 %v3953_v0 }
0x1ca1   :  { %v3649_v63 = vpop.xlane.xlu1 %3648 }
0x1ca2   :  { %v3651_v3 = vmul.f32 0.03125, %v3649_v63 }
0x1ca3   :  { %v3646_v1 = vpop.xlane.xlu0 %3645 }
0x1ca4   :  { %v13637_v4 = vsub.f32 %v13617_v55, %v3651_v3  ;;  %v3650_v6 = vmul.f32 0.03125, %v3646_v1 }
0x1ca6   :  { %v13640_v7 = vsub.f32 %v13620_v58, %v3650_v6  ;;  %v3655_v8 = vmul.f32 %v13637_v4, %v13637_v4 }
0x1ca7   :  { %v3952_v10 = vpop.xlane.xlu0 %3951 }
0x1ca8   :  { %v3956_v60 = vmul.f32 0.03125, %v3952_v10  ;;  %v3659_v11 = vsel %vm160_vm0, %v3655_v8, 0.0  ;;  %v3654_v12 = vmul.f32 %v13640_v7, %v13640_v7  ;;  %v11238_v8 = vld [vmem:[%s13045_s6 + $0x2] sm:$0x3]  ;;  %s14708_s6 = sld [smem:[#allocation15_spill]] }
0x1ca9   :  { %3660 = vadd.xlane.f32.xlu1 %v3659_v11  ;;  %v3685_v11 = vrot.slane %v11238_v8, %v13165_v36 }
0x1caa   :  { %v13648_v13 = vsub.f32 %v13625_v59, %v3956_v60  ;;  %v3656_v15 = vsel %vm160_vm0, %v3654_v12, 0.0  ;;  %v3949_v12 = vld [vmem:[%s14699_s21] sm:$0x3] }
0x1cab   :  { %3657 = vadd.xlane.f32.xlu0 %v3656_v15  ;;  %v3955_v16 = vpop.xlane.xlu0 %3954  ;;  %v3999_v23 = vrot.slane %v3949_v12, %v13169_v39 }
0x1cac   :  { %v3957_v18 = vmul.f32 0.03125, %v3955_v16  ;;  %v3960_v20 = vmul.f32 %v13648_v13, %v13648_v13  ;;  %v3687_v16 = vmul.f32 %v3685_v11, %v13637_v4  ;;  %v4004_v4 = vld [vmem:[%s14698_s9 + $0x10] sm:$0xff] }
0x1cae   :  { %v13654_v56 = vsub.f32 %v13632_v40, %v3957_v18  ;;  %v3962_v62 = vsel %vm160_vm0, %v3960_v20, 0.0  ;;  %v3991_v18 = vrot.slane %v3949_v12, %v13165_v36  ;;  %v3686_v20 = vmul.f32 %v3685_v11, %v13640_v7 }
0x1caf   :  { %3963 = vadd.xlane.f32.xlu0 %v3962_v62 }
0x1cb0   :  { %v3961_v21 = vmul.f32 %v13654_v56, %v13654_v56  ;;  %v3992_v52 = vmul.f32 %v3991_v18, %v13648_v13  ;;  %v3993_v7 = vmul.f32 %v3991_v18, %v13654_v56  ;;  %v4003_v13 = vld [vmem:[%s14698_s9 + $0x8] sm:$0xff]  ;;  %v11250_v56 = vld [vmem:[%s13030_s19 + $0x58] sm:$0xff] }
0x1cb1   :  { %12031 = vmatprep.subr.mxu0 %v11250_v56 }
0x1cb2   :  { %v3965_v14 = vsel %vm160_vm0, %v3961_v21, 0.0  ;;  %12032 = vmatpush3.msra.mxu0 %v11250_v56 }
0x1cb3   :  { %3966 = vadd.xlane.f32.xlu1 %v3965_v14  ;;  %v3693_v14 = vrot.slane %v11238_v8, %v13169_v39 }
0x1d32   :  { %v3661_v27 = vpop.xlane.xlu1 %3660 }
0x1d33   :  { %v3663_v28 = vmul.f32 0.032258064, %v3661_v27 }
0x1d34   :  { %v3658_v29 = vpop.xlane.xlu0 %3657 }
0x1d35   :  { %12674 = vrsqrt.f32 %v3663_v28  ;;  %v3662_v31 = vmul.f32 0.032258064, %v3658_v29  ;;  %vm3673_vm13 = vcmp.eq.f32.partialorder %v3663_v28, inf  ;;  %v3676_v42 = vand.u32 2147483648, %v3663_v28  ;;  %v4002_v29 = vld [vmem:[%s14698_s9] sm:$0xff] }
0x1d36   :  { %vm3675_vm14 = vcmp.eq.f32.partialorder %v3663_v28, 0.0 }
0x1d37   :  { %12676 = vrsqrt.f32 %v3662_v31  ;;  %vm3666_vm15 = vcmp.eq.f32.partialorder %v3662_v31, inf  ;;  %v3669_v48 = vand.u32 2147483648, %v3662_v31  ;;  %vm3668_vm1 = vcmp.eq.f32.partialorder %v3662_v31, 0.0 }
0x1d38   :  { %v3964_v32 = vpop.xlane.xlu0 %3963 }
0x1d39   :  { %v3968_v33 = vmul.f32 0.032258064, %v3964_v32  ;;  %v11248_v32 = vld [vmem:[%s13030_s19 + $0x48] sm:$0xff] }
0x1d3b   :  { %12678 = vrsqrt.f32 %v3968_v33  ;;  %vm3972_vm3 = vcmp.eq.f32.partialorder %v3968_v33, inf  ;;  %v3975_v54 = vand.u32 2147483648, %v3968_v33  ;;  %vm3974_vm4 = vcmp.eq.f32.partialorder %v3968_v33, 0.0 }
0x1d3c   :  { %v3967_v34 = vpop.xlane.xlu1 %3966 }
0x1d3d   :  { %v3969_v35 = vmul.f32 0.032258064, %v3967_v34  ;;  %v11244_v34 = vld [vmem:[%s13025_s14 + $0x1] ss:$0 sm:$0xff]  ;;  %s14704_s14 = sld [smem:[#allocation16_spill]] }
0x1d3f   :  { %12680 = vrsqrt.f32 %v3969_v35  ;;  %vm3979_vm7 = vcmp.eq.f32.partialorder %v3969_v35, inf  ;;  %v3982_v1 = vand.u32 2147483648, %v3969_v35  ;;  %vm3981_vm8 = vcmp.eq.f32.partialorder %v3969_v35, 0.0 }
0x1d42   :  { %v12675_v38 = vpop.eup %12674 }
0x1d43   :  { %v3672_v41 = vmul.f32 %v12675_v38, %v3663_v28 }
0x1d44   :  { %v12677_v43 = vpop.eup %12676 }
0x1d45   :  { %v3674_v44 = vsel %vm3673_vm13, %v3663_v28, %v3672_v41  ;;  %v3665_v46 = vmul.f32 %v12677_v43, %v3662_v31 }
0x1d46   :  { %v3677_v45 = vsel %vm3675_vm14, %v3676_v42, %v3674_v44 }
0x1d47   :  { %v3679_v47 = vadd.f32 1e-06, %v3677_v45  ;;  %v3667_v50 = vsel %vm3666_vm15, %v3662_v31, %v3665_v46  ;;  %v11259_v45 = vld [vmem:[%s14700_s25] ss:$0 sm:$0xff] }
0x1d48   :  { %v12679_v30 = vpop.eup %12678  ;;  %v3670_v51 = vsel %vm3668_vm1, %v3669_v48, %v3667_v50 }
0x1d49   :  { %12682 = vrcp.f32 %v3679_v47  ;;  %v3971_v53 = vmul.f32 %v12679_v30, %v3968_v33  ;;  %v3678_v37 = vadd.f32 1e-06, %v3670_v51 }
0x1d4b   :  { %v3973_v61 = vsel %vm3972_vm3, %v3968_v33, %v3971_v53  ;;  %12684 = vrcp.f32 %v3678_v37  ;;  %v11247_v33 = vld [vmem:[%s13030_s19 + $0x40] sm:$0xff] }
0x1d4c   :  { %v12681_v5 = vpop.eup %12680  ;;  %v3976_v0 = vsel %vm3974_vm4, %v3975_v54, %v3973_v61  ;;  %v13725_v53 = vld [vmem:[%s14701_s29] sm:$0xff]  ;;  %v13729_v61 = vld [vmem:[%s14701_s29 + $0x8] sm:$0xff]  ;;  %s14711_s29 = sld [smem:[#allocation20_spill]] }
0x1d4d   :  { %v3984_v63 = vadd.f32 1e-06, %v3976_v0  ;;  %v3978_v3 = vmul.f32 %v12681_v5, %v3969_v35  ;;  %vm4250_vm13 = vcmp.gt.f32.partialorder %v13725_v53, 0.0  ;;  %vm4251_vm14 = vcmp.gt.f32.partialorder %v13729_v61, 0.0 }
0x1d4f   :  { %12686 = vrcp.f32 %v3984_v63  ;;  %v3980_v6 = vsel %vm3979_vm7, %v3969_v35, %v3978_v3 }
0x1d50   :  { %v3983_v10 = vsel %vm3981_vm8, %v3982_v1, %v3980_v6 }
0x1d51   :  { %v3985_v60 = vadd.f32 1e-06, %v3983_v10 }
0x1d53   :  { %12688 = vrcp.f32 %v3985_v60 }
0x1d56   :  { %v12683_v15 = vpop.eup %12682 }
0x1d57   :  { %v3689_v21 = vmul.f32 %v12683_v15, %v3687_v16 }
0x1d58   :  { %v12685_v62 = vpop.eup %12684 }
0x1d59   :  { %v3688_v22 = vmul.f32 %v12685_v62, %v3686_v20  ;;  %v3695_v25 = vadd.f32 %v3693_v14, %v3689_v21 }
0x1d5b   :  { %v3694_v19 = vadd.f32 %v3693_v14, %v3688_v22 }
0x1d5c   :  { %v12687_v17 = vpop.eup %12686 }
0x1d5d   :  { %v3994_v57 = vmul.f32 %v12687_v17, %v3992_v52  ;;  %12020 = vmatprep.mubr.msk.f32.mxu1 %vm160_vm0, %v3694_v19 }
0x1d5e   :  { %12021 = vmatmul.mubr.msk.f32.vlgmr.msra.gmra.mxu1 %vm160_vm0, %v3695_v25 }
0x1d5f   :  { %v4000_v26 = vadd.f32 %v3999_v23, %v3994_v57  ;;  %12043 = vmatpush3.msra.mxu1 %v13665_v24  ;;  %v11249_v24 = vld [vmem:[%s13030_s19 + $0x50] sm:$0xff]  ;;  %s14705_s19 = sld [smem:[#allocation9_spill]] }
0x1d60   :  { %v12689_v27 = vpop.eup %12688  ;;  %12044 = vmatprep.subr.mxu1 %v4004_v4  ;;  %12033 = vmatprep.subr.mxu0 %v11249_v24 }
0x1d61   :  { %v3995_v28 = vmul.f32 %v12689_v27, %v3993_v7  ;;  %12050 = vmatprep.mubr.msk.f32.mxu1 %vm160_vm0, %v4000_v26  ;;  %12045 = vmatpush3.msra.mxu1 %v4004_v4 }
0x1d62   :  { %12046 = vmatprep.subr.mxu1 %v4003_v13  ;;  %12034 = vmatpush3.msra.mxu0 %v11249_v24 }
0x1d63   :  { %v4001_v31 = vadd.f32 %v3999_v23, %v3995_v28  ;;  %12047 = vmatpush3.msra.mxu1 %v4003_v13  ;;  %12035 = vmatprep.subr.mxu0 %v11248_v32 }
0x1d64   :  { %12048 = vmatprep.subr.mxu1 %v4002_v29  ;;  %12036 = vmatpush3.msra.mxu0 %v11248_v32 }
0x1d65   :  { %12049 = vmatpush3.msra.mxu1 %v4002_v29  ;;  %12037 = vmatprep.subr.mxu0 %v11247_v33 }
0x1d66   :  { %12051 = vmatmul.mubr.msk.f32.vlgmr.msra.gmra.mxu1 %vm160_vm0, %v4001_v31  ;;  %12053 = vmatprep.subr.mxu1 %v12954_v49 }
0x1d67   :  { %12055 = vmatprep.mubr.msk.f32.mxu1 %vm12955_vm5, %v12954_v49  ;;  %12038 = vmatpush3.msra.mxu0 %v11247_v33 }
0x1d68   :  { %12063 = vmatprep.subr.mxu0 %v12954_v49 }
0x1e1e   :  { %v12022_v35 = vpop.f32.mrf.mxu1 }
0x1e1f   :  { %v3787_v38 = vadd.f32 %v12022_v35, %v11244_v34 }
0x1e20   :  { %v3781_v41 = vpop.f32.mrf.mxu1 }
0x1e21   :  { %v3782_v42 = vadd.f32 %v11244_v34, %v3781_v41  ;;  %v3791_v44 = vmax.f32 %v3787_v38, 0.0 }
0x1e23   :  { %v3790_v43 = vmax.f32 %v3782_v42, 0.0 }
0x1e25   :  { %12039 = vmatprep.mubr.msk.f32.mxu0 %vm1939_vm2, %v3790_v43 }
0x1e26   :  { %v12052_v46 = vpop.f32.mrf.mxu1  ;;  %12040 = vmatmul.mubr.msk.f32.vlgmr.msra.gmra.mxu0 %vm1939_vm2, %v3791_v44 }
0x1e27   :  { %v13702_v47 = vadd.f32 %v12052_v46, %v11259_v45  ;;  %12065 = vmatprep.mubr.msk.f32.mxu0 %vm12955_vm5, %v12954_v49 }
0x1e28   :  { %v4085_v48 = vpop.f32.mrf.mxu1 }
0x1e29   :  { %v13706_v30 = vadd.f32 %v11259_v45, %v4085_v48  ;;  %4172 = vrot.lane.b32.xlu1 %v13702_v47, %s12956_s0 }
0x1e2b   :  { %4095 = vrot.lane.b32.xlu0 %v13706_v30, %s12956_s0 }
0x1e9b   :  { %v4173_v51 = vpop.permute.xlu1 %4172 }
0x1e9d   :  { %v4096_v50 = vpop.permute.xlu0 %4095 }
0x1e9e   :  { %12054 = vmatpush3.xpose.msk.msra.mxu1 %vm310_vm6, %v4096_v50 }
0x1e9f   :  { %12058 = vmatprep.subr.mxu1 %v12954_v49 }
0x1ea1   :  { %12056 = vmatmul.mubr.msk.f32.vlgmr.msra.gmra.mxu1 %vm310_vm6, %v13706_v30 }
0x1ea2   :  { %12059 = vmatpush3.xpose.msk.msra.mxu1 %vm310_vm6, %v4173_v51  ;;  %12060 = vmatprep.mubr.msk.f32.mxu1 %vm12955_vm5, %v12954_v49 }
0x1ea3   :  { %12068 = vmatprep.subr.mxu1 %v12954_v49 }
0x1ea5   :  { %12061 = vmatmul.mubr.msk.f32.vlgmr.msra.gmra.mxu1 %vm310_vm6, %v13702_v47 }
0x1ea6   :  { %12070 = vmatprep.mubr.msk.f32.mxu1 %vm12955_vm5, %v12954_v49 }
0x1ee6   :  { %v13770_v28 = vpop.f32.mrf.mxu0 }
0x1ee8   :  { %v13772_v29 = vpop.f32.mrf.mxu0 }
0x1f61   :  { %v4167_v37 = vpop.f32.mrf.mxu1 }
0x1f62   :  { %v4248_v54 = vmul.f32 0.35355338, %v4167_v37 }
0x1f63   :  { %v12057_v5 = vpop.f32.mrf.mxu1 }
0x1f64   :  { %v4252_v0 = vsel %vm4250_vm13, %v4248_v54, -1e+09 }
0x1f65   :  { %v4244_v63 = vpop.f32.mrf.mxu1  ;;  %v4254_v3 = vsel %vm310_vm6, %v4252_v0, -inf }
0x1f66   :  { %v4249_v1 = vmul.f32 0.35355338, %v4244_v63  ;;  %4255 = vmax.xlane.f32.xlu1 %v4254_v3 }
0x1f67   :  { %v12062_v6 = vpop.f32.mrf.mxu1 }
0x1f68   :  { %v4253_v8 = vsel %vm4251_vm14, %v4249_v1, -1e+09 }
0x1f69   :  { %v4257_v10 = vsel %vm310_vm6, %v4253_v8, -inf }
0x1f6a   :  { %4258 = vmax.xlane.f32.xlu0 %v4257_v10 }
0x1f77   :  { %4352 = vrot.lane.b32.xlu1 %v13702_v47, %s12958_s5 }
0x1f7b   :  { %4430 = vrot.lane.b32.xlu1 %v13706_v30, %s12959_s13 }
0x1f7f   :  { %4508 = vrot.lane.b32.xlu1 %v13702_v47, %s12959_s13 }
0x1fef   :  { %v4256_v60 = vpop.xlane.xlu1 %4255 }
0x1ff0   :  { %v4260_v11 = vsub.f32 %v4252_v0, %v4256_v60 }
0x1ff2   :  { %v4262_v12 = vmul.f32 1.442695, %v4260_v11 }
0x1ff3   :  { %v4353_v15 = vpop.permute.xlu1 %4352  ;;  %v4259_v16 = vpop.xlane.xlu0 %4258 }
0x1ff4   :  { %12690 = vpow2.f32 %v4262_v12  ;;  %v4261_v18 = vsub.f32 %v4253_v8, %v4259_v16  ;;  %12069 = vmatpush3.msra.mxu1 %v4353_v15 }
0x1ff5   :  { %12078 = vmatprep.subr.mxu1 %v12954_v49 }
0x1ff6   :  { %v4264_v20 = vmul.f32 1.442695, %v4261_v18 }
0x1ff7   :  { %v4431_v52 = vpop.permute.xlu1 %4430 }
0x1ff8   :  { %12692 = vpow2.f32 %v4264_v20 }
0x1ffb   :  { %v4509_v23 = vpop.permute.xlu1 %4508 }
0x2001   :  { %v12691_v62 = vpop.eup %12690 }
0x2002   :  { %v4266_v21 = vsel %vm310_vm6, %v12691_v62, 0.0 }
0x2003   :  { %4267 = vadd.xlane.f32.xlu0 %v4266_v21 }
0x2005   :  { %v12693_v14 = vpop.eup %12692 }
0x2006   :  { %v4269_v22 = vsel %vm310_vm6, %v12693_v14, 0.0 }
0x2007   :  { %4270 = vadd.xlane.f32.xlu1 %v4269_v22 }
0x2018   :  { %4506 = vrot.lane.b32.xlu1 %v13702_v47, %s12960_s27 }
0x2019   :  { %4276 = vrot.lane.b32.xlu0 %v13706_v30, %s12958_s5 }
0x201d   :  { %4428 = vrot.lane.b32.xlu0 %v13706_v30, %s12960_s27 }
0x208c   :  { %v4268_v17 = vpop.xlane.xlu0 %4267 }
0x208d   :  { %12694 = vrcp.f32 %v4268_v17 }
0x2090   :  { %v4271_v19 = vpop.xlane.xlu1 %4270  ;;  %v4277_v25 = vpop.permute.xlu0 %4276 }
0x2091   :  { %12696 = vrcp.f32 %v4271_v19  ;;  %12064 = vmatpush3.msra.mxu0 %v4277_v25 }
0x2092   :  { %12073 = vmatprep.subr.mxu0 %v12954_v49 }
0x2094   :  { %v4429_v27 = vpop.permute.xlu0 %4428  ;;  %v4507_v13 = vpop.permute.xlu1 %4506 }
0x209a   :  { %v12695_v57 = vpop.eup %12694 }
0x209b   :  { %v4274_v4 = vmul.f32 %v12695_v57, %v12691_v62 }
0x209d   :  { %12066 = vmatmul.mubr.msk.f32.vlgmr.msra.gmra.mxu0 %vm310_vm6, %v4274_v4 }
0x209e   :  { %v12697_v7 = vpop.eup %12696  ;;  %12074 = vmatpush3.xpose.msk.msra.mxu0 %vm310_vm6, %v4431_v52  ;;  %12075 = vmatprep.mubr.msk.f32.mxu0 %vm12955_vm5, %v12954_v49 }
0x209f   :  { %v4275_v26 = vmul.f32 %v12697_v7, %v12693_v14  ;;  %12083 = vmatprep.subr.mxu0 %v12954_v49 }
0x20a1   :  { %12071 = vmatmul.mubr.msk.f32.vlgmr.msra.gmra.mxu1 %vm310_vm6, %v4275_v26  ;;  %12076 = vmatmul.mubr.msk.f32.vlgmr.msra.gmra.mxu0 %vm310_vm6, %v4429_v27 }
0x20a2   :  { %12079 = vmatpush3.xpose.msk.msra.mxu1 %vm310_vm6, %v4509_v23  ;;  %12080 = vmatprep.mubr.msk.f32.mxu1 %vm12955_vm5, %v12954_v49 }
0x20a3   :  { %12088 = vmatprep.subr.mxu1 %v12954_v49  ;;  %12085 = vmatprep.mubr.msk.f32.mxu0 %vm12955_vm5, %v12954_v49 }
0x20a5   :  { %12081 = vmatmul.mubr.msk.f32.vlgmr.msra.gmra.mxu1 %vm310_vm6, %v4507_v13 }
0x20a6   :  { %12090 = vmatprep.mubr.msk.f32.mxu1 %vm12955_vm5, %v12954_v49 }
0x215d   :  { %v13774_v31 = vpop.f32.mrf.mxu0 }
0x215f   :  { %v12067_v56 = vpop.f32.mrf.mxu0 }
0x2161   :  { %v13776_v24 = vpop.f32.mrf.mxu1  ;;  %v4502_v32 = vpop.f32.mrf.mxu0 }
0x2162   :  { %v4584_v33 = vmul.f32 0.35355338, %v4502_v32 }
0x2163   :  { %v12072_v34 = vpop.f32.mrf.mxu1  ;;  %v12077_v35 = vpop.f32.mrf.mxu0 }
0x2164   :  { %v4586_v38 = vsel %vm4250_vm13, %v4584_v33, -1e+09 }
0x2165   :  { %v4580_v41 = vpop.f32.mrf.mxu1  ;;  %v4588_v42 = vsel %vm310_vm6, %v4586_v38, -inf }
0x2166   :  { %v4585_v43 = vmul.f32 0.35355338, %v4580_v41  ;;  %4589 = vmax.xlane.f32.xlu0 %v4588_v42 }
0x2167   :  { %v12082_v44 = vpop.f32.mrf.mxu1 }
0x2168   :  { %v4587_v45 = vsel %vm4251_vm14, %v4585_v43, -1e+09 }
0x2169   :  { %v4591_v46 = vsel %vm310_vm6, %v4587_v45, -inf }
0x216a   :  { %4592 = vmax.xlane.f32.xlu1 %v4591_v46 }
0x217b   :  { %4686 = vrot.lane.b32.xlu1 %v13702_v47, %s12961_s18 }
0x217c   :  { %4610 = vrot.lane.b32.xlu0 %v13706_v30, %s12961_s18 }
0x217f   :  { %4764 = vrot.lane.b32.xlu1 %v13706_v30, %s12962_s23 }
0x2183   :  { %4842 = vrot.lane.b32.xlu1 %v13702_v47, %s12962_s23 }
0x2187   :  { %4840 = vrot.lane.b32.xlu1 %v13702_v47, %s12963_s22 }
0x21ef   :  { %v4590_v48 = vpop.xlane.xlu0 %4589 }
0x21f0   :  { %v4594_v50 = vsub.f32 %v4586_v38, %v4590_v48 }
0x21f2   :  { %v4596_v51 = vmul.f32 1.442695, %v4594_v50 }
0x21f3   :  { %v4593_v37 = vpop.xlane.xlu1 %4592  ;;  %v4611_v54 = vpop.permute.xlu0 %4610 }
0x21f4   :  { %12698 = vpow2.f32 %v4596_v51  ;;  %v4595_v5 = vsub.f32 %v4587_v45, %v4593_v37  ;;  %12084 = vmatpush3.msra.mxu0 %v4611_v54 }
0x21f5   :  { %12093 = vmatprep.subr.mxu0 %v12954_v49 }
0x21f6   :  { %v4598_v0 = vmul.f32 1.442695, %v4595_v5 }
0x21f7   :  { %v4687_v63 = vpop.permute.xlu1 %4686 }
0x21f8   :  { %12700 = vpow2.f32 %v4598_v0  ;;  %12089 = vmatpush3.msra.mxu1 %v4687_v63 }
0x21f9   :  { %12098 = vmatprep.subr.mxu1 %v12954_v49 }
0x21fb   :  { %v4765_v11 = vpop.permute.xlu1 %4764 }
0x21ff   :  { %v4843_v18 = vpop.permute.xlu1 %4842 }
0x2201   :  { %v12699_v3 = vpop.eup %12698 }
0x2202   :  { %v4600_v1 = vsel %vm310_vm6, %v12699_v3, 0.0 }
0x2203   :  { %4601 = vadd.xlane.f32.xlu0 %v4600_v1  ;;  %v4841_v21 = vpop.permute.xlu1 %4840 }
0x2205   :  { %v12701_v6 = vpop.eup %12700 }
0x2206   :  { %v4603_v8 = vsel %vm310_vm6, %v12701_v6, 0.0 }
0x2207   :  { %4604 = vadd.xlane.f32.xlu0 %v4603_v8 }
0x221d   :  { %4762 = vrot.lane.b32.xlu0 %v13706_v30, %s12963_s22 }
0x228c   :  { %v4602_v10 = vpop.xlane.xlu0 %4601 }
0x228d   :  { %12702 = vrcp.f32 %v4602_v10 }
0x2290   :  { %v4605_v60 = vpop.xlane.xlu0 %4604 }
0x2291   :  { %12704 = vrcp.f32 %v4605_v60 }
0x2294   :  { %v4763_v62 = vpop.permute.xlu0 %4762 }
0x229a   :  { %v12703_v12 = vpop.eup %12702 }
0x229b   :  { %v4608_v15 = vmul.f32 %v12703_v12, %v12699_v3 }
0x229d   :  { %12086 = vmatmul.mubr.msk.f32.vlgmr.msra.gmra.mxu0 %vm310_vm6, %v4608_v15 }
0x229e   :  { %v12705_v16 = vpop.eup %12704  ;;  %12094 = vmatpush3.xpose.msk.msra.mxu0 %vm310_vm6, %v4765_v11  ;;  %12095 = vmatprep.mubr.msk.f32.mxu0 %vm12955_vm5, %v12954_v49 }
0x229f   :  { %v4609_v20 = vmul.f32 %v12705_v16, %v12701_v6  ;;  %12103 = vmatprep.subr.mxu0 %v12954_v49 }
0x22a1   :  { %12091 = vmatmul.mubr.msk.f32.vlgmr.msra.gmra.mxu1 %vm310_vm6, %v4609_v20  ;;  %12096 = vmatmul.mubr.msk.f32.vlgmr.msra.gmra.mxu0 %vm310_vm6, %v4763_v62 }
0x22a2   :  { %12099 = vmatpush3.xpose.msk.msra.mxu1 %vm310_vm6, %v4843_v18  ;;  %12100 = vmatprep.mubr.msk.f32.mxu1 %vm12955_vm5, %v12954_v49 }
0x22a3   :  { %12108 = vmatprep.subr.mxu1 %v12954_v49  ;;  %12105 = vmatprep.mubr.msk.f32.mxu0 %vm12955_vm5, %v12954_v49 }
0x22a5   :  { %12101 = vmatmul.mubr.msk.f32.vlgmr.msra.gmra.mxu1 %vm310_vm6, %v4841_v21 }
0x22a6   :  { %12110 = vmatprep.mubr.msk.f32.mxu1 %vm12955_vm5, %v12954_v49 }
0x235d   :  { %v13816_v14 = vpop.f32.mrf.mxu0 }
0x235f   :  { %v12087_v22 = vpop.f32.mrf.mxu0 }
0x2361   :  { %v13818_v52 = vpop.f32.mrf.mxu1  ;;  %v4836_v23 = vpop.f32.mrf.mxu0 }
0x2362   :  { %v4918_v17 = vmul.f32 0.35355338, %v4836_v23 }
0x2363   :  { %v12092_v19 = vpop.f32.mrf.mxu1  ;;  %v12097_v25 = vpop.f32.mrf.mxu0 }
0x2364   :  { %v4920_v57 = vsel %vm4250_vm13, %v4918_v17, -1e+09 }
0x2365   :  { %v4914_v4 = vpop.f32.mrf.mxu1  ;;  %v4922_v7 = vsel %vm310_vm6, %v4920_v57, -inf }
0x2366   :  { %v4919_v26 = vmul.f32 0.35355338, %v4914_v4  ;;  %4923 = vmax.xlane.f32.xlu0 %v4922_v7 }
0x2367   :  { %v12102_v27 = vpop.f32.mrf.mxu1 }
0x2368   :  { %v4921_v13 = vsel %vm4251_vm14, %v4919_v26, -1e+09 }
0x2369   :  { %v4925_v56 = vsel %vm310_vm6, %v4921_v13, -inf }
0x236a   :  { %4926 = vmax.xlane.f32.xlu1 %v4925_v56 }
0x237b   :  { %5020 = vrot.lane.b32.xlu1 %v13702_v47, %s12964_s26 }
0x237c   :  { %4944 = vrot.lane.b32.xlu0 %v13706_v30, %s12964_s26 }
0x237f   :  { %5098 = vrot.lane.b32.xlu1 %v13706_v30, %s12965_s1 }
0x2383   :  { %5176 = vrot.lane.b32.xlu1 %v13702_v47, %s12965_s1 }
0x2387   :  { %5174 = vrot.lane.b32.xlu1 %v13702_v47, %s12966_s28 }
0x23ef   :  { %v4924_v32 = vpop.xlane.xlu0 %4923 }
0x23f0   :  { %v4928_v33 = vsub.f32 %v4920_v57, %v4924_v32 }
0x23f2   :  { %v4930_v34 = vmul.f32 1.442695, %v4928_v33 }
0x23f3   :  { %v4927_v35 = vpop.xlane.xlu1 %4926  ;;  %v4945_v38 = vpop.permute.xlu0 %4944 }
0x23f4   :  { %12706 = vpow2.f32 %v4930_v34  ;;  %v4929_v41 = vsub.f32 %v4921_v13, %v4927_v35  ;;  %12104 = vmatpush3.msra.mxu0 %v4945_v38 }
0x23f5   :  { %12113 = vmatprep.subr.mxu0 %v12954_v49 }
0x23f6   :  { %v4932_v42 = vmul.f32 1.442695, %v4929_v41 }
0x23f7   :  { %v5021_v43 = vpop.permute.xlu1 %5020 }
0x23f8   :  { %12708 = vpow2.f32 %v4932_v42  ;;  %12109 = vmatpush3.msra.mxu1 %v5021_v43  ;;  %v5463_v42 = vld [vmem:[%s14702_s3 + $0x18] sm:$0xff]  ;;  %v5461_v43 = vld [vmem:[%s14702_s3 + $0x8] sm:$0xff] }
0x23f9   :  { %12118 = vmatprep.subr.mxu1 %v12954_v49 }
0x23fb   :  { %v5099_v37 = vpop.permute.xlu1 %5098 }
0x23ff   :  { %v5177_v63 = vpop.permute.xlu1 %5176 }
0x2401   :  { %v12707_v44 = vpop.eup %12706 }
0x2402   :  { %v4934_v45 = vsel %vm310_vm6, %v12707_v44, 0.0 }
0x2403   :  { %4935 = vadd.xlane.f32.xlu0 %v4934_v45  ;;  %v5175_v6 = vpop.permute.xlu1 %5174 }
0x2405   :  { %v12709_v46 = vpop.eup %12708 }
0x2406   :  { %v4937_v48 = vsel %vm310_vm6, %v12709_v46, 0.0 }
0x2407   :  { %4938 = vadd.xlane.f32.xlu0 %v4937_v48 }
0x241d   :  { %5096 = vrot.lane.b32.xlu0 %v13706_v30, %s12966_s28 }
0x248c   :  { %v4936_v50 = vpop.xlane.xlu0 %4935 }
0x248d   :  { %12710 = vrcp.f32 %v4936_v50 }
0x2490   :  { %v4939_v51 = vpop.xlane.xlu0 %4938 }
0x2491   :  { %12712 = vrcp.f32 %v4939_v51  ;;  %v3882_v51 = vadd.f32 %v13772_v29, %v13620_v58 }
0x2494   :  { %v5097_v1 = vpop.permute.xlu0 %5096 }
0x249a   :  { %v12711_v54 = vpop.eup %12710 }
0x249b   :  { %v4942_v5 = vmul.f32 %v12711_v54, %v12707_v44  ;;  %v5460_v44 = vld [vmem:[%s14702_s3] sm:$0xff] }
0x249d   :  { %12106 = vmatmul.mubr.msk.f32.vlgmr.msra.gmra.mxu0 %vm310_vm6, %v4942_v5 }
0x249e   :  { %v12713_v0 = vpop.eup %12712  ;;  %12114 = vmatpush3.xpose.msk.msra.mxu0 %vm310_vm6, %v5099_v37  ;;  %12115 = vmatprep.mubr.msk.f32.mxu0 %vm12955_vm5, %v12954_v49  ;;  %v11258_v37 = vld [vmem:[%s13035_s24 + $0x1] ss:$0 sm:$0xff]  ;;  %s14706_s24 = sld [smem:[#allocation14_spill]] }
0x249f   :  { %v4943_v3 = vmul.f32 %v12713_v0, %v12709_v46  ;;  %12123 = vmatprep.subr.mxu0 %v12954_v49  ;;  %v3892_v54 = vadd.f32 %v11258_v37, %v3882_v51  ;;  %v3883_v0 = vadd.f32 %v13770_v28, %v13617_v55 }
0x24a1   :  { %12111 = vmatmul.mubr.msk.f32.vlgmr.msra.gmra.mxu1 %vm310_vm6, %v4943_v3  ;;  %12116 = vmatmul.mubr.msk.f32.vlgmr.msra.gmra.mxu0 %vm310_vm6, %v5097_v1  ;;  %v3895_v5 = vsel %vm160_vm0, %v3892_v54, 0.0 }
0x24a2   :  { %12119 = vmatpush3.xpose.msk.msra.mxu1 %vm310_vm6, %v5177_v63  ;;  %12120 = vmatprep.mubr.msk.f32.mxu1 %vm12955_vm5, %v12954_v49  ;;  %v3893_v63 = vadd.f32 %v11258_v37, %v3883_v0 }
0x24a3   :  { %12128 = vmatprep.subr.mxu1 %v12954_v49  ;;  %12125 = vmatprep.mubr.msk.f32.mxu0 %vm12955_vm5, %v12954_v49 }
0x24a4   :  { %v3898_v3 = vsel %vm160_vm0, %v3893_v63, 0.0 }
0x24a5   :  { %12121 = vmatmul.mubr.msk.f32.vlgmr.msra.gmra.mxu1 %vm310_vm6, %v5175_v6 }
0x24a6   :  { %12130 = vmatprep.mubr.msk.f32.mxu1 %vm12955_vm5, %v12954_v49 }
0x255d   :  { %v5016_v8 = vpop.f32.mrf.mxu0 }
0x255f   :  { %v12107_v10 = vpop.f32.mrf.mxu0 }
0x2561   :  { %v5092_v60 = vpop.f32.mrf.mxu1  ;;  %v5170_v11 = vpop.f32.mrf.mxu0 }
0x2562   :  { %v5252_v12 = vmul.f32 0.35355338, %v5170_v11 }
0x2563   :  { %v12112_v15 = vpop.f32.mrf.mxu1  ;;  %v12117_v16 = vpop.f32.mrf.mxu0 }
0x2564   :  { %v5254_v18 = vsel %vm4250_vm13, %v5252_v12, -1e+09 }
0x2565   :  { %v5248_v20 = vpop.f32.mrf.mxu1  ;;  %v5256_v62 = vsel %vm310_vm6, %v5254_v18, -inf }
0x2566   :  { %v5253_v21 = vmul.f32 0.35355338, %v5248_v20  ;;  %5257 = vmax.xlane.f32.xlu0 %v5256_v62 }
0x2567   :  { %v12122_v22 = vpop.f32.mrf.mxu1 }
0x2568   :  { %v5255_v23 = vsel %vm4251_vm14, %v5253_v21, -1e+09 }
0x2569   :  { %v5259_v17 = vsel %vm310_vm6, %v5255_v23, -inf }
0x256a   :  { %5260 = vmax.xlane.f32.xlu1 %v5259_v17 }
0x257b   :  { %5354 = vrot.lane.b32.xlu1 %v13702_v47, %s12967_s2 }
0x257f   :  { %5432 = vrot.lane.b32.xlu1 %v13816_v14, %s12968_s10 }
0x2583   :  { %5434 = vrot.lane.b32.xlu1 %v13818_v52, %s12968_s10 }
0x2587   :  { %5442 = vrot.lane.b32.xlu1 %v5092_v60, %s12952_s16 }
0x25ef   :  { %v5258_v19 = vpop.xlane.xlu0 %5257 }
0x25f0   :  { %v5262_v25 = vsub.f32 %v5254_v18, %v5258_v19 }
0x25f2   :  { %v5264_v57 = vmul.f32 1.442695, %v5262_v25  ;;  %v11288_v25 = vld [vmem:[%s14703_s8] ss:$0 sm:$0xff] }
0x25f3   :  { %v5261_v4 = vpop.xlane.xlu1 %5260 }
0x25f4   :  { %12714 = vpow2.f32 %v5264_v57  ;;  %v5263_v7 = vsub.f32 %v5255_v23, %v5261_v4 }
0x25f6   :  { %v5266_v26 = vmul.f32 1.442695, %v5263_v7 }
0x25f7   :  { %v5355_v27 = vpop.permute.xlu1 %5354 }
0x25f8   :  { %12716 = vpow2.f32 %v5266_v26  ;;  %12129 = vmatpush3.msra.mxu1 %v5355_v27 }
0x25fb   :  { %v5433_v1 = vpop.permute.xlu1 %5432 }
0x25fc   :  { %v5454_v10 = vsel %vm310_vm6, %v13774_v31, %v5433_v1 }
0x25ff   :  { %v5435_v6 = vpop.permute.xlu1 %5434 }
0x2600   :  { %v5455_v55 = vsel %vm310_vm6, %v13776_v24, %v5435_v6 }
0x2601   :  { %v12715_v13 = vpop.eup %12714 }
0x2602   :  { %v5268_v47 = vsel %vm310_vm6, %v12715_v13, 0.0 }
0x2603   :  { %5269 = vadd.xlane.f32.xlu0 %v5268_v47  ;;  %v5443_v60 = vpop.permute.xlu1 %5442  ;;  %v5703_v47 = vld [vmem:[%s14704_s14 + $0x10] sm:$0xff] }
0x2604   :  { %v5457_v28 = vsel %vm1682_vm12, %v5455_v55, %v5443_v60  ;;  %v3894_v60 = vld [vmem:[%s14705_s19] sm:$0x3]  ;;  %s14712_s19 = sld [smem:[#allocation22_spill]] }
0x2605   :  { %v12717_v14 = vpop.eup %12716 }
0x2606   :  { %v5271_v56 = vsel %vm310_vm6, %v12717_v14, 0.0 }
0x2607   :  { %5272 = vadd.xlane.f32.xlu0 %v5271_v56  ;;  %v5701_v56 = vld [vmem:[%s14704_s14] sm:$0xff] }
0x261d   :  { %5278 = vrot.lane.b32.xlu0 %v13706_v30, %s12967_s2  ;;  %v5462_v30 = vld [vmem:[%s14702_s3 + $0x10] sm:$0xff] }
0x2621   :  { %5440 = vrot.lane.b32.xlu0 %v5016_v8, %s12952_s16 }
0x268c   :  { %v5270_v52 = vpop.xlane.xlu0 %5269 }
0x268d   :  { %12718 = vrcp.f32 %v5270_v52 }
0x2690   :  { %v5273_v32 = vpop.xlane.xlu0 %5272 }
0x2691   :  { %12720 = vrcp.f32 %v5273_v32 }
0x2694   :  { %v5279_v33 = vpop.permute.xlu0 %5278 }
0x2695   :  { %12124 = vmatpush3.msra.mxu0 %v5279_v33 }
0x2696   :  { %12133 = vmatprep.subr.mxu0 %v5463_v42 }
0x2698   :  { %v5441_v8 = vpop.permute.xlu0 %5440 }
0x2699   :  { %v5456_v58 = vsel %vm1682_vm12, %v5454_v10, %v5441_v8 }
0x269a   :  { %v12719_v34 = vpop.eup %12718 }
0x269b   :  { %v5276_v35 = vmul.f32 %v12719_v34, %v12715_v13 }
0x269d   :  { %12126 = vmatmul.mubr.msk.f32.vlgmr.msra.gmra.mxu0 %vm310_vm6, %v5276_v35 }
0x269e   :  { %v12721_v38 = vpop.eup %12720  ;;  %12134 = vmatpush3.msra.mxu0 %v5463_v42 }
0x269f   :  { %v5277_v41 = vmul.f32 %v12721_v38, %v12717_v14  ;;  %12135 = vmatprep.subr.mxu0 %v5462_v30  ;;  %v5702_v14 = vld [vmem:[%s14704_s14 + $0x8] sm:$0xff] }
0x26a0   :  { %12136 = vmatpush3.msra.mxu0 %v5462_v30 }
0x26a1   :  { %12131 = vmatmul.mubr.msk.f32.vlgmr.msra.gmra.mxu1 %vm310_vm6, %v5277_v41  ;;  %12137 = vmatprep.subr.mxu0 %v5461_v43 }
0x26a2   :  { %12138 = vmatpush3.msra.mxu0 %v5461_v43 }
0x26a3   :  { %12139 = vmatprep.subr.mxu0 %v5460_v44 }
0x26a4   :  { %12140 = vmatpush3.msra.mxu0 %v5460_v44 }
0x275d   :  { %v5350_v45 = vpop.f32.mrf.mxu0 }
0x275e   :  { %5448 = vrot.lane.b32.xlu0 %v5350_v45, %s14676_s7 }
0x275f   :  { %v12127_v46 = vpop.f32.mrf.mxu0 }
0x2761   :  { %v5426_v48 = vpop.f32.mrf.mxu1 }
0x2762   :  { %5450 = vrot.lane.b32.xlu1 %v5426_v48, %s14676_s7 }
0x2763   :  { %v12132_v50 = vpop.f32.mrf.mxu1 }
0x277d   :  { %3896 = vadd.xlane.f32.xlu0 %v3895_v5 }
0x2786   :  { %3899 = vadd.xlane.f32.xlu1 %v3898_v3 }
0x27d0   :  { %v5449_v29 = vpop.permute.xlu0 %5448 }
0x27d1   :  { %v5458_v11 = vsel %vm1685_vm11, %v5456_v58, %v5449_v29  ;;  %v3936_v58 = vrot.slane %v3894_v60, %v13165_v36 }
0x27d2   :  { %12141 = vmatprep.mubr.msk.f32.mxu0 %vm160_vm0, %v5458_v11 }
0x27d4   :  { %v5451_v12 = vpop.permute.xlu1 %5450 }
0x27d5   :  { %v5459_v15 = vsel %vm1685_vm11, %v5457_v28, %v5451_v12 }
0x27d6   :  { %12142 = vmatmul.mubr.msk.f32.vlgmr.msra.gmra.mxu0 %vm160_vm0, %v5459_v15  ;;  %v3944_v15 = vrot.slane %v3894_v60, %v13169_v39 }
0x2806   :  { %v3897_v21 = vpop.xlane.xlu0 %3896 }
0x2807   :  { %v3901_v23 = vmul.f32 0.03125, %v3897_v21  ;;  %v5610_v21 = vld [vmem:[%s14706_s24 + $0x8] sm:$0xff] }
0x2809   :  { %v3903_v4 = vsub.f32 %v3892_v54, %v3901_v23 }
0x280b   :  { %v3905_v13 = vmul.f32 %v3903_v4, %v3903_v4  ;;  %v3937_v55 = vmul.f32 %v3936_v58, %v3903_v4 }
0x280f   :  { %v3900_v31 = vpop.xlane.xlu1 %3899 }
0x2810   :  { %v3902_v16 = vmul.f32 0.03125, %v3900_v31 }
0x2812   :  { %v13901_v18 = vsub.f32 %v3893_v63, %v3902_v16  ;;  %v5612_v16 = vld [vmem:[%s14706_s24 + $0x18] sm:$0xff] }
0x2813   :  { %12144 = vmatprep.subr.mxu1 %v5612_v16 }
0x2814   :  { %v3906_v20 = vmul.f32 %v13901_v18, %v13901_v18  ;;  %v3938_v11 = vmul.f32 %v3936_v58, %v13901_v18  ;;  %12145 = vmatpush3.msra.mxu1 %v5612_v16  ;;  %v5609_v18 = vld [vmem:[%s14706_s24] sm:$0xff] }
0x2816   :  { %v3910_v62 = vsel %vm160_vm0, %v3906_v20, 0.0  ;;  %v5611_v20 = vld [vmem:[%s14706_s24 + $0x10] sm:$0xff] }
0x2817   :  { %3911 = vadd.xlane.f32.xlu1 %v3910_v62  ;;  %12146 = vmatprep.subr.mxu1 %v5611_v20 }
0x2818   :  { %12147 = vmatpush3.msra.mxu1 %v5611_v20 }
0x2819   :  { %12148 = vmatprep.subr.mxu1 %v5610_v21 }
0x281a   :  { %12149 = vmatpush3.msra.mxu1 %v5610_v21 }
0x281b   :  { %12150 = vmatprep.subr.mxu1 %v5609_v18 }
0x281c   :  { %12151 = vmatpush3.msra.mxu1 %v5609_v18 }
0x281d   :  { %12166 = vmatprep.subr.mxu1 %v12954_v49 }
0x2896   :  { %v12143_v24 = vpop.f32.mrf.mxu0 }
0x2897   :  { %v5546_v17 = vadd.f32 %v12143_v24, %v13632_v40  ;;  %v3907_v40 = vsel %vm160_vm0, %v3905_v13, 0.0 }
0x2898   :  { %v5536_v22 = vpop.f32.mrf.mxu0 }
0x2899   :  { %v5545_v19 = vadd.f32 %v5536_v22, %v13625_v59  ;;  %v13911_v7 = vadd.f32 %v11288_v25, %v5546_v17  ;;  %v5704_v59 = vld [vmem:[%s14704_s14 + $0x18] sm:$0xff] }
0x289a   :  { %12155 = vmatprep.subr.mxu0 %v5704_v59 }
0x289b   :  { %v13909_v57 = vadd.f32 %v11288_v25, %v5545_v19  ;;  %v5560_v27 = vsel %vm160_vm0, %v13911_v7, 0.0  ;;  %12156 = vmatpush3.msra.mxu0 %v5704_v59 }
0x289c   :  { %12157 = vmatprep.subr.mxu0 %v5703_v47 }
0x289d   :  { %v5557_v26 = vsel %vm160_vm0, %v13909_v57, 0.0  ;;  %12158 = vmatpush3.msra.mxu0 %v5703_v47 }
0x289e   :  { %5558 = vadd.xlane.f32.xlu0 %v5557_v26  ;;  %12159 = vmatprep.subr.mxu0 %v5702_v14 }
0x289f   :  { %12160 = vmatpush3.msra.mxu0 %v5702_v14 }
0x28a0   :  { %12161 = vmatprep.subr.mxu0 %v5701_v56  ;;  %v3912_v52 = vpop.xlane.xlu1 %3911 }
0x28a1   :  { %12162 = vmatpush3.msra.mxu0 %v5701_v56  ;;  %v3914_v32 = vmul.f32 0.032258064, %v3912_v52 }
0x28a2   :  { %5561 = vadd.xlane.f32.xlu0 %v5560_v27  ;;  %12176 = vmatprep.subr.mxu0 %v12954_v49 }
0x28a3   :  { %12722 = vrsqrt.f32 %v3914_v32  ;;  %vm3924_vm15 = vcmp.eq.f32.partialorder %v3914_v32, inf  ;;  %v3927_v54 = vand.u32 2147483648, %v3914_v32  ;;  %vm3926_vm1 = vcmp.eq.f32.partialorder %v3914_v32, 0.0 }
0x28a6   :  { %3908 = vadd.xlane.f32.xlu0 %v3907_v40 }
0x28b0   :  { %v12723_v48 = vpop.eup %12722 }
0x28b1   :  { %v3923_v51 = vmul.f32 %v12723_v48, %v3914_v32 }
0x28b3   :  { %v3925_v37 = vsel %vm3924_vm15, %v3914_v32, %v3923_v51  ;;  %v11292_v51 = vld [vmem:[%s14707_s30] ss:$0 sm:$0xff] }
0x28b4   :  { %v3928_v5 = vsel %vm3926_vm1, %v3927_v54, %v3925_v37 }
0x28b5   :  { %v3930_v63 = vadd.f32 1e-06, %v3928_v5 }
0x2927   :  { %v5559_v33 = vpop.xlane.xlu0 %5558 }
0x2928   :  { %v5563_v34 = vmul.f32 0.03125, %v5559_v33  ;;  %v5556_v33 = vld [vmem:[%s13128_s12] sm:$0x3] }
0x292a   :  { %v13924_v35 = vsub.f32 %v13909_v57, %v5563_v34  ;;  %v5598_v34 = vrot.slane %v5556_v33, %v13165_v36 }
0x292b   :  { %v5562_v38 = vpop.xlane.xlu0 %5561 }
0x292c   :  { %v5564_v41 = vmul.f32 0.03125, %v5562_v38  ;;  %v5567_v42 = vmul.f32 %v13924_v35, %v13924_v35  ;;  %v5599_v38 = vmul.f32 %v5598_v34, %v13924_v35 }
0x292e   :  { %v13929_v30 = vsub.f32 %v13911_v7, %v5564_v41  ;;  %v5569_v43 = vsel %vm160_vm0, %v5567_v42, 0.0  ;;  %v5606_v41 = vrot.slane %v5556_v33, %v13169_v39 }
0x292f   :  { %5570 = vadd.xlane.f32.xlu0 %v5569_v43  ;;  %v3909_v44 = vpop.xlane.xlu0 %3908 }
0x2930   :  { %v3913_v45 = vmul.f32 0.032258064, %v3909_v44  ;;  %v5568_v46 = vmul.f32 %v13929_v30, %v13929_v30 }
0x2932   :  { %12724 = vrsqrt.f32 %v3913_v45  ;;  %v5572_v50 = vsel %vm160_vm0, %v5568_v46, 0.0  ;;  %vm3917_vm3 = vcmp.eq.f32.partialorder %v3913_v45, inf  ;;  %v3920_v1 = vand.u32 2147483648, %v3913_v45 }
0x2933   :  { %5573 = vadd.xlane.f32.xlu1 %v5572_v50  ;;  %vm3919_vm4 = vcmp.eq.f32.partialorder %v3913_v45, 0.0  ;;  %12726 = vrcp.f32 %v3930_v63 }
0x293f   :  { %v12725_v0 = vpop.eup %12724 }
0x2940   :  { %v3916_v3 = vmul.f32 %v12725_v0, %v3913_v45  ;;  %v12727_v29 = vpop.eup %12726  ;;  %v11289_v0 = vld [vmem:[%s14708_s6] ss:$0 sm:$0xff] }
0x2941   :  { %v3940_v12 = vmul.f32 %v12727_v29, %v3938_v11 }
0x2942   :  { %v3918_v6 = vsel %vm3917_vm3, %v3913_v45, %v3916_v3  ;;  %v5600_v45 = vmul.f32 %v5598_v34, %v13929_v30 }
0x2943   :  { %v3921_v8 = vsel %vm3919_vm4, %v3920_v1, %v3918_v6  ;;  %v13944_v24 = vadd.f32 %v3944_v15, %v3940_v12 }
0x2944   :  { %v3929_v10 = vadd.f32 1e-06, %v3921_v8 }
0x2946   :  { %12728 = vrcp.f32 %v3929_v10 }
0x2953   :  { %v12729_v28 = vpop.eup %12728 }
0x2954   :  { %v3939_v31 = vmul.f32 %v12729_v28, %v3937_v55 }
0x2956   :  { %v13941_v62 = vadd.f32 %v3944_v15, %v3939_v31 }
0x2958   :  { %12163 = vmatprep.mubr.msk.f32.mxu0 %vm160_vm0, %v13941_v62 }
0x2959   :  { %12164 = vmatmul.mubr.msk.f32.vlgmr.msra.gmra.mxu0 %vm160_vm0, %v13944_v24 }
0x295a   :  { %12178 = vmatprep.mubr.msk.f32.mxu0 %vm12955_vm5, %v12954_v49 }
0x29b8   :  { %v5571_v22 = vpop.xlane.xlu0 %5570 }
0x29b9   :  { %v5575_v23 = vmul.f32 0.032258064, %v5571_v22 }
0x29bb   :  { %12730 = vrsqrt.f32 %v5575_v23  ;;  %vm5579_vm7 = vcmp.eq.f32.partialorder %v5575_v23, inf  ;;  %v5582_v26 = vand.u32 2147483648, %v5575_v23  ;;  %vm5581_vm8 = vcmp.eq.f32.partialorder %v5575_v23, 0.0 }
0x29bc   :  { %v5574_v17 = vpop.xlane.xlu1 %5573 }
0x29bd   :  { %v5576_v19 = vmul.f32 0.032258064, %v5574_v17 }
0x29bf   :  { %12732 = vrsqrt.f32 %v5576_v19  ;;  %vm5586_vm15 = vcmp.eq.f32.partialorder %v5576_v19, inf  ;;  %v5589_v14 = vand.u32 2147483648, %v5576_v19  ;;  %vm5588_vm1 = vcmp.eq.f32.partialorder %v5576_v19, 0.0 }
0x29c8   :  { %v12731_v25 = vpop.eup %12730 }
0x29c9   :  { %v5578_v4 = vmul.f32 %v12731_v25, %v5575_v23 }
0x29cb   :  { %v5580_v27 = vsel %vm5579_vm7, %v5575_v23, %v5578_v4 }
0x29cc   :  { %v5583_v13 = vsel %vm5581_vm8, %v5582_v26, %v5580_v27  ;;  %v12733_v40 = vpop.eup %12732 }
0x29cd   :  { %v5591_v59 = vadd.f32 1e-06, %v5583_v13  ;;  %v5585_v47 = vmul.f32 %v12733_v40, %v5576_v19 }
0x29cf   :  { %12734 = vrcp.f32 %v5591_v59  ;;  %v5587_v56 = vsel %vm5586_vm15, %v5576_v19, %v5585_v47 }
0x29d0   :  { %v5590_v52 = vsel %vm5588_vm1, %v5589_v14, %v5587_v56 }
0x29d1   :  { %v5592_v32 = vadd.f32 1e-06, %v5590_v52 }
0x29d3   :  { %12736 = vrcp.f32 %v5592_v32 }
0x29dc   :  { %v12735_v42 = vpop.eup %12734 }
0x29dd   :  { %v5601_v43 = vmul.f32 %v12735_v42, %v5599_v38 }
0x29df   :  { %v5607_v44 = vadd.f32 %v5606_v41, %v5601_v43 }
0x29e0   :  { %v12737_v46 = vpop.eup %12736 }
0x29e1   :  { %12152 = vmatprep.mubr.msk.f32.mxu1 %vm160_vm0, %v5607_v44  ;;  %v5602_v48 = vmul.f32 %v12737_v46, %v5600_v45 }
0x29e3   :  { %v5608_v50 = vadd.f32 %v5606_v41, %v5602_v48 }
0x29e5   :  { %12153 = vmatmul.mubr.msk.f32.vlgmr.msra.gmra.mxu1 %vm160_vm0, %v5608_v50 }
0x29e6   :  { %12168 = vmatprep.mubr.msk.f32.mxu1 %vm12955_vm5, %v12954_v49 }
0x2a19   :  { %v12165_v35 = vpop.f32.mrf.mxu0 }
0x2a1a   :  { %v13964_v37 = vadd.f32 %v12165_v35, %v11292_v51 }
0x2a1b   :  { %v5784_v54 = vpop.f32.mrf.mxu0 }
0x2a1c   :  { %v13966_v5 = vadd.f32 %v11292_v51, %v5784_v54 }
0x2a1e   :  { %12167 = vmatpush3.xpose.msk.msra.mxu1 %vm310_vm6, %v13966_v5 }
0x2a1f   :  { %12171 = vmatprep.subr.mxu1 %v12954_v49 }
0x2aa5   :  { %v12154_v30 = vpop.f32.mrf.mxu1 }
0x2aa6   :  { %v13980_v1 = vadd.f32 %v12154_v30, %v11289_v0 }
0x2aa7   :  { %v5692_v63 = vpop.f32.mrf.mxu1 }
0x2aa8   :  { %v13972_v3 = vadd.f32 %v11289_v0, %v5692_v63 }
0x2aaa   :  { %12169 = vmatmul.mubr.msk.f32.vlgmr.msra.gmra.mxu1 %vm310_vm6, %v13972_v3 }
0x2aab   :  { %12172 = vmatpush3.xpose.msk.msra.mxu1 %vm310_vm6, %v13964_v37  ;;  %12173 = vmatprep.mubr.msk.f32.mxu1 %vm12955_vm5, %v12954_v49 }
0x2aac   :  { %12181 = vmatprep.subr.mxu1 %v12954_v49 }
0x2aae   :  { %12174 = vmatmul.mubr.msk.f32.vlgmr.msra.gmra.mxu1 %vm310_vm6, %v13980_v1 }
0x2aaf   :  { %12183 = vmatprep.mubr.msk.f32.mxu1 %vm12955_vm5, %v12954_v49 }
0x2b6a   :  { %v5865_v6 = vpop.f32.mrf.mxu1 }
0x2b6b   :  { %v5945_v8 = vmul.f32 0.35355338, %v5865_v6 }
0x2b6c   :  { %v12170_v10 = vpop.f32.mrf.mxu1 }
0x2b6d   :  { %v5947_v60 = vsel %vm13204_vm9, %v5945_v8, -1e+09 }
0x2b6e   :  { %v5941_v58 = vpop.f32.mrf.mxu1  ;;  %v5949_v29 = vsel %vm310_vm6, %v5947_v60, -inf }
0x2b6f   :  { %v5946_v11 = vmul.f32 0.35355338, %v5941_v58  ;;  %5950 = vmax.xlane.f32.xlu0 %v5949_v29 }
0x2b70   :  { %v12175_v55 = vpop.f32.mrf.mxu1 }
0x2b71   :  { %v5948_v28 = vsel %vm13212_vm10, %v5946_v11, -1e+09 }
0x2b72   :  { %v5952_v12 = vsel %vm310_vm6, %v5948_v28, -inf }
0x2b73   :  { %5953 = vmax.xlane.f32.xlu1 %v5952_v12 }
0x2b84   :  { %6047 = vrot.lane.b32.xlu1 %v13964_v37, %s12956_s0 }
0x2b88   :  { %6125 = vrot.lane.b32.xlu1 %v13966_v5, %s12960_s27 }
0x2b8c   :  { %6203 = vrot.lane.b32.xlu1 %v13964_v37, %s12960_s27 }
0x2bf8   :  { %v5951_v15 = vpop.xlane.xlu0 %5950 }
0x2bf9   :  { %v5955_v31 = vsub.f32 %v5947_v60, %v5951_v15 }
0x2bfb   :  { %v5957_v16 = vmul.f32 1.442695, %v5955_v31 }
0x2bfc   :  { %v5954_v20 = vpop.xlane.xlu1 %5953 }
0x2bfd   :  { %12738 = vpow2.f32 %v5957_v16  ;;  %v5956_v21 = vsub.f32 %v5948_v28, %v5954_v20 }
0x2bff   :  { %v5959_v18 = vmul.f32 1.442695, %v5956_v21 }
0x2c00   :  { %v6048_v22 = vpop.permute.xlu1 %6047 }
0x2c01   :  { %12740 = vpow2.f32 %v5959_v18  ;;  %12182 = vmatpush3.msra.mxu1 %v6048_v22 }
0x2c02   :  { %12191 = vmatprep.subr.mxu1 %v12954_v49 }
0x2c04   :  { %v6126_v4 = vpop.permute.xlu1 %6125 }
0x2c08   :  { %v6204_v26 = vpop.permute.xlu1 %6203 }
0x2c0a   :  { %v12739_v23 = vpop.eup %12738 }
0x2c0b   :  { %v5961_v17 = vsel %vm310_vm6, %v12739_v23, 0.0 }
0x2c0c   :  { %5962 = vadd.xlane.f32.xlu0 %v5961_v17 }
0x2c0e   :  { %v12741_v19 = vpop.eup %12740 }
0x2c0f   :  { %v5964_v25 = vsel %vm310_vm6, %v12741_v19, 0.0 }
0x2c10   :  { %5965 = vadd.xlane.f32.xlu1 %v5964_v25 }
0x2c21   :  { %6201 = vrot.lane.b32.xlu1 %v13980_v1, %s12960_s27 }
0x2c22   :  { %5971 = vrot.lane.b32.xlu0 %v13966_v5, %s12956_s0 }
0x2c26   :  { %6123 = vrot.lane.b32.xlu0 %v13972_v3, %s12960_s27 }
0x2c95   :  { %v5963_v27 = vpop.xlane.xlu0 %5962 }
0x2c96   :  { %12742 = vrcp.f32 %v5963_v27 }
0x2c99   :  { %v5972_v13 = vpop.permute.xlu0 %5971  ;;  %v5966_v40 = vpop.xlane.xlu1 %5965 }
0x2c9a   :  { %12744 = vrcp.f32 %v5966_v40  ;;  %12177 = vmatpush3.msra.mxu0 %v5972_v13 }
0x2c9b   :  { %12186 = vmatprep.subr.mxu0 %v12954_v49 }
0x2c9d   :  { %v6124_v52 = vpop.permute.xlu0 %6123  ;;  %v6202_v32 = vpop.permute.xlu1 %6201 }
0x2ca3   :  { %v12743_v59 = vpop.eup %12742 }
0x2ca4   :  { %v5969_v47 = vmul.f32 %v12743_v59, %v12739_v23 }
0x2ca6   :  { %12179 = vmatmul.mubr.msk.f32.vlgmr.msra.gmra.mxu0 %vm310_vm6, %v5969_v47 }
0x2ca7   :  { %v12745_v14 = vpop.eup %12744  ;;  %12187 = vmatpush3.xpose.msk.msra.mxu0 %vm310_vm6, %v6126_v4  ;;  %12188 = vmatprep.mubr.msk.f32.mxu0 %vm12955_vm5, %v12954_v49 }
0x2ca8   :  { %v5970_v56 = vmul.f32 %v12745_v14, %v12741_v19  ;;  %12196 = vmatprep.subr.mxu0 %v12954_v49 }
0x2caa   :  { %12184 = vmatmul.mubr.msk.f32.vlgmr.msra.gmra.mxu1 %vm310_vm6, %v5970_v56  ;;  %12189 = vmatmul.mubr.msk.f32.vlgmr.msra.gmra.mxu0 %vm310_vm6, %v6124_v52 }
0x2cab   :  { %12192 = vmatpush3.xpose.msk.msra.mxu1 %vm310_vm6, %v6204_v26  ;;  %12193 = vmatprep.mubr.msk.f32.mxu1 %vm12955_vm5, %v12954_v49 }
0x2cac   :  { %12201 = vmatprep.subr.mxu1 %v12954_v49  ;;  %12198 = vmatprep.mubr.msk.f32.mxu0 %vm12955_vm5, %v12954_v49 }
0x2cae   :  { %12194 = vmatmul.mubr.msk.f32.vlgmr.msra.gmra.mxu1 %vm310_vm6, %v6202_v32 }
0x2caf   :  { %12203 = vmatprep.mubr.msk.f32.mxu1 %vm12955_vm5, %v12954_v49 }
0x2d66   :  { %v14025_v33 = vpop.f32.mrf.mxu0 }
0x2d68   :  { %v12180_v34 = vpop.f32.mrf.mxu0 }
0x2d6a   :  { %v14027_v38 = vpop.f32.mrf.mxu1  ;;  %v6197_v41 = vpop.f32.mrf.mxu0 }
0x2d6b   :  { %v6279_v42 = vmul.f32 0.35355338, %v6197_v41 }
0x2d6c   :  { %v12185_v43 = vpop.f32.mrf.mxu1  ;;  %v12190_v44 = vpop.f32.mrf.mxu0 }
0x2d6d   :  { %v6281_v45 = vsel %vm13204_vm9, %v6279_v42, -1e+09 }
0x2d6e   :  { %v6275_v46 = vpop.f32.mrf.mxu1  ;;  %v6283_v48 = vsel %vm310_vm6, %v6281_v45, -inf }
0x2d6f   :  { %v6280_v50 = vmul.f32 0.35355338, %v6275_v46  ;;  %6284 = vmax.xlane.f32.xlu0 %v6283_v48 }
0x2d70   :  { %v12195_v51 = vpop.f32.mrf.mxu1 }
0x2d71   :  { %v6282_v35 = vsel %vm13212_vm10, %v6280_v50, -1e+09 }
0x2d72   :  { %v6286_v54 = vsel %vm310_vm6, %v6282_v35, -inf }
0x2d73   :  { %6287 = vmax.xlane.f32.xlu1 %v6286_v54 }
0x2d84   :  { %6381 = vrot.lane.b32.xlu1 %v13964_v37, %s12959_s13 }
0x2d85   :  { %6305 = vrot.lane.b32.xlu0 %v13966_v5, %s12959_s13 }
0x2d88   :  { %6459 = vrot.lane.b32.xlu1 %v13966_v5, %s12963_s22 }
0x2d8c   :  { %6537 = vrot.lane.b32.xlu1 %v13964_v37, %s12963_s22 }
0x2d90   :  { %6535 = vrot.lane.b32.xlu1 %v13980_v1, %s12963_s22 }
0x2df8   :  { %v6285_v30 = vpop.xlane.xlu0 %6284 }
0x2df9   :  { %v6289_v0 = vsub.f32 %v6281_v45, %v6285_v30 }
0x2dfb   :  { %v6291_v63 = vmul.f32 1.442695, %v6289_v0 }
0x2dfc   :  { %v6306_v6 = vpop.permute.xlu0 %6305  ;;  %v6288_v8 = vpop.xlane.xlu1 %6287 }
0x2dfd   :  { %12746 = vpow2.f32 %v6291_v63  ;;  %v6290_v10 = vsub.f32 %v6282_v35, %v6288_v8  ;;  %12197 = vmatpush3.msra.mxu0 %v6306_v6 }
0x2dfe   :  { %12206 = vmatprep.subr.mxu0 %v12954_v49 }
0x2dff   :  { %v6293_v60 = vmul.f32 1.442695, %v6290_v10 }
0x2e00   :  { %v6382_v58 = vpop.permute.xlu1 %6381 }
0x2e01   :  { %12748 = vpow2.f32 %v6293_v60  ;;  %12202 = vmatpush3.msra.mxu1 %v6382_v58 }
0x2e02   :  { %12211 = vmatprep.subr.mxu1 %v12954_v49 }
0x2e04   :  { %v6460_v31 = vpop.permute.xlu1 %6459 }
0x2e08   :  { %v6538_v18 = vpop.permute.xlu1 %6537 }
0x2e0a   :  { %v12747_v29 = vpop.eup %12746 }
0x2e0b   :  { %v6295_v11 = vsel %vm310_vm6, %v12747_v29, 0.0 }
0x2e0c   :  { %6296 = vadd.xlane.f32.xlu0 %v6295_v11  ;;  %v6536_v17 = vpop.permute.xlu1 %6535 }
0x2e0e   :  { %v12749_v55 = vpop.eup %12748 }
0x2e0f   :  { %v6298_v28 = vsel %vm310_vm6, %v12749_v55, 0.0 }
0x2e10   :  { %6299 = vadd.xlane.f32.xlu0 %v6298_v28 }
0x2e26   :  { %6457 = vrot.lane.b32.xlu0 %v13972_v3, %s12963_s22 }
0x2e95   :  { %v6297_v12 = vpop.xlane.xlu0 %6296 }
0x2e96   :  { %12750 = vrcp.f32 %v6297_v12 }
0x2e99   :  { %v6300_v15 = vpop.xlane.xlu0 %6299 }
0x2e9a   :  { %12752 = vrcp.f32 %v6300_v15 }
0x2e9d   :  { %v6458_v23 = vpop.permute.xlu0 %6457 }
0x2ea3   :  { %v12751_v16 = vpop.eup %12750 }
0x2ea4   :  { %v6303_v20 = vmul.f32 %v12751_v16, %v12747_v29 }
0x2ea6   :  { %12199 = vmatmul.mubr.msk.f32.vlgmr.msra.gmra.mxu0 %vm310_vm6, %v6303_v20 }
0x2ea7   :  { %v12753_v21 = vpop.eup %12752  ;;  %12207 = vmatpush3.xpose.msk.msra.mxu0 %vm310_vm6, %v6460_v31  ;;  %12208 = vmatprep.mubr.msk.f32.mxu0 %vm12955_vm5, %v12954_v49 }
0x2ea8   :  { %v6304_v22 = vmul.f32 %v12753_v21, %v12749_v55  ;;  %12216 = vmatprep.subr.mxu0 %v12954_v49 }
0x2eaa   :  { %12204 = vmatmul.mubr.msk.f32.vlgmr.msra.gmra.mxu1 %vm310_vm6, %v6304_v22  ;;  %12209 = vmatmul.mubr.msk.f32.vlgmr.msra.gmra.mxu0 %vm310_vm6, %v6458_v23 }
0x2eab   :  { %12212 = vmatpush3.xpose.msk.msra.mxu1 %vm310_vm6, %v6538_v18  ;;  %12213 = vmatprep.mubr.msk.f32.mxu1 %vm12955_vm5, %v12954_v49 }
0x2eac   :  { %12221 = vmatprep.subr.mxu1 %v12954_v49  ;;  %12218 = vmatprep.mubr.msk.f32.mxu0 %vm12955_vm5, %v12954_v49 }
0x2eae   :  { %12214 = vmatmul.mubr.msk.f32.vlgmr.msra.gmra.mxu1 %vm310_vm6, %v6536_v17 }
0x2eaf   :  { %12223 = vmatprep.mubr.msk.f32.mxu1 %vm12955_vm5, %v12954_v49 }
0x2f66   :  { %v14067_v19 = vpop.f32.mrf.mxu0 }
0x2f68   :  { %v12200_v25 = vpop.f32.mrf.mxu0 }
0x2f6a   :  { %v14069_v4 = vpop.f32.mrf.mxu1  ;;  %v6531_v26 = vpop.f32.mrf.mxu0 }
0x2f6b   :  { %v6613_v27 = vmul.f32 0.35355338, %v6531_v26 }
0x2f6c   :  { %v12205_v13 = vpop.f32.mrf.mxu1  ;;  %v12210_v40 = vpop.f32.mrf.mxu0 }
0x2f6d   :  { %v6615_v59 = vsel %vm13204_vm9, %v6613_v27, -1e+09 }
0x2f6e   :  { %v6609_v47 = vpop.f32.mrf.mxu1  ;;  %v6617_v14 = vsel %vm310_vm6, %v6615_v59, -inf }
0x2f6f   :  { %v6614_v56 = vmul.f32 0.35355338, %v6609_v47  ;;  %6618 = vmax.xlane.f32.xlu0 %v6617_v14 }
0x2f70   :  { %v12215_v52 = vpop.f32.mrf.mxu1 }
0x2f71   :  { %v6616_v32 = vsel %vm13212_vm10, %v6614_v56, -1e+09 }
0x2f72   :  { %v6620_v34 = vsel %vm310_vm6, %v6616_v32, -inf }
0x2f73   :  { %6621 = vmax.xlane.f32.xlu1 %v6620_v34 }
0x2f84   :  { %6715 = vrot.lane.b32.xlu1 %v13964_v37, %s12962_s23 }
0x2f85   :  { %6639 = vrot.lane.b32.xlu0 %v13966_v5, %s12962_s23 }
0x2f88   :  { %6793 = vrot.lane.b32.xlu1 %v13966_v5, %s12966_s28 }
0x2f8c   :  { %6871 = vrot.lane.b32.xlu1 %v13964_v37, %s12966_s28 }
0x2f90   :  { %6869 = vrot.lane.b32.xlu1 %v13980_v1, %s12966_s28 }
0x2ff8   :  { %v6619_v41 = vpop.xlane.xlu0 %6618 }
0x2ff9   :  { %v6623_v42 = vsub.f32 %v6615_v59, %v6619_v41 }
0x2ffb   :  { %v6625_v43 = vmul.f32 1.442695, %v6623_v42 }
0x2ffc   :  { %v6640_v44 = vpop.permute.xlu0 %6639  ;;  %v6622_v45 = vpop.xlane.xlu1 %6621 }
0x2ffd   :  { %12754 = vpow2.f32 %v6625_v43  ;;  %v6624_v46 = vsub.f32 %v6616_v32, %v6622_v45  ;;  %12217 = vmatpush3.msra.mxu0 %v6640_v44  ;;  %v7158_v45 = vld [vmem:[%s14709_s11 + $0x18] sm:$0xff] }
0x2ffe   :  { %12226 = vmatprep.subr.mxu0 %v12954_v49 }
0x2fff   :  { %v6627_v48 = vmul.f32 1.442695, %v6624_v46  ;;  %v7156_v46 = vld [vmem:[%s14709_s11 + $0x8] sm:$0xff] }
0x3000   :  { %v6716_v50 = vpop.permute.xlu1 %6715 }
0x3001   :  { %12756 = vpow2.f32 %v6627_v48  ;;  %12222 = vmatpush3.msra.mxu1 %v6716_v50  ;;  %v7155_v48 = vld [vmem:[%s14709_s11] sm:$0xff] }
0x3002   :  { %12231 = vmatprep.subr.mxu1 %v12954_v49 }
0x3004   :  { %v6794_v63 = vpop.permute.xlu1 %6793 }
0x3008   :  { %v6872_v60 = vpop.permute.xlu1 %6871 }
0x300a   :  { %v12755_v51 = vpop.eup %12754 }
0x300b   :  { %v6629_v35 = vsel %vm310_vm6, %v12755_v51, 0.0 }
0x300c   :  { %6630 = vadd.xlane.f32.xlu0 %v6629_v35  ;;  %v6870_v29 = vpop.permute.xlu1 %6869 }
0x300e   :  { %v12757_v1 = vpop.eup %12756 }
0x300f   :  { %v6632_v54 = vsel %vm310_vm6, %v12757_v1, 0.0 }
0x3010   :  { %6633 = vadd.xlane.f32.xlu0 %v6632_v54 }
0x3026   :  { %6791 = vrot.lane.b32.xlu0 %v13972_v3, %s12966_s28 }
0x3095   :  { %v6631_v30 = vpop.xlane.xlu0 %6630 }
0x3096   :  { %12758 = vrcp.f32 %v6631_v30 }
0x3099   :  { %v6634_v0 = vpop.xlane.xlu0 %6633 }
0x309a   :  { %12760 = vrcp.f32 %v6634_v0 }
0x309d   :  { %v6792_v3 = vpop.permute.xlu0 %6791 }
0x30a3   :  { %v12759_v6 = vpop.eup %12758 }
0x30a4   :  { %v6637_v8 = vmul.f32 %v12759_v6, %v12755_v51 }
0x30a6   :  { %12219 = vmatmul.mubr.msk.f32.vlgmr.msra.gmra.mxu0 %vm310_vm6, %v6637_v8 }
0x30a7   :  { %v12761_v10 = vpop.eup %12760  ;;  %12227 = vmatpush3.xpose.msk.msra.mxu0 %vm310_vm6, %v6794_v63  ;;  %12228 = vmatprep.mubr.msk.f32.mxu0 %vm12955_vm5, %v12954_v49 }
0x30a8   :  { %v6638_v58 = vmul.f32 %v12761_v10, %v12757_v1  ;;  %12236 = vmatprep.subr.mxu0 %v12954_v49 }
0x30aa   :  { %12224 = vmatmul.mubr.msk.f32.vlgmr.msra.gmra.mxu1 %vm310_vm6, %v6638_v58  ;;  %12229 = vmatmul.mubr.msk.f32.vlgmr.msra.gmra.mxu0 %vm310_vm6, %v6792_v3 }
0x30ab   :  { %12232 = vmatpush3.xpose.msk.msra.mxu1 %vm310_vm6, %v6872_v60  ;;  %12233 = vmatprep.mubr.msk.f32.mxu1 %vm12955_vm5, %v12954_v49 }
0x30ac   :  { %12241 = vmatprep.subr.mxu1 %v12954_v49  ;;  %12238 = vmatprep.mubr.msk.f32.mxu0 %vm12955_vm5, %v12954_v49 }
0x30ae   :  { %12234 = vmatmul.mubr.msk.f32.vlgmr.msra.gmra.mxu1 %vm310_vm6, %v6870_v29 }
0x30af   :  { %12243 = vmatprep.mubr.msk.f32.mxu1 %vm12955_vm5, %v12954_v49 }
0x3166   :  { %v6711_v11 = vpop.f32.mrf.mxu0 }
0x3168   :  { %v12220_v55 = vpop.f32.mrf.mxu0 }
0x316a   :  { %v6787_v28 = vpop.f32.mrf.mxu1  ;;  %v6865_v12 = vpop.f32.mrf.mxu0 }
0x316b   :  { %v6947_v15 = vmul.f32 0.35355338, %v6865_v12 }
0x316c   :  { %v12225_v31 = vpop.f32.mrf.mxu1  ;;  %v12230_v16 = vpop.f32.mrf.mxu0 }
0x316d   :  { %v6949_v20 = vsel %vm13204_vm9, %v6947_v15, -1e+09 }
0x316e   :  { %v6943_v21 = vpop.f32.mrf.mxu1  ;;  %v6951_v18 = vsel %vm310_vm6, %v6949_v20, -inf }
0x316f   :  { %v6948_v22 = vmul.f32 0.35355338, %v6943_v21  ;;  %6952 = vmax.xlane.f32.xlu0 %v6951_v18 }
0x3170   :  { %v12235_v23 = vpop.f32.mrf.mxu1 }
0x3171   :  { %v6950_v17 = vsel %vm13212_vm10, %v6948_v22, -1e+09 }
0x3172   :  { %v6954_v25 = vsel %vm310_vm6, %v6950_v17, -inf }
0x3173   :  { %6955 = vmax.xlane.f32.xlu1 %v6954_v25 }
0x3184   :  { %7049 = vrot.lane.b32.xlu1 %v13964_v37, %s12965_s1 }
0x3188   :  { %7127 = vrot.lane.b32.xlu1 %v14067_v19, %s12968_s10 }
0x318c   :  { %7129 = vrot.lane.b32.xlu1 %v14069_v4, %s12968_s10 }
0x3190   :  { %7137 = vrot.lane.b32.xlu1 %v6787_v28, %s12952_s16 }
0x31f8   :  { %v6953_v26 = vpop.xlane.xlu0 %6952 }
0x31f9   :  { %v6957_v27 = vsub.f32 %v6949_v20, %v6953_v26 }
0x31fb   :  { %v6959_v13 = vmul.f32 1.442695, %v6957_v27 }
0x31fc   :  { %v6956_v40 = vpop.xlane.xlu1 %6955 }
0x31fd   :  { %12762 = vpow2.f32 %v6959_v13  ;;  %v6958_v59 = vsub.f32 %v6950_v17, %v6956_v40  ;;  %v7307_v13 = vld [vmem:[%s14711_s29 + $0x18] sm:$0xff]  ;;  %v7306_v40 = vld [vmem:[%s14711_s29 + $0x10] sm:$0xff] }
0x31ff   :  { %v6961_v47 = vmul.f32 1.442695, %v6958_v59  ;;  %v7305_v59 = vld [vmem:[%s14711_s29 + $0x8] sm:$0xff] }
0x3200   :  { %v7050_v14 = vpop.permute.xlu1 %7049 }
0x3201   :  { %12764 = vpow2.f32 %v6961_v47  ;;  %12242 = vmatpush3.msra.mxu1 %v7050_v14  ;;  %v7304_v47 = vld [vmem:[%s14711_s29] sm:$0xff]  ;;  %v7405_v14 = vld [vmem:[%s14712_s19 + $0x38] sm:$0xff] }
0x3202   :  { %12257 = vmatprep.subr.mxu1 %v7307_v13 }
0x3204   :  { %v7128_v54 = vpop.permute.xlu1 %7127 }
0x3205   :  { %v7149_v63 = vsel %vm310_vm6, %v14025_v33, %v7128_v54  ;;  %v11321_v33 = vld [vmem:[%s14710_s15] ss:$0 sm:$0xff] }
0x3206   :  { %v7251_v54 = vld [vmem:[%s13133_s17] sm:$0x3] }
0x3208   :  { %v7130_v30 = vpop.permute.xlu1 %7129 }
0x3209   :  { %v7150_v58 = vsel %vm310_vm6, %v14027_v38, %v7130_v30  ;;  %v7293_v30 = vrot.slane %v7251_v54, %v13165_v36 }
0x320a   :  { %v12763_v56 = vpop.eup %12762 }
0x320b   :  { %v6963_v37 = vsel %vm310_vm6, %v12763_v56, 0.0 }
0x320c   :  { %6964 = vadd.xlane.f32.xlu0 %v6963_v37  ;;  %v7138_v6 = vpop.permute.xlu1 %7137  ;;  %v7403_v37 = vld [vmem:[%s14712_s19 + $0x28] sm:$0xff] }
0x320d   :  { %v7152_v3 = vsel %vm1682_vm12, %v7150_v58, %v7138_v6 }
0x320e   :  { %v12765_v19 = vpop.eup %12764 }
0x320f   :  { %v6966_v52 = vsel %vm310_vm6, %v12765_v19, 0.0 }
0x3210   :  { %6967 = vadd.xlane.f32.xlu0 %v6966_v52 }
0x3226   :  { %6973 = vrot.lane.b32.xlu0 %v13966_v5, %s12965_s1  ;;  %v7157_v5 = vld [vmem:[%s14709_s11 + $0x10] sm:$0xff] }
0x322a   :  { %7135 = vrot.lane.b32.xlu0 %v6711_v11, %s12952_s16 }
0x3295   :  { %v6965_v4 = vpop.xlane.xlu0 %6964 }
0x3296   :  { %12766 = vrcp.f32 %v6965_v4 }
0x3299   :  { %v6968_v32 = vpop.xlane.xlu0 %6967 }
0x329a   :  { %12768 = vrcp.f32 %v6968_v32 }
0x329d   :  { %v6974_v34 = vpop.permute.xlu0 %6973 }
0x329e   :  { %12237 = vmatpush3.msra.mxu0 %v6974_v34 }
0x329f   :  { %12246 = vmatprep.subr.mxu0 %v7158_v45 }
0x32a1   :  { %v7136_v0 = vpop.permute.xlu0 %7135 }
0x32a2   :  { %v7151_v8 = vsel %vm1682_vm12, %v7149_v63, %v7136_v0  ;;  %v7301_v63 = vrot.slane %v7251_v54, %v13169_v39 }
0x32a3   :  { %v12767_v41 = vpop.eup %12766 }
0x32a4   :  { %v6971_v42 = vmul.f32 %v12767_v41, %v12763_v56  ;;  %v7404_v56 = vld [vmem:[%s14712_s19 + $0x30] sm:$0xff] }
0x32a6   :  { %12239 = vmatmul.mubr.msk.f32.vlgmr.msra.gmra.mxu0 %vm310_vm6, %v6971_v42 }
0x32a7   :  { %v12769_v43 = vpop.eup %12768  ;;  %12247 = vmatpush3.msra.mxu0 %v7158_v45 }
0x32a8   :  { %v6972_v44 = vmul.f32 %v12769_v43, %v12765_v19  ;;  %12248 = vmatprep.subr.mxu0 %v7157_v5  ;;  %v7402_v19 = vld [vmem:[%s14712_s19 + $0x20] sm:$0xff] }
0x32a9   :  { %12249 = vmatpush3.msra.mxu0 %v7157_v5 }
0x32aa   :  { %12244 = vmatmul.mubr.msk.f32.vlgmr.msra.gmra.mxu1 %vm310_vm6, %v6972_v44  ;;  %12250 = vmatprep.subr.mxu0 %v7156_v46 }
0x32ab   :  { %12251 = vmatpush3.msra.mxu0 %v7156_v46  ;;  %12258 = vmatpush3.msra.mxu1 %v7307_v13 }
0x32ac   :  { %12252 = vmatprep.subr.mxu0 %v7155_v48  ;;  %12259 = vmatprep.subr.mxu1 %v7306_v40 }
0x32ad   :  { %12253 = vmatpush3.msra.mxu0 %v7155_v48  ;;  %12260 = vmatpush3.msra.mxu1 %v7306_v40 }
0x32ae   :  { %12261 = vmatprep.subr.mxu1 %v7305_v59  ;;  %12268 = vmatprep.subr.mxu0 %v7405_v14 }
0x32af   :  { %12262 = vmatpush3.msra.mxu1 %v7305_v59 }
0x32b0   :  { %12263 = vmatprep.subr.mxu1 %v7304_v47 }
0x32b1   :  { %12264 = vmatpush3.msra.mxu1 %v7304_v47 }
0x3366   :  { %v7045_v50 = vpop.f32.mrf.mxu0 }
0x3367   :  { %7143 = vrot.lane.b32.xlu0 %v7045_v50, %s14676_s7 }
0x3368   :  { %v12240_v51 = vpop.f32.mrf.mxu0 }
0x336a   :  { %v7121_v35 = vpop.f32.mrf.mxu1 }
0x336b   :  { %7145 = vrot.lane.b32.xlu1 %v7121_v35, %s14676_s7  ;;  %s14713_s7 = sld [smem:[#allocation21_spill]] }
0x336c   :  { %v12245_v1 = vpop.f32.mrf.mxu1 }
0x33d9   :  { %v7144_v10 = vpop.permute.xlu0 %7143 }
0x33da   :  { %v7153_v60 = vsel %vm1685_vm11, %v7151_v8, %v7144_v10 }
0x33db   :  { %12254 = vmatprep.mubr.msk.f32.mxu0 %vm160_vm0, %v7153_v60 }
0x33dd   :  { %v7146_v29 = vpop.permute.xlu1 %7145 }
0x33de   :  { %v7154_v11 = vsel %vm1685_vm11, %v7152_v3, %v7146_v29 }
0x33df   :  { %12255 = vmatmul.mubr.msk.f32.vlgmr.msra.gmra.mxu0 %vm160_vm0, %v7154_v11  ;;  %v7401_v11 = vld [vmem:[%s14712_s19 + $0x18] sm:$0xff] }
0x33e0   :  { %12269 = vmatpush3.msra.mxu0 %v7405_v14 }
0x33e1   :  { %12270 = vmatprep.subr.mxu0 %v7404_v56 }
0x33e2   :  { %12271 = vmatpush3.msra.mxu0 %v7404_v56 }
0x33e3   :  { %12272 = vmatprep.subr.mxu0 %v7403_v37 }
0x33e4   :  { %12273 = vmatpush3.msra.mxu0 %v7403_v37 }
0x33e5   :  { %12274 = vmatprep.subr.mxu0 %v7402_v19 }
0x33e6   :  { %12275 = vmatpush3.msra.mxu0 %v7402_v19 }
0x33e7   :  { %12276 = vmatprep.subr.mxu0 %v7401_v11 }
0x33e8   :  { %12277 = vmatpush3.msra.mxu0 %v7401_v11 }
0x349f   :  { %v12256_v55 = vpop.f32.mrf.mxu0 }
0x34a0   :  { %v7241_v28 = vadd.f32 %v12256_v55, %v13911_v7  ;;  %v7400_v55 = vld [vmem:[%s14712_s19 + $0x10] sm:$0xff] }
0x34a1   :  { %v7231_v12 = vpop.f32.mrf.mxu0  ;;  %12278 = vmatprep.subr.mxu0 %v7400_v55 }
0x34a2   :  { %v14147_v15 = vadd.f32 %v11321_v33, %v7241_v28  ;;  %v7240_v31 = vadd.f32 %v7231_v12, %v13909_v57  ;;  %12279 = vmatpush3.msra.mxu0 %v7400_v55  ;;  %v7398_v28 = vld [vmem:[%s14712_s19] sm:$0xff] }
0x34a3   :  { %v11322_v12 = vld [vmem:[%s14713_s7] ss:$0 sm:$0xff] }
0x34a4   :  { %v14150_v16 = vadd.f32 %v11321_v33, %v7240_v31  ;;  %v7255_v38 = vsel %vm160_vm0, %v14147_v15, 0.0  ;;  %v7399_v33 = vld [vmem:[%s14712_s19 + $0x8] sm:$0xff] }
0x34a5   :  { %7256 = vadd.xlane.f32.xlu1 %v7255_v38  ;;  %12280 = vmatprep.subr.mxu0 %v7399_v33 }
0x34a6   :  { %v7252_v20 = vsel %vm160_vm0, %v14150_v16, 0.0  ;;  %12281 = vmatpush3.msra.mxu0 %v7399_v33 }
0x34a7   :  { %7253 = vadd.xlane.f32.xlu0 %v7252_v20  ;;  %12282 = vmatprep.subr.mxu0 %v7398_v28 }
0x34a8   :  { %12283 = vmatpush3.msra.mxu0 %v7398_v28 }
0x34a9   :  { %12308 = vmatprep.subr.mxu0 %v12954_v49 }
0x352e   :  { %v7257_v21 = vpop.xlane.xlu1 %7256 }
0x352f   :  { %v7259_v7 = vmul.f32 0.03125, %v7257_v21 }
0x3530   :  { %v7254_v18 = vpop.xlane.xlu0 %7253 }
0x3531   :  { %v7258_v22 = vmul.f32 0.03125, %v7254_v18  ;;  %v7261_v23 = vsub.f32 %v14147_v15, %v7259_v7 }
0x3533   :  { %v7260_v57 = vsub.f32 %v14150_v16, %v7258_v22  ;;  %v7263_v26 = vmul.f32 %v7261_v23, %v7261_v23  ;;  %v7295_v10 = vmul.f32 %v7293_v30, %v7261_v23  ;;  %v11327_v23 = vld [vmem:[#allocation2] ss:$0 sm:$0xff] }
0x3535   :  { %v7262_v17 = vmul.f32 %v7260_v57, %v7260_v57  ;;  %v7267_v27 = vsel %vm160_vm0, %v7263_v26, 0.0  ;;  %v7294_v0 = vmul.f32 %v7293_v30, %v7260_v57 }
0x3537   :  { %v7264_v25 = vsel %vm160_vm0, %v7262_v17, 0.0 }
0x3538   :  { %7265 = vadd.xlane.f32.xlu0 %v7264_v25 }
0x353c   :  { %7268 = vadd.xlane.f32.xlu0 %v7267_v27 }
0x35c1   :  { %v7266_v52 = vpop.xlane.xlu0 %7265 }
0x35c2   :  { %v7270_v4 = vmul.f32 0.032258064, %v7266_v52 }
0x35c4   :  { %12770 = vrsqrt.f32 %v7270_v4  ;;  %vm7274_vm3 = vcmp.eq.f32.partialorder %v7270_v4, inf  ;;  %v7277_v43 = vand.u32 2147483648, %v7270_v4  ;;  %vm7276_vm4 = vcmp.eq.f32.partialorder %v7270_v4, 0.0 }
0x35c5   :  { %v7269_v32 = vpop.xlane.xlu0 %7268 }
0x35c6   :  { %v7271_v34 = vmul.f32 0.032258064, %v7269_v32  ;;  %v11332_v32 = vld [vmem:[%s14698_s9 + $0x38] sm:$0xff] }
0x35c7   :  { %12287 = vmatprep.subr.mxu1 %v11332_v32 }
0x35c8   :  { %12772 = vrsqrt.f32 %v7271_v34  ;;  %vm7281_vm7 = vcmp.eq.f32.partialorder %v7271_v34, inf  ;;  %v7284_v50 = vand.u32 2147483648, %v7271_v34  ;;  %vm7283_vm8 = vcmp.eq.f32.partialorder %v7271_v34, 0.0 }
0x35d1   :  { %v12771_v41 = vpop.eup %12770 }
0x35d2   :  { %v7273_v42 = vmul.f32 %v12771_v41, %v7270_v4  ;;  %v11330_v41 = vld [vmem:[%s14698_s9 + $0x28] sm:$0xff] }
0x35d4   :  { %v7275_v44 = vsel %vm7274_vm3, %v7270_v4, %v7273_v42  ;;  %v11329_v42 = vld [vmem:[%s14698_s9 + $0x20] sm:$0xff] }
0x35d5   :  { %v12773_v45 = vpop.eup %12772  ;;  %v7278_v5 = vsel %vm7276_vm4, %v7277_v43, %v7275_v44 }
0x35d6   :  { %v7286_v46 = vadd.f32 1e-06, %v7278_v5  ;;  %v7280_v48 = vmul.f32 %v12773_v45, %v7271_v34 }
0x35d8   :  { %12774 = vrcp.f32 %v7286_v46  ;;  %v7282_v51 = vsel %vm7281_vm7, %v7271_v34, %v7280_v48  ;;  %v11331_v34 = vld [vmem:[%s14698_s9 + $0x30] sm:$0xff] }
0x35d9   :  { %v7285_v35 = vsel %vm7283_vm8, %v7284_v50, %v7282_v51 }
0x35da   :  { %v7287_v1 = vadd.f32 1e-06, %v7285_v35 }
0x35dc   :  { %12776 = vrcp.f32 %v7287_v1 }
0x35e5   :  { %v12775_v6 = vpop.eup %12774 }
0x35e6   :  { %v7296_v8 = vmul.f32 %v12775_v6, %v7294_v0 }
0x35e8   :  { %v7302_v60 = vadd.f32 %v7301_v63, %v7296_v8 }
0x35e9   :  { %v12777_v58 = vpop.eup %12776 }
0x35ea   :  { %v7297_v3 = vmul.f32 %v12777_v58, %v7295_v10  ;;  %12265 = vmatprep.mubr.msk.f32.mxu1 %vm160_vm0, %v7302_v60  ;;  %v11328_v10 = vld [vmem:[%s14699_s21 + $0x2] sm:$0x3] }
0x35eb   :  { %v7541_v60 = vrot.slane %v11328_v10, %v13165_v36  ;;  %v7549_v33 = vrot.slane %v11328_v10, %v13169_v39 }
0x35ec   :  { %v7303_v29 = vadd.f32 %v7301_v63, %v7297_v3 }
0x35ee   :  { %12266 = vmatmul.mubr.msk.f32.vlgmr.msra.gmra.mxu1 %vm160_vm0, %v7303_v29 }
0x35ef   :  { %12288 = vmatpush3.msra.mxu1 %v11332_v32 }
0x35f0   :  { %12289 = vmatprep.subr.mxu1 %v11331_v34 }
0x35f1   :  { %12290 = vmatpush3.msra.mxu1 %v11331_v34 }
0x35f2   :  { %12291 = vmatprep.subr.mxu1 %v11330_v41 }
0x35f3   :  { %12292 = vmatpush3.msra.mxu1 %v11330_v41 }
0x35f4   :  { %12293 = vmatprep.subr.mxu1 %v11329_v42 }
0x35f5   :  { %12294 = vmatpush3.msra.mxu1 %v11329_v42 }
0x35f6   :  { %12298 = vmatprep.subr.mxu1 %v12954_v49 }
0x36ae   :  { %v12267_v31 = vpop.f32.mrf.mxu1 }
0x36af   :  { %v7393_v38 = vadd.f32 %v12267_v31, %v11322_v12 }
0x36b0   :  { %v7387_v20 = vpop.f32.mrf.mxu1 }
0x36b1   :  { %v7388_v21 = vadd.f32 %v11322_v12, %v7387_v20  ;;  %v7397_v18 = vmax.f32 %v7393_v38, 0.0  ;;  %v11334_v38 = vld [vmem:[%s14700_s25 + $0x1] ss:$0 sm:$0xff] }
0x36b3   :  { %v7396_v7 = vmax.f32 %v7388_v21, 0.0 }
0x36b5   :  { %12284 = vmatprep.mubr.msk.f32.mxu0 %vm1939_vm2, %v7396_v7 }
0x36b6   :  { %12285 = vmatmul.mubr.msk.f32.vlgmr.msra.gmra.mxu0 %vm1939_vm2, %v7397_v18 }
0x36b7   :  { %12310 = vmatprep.mubr.msk.f32.mxu0 %vm12955_vm5, %v12954_v49 }
0x3776   :  { %v12286_v22 = vpop.f32.mrf.mxu0 }
0x3777   :  { %v7488_v57 = vadd.f32 %v12286_v22, %v14147_v15 }
0x3778   :  { %v7478_v17 = vpop.f32.mrf.mxu0 }
0x3779   :  { %v14184_v25 = vadd.f32 %v11327_v23, %v7488_v57  ;;  %v7487_v26 = vadd.f32 %v7478_v17, %v14150_v16 }
0x377b   :  { %v14187_v27 = vadd.f32 %v11327_v23, %v7487_v26  ;;  %v7503_v13 = vsel %vm160_vm0, %v14184_v25, 0.0 }
0x377c   :  { %7504 = vadd.xlane.f32.xlu1 %v7503_v13 }
0x377d   :  { %v7500_v40 = vsel %vm160_vm0, %v14187_v27, 0.0 }
0x377e   :  { %7501 = vadd.xlane.f32.xlu0 %v7500_v40 }
0x3805   :  { %v7505_v59 = vpop.xlane.xlu1 %7504 }
0x3806   :  { %v7507_v15 = vmul.f32 0.03125, %v7505_v59 }
0x3807   :  { %v7502_v47 = vpop.xlane.xlu0 %7501 }
0x3808   :  { %v7509_v14 = vsub.f32 %v14184_v25, %v7507_v15  ;;  %v7506_v16 = vmul.f32 0.03125, %v7502_v47 }
0x380a   :  { %v7508_v56 = vsub.f32 %v14187_v27, %v7506_v16  ;;  %v7511_v37 = vmul.f32 %v7509_v14, %v7509_v14  ;;  %v7543_v3 = vmul.f32 %v7541_v60, %v7509_v14 }
0x380c   :  { %v7515_v19 = vsel %vm160_vm0, %v7511_v37, 0.0  ;;  %v7510_v52 = vmul.f32 %v7508_v56, %v7508_v56  ;;  %v7542_v29 = vmul.f32 %v7541_v60, %v7508_v56 }
0x380d   :  { %7516 = vadd.xlane.f32.xlu1 %v7515_v19 }
0x380e   :  { %v7512_v4 = vsel %vm160_vm0, %v7510_v52, 0.0 }
0x380f   :  { %7513 = vadd.xlane.f32.xlu0 %v7512_v4 }
0x3896   :  { %v7517_v43 = vpop.xlane.xlu1 %7516 }
0x3897   :  { %v7519_v44 = vmul.f32 0.032258064, %v7517_v43 }
0x3898   :  { %v7514_v45 = vpop.xlane.xlu0 %7513 }
0x3899   :  { %12778 = vrsqrt.f32 %v7519_v44  ;;  %v7518_v5 = vmul.f32 0.032258064, %v7514_v45  ;;  %vm7529_vm15 = vcmp.eq.f32.partialorder %v7519_v44, inf  ;;  %v7532_v50 = vand.u32 2147483648, %v7519_v44 }
0x389a   :  { %vm7531_vm1 = vcmp.eq.f32.partialorder %v7519_v44, 0.0 }
0x389b   :  { %12780 = vrsqrt.f32 %v7518_v5  ;;  %vm7522_vm3 = vcmp.eq.f32.partialorder %v7518_v5, inf  ;;  %v7525_v0 = vand.u32 2147483648, %v7518_v5  ;;  %vm7524_vm4 = vcmp.eq.f32.partialorder %v7518_v5, 0.0 }
0x38a6   :  { %v12779_v46 = vpop.eup %12778 }
0x38a7   :  { %v7528_v48 = vmul.f32 %v12779_v46, %v7519_v44 }
0x38a8   :  { %v12781_v51 = vpop.eup %12780 }
0x38a9   :  { %v7530_v35 = vsel %vm7529_vm15, %v7519_v44, %v7528_v48  ;;  %v7521_v54 = vmul.f32 %v12781_v51, %v7518_v5 }
0x38aa   :  { %v7533_v1 = vsel %vm7531_vm1, %v7532_v50, %v7530_v35 }
0x38ab   :  { %v7535_v30 = vadd.f32 1e-06, %v7533_v1  ;;  %v7523_v63 = vsel %vm7522_vm3, %v7518_v5, %v7521_v54 }
0x38ac   :  { %v7526_v6 = vsel %vm7524_vm4, %v7525_v0, %v7523_v63 }
0x38ad   :  { %12782 = vrcp.f32 %v7535_v30  ;;  %v7534_v8 = vadd.f32 1e-06, %v7526_v6 }
0x38af   :  { %12784 = vrcp.f32 %v7534_v8 }
0x38ba   :  { %v12783_v58 = vpop.eup %12782 }
0x38bb   :  { %v7545_v55 = vmul.f32 %v12783_v58, %v7543_v3 }
0x38bc   :  { %v12785_v11 = vpop.eup %12784 }
0x38bd   :  { %v7544_v28 = vmul.f32 %v12785_v11, %v7542_v29  ;;  %v7551_v31 = vadd.f32 %v7549_v33, %v7545_v55 }
0x38bf   :  { %v7550_v12 = vadd.f32 %v7549_v33, %v7544_v28 }
0x38c1   :  { %12295 = vmatprep.mubr.msk.f32.mxu1 %vm160_vm0, %v7550_v12 }
0x38c2   :  { %12296 = vmatmul.mubr.msk.f32.vlgmr.msra.gmra.mxu1 %vm160_vm0, %v7551_v31 }
0x38c3   :  { %12300 = vmatprep.mubr.msk.f32.mxu1 %vm12955_vm5, %v12954_v49 }
0x3982   :  { %v12297_v20 = vpop.f32.mrf.mxu1 }
0x3983   :  { %v14210_v21 = vadd.f32 %v12297_v20, %v11334_v38 }
0x3984   :  { %v7637_v7 = vpop.f32.mrf.mxu1 }
0x3985   :  { %v14212_v18 = vadd.f32 %v11334_v38, %v7637_v7  ;;  %7724 = vrot.lane.b32.xlu1 %v14210_v21, %s12956_s0 }
0x3987   :  { %7647 = vrot.lane.b32.xlu0 %v14212_v18, %s12956_s0 }
0x39f7   :  { %v7725_v23 = vpop.permute.xlu1 %7724 }
0x39f9   :  { %v7648_v22 = vpop.permute.xlu0 %7647 }
0x39fa   :  { %12299 = vmatpush3.xpose.msk.msra.mxu1 %vm310_vm6, %v7648_v22 }
0x39fb   :  { %12303 = vmatprep.subr.mxu1 %v12954_v49 }
0x39fd   :  { %12301 = vmatmul.mubr.msk.f32.vlgmr.msra.gmra.mxu1 %vm310_vm6, %v14212_v18 }
0x39fe   :  { %12304 = vmatpush3.xpose.msk.msra.mxu1 %vm310_vm6, %v7725_v23  ;;  %12305 = vmatprep.mubr.msk.f32.mxu1 %vm12955_vm5, %v12954_v49 }
0x39ff   :  { %12313 = vmatprep.subr.mxu1 %v12954_v49 }
0x3a01   :  { %12306 = vmatmul.mubr.msk.f32.vlgmr.msra.gmra.mxu1 %vm310_vm6, %v14210_v21 }
0x3a02   :  { %12315 = vmatprep.mubr.msk.f32.mxu1 %vm12955_vm5, %v12954_v49 }
0x3abd   :  { %v7719_v57 = vpop.f32.mrf.mxu1 }
0x3abe   :  { %v7800_v17 = vmul.f32 0.35355338, %v7719_v57 }
0x3abf   :  { %v12302_v26 = vpop.f32.mrf.mxu1 }
0x3ac0   :  { %v7802_v13 = vsel %vm4250_vm13, %v7800_v17, -1e+09 }
0x3ac1   :  { %v7796_v40 = vpop.f32.mrf.mxu1  ;;  %v7804_v59 = vsel %vm310_vm6, %v7802_v13, -inf }
0x3ac2   :  { %v7801_v15 = vmul.f32 0.35355338, %v7796_v40  ;;  %7805 = vmax.xlane.f32.xlu1 %v7804_v59 }
0x3ac3   :  { %v12307_v47 = vpop.f32.mrf.mxu1 }
0x3ac4   :  { %v7803_v14 = vsel %vm4251_vm14, %v7801_v15, -1e+09 }
0x3ac5   :  { %v7807_v16 = vsel %vm310_vm6, %v7803_v14, -inf }
0x3ac6   :  { %7808 = vmax.xlane.f32.xlu0 %v7807_v16 }
0x3ad3   :  { %7902 = vrot.lane.b32.xlu1 %v14210_v21, %s12958_s5 }
0x3ad7   :  { %7980 = vrot.lane.b32.xlu1 %v14212_v18, %s12959_s13 }
0x3adb   :  { %8058 = vrot.lane.b32.xlu1 %v14210_v21, %s12959_s13 }
0x3b4b   :  { %v7806_v56 = vpop.xlane.xlu1 %7805 }
0x3b4c   :  { %v7810_v37 = vsub.f32 %v7802_v13, %v7806_v56 }
0x3b4e   :  { %v7812_v19 = vmul.f32 1.442695, %v7810_v37 }
0x3b4f   :  { %v7903_v52 = vpop.permute.xlu1 %7902  ;;  %v7809_v4 = vpop.xlane.xlu0 %7808 }
0x3b50   :  { %12786 = vpow2.f32 %v7812_v19  ;;  %v7811_v32 = vsub.f32 %v7803_v14, %v7809_v4  ;;  %12314 = vmatpush3.msra.mxu1 %v7903_v52 }
0x3b51   :  { %12323 = vmatprep.subr.mxu1 %v12954_v49 }
0x3b52   :  { %v7814_v34 = vmul.f32 1.442695, %v7811_v32 }
0x3b53   :  { %v7981_v45 = vpop.permute.xlu1 %7980 }
0x3b54   :  { %12788 = vpow2.f32 %v7814_v34 }
0x3b57   :  { %v8059_v5 = vpop.permute.xlu1 %8058 }
0x3b5d   :  { %v12787_v41 = vpop.eup %12786 }
0x3b5e   :  { %v7816_v42 = vsel %vm310_vm6, %v12787_v41, 0.0 }
0x3b5f   :  { %7817 = vadd.xlane.f32.xlu0 %v7816_v42 }
0x3b61   :  { %v12789_v43 = vpop.eup %12788 }
0x3b62   :  { %v7819_v44 = vsel %vm310_vm6, %v12789_v43, 0.0 }
0x3b63   :  { %7820 = vadd.xlane.f32.xlu1 %v7819_v44 }
0x3b74   :  { %8056 = vrot.lane.b32.xlu1 %v14210_v21, %s12960_s27 }
0x3b75   :  { %7826 = vrot.lane.b32.xlu0 %v14212_v18, %s12958_s5  ;;  %s14714_s5 = smov 24  }
0x3b79   :  { %7978 = vrot.lane.b32.xlu0 %v14212_v18, %s12960_s27 }
0x3be8   :  { %v7818_v46 = vpop.xlane.xlu0 %7817 }
0x3be9   :  { %12790 = vrcp.f32 %v7818_v46 }
0x3bec   :  { %v7821_v48 = vpop.xlane.xlu1 %7820  ;;  %v7827_v50 = vpop.permute.xlu0 %7826 }
0x3bed   :  { %12792 = vrcp.f32 %v7821_v48  ;;  %12309 = vmatpush3.msra.mxu0 %v7827_v50 }
0x3bee   :  { %12318 = vmatprep.subr.mxu0 %v12954_v49 }
0x3bf0   :  { %v7979_v30 = vpop.permute.xlu0 %7978  ;;  %v8057_v0 = vpop.permute.xlu1 %8056 }
0x3bf6   :  { %v12791_v51 = vpop.eup %12790 }
0x3bf7   :  { %v7824_v35 = vmul.f32 %v12791_v51, %v12787_v41 }
0x3bf9   :  { %12311 = vmatmul.mubr.msk.f32.vlgmr.msra.gmra.mxu0 %vm310_vm6, %v7824_v35 }
0x3bfa   :  { %v12793_v1 = vpop.eup %12792  ;;  %12319 = vmatpush3.xpose.msk.msra.mxu0 %vm310_vm6, %v7981_v45  ;;  %12320 = vmatprep.mubr.msk.f32.mxu0 %vm12955_vm5, %v12954_v49 }
0x3bfb   :  { %v7825_v54 = vmul.f32 %v12793_v1, %v12789_v43  ;;  %12328 = vmatprep.subr.mxu0 %v12954_v49 }
0x3bfd   :  { %12316 = vmatmul.mubr.msk.f32.vlgmr.msra.gmra.mxu1 %vm310_vm6, %v7825_v54  ;;  %12321 = vmatmul.mubr.msk.f32.vlgmr.msra.gmra.mxu0 %vm310_vm6, %v7979_v30 }
0x3bfe   :  { %12324 = vmatpush3.xpose.msk.msra.mxu1 %vm310_vm6, %v8059_v5  ;;  %12325 = vmatprep.mubr.msk.f32.mxu1 %vm12955_vm5, %v12954_v49 }
0x3bff   :  { %12333 = vmatprep.subr.mxu1 %v12954_v49  ;;  %12330 = vmatprep.mubr.msk.f32.mxu0 %vm12955_vm5, %v12954_v49 }
0x3c01   :  { %12326 = vmatmul.mubr.msk.f32.vlgmr.msra.gmra.mxu1 %vm310_vm6, %v8057_v0 }
0x3c02   :  { %12335 = vmatprep.mubr.msk.f32.mxu1 %vm12955_vm5, %v12954_v49 }
0x3cb9   :  { %v14268_v63 = vpop.f32.mrf.mxu0 }
0x3cbb   :  { %v12312_v6 = vpop.f32.mrf.mxu0 }
0x3cbd   :  { %v14270_v8 = vpop.f32.mrf.mxu1  ;;  %v8052_v10 = vpop.f32.mrf.mxu0 }
0x3cbe   :  { %v8134_v60 = vmul.f32 0.35355338, %v8052_v10 }
0x3cbf   :  { %v12317_v58 = vpop.f32.mrf.mxu1  ;;  %v12322_v3 = vpop.f32.mrf.mxu0 }
0x3cc0   :  { %v8136_v29 = vsel %vm4250_vm13, %v8134_v60, -1e+09 }
0x3cc1   :  { %v8130_v11 = vpop.f32.mrf.mxu1  ;;  %v8138_v55 = vsel %vm310_vm6, %v8136_v29, -inf }
0x3cc2   :  { %v8135_v33 = vmul.f32 0.35355338, %v8130_v11  ;;  %8139 = vmax.xlane.f32.xlu0 %v8138_v55 }
0x3cc3   :  { %v12327_v28 = vpop.f32.mrf.mxu1 }
0x3cc4   :  { %v8137_v12 = vsel %vm4251_vm14, %v8135_v33, -1e+09 }
0x3cc5   :  { %v8141_v31 = vsel %vm310_vm6, %v8137_v12, -inf }
0x3cc6   :  { %8142 = vmax.xlane.f32.xlu1 %v8141_v31 }
0x3cd7   :  { %8236 = vrot.lane.b32.xlu1 %v14210_v21, %s12961_s18 }
0x3cd8   :  { %8160 = vrot.lane.b32.xlu0 %v14212_v18, %s12961_s18 }
0x3cdb   :  { %8314 = vrot.lane.b32.xlu1 %v14212_v18, %s12962_s23 }
0x3cdf   :  { %8392 = vrot.lane.b32.xlu1 %v14210_v21, %s12962_s23 }
0x3ce3   :  { %8390 = vrot.lane.b32.xlu1 %v14210_v21, %s12963_s22 }
0x3d4b   :  { %v8140_v38 = vpop.xlane.xlu0 %8139 }
0x3d4c   :  { %v8144_v20 = vsub.f32 %v8136_v29, %v8140_v38 }
0x3d4e   :  { %v8146_v7 = vmul.f32 1.442695, %v8144_v20 }
0x3d4f   :  { %v8161_v22 = vpop.permute.xlu0 %8160  ;;  %v8143_v23 = vpop.xlane.xlu1 %8142 }
0x3d50   :  { %12794 = vpow2.f32 %v8146_v7  ;;  %v8145_v57 = vsub.f32 %v8137_v12, %v8143_v23  ;;  %12329 = vmatpush3.msra.mxu0 %v8161_v22 }
0x3d51   :  { %12338 = vmatprep.subr.mxu0 %v12954_v49 }
0x3d52   :  { %v8148_v17 = vmul.f32 1.442695, %v8145_v57 }
0x3d53   :  { %v8237_v26 = vpop.permute.xlu1 %8236 }
0x3d54   :  { %12796 = vpow2.f32 %v8148_v17  ;;  %12334 = vmatpush3.msra.mxu1 %v8237_v26 }
0x3d55   :  { %12343 = vmatprep.subr.mxu1 %v12954_v49 }
0x3d57   :  { %v8315_v16 = vpop.permute.xlu1 %8314 }
0x3d5b   :  { %v8393_v52 = vpop.permute.xlu1 %8392 }
0x3d5d   :  { %v12795_v13 = vpop.eup %12794 }
0x3d5e   :  { %v8150_v40 = vsel %vm310_vm6, %v12795_v13, 0.0 }
0x3d5f   :  { %8151 = vadd.xlane.f32.xlu0 %v8150_v40  ;;  %v8391_v34 = vpop.permute.xlu1 %8390 }
0x3d61   :  { %v12797_v59 = vpop.eup %12796 }
0x3d62   :  { %v8153_v15 = vsel %vm310_vm6, %v12797_v59, 0.0 }
0x3d63   :  { %8154 = vadd.xlane.f32.xlu0 %v8153_v15 }
0x3d79   :  { %8312 = vrot.lane.b32.xlu0 %v14212_v18, %s12963_s22 }
0x3de8   :  { %v8152_v47 = vpop.xlane.xlu0 %8151 }
0x3de9   :  { %12798 = vrcp.f32 %v8152_v47 }
0x3dec   :  { %v8155_v14 = vpop.xlane.xlu0 %8154 }
0x3ded   :  { %12800 = vrcp.f32 %v8155_v14 }
0x3df0   :  { %v8313_v32 = vpop.permute.xlu0 %8312 }
0x3df6   :  { %v12799_v56 = vpop.eup %12798 }
0x3df7   :  { %v8158_v37 = vmul.f32 %v12799_v56, %v12795_v13 }
0x3df9   :  { %12331 = vmatmul.mubr.msk.f32.vlgmr.msra.gmra.mxu0 %vm310_vm6, %v8158_v37 }
0x3dfa   :  { %v12801_v19 = vpop.eup %12800  ;;  %12339 = vmatpush3.xpose.msk.msra.mxu0 %vm310_vm6, %v8315_v16  ;;  %12340 = vmatprep.mubr.msk.f32.mxu0 %vm12955_vm5, %v12954_v49 }
0x3dfb   :  { %v8159_v4 = vmul.f32 %v12801_v19, %v12797_v59  ;;  %12348 = vmatprep.subr.mxu0 %v12954_v49 }
0x3dfd   :  { %12336 = vmatmul.mubr.msk.f32.vlgmr.msra.gmra.mxu1 %vm310_vm6, %v8159_v4  ;;  %12341 = vmatmul.mubr.msk.f32.vlgmr.msra.gmra.mxu0 %vm310_vm6, %v8313_v32 }
0x3dfe   :  { %12344 = vmatpush3.xpose.msk.msra.mxu1 %vm310_vm6, %v8393_v52  ;;  %12345 = vmatprep.mubr.msk.f32.mxu1 %vm12955_vm5, %v12954_v49 }
0x3dff   :  { %12353 = vmatprep.subr.mxu1 %v12954_v49  ;;  %12350 = vmatprep.mubr.msk.f32.mxu0 %vm12955_vm5, %v12954_v49 }
0x3e01   :  { %12346 = vmatmul.mubr.msk.f32.vlgmr.msra.gmra.mxu1 %vm310_vm6, %v8391_v34 }
0x3e02   :  { %12355 = vmatprep.mubr.msk.f32.mxu1 %vm12955_vm5, %v12954_v49 }
0x3eb9   :  { %v14310_v41 = vpop.f32.mrf.mxu0 }
0x3ebb   :  { %v12332_v42 = vpop.f32.mrf.mxu0 }
0x3ebd   :  { %v14312_v43 = vpop.f32.mrf.mxu1  ;;  %v8386_v44 = vpop.f32.mrf.mxu0 }
0x3ebe   :  { %v8468_v45 = vmul.f32 0.35355338, %v8386_v44 }
0x3ebf   :  { %v12337_v5 = vpop.f32.mrf.mxu1  ;;  %v12342_v46 = vpop.f32.mrf.mxu0 }
0x3ec0   :  { %v8470_v48 = vsel %vm4250_vm13, %v8468_v45, -1e+09 }
0x3ec1   :  { %v8464_v50 = vpop.f32.mrf.mxu1  ;;  %v8472_v51 = vsel %vm310_vm6, %v8470_v48, -inf }
0x3ec2   :  { %v8469_v35 = vmul.f32 0.35355338, %v8464_v50  ;;  %8473 = vmax.xlane.f32.xlu0 %v8472_v51 }
0x3ec3   :  { %v12347_v1 = vpop.f32.mrf.mxu1 }
0x3ec4   :  { %v8471_v54 = vsel %vm4251_vm14, %v8469_v35, -1e+09 }
0x3ec5   :  { %v8475_v30 = vsel %vm310_vm6, %v8471_v54, -inf }
0x3ec6   :  { %8476 = vmax.xlane.f32.xlu1 %v8475_v30 }
0x3ed7   :  { %8570 = vrot.lane.b32.xlu1 %v14210_v21, %s12964_s26 }
0x3ed8   :  { %8494 = vrot.lane.b32.xlu0 %v14212_v18, %s12964_s26 }
0x3edb   :  { %8648 = vrot.lane.b32.xlu1 %v14212_v18, %s12965_s1 }
0x3edf   :  { %8726 = vrot.lane.b32.xlu1 %v14210_v21, %s12965_s1 }
0x3ee3   :  { %8724 = vrot.lane.b32.xlu1 %v14210_v21, %s12966_s28 }
0x3f4b   :  { %v8474_v0 = vpop.xlane.xlu0 %8473 }
0x3f4c   :  { %v8478_v6 = vsub.f32 %v8470_v48, %v8474_v0 }
0x3f4e   :  { %v8480_v10 = vmul.f32 1.442695, %v8478_v6 }
0x3f4f   :  { %v8495_v60 = vpop.permute.xlu0 %8494  ;;  %v8477_v58 = vpop.xlane.xlu1 %8476 }
0x3f50   :  { %12802 = vpow2.f32 %v8480_v10  ;;  %v8479_v3 = vsub.f32 %v8471_v54, %v8477_v58  ;;  %12349 = vmatpush3.msra.mxu0 %v8495_v60  ;;  %v11363_v10 = vld [vmem:[%s14702_s3 + $0x30] sm:$0xff]  ;;  %v11362_v60 = vld [vmem:[%s14702_s3 + $0x28] sm:$0xff]  ;;  %v11361_v58 = vld [vmem:[%s14702_s3 + $0x20] sm:$0xff] }
0x3f51   :  { %12358 = vmatprep.subr.mxu0 %v12954_v49 }
0x3f52   :  { %v8482_v29 = vmul.f32 1.442695, %v8479_v3  ;;  %v11381_v3 = vld [vmem:[%s14704_s14 + $0x38] sm:$0xff] }
0x3f53   :  { %v8571_v11 = vpop.permute.xlu1 %8570 }
0x3f54   :  { %12804 = vpow2.f32 %v8482_v29  ;;  %12354 = vmatpush3.msra.mxu1 %v8571_v11 }
0x3f55   :  { %12363 = vmatprep.subr.mxu1 %v12954_v49 }
0x3f57   :  { %v8649_v20 = vpop.permute.xlu1 %8648 }
0x3f5b   :  { %v8727_v57 = vpop.permute.xlu1 %8726 }
0x3f5d   :  { %v12803_v55 = vpop.eup %12802 }
0x3f5e   :  { %v8484_v33 = vsel %vm310_vm6, %v12803_v55, 0.0 }
0x3f5f   :  { %8485 = vadd.xlane.f32.xlu0 %v8484_v33  ;;  %v8725_v13 = vpop.permute.xlu1 %8724 }
0x3f61   :  { %v12805_v28 = vpop.eup %12804 }
0x3f62   :  { %v8487_v12 = vsel %vm310_vm6, %v12805_v28, 0.0 }
0x3f63   :  { %8488 = vadd.xlane.f32.xlu0 %v8487_v12 }
0x3f79   :  { %8646 = vrot.lane.b32.xlu0 %v14212_v18, %s12966_s28 }
0x3fe8   :  { %v8486_v31 = vpop.xlane.xlu0 %8485 }
0x3fe9   :  { %12806 = vrcp.f32 %v8486_v31 }
0x3fec   :  { %v8489_v38 = vpop.xlane.xlu0 %8488 }
0x3fed   :  { %12808 = vrcp.f32 %v8489_v38 }
0x3ff0   :  { %v8647_v26 = vpop.permute.xlu0 %8646 }
0x3ff6   :  { %v12807_v7 = vpop.eup %12806 }
0x3ff7   :  { %v8492_v22 = vmul.f32 %v12807_v7, %v12803_v55 }
0x3ff9   :  { %12351 = vmatmul.mubr.msk.f32.vlgmr.msra.gmra.mxu0 %vm310_vm6, %v8492_v22 }
0x3ffa   :  { %v12809_v23 = vpop.eup %12808  ;;  %12359 = vmatpush3.xpose.msk.msra.mxu0 %vm310_vm6, %v8649_v20  ;;  %12360 = vmatprep.mubr.msk.f32.mxu0 %vm12955_vm5, %v12954_v49 }
0x3ffb   :  { %v8493_v17 = vmul.f32 %v12809_v23, %v12805_v28  ;;  %12368 = vmatprep.subr.mxu0 %v12954_v49 }
0x3ffd   :  { %12356 = vmatmul.mubr.msk.f32.vlgmr.msra.gmra.mxu1 %vm310_vm6, %v8493_v17  ;;  %12361 = vmatmul.mubr.msk.f32.vlgmr.msra.gmra.mxu0 %vm310_vm6, %v8647_v26 }
0x3ffe   :  { %12364 = vmatpush3.xpose.msk.msra.mxu1 %vm310_vm6, %v8727_v57  ;;  %12365 = vmatprep.mubr.msk.f32.mxu1 %vm12955_vm5, %v12954_v49 }
0x3fff   :  { %12373 = vmatprep.subr.mxu1 %v12954_v49  ;;  %12370 = vmatprep.mubr.msk.f32.mxu0 %vm12955_vm5, %v12954_v49 }
0x4001   :  { %12366 = vmatmul.mubr.msk.f32.vlgmr.msra.gmra.mxu1 %vm310_vm6, %v8725_v13 }
0x4002   :  { %12375 = vmatprep.mubr.msk.f32.mxu1 %vm12955_vm5, %v12954_v49 }
0x40b9   :  { %v8566_v40 = vpop.f32.mrf.mxu0 }
0x40bb   :  { %v12352_v59 = vpop.f32.mrf.mxu0 }
0x40bc   :  { %v11378_v59 = vld [vmem:[%s14704_s14 + $0x20] sm:$0xff] }
0x40bd   :  { %v8642_v15 = vpop.f32.mrf.mxu1  ;;  %v8720_v47 = vpop.f32.mrf.mxu0 }
0x40be   :  { %v8802_v14 = vmul.f32 0.35355338, %v8720_v47 }
0x40bf   :  { %v12357_v16 = vpop.f32.mrf.mxu1  ;;  %v12362_v56 = vpop.f32.mrf.mxu0 }
0x40c0   :  { %v8804_v37 = vsel %vm4250_vm13, %v8802_v14, -1e+09 }
0x40c1   :  { %v8798_v19 = vpop.f32.mrf.mxu1  ;;  %v8806_v52 = vsel %vm310_vm6, %v8804_v37, -inf }
0x40c2   :  { %v8803_v4 = vmul.f32 0.35355338, %v8798_v19  ;;  %8807 = vmax.xlane.f32.xlu0 %v8806_v52 }
0x40c3   :  { %v12367_v32 = vpop.f32.mrf.mxu1 }
0x40c4   :  { %v8805_v34 = vsel %vm4251_vm14, %v8803_v4, -1e+09 }
0x40c5   :  { %v8809_v42 = vsel %vm310_vm6, %v8805_v34, -inf }
0x40c6   :  { %8810 = vmax.xlane.f32.xlu1 %v8809_v42 }
0x40d7   :  { %8904 = vrot.lane.b32.xlu1 %v14210_v21, %s12967_s2 }
0x40db   :  { %8982 = vrot.lane.b32.xlu1 %v14310_v41, %s12968_s10 }
0x40df   :  { %8984 = vrot.lane.b32.xlu1 %v14312_v43, %s12968_s10 }
0x40e3   :  { %8992 = vrot.lane.b32.xlu1 %v8642_v15, %s12952_s16  ;;  %v11368_v15 = vld [vmem:[%s14703_s8 + $0x1] ss:$0 sm:$0xff] }
0x414b   :  { %v8808_v53 = vpop.xlane.xlu0 %8807 }
0x414c   :  { %v8812_v44 = vsub.f32 %v8804_v37, %v8808_v53 }
0x414e   :  { %v8814_v45 = vmul.f32 1.442695, %v8812_v44 }
0x414f   :  { %v8811_v5 = vpop.xlane.xlu1 %8810 }
0x4150   :  { %12810 = vpow2.f32 %v8814_v45  ;;  %v8813_v61 = vsub.f32 %v8805_v34, %v8811_v5 }
0x4152   :  { %v8816_v46 = vmul.f32 1.442695, %v8813_v61 }
0x4153   :  { %v8905_v48 = vpop.permute.xlu1 %8904 }
0x4154   :  { %12812 = vpow2.f32 %v8816_v46  ;;  %12374 = vmatpush3.msra.mxu1 %v8905_v48  ;;  %v11373_v46 = vld [vmem:[%s14706_s24 + $0x38] sm:$0xff]  ;;  %v11372_v48 = vld [vmem:[%s14706_s24 + $0x30] sm:$0xff] }
0x4155   :  { %12389 = vmatprep.subr.mxu1 %v11373_v46 }
0x4157   :  { %v8983_v28 = vpop.permute.xlu1 %8982 }
0x4158   :  { %v9004_v38 = vsel %vm310_vm6, %v14268_v63, %v8983_v28  ;;  %v11379_v63 = vld [vmem:[%s14704_s14 + $0x28] sm:$0xff] }
0x415b   :  { %v8985_v12 = vpop.permute.xlu1 %8984 }
0x415c   :  { %v9005_v57 = vsel %vm310_vm6, %v14270_v8, %v8985_v12 }
0x415d   :  { %v12811_v50 = vpop.eup %12810 }
0x415e   :  { %v8818_v21 = vsel %vm310_vm6, %v12811_v50, 0.0 }
0x415f   :  { %8819 = vadd.xlane.f32.xlu0 %v8818_v21  ;;  %v8993_v20 = vpop.permute.xlu1 %8992  ;;  %v11370_v21 = vld [vmem:[%s14706_s24 + $0x20] sm:$0xff] }
0x4160   :  { %v9007_v17 = vsel %vm1682_vm12, %v9005_v57, %v8993_v20 }
0x4161   :  { %v12813_v41 = vpop.eup %12812 }
0x4162   :  { %v8821_v51 = vsel %vm310_vm6, %v12813_v41, 0.0 }
0x4163   :  { %8822 = vadd.xlane.f32.xlu0 %v8821_v51 }
0x4179   :  { %8828 = vrot.lane.b32.xlu0 %v14212_v18, %s12967_s2  ;;  %v11364_v18 = vld [vmem:[%s14702_s3 + $0x38] sm:$0xff] }
0x417d   :  { %8990 = vrot.lane.b32.xlu0 %v8566_v40, %s12952_s16  ;;  %v11380_v40 = vld [vmem:[%s14704_s14 + $0x30] sm:$0xff] }
0x41e8   :  { %v8820_v43 = vpop.xlane.xlu0 %8819 }
0x41e9   :  { %12814 = vrcp.f32 %v8820_v43 }
0x41ec   :  { %v8823_v35 = vpop.xlane.xlu0 %8822 }
0x41ed   :  { %12816 = vrcp.f32 %v8823_v35 }
0x41f0   :  { %v8829_v1 = vpop.permute.xlu0 %8828 }
0x41f1   :  { %12369 = vmatpush3.msra.mxu0 %v8829_v1 }
0x41f2   :  { %12378 = vmatprep.subr.mxu0 %v11364_v18 }
0x41f4   :  { %v8991_v31 = vpop.permute.xlu0 %8990 }
0x41f5   :  { %v9006_v7 = vsel %vm1682_vm12, %v9004_v38, %v8991_v31 }
0x41f6   :  { %v12815_v54 = vpop.eup %12814 }
0x41f7   :  { %v8826_v30 = vmul.f32 %v12815_v54, %v12811_v50  ;;  %v11371_v50 = vld [vmem:[%s14706_s24 + $0x28] sm:$0xff] }
0x41f9   :  { %12371 = vmatmul.mubr.msk.f32.vlgmr.msra.gmra.mxu0 %vm310_vm6, %v8826_v30 }
0x41fa   :  { %v12817_v0 = vpop.eup %12816  ;;  %12379 = vmatpush3.msra.mxu0 %v11364_v18 }
0x41fb   :  { %v8827_v6 = vmul.f32 %v12817_v0, %v12813_v41  ;;  %12380 = vmatprep.subr.mxu0 %v11363_v10 }
0x41fc   :  { %12381 = vmatpush3.msra.mxu0 %v11363_v10 }
0x41fd   :  { %12376 = vmatmul.mubr.msk.f32.vlgmr.msra.gmra.mxu1 %vm310_vm6, %v8827_v6  ;;  %12382 = vmatprep.subr.mxu0 %v11362_v60 }
0x41fe   :  { %12383 = vmatpush3.msra.mxu0 %v11362_v60  ;;  %12390 = vmatpush3.msra.mxu1 %v11373_v46 }
0x41ff   :  { %12384 = vmatprep.subr.mxu0 %v11361_v58  ;;  %12391 = vmatprep.subr.mxu1 %v11372_v48 }
0x4200   :  { %12385 = vmatpush3.msra.mxu0 %v11361_v58  ;;  %12392 = vmatpush3.msra.mxu1 %v11372_v48 }
0x4201   :  { %12400 = vmatprep.subr.mxu0 %v11381_v3  ;;  %12393 = vmatprep.subr.mxu1 %v11371_v50 }
0x4202   :  { %12394 = vmatpush3.msra.mxu1 %v11371_v50 }
0x4203   :  { %12395 = vmatprep.subr.mxu1 %v11370_v21 }
0x4204   :  { %12396 = vmatpush3.msra.mxu1 %v11370_v21 }
0x4205   :  { %12411 = vmatprep.subr.mxu1 %v12954_v49 }
0x42b9   :  { %v8900_v29 = vpop.f32.mrf.mxu0 }
0x42ba   :  { %8998 = vrot.lane.b32.xlu0 %v8900_v29, %s14714_s5 }
0x42bb   :  { %v12372_v11 = vpop.f32.mrf.mxu0 }
0x42bd   :  { %v8976_v55 = vpop.f32.mrf.mxu1 }
0x42be   :  { %9000 = vrot.lane.b32.xlu1 %v8976_v55, %s14714_s5  ;;  %v11369_v55 = vld [vmem:[%s13128_s12 + $0x2] sm:$0x3] }
0x42bf   :  { %v12377_v33 = vpop.f32.mrf.mxu1  ;;  %v9159_v28 = vrot.slane %v11369_v55, %v13169_v39 }
0x42c0   :  { %v9151_v33 = vrot.slane %v11369_v55, %v13165_v36 }
0x432c   :  { %v8999_v22 = vpop.permute.xlu0 %8998 }
0x432d   :  { %v9008_v23 = vsel %vm1685_vm11, %v9006_v7, %v8999_v22 }
0x432e   :  { %12386 = vmatprep.mubr.msk.f32.mxu0 %vm160_vm0, %v9008_v23 }
0x4330   :  { %v9001_v26 = vpop.permute.xlu1 %9000 }
0x4331   :  { %v9009_v13 = vsel %vm1685_vm11, %v9007_v17, %v9001_v26 }
0x4332   :  { %12387 = vmatmul.mubr.msk.f32.vlgmr.msra.gmra.mxu0 %vm160_vm0, %v9009_v13 }
0x4333   :  { %12401 = vmatpush3.msra.mxu0 %v11381_v3  ;;  %12408 = vmatprep.mubr.msk.f32.mxu0 %vm160_vm0, %v13941_v62 }
0x4334   :  { %12402 = vmatprep.subr.mxu0 %v11380_v40 }
0x4335   :  { %12403 = vmatpush3.msra.mxu0 %v11380_v40  ;;  %v11375_v40 = vld [vmem:[%s14708_s6 + $0x1] ss:$0 sm:$0xff] }
0x4336   :  { %12404 = vmatprep.subr.mxu0 %v11379_v63 }
0x4337   :  { %12405 = vmatpush3.msra.mxu0 %v11379_v63 }
0x4338   :  { %12406 = vmatprep.subr.mxu0 %v11378_v59 }
0x4339   :  { %12407 = vmatpush3.msra.mxu0 %v11378_v59 }
0x433a   :  { %12409 = vmatmul.mubr.msk.f32.vlgmr.msra.gmra.mxu0 %vm160_vm0, %v13944_v24  ;;  %12421 = vmatprep.subr.mxu0 %v12954_v49  ;;  %v14409_v24 = vld [vmem:[%s14707_s30 + $0x1] ss:$0 sm:$0xff] }
0x433b   :  { %12423 = vmatprep.mubr.msk.f32.mxu0 %vm12955_vm5, %v12954_v49 }
0x43f2   :  { %v12388_v8 = vpop.f32.mrf.mxu0 }
0x43f3   :  { %v9097_v62 = vadd.f32 %v12388_v8, %v14184_v25 }
0x43f4   :  { %v9087_v47 = vpop.f32.mrf.mxu0 }
0x43f5   :  { %v14401_v14 = vadd.f32 %v11368_v15, %v9097_v62  ;;  %v9096_v16 = vadd.f32 %v9087_v47, %v14187_v27 }
0x43f7   :  { %v14404_v56 = vadd.f32 %v11368_v15, %v9096_v16  ;;  %v9113_v37 = vsel %vm160_vm0, %v14401_v14, 0.0 }
0x43f8   :  { %9114 = vadd.xlane.f32.xlu1 %v9113_v37 }
0x43f9   :  { %v9110_v19 = vsel %vm160_vm0, %v14404_v56, 0.0 }
0x43fa   :  { %v12410_v52 = vpop.f32.mrf.mxu0  ;;  %9111 = vadd.xlane.f32.xlu0 %v9110_v19 }
0x43fb   :  { %v14414_v25 = vadd.f32 %v12410_v52, %v14409_v24 }
0x43fc   :  { %v9335_v23 = vpop.f32.mrf.mxu0 }
0x43fd   :  { %v14430_v26 = vadd.f32 %v14409_v24, %v9335_v23 }
0x4481   :  { %v9115_v4 = vpop.xlane.xlu1 %9114 }
0x4482   :  { %v9117_v27 = vmul.f32 0.03125, %v9115_v4 }
0x4483   :  { %v9112_v32 = vpop.xlane.xlu0 %9111 }
0x4484   :  { %v9116_v34 = vmul.f32 0.03125, %v9112_v32  ;;  %v9119_v42 = vsub.f32 %v14401_v14, %v9117_v27 }
0x4486   :  { %v9118_v53 = vsub.f32 %v14404_v56, %v9116_v34  ;;  %v9121_v5 = vmul.f32 %v9119_v42, %v9119_v42  ;;  %v9153_v20 = vmul.f32 %v9151_v33, %v9119_v42 }
0x4488   :  { %v9120_v44 = vmul.f32 %v9118_v53, %v9118_v53  ;;  %v9125_v61 = vsel %vm160_vm0, %v9121_v5, 0.0  ;;  %v9152_v12 = vmul.f32 %v9151_v33, %v9118_v53 }
0x448a   :  { %v9122_v45 = vsel %vm160_vm0, %v9120_v44, 0.0 }
0x448b   :  { %9123 = vadd.xlane.f32.xlu0 %v9122_v45 }
0x448f   :  { %9126 = vadd.xlane.f32.xlu0 %v9125_v61 }
0x4514   :  { %v9124_v41 = vpop.xlane.xlu0 %9123 }
0x4515   :  { %v9128_v51 = vmul.f32 0.032258064, %v9124_v41 }
0x4517   :  { %12818 = vrsqrt.f32 %v9128_v51  ;;  %vm9132_vm13 = vcmp.eq.f32.partialorder %v9128_v51, inf  ;;  %v9135_v30 = vand.u32 2147483648, %v9128_v51  ;;  %vm9134_vm14 = vcmp.eq.f32.partialorder %v9128_v51, 0.0 }
0x4518   :  { %v9127_v43 = vpop.xlane.xlu0 %9126 }
0x4519   :  { %v9129_v35 = vmul.f32 0.032258064, %v9127_v43 }
0x451b   :  { %12820 = vrsqrt.f32 %v9129_v35  ;;  %vm9139_vm7 = vcmp.eq.f32.partialorder %v9129_v35, inf  ;;  %v9142_v58 = vand.u32 2147483648, %v9129_v35  ;;  %vm9141_vm8 = vcmp.eq.f32.partialorder %v9129_v35, 0.0 }
0x4524   :  { %v12819_v1 = vpop.eup %12818 }
0x4525   :  { %v9131_v54 = vmul.f32 %v12819_v1, %v9128_v51 }
0x4527   :  { %v9133_v0 = vsel %vm9132_vm13, %v9128_v51, %v9131_v54 }
0x4528   :  { %v12821_v6 = vpop.eup %12820  ;;  %v9136_v18 = vsel %vm9134_vm14, %v9135_v30, %v9133_v0 }
0x4529   :  { %v9144_v10 = vadd.f32 1e-06, %v9136_v18  ;;  %v9138_v60 = vmul.f32 %v12821_v6, %v9129_v35 }
0x452b   :  { %12822 = vrcp.f32 %v9144_v10  ;;  %v9140_v3 = vsel %vm9139_vm7, %v9129_v35, %v9138_v60 }
0x452c   :  { %v9143_v29 = vsel %vm9141_vm8, %v9142_v58, %v9140_v3 }
0x452d   :  { %v9145_v11 = vadd.f32 1e-06, %v9143_v29 }
0x452f   :  { %12824 = vrcp.f32 %v9145_v11 }
0x4538   :  { %v12823_v31 = vpop.eup %12822 }
0x4539   :  { %v9154_v38 = vmul.f32 %v12823_v31, %v9152_v12 }
0x453b   :  { %v9160_v7 = vadd.f32 %v9159_v28, %v9154_v38 }
0x453c   :  { %v12825_v22 = vpop.eup %12824 }
0x453d   :  { %12397 = vmatprep.mubr.msk.f32.mxu1 %vm160_vm0, %v9160_v7  ;;  %v9155_v57 = vmul.f32 %v12825_v22, %v9153_v20 }
0x453f   :  { %v9161_v17 = vadd.f32 %v9159_v28, %v9155_v57 }
0x4541   :  { %12398 = vmatmul.mubr.msk.f32.vlgmr.msra.gmra.mxu1 %vm160_vm0, %v9161_v17 }
0x4542   :  { %12412 = vmatpush3.xpose.msk.msra.mxu1 %vm310_vm6, %v14430_v26  ;;  %12413 = vmatprep.mubr.msk.f32.mxu1 %vm12955_vm5, %v12954_v49 }
0x4543   :  { %12416 = vmatprep.subr.mxu1 %v12954_v49 }
0x4601   :  { %v12399_v13 = vpop.f32.mrf.mxu1 }
0x4602   :  { %v14447_v8 = vadd.f32 %v12399_v13, %v11375_v40 }
0x4603   :  { %v9247_v63 = vpop.f32.mrf.mxu1 }
0x4604   :  { %v14439_v59 = vadd.f32 %v11375_v40, %v9247_v63 }
0x4606   :  { %12414 = vmatmul.mubr.msk.f32.vlgmr.msra.gmra.mxu1 %vm310_vm6, %v14439_v59 }
0x4607   :  { %12417 = vmatpush3.xpose.msk.msra.mxu1 %vm310_vm6, %v14414_v25  ;;  %12418 = vmatprep.mubr.msk.f32.mxu1 %vm12955_vm5, %v12954_v49 }
0x4608   :  { %12426 = vmatprep.subr.mxu1 %v12954_v49 }
0x460a   :  { %12419 = vmatmul.mubr.msk.f32.vlgmr.msra.gmra.mxu1 %vm310_vm6, %v14447_v8 }
0x460b   :  { %12428 = vmatprep.mubr.msk.f32.mxu1 %vm12955_vm5, %v12954_v49 }
0x46c6   :  { %v9416_v15 = vpop.f32.mrf.mxu1 }
0x46c7   :  { %v9496_v62 = vmul.f32 0.35355338, %v9416_v15 }
0x46c8   :  { %v12415_v47 = vpop.f32.mrf.mxu1 }
0x46c9   :  { %v9498_v16 = vsel %vm13204_vm9, %v9496_v62, -1e+09 }
0x46ca   :  { %v9492_v37 = vpop.f32.mrf.mxu1  ;;  %v9500_v24 = vsel %vm310_vm6, %v9498_v16, -inf }
0x46cb   :  { %v9497_v19 = vmul.f32 0.35355338, %v9492_v37  ;;  %9501 = vmax.xlane.f32.xlu0 %v9500_v24 }
0x46cc   :  { %v12420_v52 = vpop.f32.mrf.mxu1 }
0x46cd   :  { %v9499_v4 = vsel %vm13212_vm10, %v9497_v19, -1e+09 }
0x46ce   :  { %v9503_v27 = vsel %vm310_vm6, %v9499_v4, -inf }
0x46cf   :  { %9504 = vmax.xlane.f32.xlu1 %v9503_v27 }
0x46e0   :  { %9598 = vrot.lane.b32.xlu1 %v14414_v25, %s12956_s0 }
0x46e4   :  { %9676 = vrot.lane.b32.xlu1 %v14430_v26, %s12960_s27 }
0x46e8   :  { %9754 = vrot.lane.b32.xlu1 %v14414_v25, %s12960_s27 }
0x4754   :  { %v9502_v32 = vpop.xlane.xlu0 %9501 }
0x4755   :  { %v9506_v34 = vsub.f32 %v9498_v16, %v9502_v32 }
0x4757   :  { %v9508_v42 = vmul.f32 1.442695, %v9506_v34 }
0x4758   :  { %v9505_v53 = vpop.xlane.xlu1 %9504 }
0x4759   :  { %12826 = vpow2.f32 %v9508_v42  ;;  %v9507_v44 = vsub.f32 %v9499_v4, %v9505_v53 }
0x475b   :  { %v9510_v45 = vmul.f32 1.442695, %v9507_v44 }
0x475c   :  { %v9599_v5 = vpop.permute.xlu1 %9598 }
0x475d   :  { %12828 = vpow2.f32 %v9510_v45  ;;  %12427 = vmatpush3.msra.mxu1 %v9599_v5 }
0x475e   :  { %12436 = vmatprep.subr.mxu1 %v12954_v49 }
0x4760   :  { %v9677_v21 = vpop.permute.xlu1 %9676 }
0x4764   :  { %v9755_v41 = vpop.permute.xlu1 %9754 }
0x4766   :  { %v12827_v61 = vpop.eup %12826 }
0x4767   :  { %v9512_v46 = vsel %vm310_vm6, %v12827_v61, 0.0 }
0x4768   :  { %9513 = vadd.xlane.f32.xlu0 %v9512_v46 }
0x476a   :  { %v12829_v48 = vpop.eup %12828 }
0x476b   :  { %v9515_v50 = vsel %vm310_vm6, %v12829_v48, 0.0 }
0x476c   :  { %9516 = vadd.xlane.f32.xlu1 %v9515_v50 }
0x477d   :  { %9752 = vrot.lane.b32.xlu1 %v14447_v8, %s12960_s27 }
0x477e   :  { %9522 = vrot.lane.b32.xlu0 %v14430_v26, %s12956_s0 }
0x4782   :  { %9674 = vrot.lane.b32.xlu0 %v14439_v59, %s12960_s27 }
0x47f1   :  { %v9514_v51 = vpop.xlane.xlu0 %9513 }
0x47f2   :  { %12830 = vrcp.f32 %v9514_v51 }
0x47f5   :  { %v9523_v43 = vpop.permute.xlu0 %9522  ;;  %v9517_v35 = vpop.xlane.xlu1 %9516 }
0x47f6   :  { %12832 = vrcp.f32 %v9517_v35  ;;  %12422 = vmatpush3.msra.mxu0 %v9523_v43 }
0x47f7   :  { %12431 = vmatprep.subr.mxu0 %v12954_v49 }
0x47f9   :  { %v9675_v6 = vpop.permute.xlu0 %9674  ;;  %v9753_v18 = vpop.permute.xlu1 %9752 }
0x47ff   :  { %v12831_v1 = vpop.eup %12830 }
0x4800   :  { %v9520_v54 = vmul.f32 %v12831_v1, %v12827_v61 }
0x4802   :  { %12424 = vmatmul.mubr.msk.f32.vlgmr.msra.gmra.mxu0 %vm310_vm6, %v9520_v54 }
0x4803   :  { %v12833_v30 = vpop.eup %12832  ;;  %12432 = vmatpush3.xpose.msk.msra.mxu0 %vm310_vm6, %v9677_v21  ;;  %12433 = vmatprep.mubr.msk.f32.mxu0 %vm12955_vm5, %v12954_v49 }
0x4804   :  { %v9521_v0 = vmul.f32 %v12833_v30, %v12829_v48  ;;  %12441 = vmatprep.subr.mxu0 %v12954_v49 }
0x4806   :  { %12429 = vmatmul.mubr.msk.f32.vlgmr.msra.gmra.mxu1 %vm310_vm6, %v9521_v0  ;;  %12434 = vmatmul.mubr.msk.f32.vlgmr.msra.gmra.mxu0 %vm310_vm6, %v9675_v6 }
0x4807   :  { %12437 = vmatpush3.xpose.msk.msra.mxu1 %vm310_vm6, %v9755_v41  ;;  %12438 = vmatprep.mubr.msk.f32.mxu1 %vm12955_vm5, %v12954_v49 }
0x4808   :  { %12446 = vmatprep.subr.mxu1 %v12954_v49  ;;  %12443 = vmatprep.mubr.msk.f32.mxu0 %vm12955_vm5, %v12954_v49 }
0x480a   :  { %12439 = vmatmul.mubr.msk.f32.vlgmr.msra.gmra.mxu1 %vm310_vm6, %v9753_v18 }
0x480b   :  { %12448 = vmatprep.mubr.msk.f32.mxu1 %vm12955_vm5, %v12954_v49 }
0x48c2   :  { %v14492_v10 = vpop.f32.mrf.mxu0 }
0x48c4   :  { %v12425_v60 = vpop.f32.mrf.mxu0 }
0x48c6   :  { %v14494_v58 = vpop.f32.mrf.mxu1  ;;  %v9748_v3 = vpop.f32.mrf.mxu0 }
0x48c7   :  { %v9830_v29 = vmul.f32 0.35355338, %v9748_v3 }
0x48c8   :  { %v12430_v11 = vpop.f32.mrf.mxu1  ;;  %v12435_v55 = vpop.f32.mrf.mxu0 }
0x48c9   :  { %v9832_v33 = vsel %vm13204_vm9, %v9830_v29, -1e+09 }
0x48ca   :  { %v9826_v28 = vpop.f32.mrf.mxu1  ;;  %v9834_v12 = vsel %vm310_vm6, %v9832_v33, -inf }
0x48cb   :  { %v9831_v31 = vmul.f32 0.35355338, %v9826_v28  ;;  %9835 = vmax.xlane.f32.xlu0 %v9834_v12 }
0x48cc   :  { %v12440_v38 = vpop.f32.mrf.mxu1 }
0x48cd   :  { %v9833_v20 = vsel %vm13212_vm10, %v9831_v31, -1e+09 }
0x48ce   :  { %v9837_v7 = vsel %vm310_vm6, %v9833_v20, -inf }
0x48cf   :  { %9838 = vmax.xlane.f32.xlu1 %v9837_v7 }
0x48e0   :  { %9932 = vrot.lane.b32.xlu1 %v14414_v25, %s12959_s13 }
0x48e1   :  { %9856 = vrot.lane.b32.xlu0 %v14430_v26, %s12959_s13 }
0x48e4   :  { %10010 = vrot.lane.b32.xlu1 %v14430_v26, %s12963_s22 }
0x48e8   :  { %10088 = vrot.lane.b32.xlu1 %v14414_v25, %s12963_s22 }
0x48ec   :  { %10086 = vrot.lane.b32.xlu1 %v14447_v8, %s12963_s22 }
0x4954   :  { %v9836_v22 = vpop.xlane.xlu0 %9835 }
0x4955   :  { %v9840_v23 = vsub.f32 %v9832_v33, %v9836_v22 }
0x4957   :  { %v9842_v57 = vmul.f32 1.442695, %v9840_v23 }
0x4958   :  { %v9857_v17 = vpop.permute.xlu0 %9856  ;;  %v9839_v13 = vpop.xlane.xlu1 %9838 }
0x4959   :  { %12834 = vpow2.f32 %v9842_v57  ;;  %v9841_v40 = vsub.f32 %v9833_v20, %v9839_v13  ;;  %12442 = vmatpush3.msra.mxu0 %v9857_v17 }
0x495a   :  { %12451 = vmatprep.subr.mxu0 %v12954_v49 }
0x495b   :  { %v9844_v63 = vmul.f32 1.442695, %v9841_v40 }
0x495c   :  { %v9933_v15 = vpop.permute.xlu1 %9932 }
0x495d   :  { %12836 = vpow2.f32 %v9844_v63  ;;  %12447 = vmatpush3.msra.mxu1 %v9933_v15 }
0x495e   :  { %12456 = vmatprep.subr.mxu1 %v12954_v49 }
0x4960   :  { %v10011_v52 = vpop.permute.xlu1 %10010 }
0x4964   :  { %v10089_v34 = vpop.permute.xlu1 %10088 }
0x4966   :  { %v12835_v62 = vpop.eup %12834 }
0x4967   :  { %v9846_v47 = vsel %vm310_vm6, %v12835_v62, 0.0 }
0x4968   :  { %9847 = vadd.xlane.f32.xlu0 %v9846_v47  ;;  %v10087_v44 = vpop.permute.xlu1 %10086 }
0x496a   :  { %v12837_v16 = vpop.eup %12836 }
0x496b   :  { %v9849_v37 = vsel %vm310_vm6, %v12837_v16, 0.0 }
0x496c   :  { %9850 = vadd.xlane.f32.xlu0 %v9849_v37 }
0x4982   :  { %10008 = vrot.lane.b32.xlu0 %v14439_v59, %s12963_s22 }
0x49f1   :  { %v9848_v24 = vpop.xlane.xlu0 %9847 }
0x49f2   :  { %12838 = vrcp.f32 %v9848_v24 }
0x49f5   :  { %v9851_v19 = vpop.xlane.xlu0 %9850 }
0x49f6   :  { %12840 = vrcp.f32 %v9851_v19 }
0x49f9   :  { %v10009_v53 = vpop.permute.xlu0 %10008 }
0x49ff   :  { %v12839_v4 = vpop.eup %12838 }
0x4a00   :  { %v9854_v27 = vmul.f32 %v12839_v4, %v12835_v62 }
0x4a02   :  { %12444 = vmatmul.mubr.msk.f32.vlgmr.msra.gmra.mxu0 %vm310_vm6, %v9854_v27 }
0x4a03   :  { %v12841_v32 = vpop.eup %12840  ;;  %12452 = vmatpush3.xpose.msk.msra.mxu0 %vm310_vm6, %v10011_v52  ;;  %12453 = vmatprep.mubr.msk.f32.mxu0 %vm12955_vm5, %v12954_v49 }
0x4a04   :  { %v9855_v42 = vmul.f32 %v12841_v32, %v12837_v16  ;;  %12461 = vmatprep.subr.mxu0 %v12954_v49 }
0x4a06   :  { %12449 = vmatmul.mubr.msk.f32.vlgmr.msra.gmra.mxu1 %vm310_vm6, %v9855_v42  ;;  %12454 = vmatmul.mubr.msk.f32.vlgmr.msra.gmra.mxu0 %vm310_vm6, %v10009_v53 }
0x4a07   :  { %12457 = vmatpush3.xpose.msk.msra.mxu1 %vm310_vm6, %v10089_v34  ;;  %12458 = vmatprep.mubr.msk.f32.mxu1 %vm12955_vm5, %v12954_v49 }
0x4a08   :  { %12466 = vmatprep.subr.mxu1 %v12954_v49  ;;  %12463 = vmatprep.mubr.msk.f32.mxu0 %vm12955_vm5, %v12954_v49 }
0x4a0a   :  { %12459 = vmatmul.mubr.msk.f32.vlgmr.msra.gmra.mxu1 %vm310_vm6, %v10087_v44 }
0x4a0b   :  { %12468 = vmatprep.mubr.msk.f32.mxu1 %vm12955_vm5, %v12954_v49 }
0x4ac2   :  { %v14534_v45 = vpop.f32.mrf.mxu0 }
0x4ac4   :  { %v12445_v5 = vpop.f32.mrf.mxu0 }
0x4ac6   :  { %v14536_v61 = vpop.f32.mrf.mxu1  ;;  %v10082_v46 = vpop.f32.mrf.mxu0 }
0x4ac7   :  { %v10164_v48 = vmul.f32 0.35355338, %v10082_v46 }
0x4ac8   :  { %v12450_v50 = vpop.f32.mrf.mxu1  ;;  %v12455_v21 = vpop.f32.mrf.mxu0 }
0x4ac9   :  { %v10166_v41 = vsel %vm13204_vm9, %v10164_v48, -1e+09 }
0x4aca   :  { %v10160_v51 = vpop.f32.mrf.mxu1  ;;  %v10168_v43 = vsel %vm310_vm6, %v10166_v41, -inf }
0x4acb   :  { %v10165_v35 = vmul.f32 0.35355338, %v10160_v51  ;;  %10169 = vmax.xlane.f32.xlu0 %v10168_v43 }
0x4acc   :  { %v12460_v1 = vpop.f32.mrf.mxu1 }
0x4acd   :  { %v10167_v54 = vsel %vm13212_vm10, %v10165_v35, -1e+09  ;;  %v11413_v1 = vld [vmem:[%s14709_s11 + $0x38] sm:$0xff] }
0x4ace   :  { %v10171_v30 = vsel %vm310_vm6, %v10167_v54, -inf }
0x4acf   :  { %10172 = vmax.xlane.f32.xlu1 %v10171_v30  ;;  %v11410_v30 = vld [vmem:[%s14709_s11 + $0x20] sm:$0xff] }
0x4ae0   :  { %10266 = vrot.lane.b32.xlu1 %v14414_v25, %s12962_s23 }
0x4ae1   :  { %10190 = vrot.lane.b32.xlu0 %v14430_v26, %s12962_s23 }
0x4ae4   :  { %10344 = vrot.lane.b32.xlu1 %v14430_v26, %s12966_s28 }
0x4ae8   :  { %10422 = vrot.lane.b32.xlu1 %v14414_v25, %s12966_s28 }
0x4aec   :  { %10420 = vrot.lane.b32.xlu1 %v14447_v8, %s12966_s28 }
0x4b54   :  { %v10170_v0 = vpop.xlane.xlu0 %10169 }
0x4b55   :  { %v10174_v6 = vsub.f32 %v10166_v41, %v10170_v0 }
0x4b57   :  { %v10176_v18 = vmul.f32 1.442695, %v10174_v6 }
0x4b58   :  { %v10191_v60 = vpop.permute.xlu0 %10190  ;;  %v10173_v3 = vpop.xlane.xlu1 %10172 }
0x4b59   :  { %12842 = vpow2.f32 %v10176_v18  ;;  %v10175_v29 = vsub.f32 %v10167_v54, %v10173_v3  ;;  %12462 = vmatpush3.msra.mxu0 %v10191_v60  ;;  %v11411_v54 = vld [vmem:[%s14709_s11 + $0x28] sm:$0xff] }
0x4b5a   :  { %12471 = vmatprep.subr.mxu0 %v12954_v49 }
0x4b5b   :  { %v10178_v11 = vmul.f32 1.442695, %v10175_v29 }
0x4b5c   :  { %v10267_v55 = vpop.permute.xlu1 %10266 }
0x4b5d   :  { %12844 = vpow2.f32 %v10178_v11  ;;  %12467 = vmatpush3.msra.mxu1 %v10267_v55 }
0x4b5e   :  { %12476 = vmatprep.subr.mxu1 %v12954_v49 }
0x4b60   :  { %v10345_v20 = vpop.permute.xlu1 %10344 }
0x4b64   :  { %v10423_v57 = vpop.permute.xlu1 %10422 }
0x4b66   :  { %v12843_v33 = vpop.eup %12842 }
0x4b67   :  { %v10180_v28 = vsel %vm310_vm6, %v12843_v33, 0.0 }
0x4b68   :  { %10181 = vadd.xlane.f32.xlu0 %v10180_v28  ;;  %v10421_v13 = vpop.permute.xlu1 %10420 }
0x4b6a   :  { %v12845_v8 = vpop.eup %12844 }
0x4b6b   :  { %v10183_v12 = vsel %vm310_vm6, %v12845_v8, 0.0 }
0x4b6c   :  { %10184 = vadd.xlane.f32.xlu0 %v10183_v12 }
0x4b82   :  { %10342 = vrot.lane.b32.xlu0 %v14439_v59, %s12966_s28 }
0x4bf1   :  { %v10182_v31 = vpop.xlane.xlu0 %10181 }
0x4bf2   :  { %12846 = vrcp.f32 %v10182_v31 }
0x4bf5   :  { %v10185_v38 = vpop.xlane.xlu0 %10184 }
0x4bf6   :  { %12848 = vrcp.f32 %v10185_v38 }
0x4bf9   :  { %v10343_v59 = vpop.permute.xlu0 %10342 }
0x4bff   :  { %v12847_v7 = vpop.eup %12846 }
0x4c00   :  { %v10188_v22 = vmul.f32 %v12847_v7, %v12843_v33 }
0x4c02   :  { %12464 = vmatmul.mubr.msk.f32.vlgmr.msra.gmra.mxu0 %vm310_vm6, %v10188_v22 }
0x4c03   :  { %v12849_v23 = vpop.eup %12848  ;;  %12472 = vmatpush3.xpose.msk.msra.mxu0 %vm310_vm6, %v10345_v20  ;;  %12473 = vmatprep.mubr.msk.f32.mxu0 %vm12955_vm5, %v12954_v49 }
0x4c04   :  { %v10189_v17 = vmul.f32 %v12849_v23, %v12845_v8  ;;  %12481 = vmatprep.subr.mxu0 %v12954_v49 }
0x4c06   :  { %12469 = vmatmul.mubr.msk.f32.vlgmr.msra.gmra.mxu1 %vm310_vm6, %v10189_v17  ;;  %12474 = vmatmul.mubr.msk.f32.vlgmr.msra.gmra.mxu0 %vm310_vm6, %v10343_v59 }
0x4c07   :  { %12477 = vmatpush3.xpose.msk.msra.mxu1 %vm310_vm6, %v10423_v57  ;;  %12478 = vmatprep.mubr.msk.f32.mxu1 %vm12955_vm5, %v12954_v49 }
0x4c08   :  { %12486 = vmatprep.subr.mxu1 %v12954_v49  ;;  %12483 = vmatprep.mubr.msk.f32.mxu0 %vm12955_vm5, %v12954_v49 }
0x4c0a   :  { %12479 = vmatmul.mubr.msk.f32.vlgmr.msra.gmra.mxu1 %vm310_vm6, %v10421_v13 }
0x4c0b   :  { %12488 = vmatprep.mubr.msk.f32.mxu1 %vm12955_vm5, %v12954_v49 }
0x4cc2   :  { %v10262_v40 = vpop.f32.mrf.mxu0 }
0x4cc4   :  { %v12465_v63 = vpop.f32.mrf.mxu0 }
0x4cc6   :  { %v10338_v15 = vpop.f32.mrf.mxu1  ;;  %v10416_v62 = vpop.f32.mrf.mxu0 }
0x4cc7   :  { %v10498_v47 = vmul.f32 0.35355338, %v10416_v62 }
0x4cc8   :  { %v12470_v16 = vpop.f32.mrf.mxu1  ;;  %v12475_v37 = vpop.f32.mrf.mxu0 }
0x4cc9   :  { %v10500_v24 = vsel %vm13204_vm9, %v10498_v47, -1e+09 }
0x4cca   :  { %v10494_v19 = vpop.f32.mrf.mxu1  ;;  %v10502_v52 = vsel %vm310_vm6, %v10500_v24, -inf }
0x4ccb   :  { %v10499_v4 = vmul.f32 0.35355338, %v10494_v19  ;;  %10503 = vmax.xlane.f32.xlu0 %v10502_v52  ;;  %v11422_v52 = vld [vmem:[%s14711_s29 + $0x38] sm:$0xff] }
0x4ccc   :  { %v12480_v27 = vpop.f32.mrf.mxu1 }
0x4ccd   :  { %v10501_v32 = vsel %vm13212_vm10, %v10499_v4, -1e+09  ;;  %v11421_v4 = vld [vmem:[%s14711_s29 + $0x30] sm:$0xff]  ;;  %v11420_v27 = vld [vmem:[%s14711_s29 + $0x28] sm:$0xff] }
0x4cce   :  { %v10505_v49 = vsel %vm310_vm6, %v10501_v32, -inf }
0x4ccf   :  { %10506 = vmax.xlane.f32.xlu1 %v10505_v49  ;;  %v11434_v49 = vld [vmem:[%s14712_s19 + $0x78] sm:$0xff] }
0x4ce0   :  { %10600 = vrot.lane.b32.xlu1 %v14414_v25, %s12965_s1 }
0x4ce4   :  { %10678 = vrot.lane.b32.xlu1 %v14534_v45, %s12968_s10 }
0x4ce8   :  { %10680 = vrot.lane.b32.xlu1 %v14536_v61, %s12968_s10 }
0x4cec   :  { %10688 = vrot.lane.b32.xlu1 %v10338_v15, %s12952_s16 }
0x4d54   :  { %v10504_v2 = vpop.xlane.xlu0 %10503 }
0x4d55   :  { %v10508_v34 = vsub.f32 %v10500_v24, %v10504_v2  ;;  %v11433_v2 = vld [vmem:[%s14712_s19 + $0x70] sm:$0xff] }
0x4d57   :  { %v10510_v42 = vmul.f32 1.442695, %v10508_v34  ;;  %v11432_v34 = vld [vmem:[%s14712_s19 + $0x68] sm:$0xff] }
0x4d58   :  { %v10507_v53 = vpop.xlane.xlu1 %10506 }
0x4d59   :  { %12850 = vpow2.f32 %v10510_v42  ;;  %v10509_v9 = vsub.f32 %v10501_v32, %v10507_v53  ;;  %v11419_v32 = vld [vmem:[%s14711_s29 + $0x20] sm:$0xff] }
0x4d5a   :  { %v11431_v42 = vld [vmem:[%s14712_s19 + $0x60] sm:$0xff] }
0x4d5b   :  { %v10512_v44 = vmul.f32 1.442695, %v10509_v9 }
0x4d5c   :  { %v10601_v5 = vpop.permute.xlu1 %10600 }
0x4d5d   :  { %12852 = vpow2.f32 %v10512_v44  ;;  %12487 = vmatpush3.msra.mxu1 %v10601_v5 }
0x4d5e   :  { %12502 = vmatprep.subr.mxu1 %v11422_v52 }
0x4d60   :  { %v10679_v3 = vpop.permute.xlu1 %10678 }
0x4d61   :  { %v10700_v55 = vsel %vm310_vm6, %v14492_v10, %v10679_v3  ;;  %v11417_v10 = vld [vmem:[%s14710_s15 + $0x1] ss:$0 sm:$0xff] }
0x4d64   :  { %v10681_v29 = vpop.permute.xlu1 %10680 }
0x4d65   :  { %v10701_v31 = vsel %vm310_vm6, %v14494_v58, %v10681_v29 }
0x4d66   :  { %v12851_v46 = vpop.eup %12850 }
0x4d67   :  { %v10514_v25 = vsel %vm310_vm6, %v12851_v46, 0.0 }
0x4d68   :  { %10515 = vadd.xlane.f32.xlu0 %v10514_v25  ;;  %v10689_v33 = vpop.permute.xlu1 %10688 }
0x4d69   :  { %v10703_v38 = vsel %vm1682_vm12, %v10701_v31, %v10689_v33  ;;  %v11430_v33 = vld [vmem:[%s14712_s19 + $0x58] sm:$0xff]  ;;  %v11424_v31 = vld [vmem:[%s14713_s7 + $0x1] ss:$0 sm:$0xff] }
0x4d6a   :  { %v12853_v45 = vpop.eup %12852 }
0x4d6b   :  { %v10517_v48 = vsel %vm310_vm6, %v12853_v45, 0.0 }
0x4d6c   :  { %10518 = vadd.xlane.f32.xlu0 %v10517_v48 }
0x4d82   :  { %10524 = vrot.lane.b32.xlu0 %v14430_v26, %s12965_s1  ;;  %v11412_v26 = vld [vmem:[%s14709_s11 + $0x30] sm:$0xff] }
0x4d86   :  { %10686 = vrot.lane.b32.xlu0 %v10262_v40, %s12952_s16 }
0x4df1   :  { %v10516_v61 = vpop.xlane.xlu0 %10515 }
0x4df2   :  { %12854 = vrcp.f32 %v10516_v61 }
0x4df5   :  { %v10519_v50 = vpop.xlane.xlu0 %10518 }
0x4df6   :  { %12856 = vrcp.f32 %v10519_v50 }
0x4df9   :  { %v10525_v21 = vpop.permute.xlu0 %10524 }
0x4dfa   :  { %12482 = vmatpush3.msra.mxu0 %v10525_v21 }
0x4dfb   :  { %12491 = vmatprep.subr.mxu0 %v11413_v1 }
0x4dfd   :  { %v10687_v11 = vpop.permute.xlu0 %10686 }
0x4dfe   :  { %v10702_v28 = vsel %vm1682_vm12, %v10700_v55, %v10687_v11 }
0x4dff   :  { %v12855_v41 = vpop.eup %12854 }
0x4e00   :  { %v10522_v51 = vmul.f32 %v12855_v41, %v12851_v46 }
0x4e02   :  { %12484 = vmatmul.mubr.msk.f32.vlgmr.msra.gmra.mxu0 %vm310_vm6, %v10522_v51 }
0x4e03   :  { %v12857_v43 = vpop.eup %12856  ;;  %12492 = vmatpush3.msra.mxu0 %v11413_v1 }
0x4e04   :  { %v10523_v35 = vmul.f32 %v12857_v43, %v12853_v45  ;;  %12493 = vmatprep.subr.mxu0 %v11412_v26 }
0x4e05   :  { %12494 = vmatpush3.msra.mxu0 %v11412_v26  ;;  %v11418_v26 = vld [vmem:[%s13133_s17 + $0x2] sm:$0x3]  ;;  %s12970_s17 = smov [#allocation5]  }
0x4e06   :  { %12489 = vmatmul.mubr.msk.f32.vlgmr.msra.gmra.mxu1 %vm310_vm6, %v10523_v35  ;;  %12495 = vmatprep.subr.mxu0 %v11411_v54  ;;  %s11116_s12 = sshll.u32 %s12970_s17, 4  ;;  %s11117_s12 = int_to_ptr.vmem [resolvable:$true] %s11116_s12 }
0x4e07   :  { %12496 = vmatpush3.msra.mxu0 %v11411_v54  ;;  %12503 = vmatpush3.msra.mxu1 %v11422_v52  ;;  %v10847_v54 = vrot.slane %v11418_v26, %v13165_v36  ;;  %p12899_p6 = scmp.lt.s32.totalorder %s11117_s12, %s11117_s12 }
0x4e08   :  { %12497 = vmatprep.subr.mxu0 %v11410_v30  ;;  %12504 = vmatprep.subr.mxu1 %v11421_v4 }
0x4e09   :  { %12498 = vmatpush3.msra.mxu0 %v11410_v30  ;;  %12505 = vmatpush3.msra.mxu1 %v11421_v4  ;;  %v10855_v30 = vrot.slane %v11418_v26, %v13169_v39 }
0x4e0a   :  { %12506 = vmatprep.subr.mxu1 %v11420_v27  ;;  %12513 = vmatprep.subr.mxu0 %v11434_v49 }
0x4e0b   :  { %12507 = vmatpush3.msra.mxu1 %v11420_v27 }
0x4e0c   :  { %12508 = vmatprep.subr.mxu1 %v11419_v32 }
0x4e0d   :  { %12509 = vmatpush3.msra.mxu1 %v11419_v32 }
0x4ec2   :  { %v10596_v0 = vpop.f32.mrf.mxu0 }
0x4ec3   :  { %10694 = vrot.lane.b32.xlu0 %v10596_v0, %s14714_s5 }
0x4ec4   :  { %v12485_v6 = vpop.f32.mrf.mxu0 }
0x4ec6   :  { %v10672_v18 = vpop.f32.mrf.mxu1 }
0x4ec7   :  { %10696 = vrot.lane.b32.xlu1 %v10672_v18, %s14714_s5 }
0x4ec8   :  { %v12490_v60 = vpop.f32.mrf.mxu1 }
0x4f35   :  { %v10695_v8 = vpop.permute.xlu0 %10694 }
0x4f36   :  { %v10704_v12 = vsel %vm1685_vm11, %v10702_v28, %v10695_v8  ;;  %v11429_v28 = vld [vmem:[%s14712_s19 + $0x50] sm:$0xff]  ;;  %v11428_v8 = vld [vmem:[%s14712_s19 + $0x48] sm:$0xff] }
0x4f37   :  { %12499 = vmatprep.mubr.msk.f32.mxu0 %vm160_vm0, %v10704_v12  ;;  %v11427_v12 = vld [vmem:[%s14712_s19 + $0x40] sm:$0xff] }
0x4f39   :  { %v10697_v20 = vpop.permute.xlu1 %10696 }
0x4f3a   :  { %v10705_v7 = vsel %vm1685_vm11, %v10703_v38, %v10697_v20 }
0x4f3b   :  { %12500 = vmatmul.mubr.msk.f32.vlgmr.msra.gmra.mxu0 %vm160_vm0, %v10705_v7 }
0x4f3c   :  { %12514 = vmatpush3.msra.mxu0 %v11434_v49 }
0x4f3d   :  { %12515 = vmatprep.subr.mxu0 %v11433_v2 }
0x4f3e   :  { %12516 = vmatpush3.msra.mxu0 %v11433_v2 }
0x4f3f   :  { %12517 = vmatprep.subr.mxu0 %v11432_v34 }
0x4f40   :  { %12518 = vmatpush3.msra.mxu0 %v11432_v34 }
0x4f41   :  { %12519 = vmatprep.subr.mxu0 %v11431_v42 }
0x4f42   :  { %12520 = vmatpush3.msra.mxu0 %v11431_v42 }
0x4f43   :  { %12521 = vmatprep.subr.mxu0 %v11430_v33 }
0x4f44   :  { %12522 = vmatpush3.msra.mxu0 %v11430_v33 }
0x4f45   :  { %12523 = vmatprep.subr.mxu0 %v11429_v28 }
0x4f46   :  { %12524 = vmatpush3.msra.mxu0 %v11429_v28 }
0x4f47   :  { %12525 = vmatprep.subr.mxu0 %v11428_v8 }
0x4f48   :  { %12526 = vmatpush3.msra.mxu0 %v11428_v8 }
0x4f49   :  { %12527 = vmatprep.subr.mxu0 %v11427_v12 }
0x4f4a   :  { %12528 = vmatpush3.msra.mxu0 %v11427_v12 }
0x4ffb   :  { %v12501_v22 = vpop.f32.mrf.mxu0 }
0x4ffc   :  { %v10793_v23 = vadd.f32 %v12501_v22, %v14401_v14 }
0x4ffd   :  { %v10783_v57 = vpop.f32.mrf.mxu0 }
0x4ffe   :  { %v14614_v17 = vadd.f32 %v11417_v10, %v10793_v23  ;;  %v10792_v59 = vadd.f32 %v10783_v57, %v14404_v56 }
0x5000   :  { %v14617_v13 = vadd.f32 %v11417_v10, %v10792_v59  ;;  %v10809_v58 = vsel %vm160_vm0, %v14614_v17, 0.0  ;;  %v11437_v59 = vld [vmem:[#allocation2 + $0x1] ss:$0 sm:$0xff] }
0x5001   :  { %10810 = vadd.xlane.f32.xlu1 %v10809_v58 }
0x5002   :  { %v10806_v40 = vsel %vm160_vm0, %v14617_v13, 0.0 }
0x5003   :  { %10807 = vadd.xlane.f32.xlu0 %v10806_v40 }
0x508a   :  { %v10811_v63 = vpop.xlane.xlu1 %10810 }
0x508b   :  { %v10813_v14 = vmul.f32 0.03125, %v10811_v63 }
0x508c   :  { %v10808_v15 = vpop.xlane.xlu0 %10807 }
0x508d   :  { %v10812_v62 = vmul.f32 0.03125, %v10808_v15  ;;  %v10815_v47 = vsub.f32 %v14614_v17, %v10813_v14 }
0x508f   :  { %v10814_v56 = vsub.f32 %v14617_v13, %v10812_v62  ;;  %v10817_v24 = vmul.f32 %v10815_v47, %v10815_v47  ;;  %v10849_v60 = vmul.f32 %v10847_v54, %v10815_v47 }
0x5091   :  { %v10816_v16 = vmul.f32 %v10814_v56, %v10814_v56  ;;  %v10821_v19 = vsel %vm160_vm0, %v10817_v24, 0.0  ;;  %v10848_v0 = vmul.f32 %v10847_v54, %v10814_v56 }
0x5093   :  { %v10818_v37 = vsel %vm160_vm0, %v10816_v16, 0.0 }
0x5094   :  { %10819 = vadd.xlane.f32.xlu0 %v10818_v37 }
0x5098   :  { %10822 = vadd.xlane.f32.xlu0 %v10821_v19 }
0x511d   :  { %v10820_v53 = vpop.xlane.xlu0 %10819 }
0x511e   :  { %v10824_v9 = vmul.f32 0.032258064, %v10820_v53 }
0x5120   :  { %12858 = vrsqrt.f32 %v10824_v9  ;;  %vm10828_vm5 = vcmp.eq.f32.partialorder %v10824_v9, inf  ;;  %v10831_v45 = vand.u32 2147483648, %v10824_v9  ;;  %vm10830_vm6 = vcmp.eq.f32.partialorder %v10824_v9, 0.0 }
0x5121   :  { %v10823_v44 = vpop.xlane.xlu0 %10822 }
0x5122   :  { %v10825_v5 = vmul.f32 0.032258064, %v10823_v44 }
0x5124   :  { %12860 = vrsqrt.f32 %v10825_v5  ;;  %vm10835_vm9 = vcmp.eq.f32.partialorder %v10825_v5, inf  ;;  %v10838_v51 = vand.u32 2147483648, %v10825_v5  ;;  %vm10837_vm10 = vcmp.eq.f32.partialorder %v10825_v5, 0.0 }
0x512d   :  { %v12859_v46 = vpop.eup %12858 }
0x512e   :  { %v10827_v25 = vmul.f32 %v12859_v46, %v10824_v9 }
0x5130   :  { %v10829_v48 = vsel %vm10828_vm5, %v10824_v9, %v10827_v25 }
0x5131   :  { %v12861_v61 = vpop.eup %12860  ;;  %v10832_v50 = vsel %vm10830_vm6, %v10831_v45, %v10829_v48 }
0x5132   :  { %v10840_v21 = vadd.f32 1e-06, %v10832_v50  ;;  %v10834_v41 = vmul.f32 %v12861_v61, %v10825_v5 }
0x5134   :  { %12862 = vrcp.f32 %v10840_v21  ;;  %v10836_v43 = vsel %vm10835_vm9, %v10825_v5, %v10834_v41  ;;  %v11056_v41 = vld [vmem:[%s13138_s20] sm:$0x3]  ;;  %s12894_s20 = scalar_lea.vmem %s11117_s12, 256 }
0x5135   :  { %v10839_v35 = vsel %vm10837_vm10, %v10838_v51, %v10836_v43  ;;  %v11098_v51 = vrot.slane %v11056_v41, %v13165_v36  ;;  %v11106_v43 = vrot.slane %v11056_v41, %v13169_v39  ;;  %p12895_p5 = scmp.ne.s32.totalorder %s11117_s12, %s12894_s20  ;;  %p12900_p7 = scmp.lt.s32.totalorder %s12894_s20, %s12894_s20 }
0x5136   :  { %v10841_v1 = vadd.f32 1e-06, %v10839_v35 }
0x5137   :  { %p12901_p8 = por %p12900_p7, %p12899_p6 }
0x5138   :  { %12864 = vrcp.f32 %v10841_v1 }
0x5139   :  { %p12902_p9 = pnand %p12901_p8, %p12895_p5 }
0x5141   :  { %v12863_v6 = vpop.eup %12862 }
0x5142   :  { %v10850_v18 = vmul.f32 %v12863_v6, %v10848_v0 }
0x5144   :  { %v10856_v3 = vadd.f32 %v10855_v30, %v10850_v18 }
0x5145   :  { %v12865_v29 = vpop.eup %12864 }
0x5146   :  { %12510 = vmatprep.mubr.msk.f32.mxu1 %vm160_vm0, %v10856_v3  ;;  %v10851_v11 = vmul.f32 %v12865_v29, %v10849_v60 }
0x5148   :  { %v10857_v55 = vadd.f32 %v10855_v30, %v10851_v11 }
0x514a   :  { %12511 = vmatmul.mubr.msk.f32.vlgmr.msra.gmra.mxu1 %vm160_vm0, %v10857_v55 }
0x520a   :  { %v12512_v38 = vpop.f32.mrf.mxu1 }
0x520b   :  { %v10949_v20 = vadd.f32 %v12512_v38, %v11424_v31 }
0x520c   :  { %v10943_v7 = vpop.f32.mrf.mxu1 }
0x520d   :  { %v10944_v22 = vadd.f32 %v11424_v31, %v10943_v7  ;;  %v10953_v23 = vmax.f32 %v10949_v20, 0.0 }
0x520f   :  { %v10952_v10 = vmax.f32 %v10944_v22, 0.0 }
0x5211   :  { %12529 = vmatprep.mubr.msk.f32.mxu0 %vm1939_vm2, %v10952_v10 }
0x5212   :  { %12530 = vmatmul.mubr.msk.f32.vlgmr.msra.gmra.mxu0 %vm1939_vm2, %v10953_v23 }
0x52d2   :  { %v12531_v57 = vpop.f32.mrf.mxu0 }
0x52d3   :  { %v11045_v58 = vadd.f32 %v12531_v57, %v14614_v17 }
0x52d4   :  { %v11035_v40 = vpop.f32.mrf.mxu0 }
0x52d5   :  { %v11055_v63 = vadd.f32 %v11437_v59, %v11045_v58  ;;  %v11044_v14 = vadd.f32 %v11035_v40, %v14617_v13 }
0x52d7   :  { %v11054_v15 = vadd.f32 %v11437_v59, %v11044_v14  ;;  %v11060_v62 = vsel %vm160_vm0, %v11055_v63, 0.0 }
0x52d8   :  { %11061 = vadd.xlane.f32.xlu1 %v11060_v62 }
0x52d9   :  { %v11057_v47 = vsel %vm160_vm0, %v11054_v15, 0.0 }
0x52da   :  { %11058 = vadd.xlane.f32.xlu0 %v11057_v47 }
0x5361   :  { %v11062_v56 = vpop.xlane.xlu1 %11061 }
0x5362   :  { %v11064_v16 = vmul.f32 0.03125, %v11062_v56 }
0x5363   :  { %v11059_v37 = vpop.xlane.xlu0 %11058 }
0x5364   :  { %v11066_v24 = vsub.f32 %v11055_v63, %v11064_v16  ;;  %v11063_v19 = vmul.f32 0.03125, %v11059_v37 }
0x5366   :  { %v11065_v52 = vsub.f32 %v11054_v15, %v11063_v19  ;;  %v11068_v4 = vmul.f32 %v11066_v24, %v11066_v24  ;;  %v11100_v35 = vmul.f32 %v11098_v51, %v11066_v24 }
0x5368   :  { %v11072_v17 = vsel %vm160_vm0, %v11068_v4, 0.0  ;;  %v11067_v27 = vmul.f32 %v11065_v52, %v11065_v52  ;;  %v11099_v54 = vmul.f32 %v11098_v51, %v11065_v52 }
0x5369   :  { %11073 = vadd.xlane.f32.xlu1 %v11072_v17 }
0x536a   :  { %v11069_v13 = vsel %vm160_vm0, %v11067_v27, 0.0 }
0x536b   :  { %11070 = vadd.xlane.f32.xlu0 %v11069_v13 }
0x53f2   :  { %v11074_v32 = vpop.xlane.xlu1 %11073 }
0x53f3   :  { %v11076_v49 = vmul.f32 0.032258064, %v11074_v32 }
0x53f4   :  { %v11071_v2 = vpop.xlane.xlu0 %11070 }
0x53f5   :  { %12866 = vrsqrt.f32 %v11076_v49  ;;  %v11075_v34 = vmul.f32 0.032258064, %v11071_v2  ;;  %vm11086_vm11 = vcmp.eq.f32.partialorder %v11076_v49, inf  ;;  %v11089_v9 = vand.u32 2147483648, %v11076_v49 }
0x53f6   :  { %vm11088_vm12 = vcmp.eq.f32.partialorder %v11076_v49, 0.0 }
0x53f7   :  { %12868 = vrsqrt.f32 %v11075_v34  ;;  %vm11079_vm2 = vcmp.eq.f32.partialorder %v11075_v34, inf  ;;  %v11082_v48 = vand.u32 2147483648, %v11075_v34  ;;  %vm11081_vm15 = vcmp.eq.f32.partialorder %v11075_v34, 0.0 }
0x5402   :  { %v12867_v42 = vpop.eup %12866 }
0x5403   :  { %v11085_v53 = vmul.f32 %v12867_v42, %v11076_v49 }
0x5404   :  { %v12869_v44 = vpop.eup %12868 }
0x5405   :  { %v11087_v5 = vsel %vm11086_vm11, %v11076_v49, %v11085_v53  ;;  %v11078_v25 = vmul.f32 %v12869_v44, %v11075_v34 }
0x5406   :  { %v11090_v46 = vsel %vm11088_vm12, %v11089_v9, %v11087_v5 }
0x5407   :  { %v11092_v45 = vadd.f32 1e-06, %v11090_v46  ;;  %v11080_v61 = vsel %vm11079_vm2, %v11075_v34, %v11078_v25 }
0x5408   :  { %v11083_v50 = vsel %vm11081_vm15, %v11082_v48, %v11080_v61 }
0x5409   :  { %12870 = vrcp.f32 %v11092_v45  ;;  %v11091_v21 = vadd.f32 1e-06, %v11083_v50 }
0x540b   :  { %12872 = vrcp.f32 %v11091_v21 }
0x5416   :  { %v12871_v1 = vpop.eup %12870 }
0x5417   :  { %v11102_v26 = vmul.f32 %v12871_v1, %v11100_v35 }
0x5418   :  { %v12873_v30 = vpop.eup %12872 }
0x5419   :  { %v11108_v0 = vadd.f32 %v11106_v43, %v11102_v26  ;;  %v11101_v6 = vmul.f32 %v12873_v30, %v11099_v54 }
0x541b   :  { %11110 = vst.msk [vmem:[#allocation5 + $0x8] sm:$0xff] %vm160_vm0, %v11108_v0  ;;  %v11107_v18 = vadd.f32 %v11106_v43, %v11101_v6 }
0x541d   :  { %11109 = vst.msk [vmem:[#allocation5] sm:$0xff] %vm160_vm0, %v11107_v18 }
0x541e   :  { %12905 = shalt.err (!%p12902_p9)
}
0x541f   :  { %s12971_s16 = smov 128  }
0x5420   :  { %11122 = dma.vmem_to_hbm [thread:$0]  %s11117_s12, 256, %s13143_s4, [#allocation4], %s12971_s16, %s12971_s16, %s12968_s10  }
0x5421   :  { %12916 = dma.done.wait [#allocation4], 256  }
0x5422   :  { %12917 = vsyncadd [#allocation4], 4294967040 }
0x5423   :  { %11126 = vsyncpa [#allocation3], 1 }
0x5424   :  { %11127 = vsyncpa [#allocation4], 1 }

</bundles_post_ra>
